<compile_context>
chip_gen: v7x
topology: tpu7x:2x2x1
jax: 0.10.0
libtpu: 0.0.40
codegen_flags: <defaults>
</compile_context>

<pallas_src>
import functools

import jax
import jax.numpy as jnp
from jax.experimental import pallas as pl
from jax.experimental.pallas import tpu as pltpu


# ---------------------------------------------------------------------------
# Kernel A: fused conv1 + conv2, one image per grid step
# ---------------------------------------------------------------------------
def _conv_stack_kernel(x_ref, w1_ref, b1_ref, w2_ref, b2_ref, out_ref, c1_ref):
    """x_ref  : [1,21,21,64]  space-to-depth(4) input, 64 = (c, dh, dw)
       w1_ref : [256,16] bf16, rows ordered (bh, bw, c, dh, dw), 1/255 folded in
       w2_ref : [256,32] bf16, rows ordered (kh, kw, c)
       out_ref: [1,84,32] bf16, rows = oh2*9 + ow2 (81 used + 3 zero-pad rows)
       c1_ref : [400,16] f32 VMEM scratch, rows = oh*20 + ow
    """
    # ---- conv1: 8x8 / stride 4  ==  2x2 / stride 1 over the s2d tensor -----
    for oh in range(20):
        parts = []
        for bh in (0, 1):
            for bw in (0, 1):
                parts.append(x_ref[0, oh + bh, pl.ds(bw, 20), :])    # [20, 64]
        lhs = jnp.concatenate(parts, axis=-1)                        # [20, 256]
        row = jnp.dot(lhs.astype(jnp.bfloat16), w1_ref[...],
                      preferred_element_type=jnp.float32) + b1_ref[...]
        c1_ref[pl.ds(oh * 20, 20), :] = jnp.maximum(row, 0.0)        # [20, 16]

    # zero the 3 padding rows (keeps the fc contraction K = 84*32 = 2688 = 21*128)
    out_ref[0, pl.ds(81, 3), :] = jnp.zeros((3, 32), out_ref.dtype)

    # ---- conv2: 4x4 / stride 2, patches via strided sublane loads ----------
    for oh2 in range(9):
        pieces = []
        for kh in range(4):
            base = (2 * oh2 + kh) * 20
            for kw in range(4):
                pieces.append(c1_ref[pl.ds(base + kw, 9, stride=2), :])  # [9,16]
        patch = jnp.concatenate(pieces, axis=-1)                     # [9, 256]
        crow = jnp.dot(patch.astype(jnp.bfloat16), w2_ref[...],
                       preferred_element_type=jnp.float32) + b2_ref[...]
        out_ref[0, pl.ds(oh2 * 9, 9), :] = (
            jnp.maximum(crow, 0.0).astype(out_ref.dtype))            # [9, 32]


def conv_stack(x_s2d, w1, b1, w2, b2):
    B = x_s2d.shape[0]
    return pl.pallas_call(
        _conv_stack_kernel,
        out_shape=jax.ShapeDtypeStruct((B, 84, 32), jnp.bfloat16),
        grid_spec=pltpu.PrefetchScalarGridSpec(
            num_scalar_prefetch=0,
            grid=(B,),
            in_specs=[
                pl.BlockSpec((1, 21, 21, 64), lambda b: (b, 0, 0, 0)),
                pl.BlockSpec((256, 16), lambda b: (0, 0)),   # weights resident
                pl.BlockSpec((1, 16), lambda b: (0, 0)),
                pl.BlockSpec((256, 32), lambda b: (0, 0)),
                pl.BlockSpec((1, 32), lambda b: (0, 0)),
            ],
            out_specs=pl.BlockSpec((1, 84, 32), lambda b: (b, 0, 0)),
            scratch_shapes=[pltpu.VMEM((400, 16), jnp.float32)],
        ),
        compiler_params=pltpu.CompilerParams(
            dimension_semantics=("parallel",)),
    )(x_s2d, w1, b1, w2, b2)


# ---------------------------------------------------------------------------
# Kernel B: fused fc + (policy | value) heads + softmax, tiled over batch rows
# ---------------------------------------------------------------------------
def _fc_heads_kernel(x_ref, wf_ref, bf_ref, wh_ref, bh_ref,
                     logits_ref, probs_ref, value_ref, *, nr_actions):
    h = jnp.dot(x_ref[...], wf_ref[...],
                preferred_element_type=jnp.float32) + bf_ref[...]
    h = jnp.maximum(h, 0.0)                                          # [tm, 256]
    z = jnp.dot(h.astype(jnp.bfloat16), wh_ref[...],
                preferred_element_type=jnp.float32) + bh_ref[...]    # [tm, A+1]
    logits = z[:, :nr_actions]
    m = jnp.max(logits, axis=-1, keepdims=True)
    e = jnp.exp(logits - m)
    probs = e / jnp.sum(e, axis=-1, keepdims=True)
    logits_ref[...] = logits
    probs_ref[...] = probs
    value_ref[...] = z[:, nr_actions:nr_actions + 1]


def fc_heads(flat, wf, bf, whd, bhd):
    B, K = flat.shape
    A = whd.shape[1] - 1
    tm = B if B <= 128 else 128
    kernel = functools.partial(_fc_heads_kernel, nr_actions=A)
    return pl.pallas_call(
        kernel,
        out_shape=(jax.ShapeDtypeStruct((B, A), jnp.float32),
                   jax.ShapeDtypeStruct((B, A), jnp.float32),
                   jax.ShapeDtypeStruct((B, 1), jnp.float32)),
        grid_spec=pltpu.PrefetchScalarGridSpec(
            num_scalar_prefetch=0,
            grid=(pl.cdiv(B, tm),),
            in_specs=[
                pl.BlockSpec((tm, K), lambda i: (i, 0)),
                pl.BlockSpec((K, 256), lambda i: (0, 0)),
                pl.BlockSpec((1, 256), lambda i: (0, 0)),
                pl.BlockSpec((256, A + 1), lambda i: (0, 0)),
                pl.BlockSpec((1, A + 1), lambda i: (0, 0)),
            ],
            out_specs=(
                pl.BlockSpec((tm, A), lambda i: (i, 0)),
                pl.BlockSpec((tm, A), lambda i: (i, 0)),
                pl.BlockSpec((tm, 1), lambda i: (i, 0)),
            ),
        ),
        compiler_params=pltpu.CompilerParams(
            dimension_semantics=("parallel",)),
    )(flat, wf, bf, whd, bhd)


# ---------------------------------------------------------------------------
# Parameters: generate torch-layout tensors, repack once into kernel layouts
# ---------------------------------------------------------------------------
def make_params(key, nr_actions, input_size=4):
    assert input_size == 4, "kernel assumes the 4-frame Atari stack"
    ks = jax.random.split(key, 10)
    s = 0.05
    A = nr_actions

    # torch-layout tensors (what the nn.Module would hold)
    w1_t = jax.random.normal(ks[0], (16, input_size, 8, 8), jnp.float32) * s
    b1_t = jax.random.normal(ks[1], (16,), jnp.float32) * s
    w2_t = jax.random.normal(ks[2], (32, 16, 4, 4), jnp.float32) * s
    b2_t = jax.random.normal(ks[3], (32,), jnp.float32) * s
    wf_t = jax.random.normal(ks[4], (256, 2592), jnp.float32) * s    # [out, in]
    bf_t = jax.random.normal(ks[5], (256,), jnp.float32) * s
    wp_t = jax.random.normal(ks[6], (A, 256), jnp.float32) * s
    bp_t = jax.random.normal(ks[7], (A,), jnp.float32) * s
    wv_t = jax.random.normal(ks[8], (1, 256), jnp.float32) * s
    bv_t = jax.random.normal(ks[9], (1,), jnp.float32) * s
    torch_params = dict(w1=w1_t, b1=b1_t, w2=w2_t, b2=b2_t, wf=wf_t, bf=bf_t,
                        wp=wp_t, bp=bp_t, wv=wv_t, bv=bv_t)

    # --- one-time repack (all transposes / scaling happen here, not per step)
    # conv1: fold 1/255, rows ordered (bh, bw, c, dh, dw) with kh = 4*bh + dh
    w1 = (w1_t / 255.0).reshape(16, 4, 2, 4, 2, 4)        # (o, c, bh, dh, bw, dw)
    w1 = w1.transpose(2, 4, 1, 3, 5, 0).reshape(256, 16)
    # conv2: rows ordered (kh, kw, c)
    w2 = w2_t.transpose(2, 3, 1, 0).reshape(256, 32)
    # fc: torch flatten order (c, oh2, ow2) -> kernel flatten (oh2*9+ow2, c),
    #     then zero-pad K from 2592 to 2688 = 21*128 (lane-dense contraction)
    wf = wf_t.reshape(256, 32, 9, 9).transpose(2, 3, 1, 0).reshape(2592, 256)
    wf = jnp.concatenate([wf, jnp.zeros((96, 256), jnp.float32)], axis=0)
    # heads packed into one (256, A+1) matmul, value = last column
    whd = jnp.concatenate([wp_t.T, wv_t.T], axis=1)
    bhd = jnp.concatenate([bp_t, bv_t]).reshape(1, A + 1)

    params = dict(
        w1=w1.astype(jnp.bfloat16), b1=b1_t.reshape(1, 16),
        w2=w2.astype(jnp.bfloat16), b2=b2_t.reshape(1, 32),
        wf=wf.astype(jnp.bfloat16), bf=bf_t.reshape(1, 256),
        whd=whd.astype(jnp.bfloat16), bhd=bhd,
    )
    return params, torch_params


# ---------------------------------------------------------------------------
# Forward pass (matches A3cCNNPolicy.forward)
# ---------------------------------------------------------------------------
@jax.jit
def a3c_cnn_policy_forward(x, params):
    B = x.shape[0]
    # pure layout glue: space-to-depth(4) of the NCHW input -> [B,21,21,64]
    # (channel order (c, dh, dw)).  Replaces runtime im2col / NCHW<->NHWC
    # transposes; the x/255 scaling is folded into w1.
    xs = x.reshape(B, 4, 21, 4, 21, 4).transpose(0, 2, 4, 1, 3, 5)
    xs = xs.reshape(B, 21, 21, 64)

    c2 = conv_stack(xs, params["w1"], params["b1"],
                    params["w2"], params["b2"])          # [B, 84, 32] bf16
    flat = c2.reshape(B, 84 * 32)                        # lane-dense, K = 2688

    return fc_heads(flat, params["wf"], params["bf"],
                    params["whd"], params["bhd"])


# ---------------------------------------------------------------------------
# Pure-JAX f32 reference (validation only)
# ---------------------------------------------------------------------------
def _reference_forward(x, tp):
    def conv(h, w, b, stride):
        y = jax.lax.conv_general_dilated(
            h, w, window_strides=(stride, stride), padding="VALID",
            dimension_numbers=("NCHW", "OIHW", "NCHW"))
        return y + b[None, :, None, None]

    h = jax.nn.relu(conv(x / 255.0, tp["w1"], tp["b1"], 4))
    h = jax.nn.relu(conv(h, tp["w2"], tp["b2"], 2))
    h = h.reshape(h.shape[0], -1)
    h = jax.nn.relu(h @ tp["wf"].T + tp["bf"])
    logits = h @ tp["wp"].T + tp["bp"]
    value = h @ tp["wv"].T + tp["bv"]
    return logits, jax.nn.softmax(logits, axis=-1), value


if __name__ == "__main__":
    nr_actions = 6
    B = 2
    key = jax.random.PRNGKey(0)
    k_x, k_p = jax.random.split(key)

    # Atari-style frames: 4 stacked 84x84 planes, values in [0, 255]
    # (84x84 is forced by the module: fc expects 2592 = 32*9*9 features)
    x = jax.random.uniform(k_x, (B, 4, 84, 84), jnp.float32, 0.0, 255.0)
    params, torch_params = make_params(k_p, nr_actions)

    logits, probs, value = a3c_cnn_policy_forward(x, params)
    jax.block_until_ready((logits, probs, value))

    assert logits.shape == (B, nr_actions)
    assert probs.shape == (B, nr_actions)
    assert value.shape == (B, 1)
    assert jnp.allclose(jnp.sum(probs, axis=-1), 1.0, atol=1e-5)

    # cross-check against a pure-JAX f32 reference (tolerance for bf16 matmuls)
    rl, rp, rv = _reference_forward(x, torch_params)
    assert jnp.allclose(logits, rl, atol=3e-2, rtol=3e-2)
    assert jnp.allclose(probs, rp, atol=1e-2)
    assert jnp.allclose(value, rv, atol=3e-2, rtol=3e-2)

    print("KERNEL_OK")
</pallas_src>

<mosaic_0001>
module attributes {stable_mosaic.version = 11 : i64} {
  func.func @_conv_stack_kernel(%arg0: i32, %arg1: memref<1x21x21x64xf32, #tpu.memory_space<vmem>>, %arg2: memref<256x16xbf16, #tpu.memory_space<vmem>>, %arg3: memref<1x16xf32, #tpu.memory_space<vmem>>, %arg4: memref<256x32xbf16, #tpu.memory_space<vmem>>, %arg5: memref<1x32xf32, #tpu.memory_space<vmem>>, %arg6: memref<1x84x32xbf16, #tpu.memory_space<vmem>>, %arg7: memref<400x16xf32, #tpu.memory_space<vmem>>) attributes {dimension_semantics = [#tpu.dimension_semantics<parallel>], iteration_bounds = array<i64: 2>, scalar_prefetch = 0 : i64, scratch_operands = 1 : i64, tpu.core_type = #tpu.core_type<tc>, window_params = [{transform_indices = @transform_0, window_bounds = array<i64: 1, 21, 21, 64>}, {pipeline_mode = #tpu.pipeline_mode<synchronous>, transform_indices = @transform_1, window_bounds = array<i64: 256, 16>}, {pipeline_mode = #tpu.pipeline_mode<synchronous>, transform_indices = @transform_2, window_bounds = array<i64: 1, 16>}, {pipeline_mode = #tpu.pipeline_mode<synchronous>, transform_indices = @transform_3, window_bounds = array<i64: 256, 32>}, {pipeline_mode = #tpu.pipeline_mode<synchronous>, transform_indices = @transform_4, window_bounds = array<i64: 1, 32>}, {transform_indices = @transform_5, window_bounds = array<i64: 1, 84, 32>}]} {
    %c0 = arith.constant 0 : index
    %c0_0 = arith.constant 0 : index
    %c0_1 = arith.constant 0 : index
    %c0_2 = arith.constant 0 : index
    %0 = vector.load %arg1[%c0, %c0_0, %c0_1, %c0_2] : memref<1x21x21x64xf32, #tpu.memory_space<vmem>>, vector<1x1x20x64xf32>
    %1 = vector.shape_cast %0 : vector<1x1x20x64xf32> to vector<20x64xf32>
    %c0_3 = arith.constant 0 : index
    %c0_4 = arith.constant 0 : index
    %c1 = arith.constant 1 : index
    %c0_5 = arith.constant 0 : index
    %2 = vector.load %arg1[%c0_3, %c0_4, %c1, %c0_5] : memref<1x21x21x64xf32, #tpu.memory_space<vmem>>, vector<1x1x20x64xf32>
    %3 = vector.shape_cast %2 : vector<1x1x20x64xf32> to vector<20x64xf32>
    %c0_6 = arith.constant 0 : index
    %c1_7 = arith.constant 1 : index
    %c0_8 = arith.constant 0 : index
    %c0_9 = arith.constant 0 : index
    %4 = vector.load %arg1[%c0_6, %c1_7, %c0_8, %c0_9] : memref<1x21x21x64xf32, #tpu.memory_space<vmem>>, vector<1x1x20x64xf32>
    %5 = vector.shape_cast %4 : vector<1x1x20x64xf32> to vector<20x64xf32>
    %c0_10 = arith.constant 0 : index
    %c1_11 = arith.constant 1 : index
    %c1_12 = arith.constant 1 : index
    %c0_13 = arith.constant 0 : index
    %6 = vector.load %arg1[%c0_10, %c1_11, %c1_12, %c0_13] : memref<1x21x21x64xf32, #tpu.memory_space<vmem>>, vector<1x1x20x64xf32>
    %7 = vector.shape_cast %6 : vector<1x1x20x64xf32> to vector<20x64xf32>
    %8 = tpu.concatenate %1, %3, %5, %7 in 1 : vector<20x64xf32>, vector<20x64xf32>, vector<20x64xf32>, vector<20x64xf32> -> vector<20x256xf32>
    %9 = arith.truncf %8 : vector<20x256xf32> to vector<20x256xbf16>
    %c0_14 = arith.constant 0 : index
    %c0_15 = arith.constant 0 : index
    %10 = vector.load %arg2[%c0_14, %c0_15] : memref<256x16xbf16, #tpu.memory_space<vmem>>, vector<256x16xbf16>
    %cst = arith.constant dense<0.000000e+00> : vector<20x16xf32>
    %11 = tpu.matmul %9, %10, %cst {dimension_numbers = #tpu.dot_dimension_numbers<[1], [0], [0], [1], [0, 0, 1, 1], [], []>} : vector<20x256xbf16>, vector<256x16xbf16>, vector<20x16xf32> -> vector<20x16xf32>
    %c0_16 = arith.constant 0 : index
    %c0_17 = arith.constant 0 : index
    %12 = vector.load %arg3[%c0_16, %c0_17] : memref<1x16xf32, #tpu.memory_space<vmem>>, vector<1x16xf32>
    %13 = vector.broadcast %12 : vector<1x16xf32> to vector<20x16xf32>
    %14 = arith.addf %11, %13 : vector<20x16xf32>
    %cst_18 = arith.constant 0.000000e+00 : f32
    %15 = vector.broadcast %cst_18 : f32 to vector<20x16xf32>
    %16 = arith.maximumf %14, %15 : vector<20x16xf32>
    %c0_19 = arith.constant 0 : index
    %c0_20 = arith.constant 0 : index
    %17 = vector.load %arg7[%c0_19, %c0_20] : memref<400x16xf32, #tpu.memory_space<vmem>>, vector<20x16xf32>
    tpu.vector_store %arg7[%c0_19, %c0_20], %16 {strides = array<i32>} : memref<400x16xf32, #tpu.memory_space<vmem>>, vector<20x16xf32>,
    %c0_21 = arith.constant 0 : index
    %c1_22 = arith.constant 1 : index
    %c0_23 = arith.constant 0 : index
    %c0_24 = arith.constant 0 : index
    %18 = vector.load %arg1[%c0_21, %c1_22, %c0_23, %c0_24] : memref<1x21x21x64xf32, #tpu.memory_space<vmem>>, vector<1x1x20x64xf32>
    %19 = vector.shape_cast %18 : vector<1x1x20x64xf32> to vector<20x64xf32>
    %c0_25 = arith.constant 0 : index
    %c1_26 = arith.constant 1 : index
    %c1_27 = arith.constant 1 : index
    %c0_28 = arith.constant 0 : index
    %20 = vector.load %arg1[%c0_25, %c1_26, %c1_27, %c0_28] : memref<1x21x21x64xf32, #tpu.memory_space<vmem>>, vector<1x1x20x64xf32>
    %21 = vector.shape_cast %20 : vector<1x1x20x64xf32> to vector<20x64xf32>
    %c0_29 = arith.constant 0 : index
    %c2 = arith.constant 2 : index
    %c0_30 = arith.constant 0 : index
    %c0_31 = arith.constant 0 : index
    %22 = vector.load %arg1[%c0_29, %c2, %c0_30, %c0_31] : memref<1x21x21x64xf32, #tpu.memory_space<vmem>>, vector<1x1x20x64xf32>
    %23 = vector.shape_cast %22 : vector<1x1x20x64xf32> to vector<20x64xf32>
    %c0_32 = arith.constant 0 : index
    %c2_33 = arith.constant 2 : index
    %c1_34 = arith.constant 1 : index
    %c0_35 = arith.constant 0 : index
    %24 = vector.load %arg1[%c0_32, %c2_33, %c1_34, %c0_35] : memref<1x21x21x64xf32, #tpu.memory_space<vmem>>, vector<1x1x20x64xf32>
    %25 = vector.shape_cast %24 : vector<1x1x20x64xf32> to vector<20x64xf32>
    %26 = tpu.concatenate %19, %21, %23, %25 in 1 : vector<20x64xf32>, vector<20x64xf32>, vector<20x64xf32>, vector<20x64xf32> -> vector<20x256xf32>
    %27 = arith.truncf %26 : vector<20x256xf32> to vector<20x256xbf16>
    %c0_36 = arith.constant 0 : index
    %c0_37 = arith.constant 0 : index
    %28 = vector.load %arg2[%c0_36, %c0_37] : memref<256x16xbf16, #tpu.memory_space<vmem>>, vector<256x16xbf16>
    %cst_38 = arith.constant dense<0.000000e+00> : vector<20x16xf32>
    %29 = tpu.matmul %27, %28, %cst_38 {dimension_numbers = #tpu.dot_dimension_numbers<[1], [0], [0], [1], [0, 0, 1, 1], [], []>} : vector<20x256xbf16>, vector<256x16xbf16>, vector<20x16xf32> -> vector<20x16xf32>
    %c0_39 = arith.constant 0 : index
    %c0_40 = arith.constant 0 : index
    %30 = vector.load %arg3[%c0_39, %c0_40] : memref<1x16xf32, #tpu.memory_space<vmem>>, vector<1x16xf32>
    %31 = vector.broadcast %30 : vector<1x16xf32> to vector<20x16xf32>
    %32 = arith.addf %29, %31 : vector<20x16xf32>
    %cst_41 = arith.constant 0.000000e+00 : f32
    %33 = vector.broadcast %cst_41 : f32 to vector<20x16xf32>
    %34 = arith.maximumf %32, %33 : vector<20x16xf32>
    %c20 = arith.constant 20 : index
    %c0_42 = arith.constant 0 : index
    %35 = vector.load %arg7[%c20, %c0_42] : memref<400x16xf32, #tpu.memory_space<vmem>>, vector<20x16xf32>
    tpu.vector_store %arg7[%c20, %c0_42], %34 {strides = array<i32>} : memref<400x16xf32, #tpu.memory_space<vmem>>, vector<20x16xf32>,
    %c0_43 = arith.constant 0 : index
    %c2_44 = arith.constant 2 : index
    %c0_45 = arith.constant 0 : index
    %c0_46 = arith.constant 0 : index
    %36 = vector.load %arg1[%c0_43, %c2_44, %c0_45, %c0_46] : memref<1x21x21x64xf32, #tpu.memory_space<vmem>>, vector<1x1x20x64xf32>
    %37 = vector.shape_cast %36 : vector<1x1x20x64xf32> to vector<20x64xf32>
    %c0_47 = arith.constant 0 : index
    %c2_48 = arith.constant 2 : index
    %c1_49 = arith.constant 1 : index
    %c0_50 = arith.constant 0 : index
    %38 = vector.load %arg1[%c0_47, %c2_48, %c1_49, %c0_50] : memref<1x21x21x64xf32, #tpu.memory_space<vmem>>, vector<1x1x20x64xf32>
    %39 = vector.shape_cast %38 : vector<1x1x20x64xf32> to vector<20x64xf32>
    %c0_51 = arith.constant 0 : index
    %c3 = arith.constant 3 : index
    %c0_52 = arith.constant 0 : index
    %c0_53 = arith.constant 0 : index
    %40 = vector.load %arg1[%c0_51, %c3, %c0_52, %c0_53] : memref<1x21x21x64xf32, #tpu.memory_space<vmem>>, vector<1x1x20x64xf32>
    %41 = vector.shape_cast %40 : vector<1x1x20x64xf32> to vector<20x64xf32>
    %c0_54 = arith.constant 0 : index
    %c3_55 = arith.constant 3 : index
    %c1_56 = arith.constant 1 : index
    %c0_57 = arith.constant 0 : index
    %42 = vector.load %arg1[%c0_54, %c3_55, %c1_56, %c0_57] : memref<1x21x21x64xf32, #tpu.memory_space<vmem>>, vector<1x1x20x64xf32>
    %43 = vector.shape_cast %42 : vector<1x1x20x64xf32> to vector<20x64xf32>
    %44 = tpu.concatenate %37, %39, %41, %43 in 1 : vector<20x64xf32>, vector<20x64xf32>, vector<20x64xf32>, vector<20x64xf32> -> vector<20x256xf32>
    %45 = arith.truncf %44 : vector<20x256xf32> to vector<20x256xbf16>
    %c0_58 = arith.constant 0 : index
    %c0_59 = arith.constant 0 : index
    %46 = vector.load %arg2[%c0_58, %c0_59] : memref<256x16xbf16, #tpu.memory_space<vmem>>, vector<256x16xbf16>
    %cst_60 = arith.constant dense<0.000000e+00> : vector<20x16xf32>
    %47 = tpu.matmul %45, %46, %cst_60 {dimension_numbers = #tpu.dot_dimension_numbers<[1], [0], [0], [1], [0, 0, 1, 1], [], []>} : vector<20x256xbf16>, vector<256x16xbf16>, vector<20x16xf32> -> vector<20x16xf32>
    %c0_61 = arith.constant 0 : index
    %c0_62 = arith.constant 0 : index
    %48 = vector.load %arg3[%c0_61, %c0_62] : memref<1x16xf32, #tpu.memory_space<vmem>>, vector<1x16xf32>
    %49 = vector.broadcast %48 : vector<1x16xf32> to vector<20x16xf32>
    %50 = arith.addf %47, %49 : vector<20x16xf32>
    %cst_63 = arith.constant 0.000000e+00 : f32
    %51 = vector.broadcast %cst_63 : f32 to vector<20x16xf32>
    %52 = arith.maximumf %50, %51 : vector<20x16xf32>
    %c40 = arith.constant 40 : index
    %c0_64 = arith.constant 0 : index
    %53 = vector.load %arg7[%c40, %c0_64] : memref<400x16xf32, #tpu.memory_space<vmem>>, vector<20x16xf32>
    tpu.vector_store %arg7[%c40, %c0_64], %52 {strides = array<i32>} : memref<400x16xf32, #tpu.memory_space<vmem>>, vector<20x16xf32>,
    %c0_65 = arith.constant 0 : index
    %c3_66 = arith.constant 3 : index
    %c0_67 = arith.constant 0 : index
    %c0_68 = arith.constant 0 : index
    %54 = vector.load %arg1[%c0_65, %c3_66, %c0_67, %c0_68] : memref<1x21x21x64xf32, #tpu.memory_space<vmem>>, vector<1x1x20x64xf32>
    %55 = vector.shape_cast %54 : vector<1x1x20x64xf32> to vector<20x64xf32>
    %c0_69 = arith.constant 0 : index
    %c3_70 = arith.constant 3 : index
    %c1_71 = arith.constant 1 : index
    %c0_72 = arith.constant 0 : index
    %56 = vector.load %arg1[%c0_69, %c3_70, %c1_71, %c0_72] : memref<1x21x21x64xf32, #tpu.memory_space<vmem>>, vector<1x1x20x64xf32>
    %57 = vector.shape_cast %56 : vector<1x1x20x64xf32> to vector<20x64xf32>
    %c0_73 = arith.constant 0 : index
    %c4 = arith.constant 4 : index
    %c0_74 = arith.constant 0 : index
    %c0_75 = arith.constant 0 : index
    %58 = vector.load %arg1[%c0_73, %c4, %c0_74, %c0_75] : memref<1x21x21x64xf32, #tpu.memory_space<vmem>>, vector<1x1x20x64xf32>
    %59 = vector.shape_cast %58 : vector<1x1x20x64xf32> to vector<20x64xf32>
    %c0_76 = arith.constant 0 : index
    %c4_77 = arith.constant 4 : index
    %c1_78 = arith.constant 1 : index
    %c0_79 = arith.constant 0 : index
    %60 = vector.load %arg1[%c0_76, %c4_77, %c1_78, %c0_79] : memref<1x21x21x64xf32, #tpu.memory_space<vmem>>, vector<1x1x20x64xf32>
    %61 = vector.shape_cast %60 : vector<1x1x20x64xf32> to vector<20x64xf32>
    %62 = tpu.concatenate %55, %57, %59, %61 in 1 : vector<20x64xf32>, vector<20x64xf32>, vector<20x64xf32>, vector<20x64xf32> -> vector<20x256xf32>
    %63 = arith.truncf %62 : vector<20x256xf32> to vector<20x256xbf16>
    %c0_80 = arith.constant 0 : index
    %c0_81 = arith.constant 0 : index
    %64 = vector.load %arg2[%c0_80, %c0_81] : memref<256x16xbf16, #tpu.memory_space<vmem>>, vector<256x16xbf16>
    %cst_82 = arith.constant dense<0.000000e+00> : vector<20x16xf32>
    %65 = tpu.matmul %63, %64, %cst_82 {dimension_numbers = #tpu.dot_dimension_numbers<[1], [0], [0], [1], [0, 0, 1, 1], [], []>} : vector<20x256xbf16>, vector<256x16xbf16>, vector<20x16xf32> -> vector<20x16xf32>
    %c0_83 = arith.constant 0 : index
    %c0_84 = arith.constant 0 : index
    %66 = vector.load %arg3[%c0_83, %c0_84] : memref<1x16xf32, #tpu.memory_space<vmem>>, vector<1x16xf32>
    %67 = vector.broadcast %66 : vector<1x16xf32> to vector<20x16xf32>
    %68 = arith.addf %65, %67 : vector<20x16xf32>
    %cst_85 = arith.constant 0.000000e+00 : f32
    %69 = vector.broadcast %cst_85 : f32 to vector<20x16xf32>
    %70 = arith.maximumf %68, %69 : vector<20x16xf32>
    %c60 = arith.constant 60 : index
    %c0_86 = arith.constant 0 : index
    %71 = vector.load %arg7[%c60, %c0_86] : memref<400x16xf32, #tpu.memory_space<vmem>>, vector<20x16xf32>
    tpu.vector_store %arg7[%c60, %c0_86], %70 {strides = array<i32>} : memref<400x16xf32, #tpu.memory_space<vmem>>, vector<20x16xf32>,
    %c0_87 = arith.constant 0 : index
    %c4_88 = arith.constant 4 : index
    %c0_89 = arith.constant 0 : index
    %c0_90 = arith.constant 0 : index
    %72 = vector.load %arg1[%c0_87, %c4_88, %c0_89, %c0_90] : memref<1x21x21x64xf32, #tpu.memory_space<vmem>>, vector<1x1x20x64xf32>
    %73 = vector.shape_cast %72 : vector<1x1x20x64xf32> to vector<20x64xf32>
    %c0_91 = arith.constant 0 : index
    %c4_92 = arith.constant 4 : index
    %c1_93 = arith.constant 1 : index
    %c0_94 = arith.constant 0 : index
    %74 = vector.load %arg1[%c0_91, %c4_92, %c1_93, %c0_94] : memref<1x21x21x64xf32, #tpu.memory_space<vmem>>, vector<1x1x20x64xf32>
    %75 = vector.shape_cast %74 : vector<1x1x20x64xf32> to vector<20x64xf32>
    %c0_95 = arith.constant 0 : index
    %c5 = arith.constant 5 : index
    %c0_96 = arith.constant 0 : index
    %c0_97 = arith.constant 0 : index
    %76 = vector.load %arg1[%c0_95, %c5, %c0_96, %c0_97] : memref<1x21x21x64xf32, #tpu.memory_space<vmem>>, vector<1x1x20x64xf32>
    %77 = vector.shape_cast %76 : vector<1x1x20x64xf32> to vector<20x64xf32>
    %c0_98 = arith.constant 0 : index
    %c5_99 = arith.constant 5 : index
    %c1_100 = arith.constant 1 : index
    %c0_101 = arith.constant 0 : index
    %78 = vector.load %arg1[%c0_98, %c5_99, %c1_100, %c0_101] : memref<1x21x21x64xf32, #tpu.memory_space<vmem>>, vector<1x1x20x64xf32>
    %79 = vector.shape_cast %78 : vector<1x1x20x64xf32> to vector<20x64xf32>
    %80 = tpu.concatenate %73, %75, %77, %79 in 1 : vector<20x64xf32>, vector<20x64xf32>, vector<20x64xf32>, vector<20x64xf32> -> vector<20x256xf32>
    %81 = arith.truncf %80 : vector<20x256xf32> to vector<20x256xbf16>
    %c0_102 = arith.constant 0 : index
    %c0_103 = arith.constant 0 : index
    %82 = vector.load %arg2[%c0_102, %c0_103] : memref<256x16xbf16, #tpu.memory_space<vmem>>, vector<256x16xbf16>
    %cst_104 = arith.constant dense<0.000000e+00> : vector<20x16xf32>
    %83 = tpu.matmul %81, %82, %cst_104 {dimension_numbers = #tpu.dot_dimension_numbers<[1], [0], [0], [1], [0, 0, 1, 1], [], []>} : vector<20x256xbf16>, vector<256x16xbf16>, vector<20x16xf32> -> vector<20x16xf32>
    %c0_105 = arith.constant 0 : index
    %c0_106 = arith.constant 0 : index
    %84 = vector.load %arg3[%c0_105, %c0_106] : memref<1x16xf32, #tpu.memory_space<vmem>>, vector<1x16xf32>
    %85 = vector.broadcast %84 : vector<1x16xf32> to vector<20x16xf32>
    %86 = arith.addf %83, %85 : vector<20x16xf32>
    %cst_107 = arith.constant 0.000000e+00 : f32
    %87 = vector.broadcast %cst_107 : f32 to vector<20x16xf32>
    %88 = arith.maximumf %86, %87 : vector<20x16xf32>
    %c80 = arith.constant 80 : index
    %c0_108 = arith.constant 0 : index
    %89 = vector.load %arg7[%c80, %c0_108] : memref<400x16xf32, #tpu.memory_space<vmem>>, vector<20x16xf32>
    tpu.vector_store %arg7[%c80, %c0_108], %88 {strides = array<i32>} : memref<400x16xf32, #tpu.memory_space<vmem>>, vector<20x16xf32>,
    %c0_109 = arith.constant 0 : index
    %c5_110 = arith.constant 5 : index
    %c0_111 = arith.constant 0 : index
    %c0_112 = arith.constant 0 : index
    %90 = vector.load %arg1[%c0_109, %c5_110, %c0_111, %c0_112] : memref<1x21x21x64xf32, #tpu.memory_space<vmem>>, vector<1x1x20x64xf32>
    %91 = vector.shape_cast %90 : vector<1x1x20x64xf32> to vector<20x64xf32>
    %c0_113 = arith.constant 0 : index
    %c5_114 = arith.constant 5 : index
    %c1_115 = arith.constant 1 : index
    %c0_116 = arith.constant 0 : index
    %92 = vector.load %arg1[%c0_113, %c5_114, %c1_115, %c0_116] : memref<1x21x21x64xf32, #tpu.memory_space<vmem>>, vector<1x1x20x64xf32>
    %93 = vector.shape_cast %92 : vector<1x1x20x64xf32> to vector<20x64xf32>
    %c0_117 = arith.constant 0 : index
    %c6 = arith.constant 6 : index
    %c0_118 = arith.constant 0 : index
    %c0_119 = arith.constant 0 : index
    %94 = vector.load %arg1[%c0_117, %c6, %c0_118, %c0_119] : memref<1x21x21x64xf32, #tpu.memory_space<vmem>>, vector<1x1x20x64xf32>
    %95 = vector.shape_cast %94 : vector<1x1x20x64xf32> to vector<20x64xf32>
    %c0_120 = arith.constant 0 : index
    %c6_121 = arith.constant 6 : index
    %c1_122 = arith.constant 1 : index
    %c0_123 = arith.constant 0 : index
    %96 = vector.load %arg1[%c0_120, %c6_121, %c1_122, %c0_123] : memref<1x21x21x64xf32, #tpu.memory_space<vmem>>, vector<1x1x20x64xf32>
    %97 = vector.shape_cast %96 : vector<1x1x20x64xf32> to vector<20x64xf32>
    %98 = tpu.concatenate %91, %93, %95, %97 in 1 : vector<20x64xf32>, vector<20x64xf32>, vector<20x64xf32>, vector<20x64xf32> -> vector<20x256xf32>
    %99 = arith.truncf %98 : vector<20x256xf32> to vector<20x256xbf16>
    %c0_124 = arith.constant 0 : index
    %c0_125 = arith.constant 0 : index
    %100 = vector.load %arg2[%c0_124, %c0_125] : memref<256x16xbf16, #tpu.memory_space<vmem>>, vector<256x16xbf16>
    %cst_126 = arith.constant dense<0.000000e+00> : vector<20x16xf32>
    %101 = tpu.matmul %99, %100, %cst_126 {dimension_numbers = #tpu.dot_dimension_numbers<[1], [0], [0], [1], [0, 0, 1, 1], [], []>} : vector<20x256xbf16>, vector<256x16xbf16>, vector<20x16xf32> -> vector<20x16xf32>
    %c0_127 = arith.constant 0 : index
    %c0_128 = arith.constant 0 : index
    %102 = vector.load %arg3[%c0_127, %c0_128] : memref<1x16xf32, #tpu.memory_space<vmem>>, vector<1x16xf32>
    %103 = vector.broadcast %102 : vector<1x16xf32> to vector<20x16xf32>
    %104 = arith.addf %101, %103 : vector<20x16xf32>
    %cst_129 = arith.constant 0.000000e+00 : f32
    %105 = vector.broadcast %cst_129 : f32 to vector<20x16xf32>
    %106 = arith.maximumf %104, %105 : vector<20x16xf32>
    %c100 = arith.constant 100 : index
    %c0_130 = arith.constant 0 : index
    %107 = vector.load %arg7[%c100, %c0_130] : memref<400x16xf32, #tpu.memory_space<vmem>>, vector<20x16xf32>
    tpu.vector_store %arg7[%c100, %c0_130], %106 {strides = array<i32>} : memref<400x16xf32, #tpu.memory_space<vmem>>, vector<20x16xf32>,
    %c0_131 = arith.constant 0 : index
    %c6_132 = arith.constant 6 : index
    %c0_133 = arith.constant 0 : index
    %c0_134 = arith.constant 0 : index
    %108 = vector.load %arg1[%c0_131, %c6_132, %c0_133, %c0_134] : memref<1x21x21x64xf32, #tpu.memory_space<vmem>>, vector<1x1x20x64xf32>
    %109 = vector.shape_cast %108 : vector<1x1x20x64xf32> to vector<20x64xf32>
    %c0_135 = arith.constant 0 : index
    %c6_136 = arith.constant 6 : index
    %c1_137 = arith.constant 1 : index
    %c0_138 = arith.constant 0 : index
    %110 = vector.load %arg1[%c0_135, %c6_136, %c1_137, %c0_138] : memref<1x21x21x64xf32, #tpu.memory_space<vmem>>, vector<1x1x20x64xf32>
    %111 = vector.shape_cast %110 : vector<1x1x20x64xf32> to vector<20x64xf32>
    %c0_139 = arith.constant 0 : index
    %c7 = arith.constant 7 : index
    %c0_140 = arith.constant 0 : index
    %c0_141 = arith.constant 0 : index
    %112 = vector.load %arg1[%c0_139, %c7, %c0_140, %c0_141] : memref<1x21x21x64xf32, #tpu.memory_space<vmem>>, vector<1x1x20x64xf32>
    %113 = vector.shape_cast %112 : vector<1x1x20x64xf32> to vector<20x64xf32>
    %c0_142 = arith.constant 0 : index
    %c7_143 = arith.constant 7 : index
    %c1_144 = arith.constant 1 : index
    %c0_145 = arith.constant 0 : index
    %114 = vector.load %arg1[%c0_142, %c7_143, %c1_144, %c0_145] : memref<1x21x21x64xf32, #tpu.memory_space<vmem>>, vector<1x1x20x64xf32>
    %115 = vector.shape_cast %114 : vector<1x1x20x64xf32> to vector<20x64xf32>
    %116 = tpu.concatenate %109, %111, %113, %115 in 1 : vector<20x64xf32>, vector<20x64xf32>, vector<20x64xf32>, vector<20x64xf32> -> vector<20x256xf32>
    %117 = arith.truncf %116 : vector<20x256xf32> to vector<20x256xbf16>
    %c0_146 = arith.constant 0 : index
    %c0_147 = arith.constant 0 : index
    %118 = vector.load %arg2[%c0_146, %c0_147] : memref<256x16xbf16, #tpu.memory_space<vmem>>, vector<256x16xbf16>
    %cst_148 = arith.constant dense<0.000000e+00> : vector<20x16xf32>
    %119 = tpu.matmul %117, %118, %cst_148 {dimension_numbers = #tpu.dot_dimension_numbers<[1], [0], [0], [1], [0, 0, 1, 1], [], []>} : vector<20x256xbf16>, vector<256x16xbf16>, vector<20x16xf32> -> vector<20x16xf32>
    %c0_149 = arith.constant 0 : index
    %c0_150 = arith.constant 0 : index
    %120 = vector.load %arg3[%c0_149, %c0_150] : memref<1x16xf32, #tpu.memory_space<vmem>>, vector<1x16xf32>
    %121 = vector.broadcast %120 : vector<1x16xf32> to vector<20x16xf32>
    %122 = arith.addf %119, %121 : vector<20x16xf32>
    %cst_151 = arith.constant 0.000000e+00 : f32
    %123 = vector.broadcast %cst_151 : f32 to vector<20x16xf32>
    %124 = arith.maximumf %122, %123 : vector<20x16xf32>
    %c120 = arith.constant 120 : index
    %c0_152 = arith.constant 0 : index
    %125 = vector.load %arg7[%c120, %c0_152] : memref<400x16xf32, #tpu.memory_space<vmem>>, vector<20x16xf32>
    tpu.vector_store %arg7[%c120, %c0_152], %124 {strides = array<i32>} : memref<400x16xf32, #tpu.memory_space<vmem>>, vector<20x16xf32>,
    %c0_153 = arith.constant 0 : index
    %c7_154 = arith.constant 7 : index
    %c0_155 = arith.constant 0 : index
    %c0_156 = arith.constant 0 : index
    %126 = vector.load %arg1[%c0_153, %c7_154, %c0_155, %c0_156] : memref<1x21x21x64xf32, #tpu.memory_space<vmem>>, vector<1x1x20x64xf32>
    %127 = vector.shape_cast %126 : vector<1x1x20x64xf32> to vector<20x64xf32>
    %c0_157 = arith.constant 0 : index
    %c7_158 = arith.constant 7 : index
    %c1_159 = arith.constant 1 : index
    %c0_160 = arith.constant 0 : index
    %128 = vector.load %arg1[%c0_157, %c7_158, %c1_159, %c0_160] : memref<1x21x21x64xf32, #tpu.memory_space<vmem>>, vector<1x1x20x64xf32>
    %129 = vector.shape_cast %128 : vector<1x1x20x64xf32> to vector<20x64xf32>
    %c0_161 = arith.constant 0 : index
    %c8 = arith.constant 8 : index
    %c0_162 = arith.constant 0 : index
    %c0_163 = arith.constant 0 : index
    %130 = vector.load %arg1[%c0_161, %c8, %c0_162, %c0_163] : memref<1x21x21x64xf32, #tpu.memory_space<vmem>>, vector<1x1x20x64xf32>
    %131 = vector.shape_cast %130 : vector<1x1x20x64xf32> to vector<20x64xf32>
    %c0_164 = arith.constant 0 : index
    %c8_165 = arith.constant 8 : index
    %c1_166 = arith.constant 1 : index
    %c0_167 = arith.constant 0 : index
    %132 = vector.load %arg1[%c0_164, %c8_165, %c1_166, %c0_167] : memref<1x21x21x64xf32, #tpu.memory_space<vmem>>, vector<1x1x20x64xf32>
    %133 = vector.shape_cast %132 : vector<1x1x20x64xf32> to vector<20x64xf32>
    %134 = tpu.concatenate %127, %129, %131, %133 in 1 : vector<20x64xf32>, vector<20x64xf32>, vector<20x64xf32>, vector<20x64xf32> -> vector<20x256xf32>
    %135 = arith.truncf %134 : vector<20x256xf32> to vector<20x256xbf16>
    %c0_168 = arith.constant 0 : index
    %c0_169 = arith.constant 0 : index
    %136 = vector.load %arg2[%c0_168, %c0_169] : memref<256x16xbf16, #tpu.memory_space<vmem>>, vector<256x16xbf16>
    %cst_170 = arith.constant dense<0.000000e+00> : vector<20x16xf32>
    %137 = tpu.matmul %135, %136, %cst_170 {dimension_numbers = #tpu.dot_dimension_numbers<[1], [0], [0], [1], [0, 0, 1, 1], [], []>} : vector<20x256xbf16>, vector<256x16xbf16>, vector<20x16xf32> -> vector<20x16xf32>
    %c0_171 = arith.constant 0 : index
    %c0_172 = arith.constant 0 : index
    %138 = vector.load %arg3[%c0_171, %c0_172] : memref<1x16xf32, #tpu.memory_space<vmem>>, vector<1x16xf32>
    %139 = vector.broadcast %138 : vector<1x16xf32> to vector<20x16xf32>
    %140 = arith.addf %137, %139 : vector<20x16xf32>
    %cst_173 = arith.constant 0.000000e+00 : f32
    %141 = vector.broadcast %cst_173 : f32 to vector<20x16xf32>
    %142 = arith.maximumf %140, %141 : vector<20x16xf32>
    %c140 = arith.constant 140 : index
    %c0_174 = arith.constant 0 : index
    %143 = vector.load %arg7[%c140, %c0_174] : memref<400x16xf32, #tpu.memory_space<vmem>>, vector<20x16xf32>
    tpu.vector_store %arg7[%c140, %c0_174], %142 {strides = array<i32>} : memref<400x16xf32, #tpu.memory_space<vmem>>, vector<20x16xf32>,
    %c0_175 = arith.constant 0 : index
    %c8_176 = arith.constant 8 : index
    %c0_177 = arith.constant 0 : index
    %c0_178 = arith.constant 0 : index
    %144 = vector.load %arg1[%c0_175, %c8_176, %c0_177, %c0_178] : memref<1x21x21x64xf32, #tpu.memory_space<vmem>>, vector<1x1x20x64xf32>
    %145 = vector.shape_cast %144 : vector<1x1x20x64xf32> to vector<20x64xf32>
    %c0_179 = arith.constant 0 : index
    %c8_180 = arith.constant 8 : index
    %c1_181 = arith.constant 1 : index
    %c0_182 = arith.constant 0 : index
    %146 = vector.load %arg1[%c0_179, %c8_180, %c1_181, %c0_182] : memref<1x21x21x64xf32, #tpu.memory_space<vmem>>, vector<1x1x20x64xf32>
    %147 = vector.shape_cast %146 : vector<1x1x20x64xf32> to vector<20x64xf32>
    %c0_183 = arith.constant 0 : index
    %c9 = arith.constant 9 : index
    %c0_184 = arith.constant 0 : index
    %c0_185 = arith.constant 0 : index
    %148 = vector.load %arg1[%c0_183, %c9, %c0_184, %c0_185] : memref<1x21x21x64xf32, #tpu.memory_space<vmem>>, vector<1x1x20x64xf32>
    %149 = vector.shape_cast %148 : vector<1x1x20x64xf32> to vector<20x64xf32>
    %c0_186 = arith.constant 0 : index
    %c9_187 = arith.constant 9 : index
    %c1_188 = arith.constant 1 : index
    %c0_189 = arith.constant 0 : index
    %150 = vector.load %arg1[%c0_186, %c9_187, %c1_188, %c0_189] : memref<1x21x21x64xf32, #tpu.memory_space<vmem>>, vector<1x1x20x64xf32>
    %151 = vector.shape_cast %150 : vector<1x1x20x64xf32> to vector<20x64xf32>
    %152 = tpu.concatenate %145, %147, %149, %151 in 1 : vector<20x64xf32>, vector<20x64xf32>, vector<20x64xf32>, vector<20x64xf32> -> vector<20x256xf32>
    %153 = arith.truncf %152 : vector<20x256xf32> to vector<20x256xbf16>
    %c0_190 = arith.constant 0 : index
    %c0_191 = arith.constant 0 : index
    %154 = vector.load %arg2[%c0_190, %c0_191] : memref<256x16xbf16, #tpu.memory_space<vmem>>, vector<256x16xbf16>
    %cst_192 = arith.constant dense<0.000000e+00> : vector<20x16xf32>
    %155 = tpu.matmul %153, %154, %cst_192 {dimension_numbers = #tpu.dot_dimension_numbers<[1], [0], [0], [1], [0, 0, 1, 1], [], []>} : vector<20x256xbf16>, vector<256x16xbf16>, vector<20x16xf32> -> vector<20x16xf32>
    %c0_193 = arith.constant 0 : index
    %c0_194 = arith.constant 0 : index
    %156 = vector.load %arg3[%c0_193, %c0_194] : memref<1x16xf32, #tpu.memory_space<vmem>>, vector<1x16xf32>
    %157 = vector.broadcast %156 : vector<1x16xf32> to vector<20x16xf32>
    %158 = arith.addf %155, %157 : vector<20x16xf32>
    %cst_195 = arith.constant 0.000000e+00 : f32
    %159 = vector.broadcast %cst_195 : f32 to vector<20x16xf32>
    %160 = arith.maximumf %158, %159 : vector<20x16xf32>
    %c160 = arith.constant 160 : index
    %c0_196 = arith.constant 0 : index
    %161 = vector.load %arg7[%c160, %c0_196] : memref<400x16xf32, #tpu.memory_space<vmem>>, vector<20x16xf32>
    tpu.vector_store %arg7[%c160, %c0_196], %160 {strides = array<i32>} : memref<400x16xf32, #tpu.memory_space<vmem>>, vector<20x16xf32>,
    %c0_197 = arith.constant 0 : index
    %c9_198 = arith.constant 9 : index
    %c0_199 = arith.constant 0 : index
    %c0_200 = arith.constant 0 : index
    %162 = vector.load %arg1[%c0_197, %c9_198, %c0_199, %c0_200] : memref<1x21x21x64xf32, #tpu.memory_space<vmem>>, vector<1x1x20x64xf32>
    %163 = vector.shape_cast %162 : vector<1x1x20x64xf32> to vector<20x64xf32>
    %c0_201 = arith.constant 0 : index
    %c9_202 = arith.constant 9 : index
    %c1_203 = arith.constant 1 : index
    %c0_204 = arith.constant 0 : index
    %164 = vector.load %arg1[%c0_201, %c9_202, %c1_203, %c0_204] : memref<1x21x21x64xf32, #tpu.memory_space<vmem>>, vector<1x1x20x64xf32>
    %165 = vector.shape_cast %164 : vector<1x1x20x64xf32> to vector<20x64xf32>
    %c0_205 = arith.constant 0 : index
    %c10 = arith.constant 10 : index
    %c0_206 = arith.constant 0 : index
    %c0_207 = arith.constant 0 : index
    %166 = vector.load %arg1[%c0_205, %c10, %c0_206, %c0_207] : memref<1x21x21x64xf32, #tpu.memory_space<vmem>>, vector<1x1x20x64xf32>
    %167 = vector.shape_cast %166 : vector<1x1x20x64xf32> to vector<20x64xf32>
    %c0_208 = arith.constant 0 : index
    %c10_209 = arith.constant 10 : index
    %c1_210 = arith.constant 1 : index
    %c0_211 = arith.constant 0 : index
    %168 = vector.load %arg1[%c0_208, %c10_209, %c1_210, %c0_211] : memref<1x21x21x64xf32, #tpu.memory_space<vmem>>, vector<1x1x20x64xf32>
    %169 = vector.shape_cast %168 : vector<1x1x20x64xf32> to vector<20x64xf32>
    %170 = tpu.concatenate %163, %165, %167, %169 in 1 : vector<20x64xf32>, vector<20x64xf32>, vector<20x64xf32>, vector<20x64xf32> -> vector<20x256xf32>
    %171 = arith.truncf %170 : vector<20x256xf32> to vector<20x256xbf16>
    %c0_212 = arith.constant 0 : index
    %c0_213 = arith.constant 0 : index
    %172 = vector.load %arg2[%c0_212, %c0_213] : memref<256x16xbf16, #tpu.memory_space<vmem>>, vector<256x16xbf16>
    %cst_214 = arith.constant dense<0.000000e+00> : vector<20x16xf32>
    %173 = tpu.matmul %171, %172, %cst_214 {dimension_numbers = #tpu.dot_dimension_numbers<[1], [0], [0], [1], [0, 0, 1, 1], [], []>} : vector<20x256xbf16>, vector<256x16xbf16>, vector<20x16xf32> -> vector<20x16xf32>
    %c0_215 = arith.constant 0 : index
    %c0_216 = arith.constant 0 : index
    %174 = vector.load %arg3[%c0_215, %c0_216] : memref<1x16xf32, #tpu.memory_space<vmem>>, vector<1x16xf32>
    %175 = vector.broadcast %174 : vector<1x16xf32> to vector<20x16xf32>
    %176 = arith.addf %173, %175 : vector<20x16xf32>
    %cst_217 = arith.constant 0.000000e+00 : f32
    %177 = vector.broadcast %cst_217 : f32 to vector<20x16xf32>
    %178 = arith.maximumf %176, %177 : vector<20x16xf32>
    %c180 = arith.constant 180 : index
    %c0_218 = arith.constant 0 : index
    %179 = vector.load %arg7[%c180, %c0_218] : memref<400x16xf32, #tpu.memory_space<vmem>>, vector<20x16xf32>
    tpu.vector_store %arg7[%c180, %c0_218], %178 {strides = array<i32>} : memref<400x16xf32, #tpu.memory_space<vmem>>, vector<20x16xf32>,
    %c0_219 = arith.constant 0 : index
    %c10_220 = arith.constant 10 : index
    %c0_221 = arith.constant 0 : index
    %c0_222 = arith.constant 0 : index
    %180 = vector.load %arg1[%c0_219, %c10_220, %c0_221, %c0_222] : memref<1x21x21x64xf32, #tpu.memory_space<vmem>>, vector<1x1x20x64xf32>
    %181 = vector.shape_cast %180 : vector<1x1x20x64xf32> to vector<20x64xf32>
    %c0_223 = arith.constant 0 : index
    %c10_224 = arith.constant 10 : index
    %c1_225 = arith.constant 1 : index
    %c0_226 = arith.constant 0 : index
    %182 = vector.load %arg1[%c0_223, %c10_224, %c1_225, %c0_226] : memref<1x21x21x64xf32, #tpu.memory_space<vmem>>, vector<1x1x20x64xf32>
    %183 = vector.shape_cast %182 : vector<1x1x20x64xf32> to vector<20x64xf32>
    %c0_227 = arith.constant 0 : index
    %c11 = arith.constant 11 : index
    %c0_228 = arith.constant 0 : index
    %c0_229 = arith.constant 0 : index
    %184 = vector.load %arg1[%c0_227, %c11, %c0_228, %c0_229] : memref<1x21x21x64xf32, #tpu.memory_space<vmem>>, vector<1x1x20x64xf32>
    %185 = vector.shape_cast %184 : vector<1x1x20x64xf32> to vector<20x64xf32>
    %c0_230 = arith.constant 0 : index
    %c11_231 = arith.constant 11 : index
    %c1_232 = arith.constant 1 : index
    %c0_233 = arith.constant 0 : index
    %186 = vector.load %arg1[%c0_230, %c11_231, %c1_232, %c0_233] : memref<1x21x21x64xf32, #tpu.memory_space<vmem>>, vector<1x1x20x64xf32>
    %187 = vector.shape_cast %186 : vector<1x1x20x64xf32> to vector<20x64xf32>
    %188 = tpu.concatenate %181, %183, %185, %187 in 1 : vector<20x64xf32>, vector<20x64xf32>, vector<20x64xf32>, vector<20x64xf32> -> vector<20x256xf32>
    %189 = arith.truncf %188 : vector<20x256xf32> to vector<20x256xbf16>
    %c0_234 = arith.constant 0 : index
    %c0_235 = arith.constant 0 : index
    %190 = vector.load %arg2[%c0_234, %c0_235] : memref<256x16xbf16, #tpu.memory_space<vmem>>, vector<256x16xbf16>
    %cst_236 = arith.constant dense<0.000000e+00> : vector<20x16xf32>
    %191 = tpu.matmul %189, %190, %cst_236 {dimension_numbers = #tpu.dot_dimension_numbers<[1], [0], [0], [1], [0, 0, 1, 1], [], []>} : vector<20x256xbf16>, vector<256x16xbf16>, vector<20x16xf32> -> vector<20x16xf32>
    %c0_237 = arith.constant 0 : index
    %c0_238 = arith.constant 0 : index
    %192 = vector.load %arg3[%c0_237, %c0_238] : memref<1x16xf32, #tpu.memory_space<vmem>>, vector<1x16xf32>
    %193 = vector.broadcast %192 : vector<1x16xf32> to vector<20x16xf32>
    %194 = arith.addf %191, %193 : vector<20x16xf32>
    %cst_239 = arith.constant 0.000000e+00 : f32
    %195 = vector.broadcast %cst_239 : f32 to vector<20x16xf32>
    %196 = arith.maximumf %194, %195 : vector<20x16xf32>
    %c200 = arith.constant 200 : index
    %c0_240 = arith.constant 0 : index
    %197 = vector.load %arg7[%c200, %c0_240] : memref<400x16xf32, #tpu.memory_space<vmem>>, vector<20x16xf32>
    tpu.vector_store %arg7[%c200, %c0_240], %196 {strides = array<i32>} : memref<400x16xf32, #tpu.memory_space<vmem>>, vector<20x16xf32>,
    %c0_241 = arith.constant 0 : index
    %c11_242 = arith.constant 11 : index
    %c0_243 = arith.constant 0 : index
    %c0_244 = arith.constant 0 : index
    %198 = vector.load %arg1[%c0_241, %c11_242, %c0_243, %c0_244] : memref<1x21x21x64xf32, #tpu.memory_space<vmem>>, vector<1x1x20x64xf32>
    %199 = vector.shape_cast %198 : vector<1x1x20x64xf32> to vector<20x64xf32>
    %c0_245 = arith.constant 0 : index
    %c11_246 = arith.constant 11 : index
    %c1_247 = arith.constant 1 : index
    %c0_248 = arith.constant 0 : index
    %200 = vector.load %arg1[%c0_245, %c11_246, %c1_247, %c0_248] : memref<1x21x21x64xf32, #tpu.memory_space<vmem>>, vector<1x1x20x64xf32>
    %201 = vector.shape_cast %200 : vector<1x1x20x64xf32> to vector<20x64xf32>
    %c0_249 = arith.constant 0 : index
    %c12 = arith.constant 12 : index
    %c0_250 = arith.constant 0 : index
    %c0_251 = arith.constant 0 : index
    %202 = vector.load %arg1[%c0_249, %c12, %c0_250, %c0_251] : memref<1x21x21x64xf32, #tpu.memory_space<vmem>>, vector<1x1x20x64xf32>
    %203 = vector.shape_cast %202 : vector<1x1x20x64xf32> to vector<20x64xf32>
    %c0_252 = arith.constant 0 : index
    %c12_253 = arith.constant 12 : index
    %c1_254 = arith.constant 1 : index
    %c0_255 = arith.constant 0 : index
    %204 = vector.load %arg1[%c0_252, %c12_253, %c1_254, %c0_255] : memref<1x21x21x64xf32, #tpu.memory_space<vmem>>, vector<1x1x20x64xf32>
    %205 = vector.shape_cast %204 : vector<1x1x20x64xf32> to vector<20x64xf32>
    %206 = tpu.concatenate %199, %201, %203, %205 in 1 : vector<20x64xf32>, vector<20x64xf32>, vector<20x64xf32>, vector<20x64xf32> -> vector<20x256xf32>
    %207 = arith.truncf %206 : vector<20x256xf32> to vector<20x256xbf16>
    %c0_256 = arith.constant 0 : index
    %c0_257 = arith.constant 0 : index
    %208 = vector.load %arg2[%c0_256, %c0_257] : memref<256x16xbf16, #tpu.memory_space<vmem>>, vector<256x16xbf16>
    %cst_258 = arith.constant dense<0.000000e+00> : vector<20x16xf32>
    %209 = tpu.matmul %207, %208, %cst_258 {dimension_numbers = #tpu.dot_dimension_numbers<[1], [0], [0], [1], [0, 0, 1, 1], [], []>} : vector<20x256xbf16>, vector<256x16xbf16>, vector<20x16xf32> -> vector<20x16xf32>
    %c0_259 = arith.constant 0 : index
    %c0_260 = arith.constant 0 : index
    %210 = vector.load %arg3[%c0_259, %c0_260] : memref<1x16xf32, #tpu.memory_space<vmem>>, vector<1x16xf32>
    %211 = vector.broadcast %210 : vector<1x16xf32> to vector<20x16xf32>
    %212 = arith.addf %209, %211 : vector<20x16xf32>
    %cst_261 = arith.constant 0.000000e+00 : f32
    %213 = vector.broadcast %cst_261 : f32 to vector<20x16xf32>
    %214 = arith.maximumf %212, %213 : vector<20x16xf32>
    %c220 = arith.constant 220 : index
    %c0_262 = arith.constant 0 : index
    %215 = vector.load %arg7[%c220, %c0_262] : memref<400x16xf32, #tpu.memory_space<vmem>>, vector<20x16xf32>
    tpu.vector_store %arg7[%c220, %c0_262], %214 {strides = array<i32>} : memref<400x16xf32, #tpu.memory_space<vmem>>, vector<20x16xf32>,
    %c0_263 = arith.constant 0 : index
    %c12_264 = arith.constant 12 : index
    %c0_265 = arith.constant 0 : index
    %c0_266 = arith.constant 0 : index
    %216 = vector.load %arg1[%c0_263, %c12_264, %c0_265, %c0_266] : memref<1x21x21x64xf32, #tpu.memory_space<vmem>>, vector<1x1x20x64xf32>
    %217 = vector.shape_cast %216 : vector<1x1x20x64xf32> to vector<20x64xf32>
    %c0_267 = arith.constant 0 : index
    %c12_268 = arith.constant 12 : index
    %c1_269 = arith.constant 1 : index
    %c0_270 = arith.constant 0 : index
    %218 = vector.load %arg1[%c0_267, %c12_268, %c1_269, %c0_270] : memref<1x21x21x64xf32, #tpu.memory_space<vmem>>, vector<1x1x20x64xf32>
    %219 = vector.shape_cast %218 : vector<1x1x20x64xf32> to vector<20x64xf32>
    %c0_271 = arith.constant 0 : index
    %c13 = arith.constant 13 : index
    %c0_272 = arith.constant 0 : index
    %c0_273 = arith.constant 0 : index
    %220 = vector.load %arg1[%c0_271, %c13, %c0_272, %c0_273] : memref<1x21x21x64xf32, #tpu.memory_space<vmem>>, vector<1x1x20x64xf32>
    %221 = vector.shape_cast %220 : vector<1x1x20x64xf32> to vector<20x64xf32>
    %c0_274 = arith.constant 0 : index
    %c13_275 = arith.constant 13 : index
    %c1_276 = arith.constant 1 : index
    %c0_277 = arith.constant 0 : index
    %222 = vector.load %arg1[%c0_274, %c13_275, %c1_276, %c0_277] : memref<1x21x21x64xf32, #tpu.memory_space<vmem>>, vector<1x1x20x64xf32>
    %223 = vector.shape_cast %222 : vector<1x1x20x64xf32> to vector<20x64xf32>
    %224 = tpu.concatenate %217, %219, %221, %223 in 1 : vector<20x64xf32>, vector<20x64xf32>, vector<20x64xf32>, vector<20x64xf32> -> vector<20x256xf32>
    %225 = arith.truncf %224 : vector<20x256xf32> to vector<20x256xbf16>
    %c0_278 = arith.constant 0 : index
    %c0_279 = arith.constant 0 : index
    %226 = vector.load %arg2[%c0_278, %c0_279] : memref<256x16xbf16, #tpu.memory_space<vmem>>, vector<256x16xbf16>
    %cst_280 = arith.constant dense<0.000000e+00> : vector<20x16xf32>
    %227 = tpu.matmul %225, %226, %cst_280 {dimension_numbers = #tpu.dot_dimension_numbers<[1], [0], [0], [1], [0, 0, 1, 1], [], []>} : vector<20x256xbf16>, vector<256x16xbf16>, vector<20x16xf32> -> vector<20x16xf32>
    %c0_281 = arith.constant 0 : index
    %c0_282 = arith.constant 0 : index
    %228 = vector.load %arg3[%c0_281, %c0_282] : memref<1x16xf32, #tpu.memory_space<vmem>>, vector<1x16xf32>
    %229 = vector.broadcast %228 : vector<1x16xf32> to vector<20x16xf32>
    %230 = arith.addf %227, %229 : vector<20x16xf32>
    %cst_283 = arith.constant 0.000000e+00 : f32
    %231 = vector.broadcast %cst_283 : f32 to vector<20x16xf32>
    %232 = arith.maximumf %230, %231 : vector<20x16xf32>
    %c240 = arith.constant 240 : index
    %c0_284 = arith.constant 0 : index
    %233 = vector.load %arg7[%c240, %c0_284] : memref<400x16xf32, #tpu.memory_space<vmem>>, vector<20x16xf32>
    tpu.vector_store %arg7[%c240, %c0_284], %232 {strides = array<i32>} : memref<400x16xf32, #tpu.memory_space<vmem>>, vector<20x16xf32>,
    %c0_285 = arith.constant 0 : index
    %c13_286 = arith.constant 13 : index
    %c0_287 = arith.constant 0 : index
    %c0_288 = arith.constant 0 : index
    %234 = vector.load %arg1[%c0_285, %c13_286, %c0_287, %c0_288] : memref<1x21x21x64xf32, #tpu.memory_space<vmem>>, vector<1x1x20x64xf32>
    %235 = vector.shape_cast %234 : vector<1x1x20x64xf32> to vector<20x64xf32>
    %c0_289 = arith.constant 0 : index
    %c13_290 = arith.constant 13 : index
    %c1_291 = arith.constant 1 : index
    %c0_292 = arith.constant 0 : index
    %236 = vector.load %arg1[%c0_289, %c13_290, %c1_291, %c0_292] : memref<1x21x21x64xf32, #tpu.memory_space<vmem>>, vector<1x1x20x64xf32>
    %237 = vector.shape_cast %236 : vector<1x1x20x64xf32> to vector<20x64xf32>
    %c0_293 = arith.constant 0 : index
    %c14 = arith.constant 14 : index
    %c0_294 = arith.constant 0 : index
    %c0_295 = arith.constant 0 : index
    %238 = vector.load %arg1[%c0_293, %c14, %c0_294, %c0_295] : memref<1x21x21x64xf32, #tpu.memory_space<vmem>>, vector<1x1x20x64xf32>
    %239 = vector.shape_cast %238 : vector<1x1x20x64xf32> to vector<20x64xf32>
    %c0_296 = arith.constant 0 : index
    %c14_297 = arith.constant 14 : index
    %c1_298 = arith.constant 1 : index
    %c0_299 = arith.constant 0 : index
    %240 = vector.load %arg1[%c0_296, %c14_297, %c1_298, %c0_299] : memref<1x21x21x64xf32, #tpu.memory_space<vmem>>, vector<1x1x20x64xf32>
    %241 = vector.shape_cast %240 : vector<1x1x20x64xf32> to vector<20x64xf32>
    %242 = tpu.concatenate %235, %237, %239, %241 in 1 : vector<20x64xf32>, vector<20x64xf32>, vector<20x64xf32>, vector<20x64xf32> -> vector<20x256xf32>
    %243 = arith.truncf %242 : vector<20x256xf32> to vector<20x256xbf16>
    %c0_300 = arith.constant 0 : index
    %c0_301 = arith.constant 0 : index
    %244 = vector.load %arg2[%c0_300, %c0_301] : memref<256x16xbf16, #tpu.memory_space<vmem>>, vector<256x16xbf16>
    %cst_302 = arith.constant dense<0.000000e+00> : vector<20x16xf32>
    %245 = tpu.matmul %243, %244, %cst_302 {dimension_numbers = #tpu.dot_dimension_numbers<[1], [0], [0], [1], [0, 0, 1, 1], [], []>} : vector<20x256xbf16>, vector<256x16xbf16>, vector<20x16xf32> -> vector<20x16xf32>
    %c0_303 = arith.constant 0 : index
    %c0_304 = arith.constant 0 : index
    %246 = vector.load %arg3[%c0_303, %c0_304] : memref<1x16xf32, #tpu.memory_space<vmem>>, vector<1x16xf32>
    %247 = vector.broadcast %246 : vector<1x16xf32> to vector<20x16xf32>
    %248 = arith.addf %245, %247 : vector<20x16xf32>
    %cst_305 = arith.constant 0.000000e+00 : f32
    %249 = vector.broadcast %cst_305 : f32 to vector<20x16xf32>
    %250 = arith.maximumf %248, %249 : vector<20x16xf32>
    %c260 = arith.constant 260 : index
    %c0_306 = arith.constant 0 : index
    %251 = vector.load %arg7[%c260, %c0_306] : memref<400x16xf32, #tpu.memory_space<vmem>>, vector<20x16xf32>
    tpu.vector_store %arg7[%c260, %c0_306], %250 {strides = array<i32>} : memref<400x16xf32, #tpu.memory_space<vmem>>, vector<20x16xf32>,
    %c0_307 = arith.constant 0 : index
    %c14_308 = arith.constant 14 : index
    %c0_309 = arith.constant 0 : index
    %c0_310 = arith.constant 0 : index
    %252 = vector.load %arg1[%c0_307, %c14_308, %c0_309, %c0_310] : memref<1x21x21x64xf32, #tpu.memory_space<vmem>>, vector<1x1x20x64xf32>
    %253 = vector.shape_cast %252 : vector<1x1x20x64xf32> to vector<20x64xf32>
    %c0_311 = arith.constant 0 : index
    %c14_312 = arith.constant 14 : index
    %c1_313 = arith.constant 1 : index
    %c0_314 = arith.constant 0 : index
    %254 = vector.load %arg1[%c0_311, %c14_312, %c1_313, %c0_314] : memref<1x21x21x64xf32, #tpu.memory_space<vmem>>, vector<1x1x20x64xf32>
    %255 = vector.shape_cast %254 : vector<1x1x20x64xf32> to vector<20x64xf32>
    %c0_315 = arith.constant 0 : index
    %c15 = arith.constant 15 : index
    %c0_316 = arith.constant 0 : index
    %c0_317 = arith.constant 0 : index
    %256 = vector.load %arg1[%c0_315, %c15, %c0_316, %c0_317] : memref<1x21x21x64xf32, #tpu.memory_space<vmem>>, vector<1x1x20x64xf32>
    %257 = vector.shape_cast %256 : vector<1x1x20x64xf32> to vector<20x64xf32>
    %c0_318 = arith.constant 0 : index
    %c15_319 = arith.constant 15 : index
    %c1_320 = arith.constant 1 : index
    %c0_321 = arith.constant 0 : index
    %258 = vector.load %arg1[%c0_318, %c15_319, %c1_320, %c0_321] : memref<1x21x21x64xf32, #tpu.memory_space<vmem>>, vector<1x1x20x64xf32>
    %259 = vector.shape_cast %258 : vector<1x1x20x64xf32> to vector<20x64xf32>
    %260 = tpu.concatenate %253, %255, %257, %259 in 1 : vector<20x64xf32>, vector<20x64xf32>, vector<20x64xf32>, vector<20x64xf32> -> vector<20x256xf32>
    %261 = arith.truncf %260 : vector<20x256xf32> to vector<20x256xbf16>
    %c0_322 = arith.constant 0 : index
    %c0_323 = arith.constant 0 : index
    %262 = vector.load %arg2[%c0_322, %c0_323] : memref<256x16xbf16, #tpu.memory_space<vmem>>, vector<256x16xbf16>
    %cst_324 = arith.constant dense<0.000000e+00> : vector<20x16xf32>
    %263 = tpu.matmul %261, %262, %cst_324 {dimension_numbers = #tpu.dot_dimension_numbers<[1], [0], [0], [1], [0, 0, 1, 1], [], []>} : vector<20x256xbf16>, vector<256x16xbf16>, vector<20x16xf32> -> vector<20x16xf32>
    %c0_325 = arith.constant 0 : index
    %c0_326 = arith.constant 0 : index
    %264 = vector.load %arg3[%c0_325, %c0_326] : memref<1x16xf32, #tpu.memory_space<vmem>>, vector<1x16xf32>
    %265 = vector.broadcast %264 : vector<1x16xf32> to vector<20x16xf32>
    %266 = arith.addf %263, %265 : vector<20x16xf32>
    %cst_327 = arith.constant 0.000000e+00 : f32
    %267 = vector.broadcast %cst_327 : f32 to vector<20x16xf32>
    %268 = arith.maximumf %266, %267 : vector<20x16xf32>
    %c280 = arith.constant 280 : index
    %c0_328 = arith.constant 0 : index
    %269 = vector.load %arg7[%c280, %c0_328] : memref<400x16xf32, #tpu.memory_space<vmem>>, vector<20x16xf32>
    tpu.vector_store %arg7[%c280, %c0_328], %268 {strides = array<i32>} : memref<400x16xf32, #tpu.memory_space<vmem>>, vector<20x16xf32>,
    %c0_329 = arith.constant 0 : index
    %c15_330 = arith.constant 15 : index
    %c0_331 = arith.constant 0 : index
    %c0_332 = arith.constant 0 : index
    %270 = vector.load %arg1[%c0_329, %c15_330, %c0_331, %c0_332] : memref<1x21x21x64xf32, #tpu.memory_space<vmem>>, vector<1x1x20x64xf32>
    %271 = vector.shape_cast %270 : vector<1x1x20x64xf32> to vector<20x64xf32>
    %c0_333 = arith.constant 0 : index
    %c15_334 = arith.constant 15 : index
    %c1_335 = arith.constant 1 : index
    %c0_336 = arith.constant 0 : index
    %272 = vector.load %arg1[%c0_333, %c15_334, %c1_335, %c0_336] : memref<1x21x21x64xf32, #tpu.memory_space<vmem>>, vector<1x1x20x64xf32>
    %273 = vector.shape_cast %272 : vector<1x1x20x64xf32> to vector<20x64xf32>
    %c0_337 = arith.constant 0 : index
    %c16 = arith.constant 16 : index
    %c0_338 = arith.constant 0 : index
    %c0_339 = arith.constant 0 : index
    %274 = vector.load %arg1[%c0_337, %c16, %c0_338, %c0_339] : memref<1x21x21x64xf32, #tpu.memory_space<vmem>>, vector<1x1x20x64xf32>
    %275 = vector.shape_cast %274 : vector<1x1x20x64xf32> to vector<20x64xf32>
    %c0_340 = arith.constant 0 : index
    %c16_341 = arith.constant 16 : index
    %c1_342 = arith.constant 1 : index
    %c0_343 = arith.constant 0 : index
    %276 = vector.load %arg1[%c0_340, %c16_341, %c1_342, %c0_343] : memref<1x21x21x64xf32, #tpu.memory_space<vmem>>, vector<1x1x20x64xf32>
    %277 = vector.shape_cast %276 : vector<1x1x20x64xf32> to vector<20x64xf32>
    %278 = tpu.concatenate %271, %273, %275, %277 in 1 : vector<20x64xf32>, vector<20x64xf32>, vector<20x64xf32>, vector<20x64xf32> -> vector<20x256xf32>
    %279 = arith.truncf %278 : vector<20x256xf32> to vector<20x256xbf16>
    %c0_344 = arith.constant 0 : index
    %c0_345 = arith.constant 0 : index
    %280 = vector.load %arg2[%c0_344, %c0_345] : memref<256x16xbf16, #tpu.memory_space<vmem>>, vector<256x16xbf16>
    %cst_346 = arith.constant dense<0.000000e+00> : vector<20x16xf32>
    %281 = tpu.matmul %279, %280, %cst_346 {dimension_numbers = #tpu.dot_dimension_numbers<[1], [0], [0], [1], [0, 0, 1, 1], [], []>} : vector<20x256xbf16>, vector<256x16xbf16>, vector<20x16xf32> -> vector<20x16xf32>
    %c0_347 = arith.constant 0 : index
    %c0_348 = arith.constant 0 : index
    %282 = vector.load %arg3[%c0_347, %c0_348] : memref<1x16xf32, #tpu.memory_space<vmem>>, vector<1x16xf32>
    %283 = vector.broadcast %282 : vector<1x16xf32> to vector<20x16xf32>
    %284 = arith.addf %281, %283 : vector<20x16xf32>
    %cst_349 = arith.constant 0.000000e+00 : f32
    %285 = vector.broadcast %cst_349 : f32 to vector<20x16xf32>
    %286 = arith.maximumf %284, %285 : vector<20x16xf32>
    %c300 = arith.constant 300 : index
    %c0_350 = arith.constant 0 : index
    %287 = vector.load %arg7[%c300, %c0_350] : memref<400x16xf32, #tpu.memory_space<vmem>>, vector<20x16xf32>
    tpu.vector_store %arg7[%c300, %c0_350], %286 {strides = array<i32>} : memref<400x16xf32, #tpu.memory_space<vmem>>, vector<20x16xf32>,
    %c0_351 = arith.constant 0 : index
    %c16_352 = arith.constant 16 : index
    %c0_353 = arith.constant 0 : index
    %c0_354 = arith.constant 0 : index
    %288 = vector.load %arg1[%c0_351, %c16_352, %c0_353, %c0_354] : memref<1x21x21x64xf32, #tpu.memory_space<vmem>>, vector<1x1x20x64xf32>
    %289 = vector.shape_cast %288 : vector<1x1x20x64xf32> to vector<20x64xf32>
    %c0_355 = arith.constant 0 : index
    %c16_356 = arith.constant 16 : index
    %c1_357 = arith.constant 1 : index
    %c0_358 = arith.constant 0 : index
    %290 = vector.load %arg1[%c0_355, %c16_356, %c1_357, %c0_358] : memref<1x21x21x64xf32, #tpu.memory_space<vmem>>, vector<1x1x20x64xf32>
    %291 = vector.shape_cast %290 : vector<1x1x20x64xf32> to vector<20x64xf32>
    %c0_359 = arith.constant 0 : index
    %c17 = arith.constant 17 : index
    %c0_360 = arith.constant 0 : index
    %c0_361 = arith.constant 0 : index
    %292 = vector.load %arg1[%c0_359, %c17, %c0_360, %c0_361] : memref<1x21x21x64xf32, #tpu.memory_space<vmem>>, vector<1x1x20x64xf32>
    %293 = vector.shape_cast %292 : vector<1x1x20x64xf32> to vector<20x64xf32>
    %c0_362 = arith.constant 0 : index
    %c17_363 = arith.constant 17 : index
    %c1_364 = arith.constant 1 : index
    %c0_365 = arith.constant 0 : index
    %294 = vector.load %arg1[%c0_362, %c17_363, %c1_364, %c0_365] : memref<1x21x21x64xf32, #tpu.memory_space<vmem>>, vector<1x1x20x64xf32>
    %295 = vector.shape_cast %294 : vector<1x1x20x64xf32> to vector<20x64xf32>
    %296 = tpu.concatenate %289, %291, %293, %295 in 1 : vector<20x64xf32>, vector<20x64xf32>, vector<20x64xf32>, vector<20x64xf32> -> vector<20x256xf32>
    %297 = arith.truncf %296 : vector<20x256xf32> to vector<20x256xbf16>
    %c0_366 = arith.constant 0 : index
    %c0_367 = arith.constant 0 : index
    %298 = vector.load %arg2[%c0_366, %c0_367] : memref<256x16xbf16, #tpu.memory_space<vmem>>, vector<256x16xbf16>
    %cst_368 = arith.constant dense<0.000000e+00> : vector<20x16xf32>
    %299 = tpu.matmul %297, %298, %cst_368 {dimension_numbers = #tpu.dot_dimension_numbers<[1], [0], [0], [1], [0, 0, 1, 1], [], []>} : vector<20x256xbf16>, vector<256x16xbf16>, vector<20x16xf32> -> vector<20x16xf32>
    %c0_369 = arith.constant 0 : index
    %c0_370 = arith.constant 0 : index
    %300 = vector.load %arg3[%c0_369, %c0_370] : memref<1x16xf32, #tpu.memory_space<vmem>>, vector<1x16xf32>
    %301 = vector.broadcast %300 : vector<1x16xf32> to vector<20x16xf32>
    %302 = arith.addf %299, %301 : vector<20x16xf32>
    %cst_371 = arith.constant 0.000000e+00 : f32
    %303 = vector.broadcast %cst_371 : f32 to vector<20x16xf32>
    %304 = arith.maximumf %302, %303 : vector<20x16xf32>
    %c320 = arith.constant 320 : index
    %c0_372 = arith.constant 0 : index
    %305 = vector.load %arg7[%c320, %c0_372] : memref<400x16xf32, #tpu.memory_space<vmem>>, vector<20x16xf32>
    tpu.vector_store %arg7[%c320, %c0_372], %304 {strides = array<i32>} : memref<400x16xf32, #tpu.memory_space<vmem>>, vector<20x16xf32>,
    %c0_373 = arith.constant 0 : index
    %c17_374 = arith.constant 17 : index
    %c0_375 = arith.constant 0 : index
    %c0_376 = arith.constant 0 : index
    %306 = vector.load %arg1[%c0_373, %c17_374, %c0_375, %c0_376] : memref<1x21x21x64xf32, #tpu.memory_space<vmem>>, vector<1x1x20x64xf32>
    %307 = vector.shape_cast %306 : vector<1x1x20x64xf32> to vector<20x64xf32>
    %c0_377 = arith.constant 0 : index
    %c17_378 = arith.constant 17 : index
    %c1_379 = arith.constant 1 : index
    %c0_380 = arith.constant 0 : index
    %308 = vector.load %arg1[%c0_377, %c17_378, %c1_379, %c0_380] : memref<1x21x21x64xf32, #tpu.memory_space<vmem>>, vector<1x1x20x64xf32>
    %309 = vector.shape_cast %308 : vector<1x1x20x64xf32> to vector<20x64xf32>
    %c0_381 = arith.constant 0 : index
    %c18 = arith.constant 18 : index
    %c0_382 = arith.constant 0 : index
    %c0_383 = arith.constant 0 : index
    %310 = vector.load %arg1[%c0_381, %c18, %c0_382, %c0_383] : memref<1x21x21x64xf32, #tpu.memory_space<vmem>>, vector<1x1x20x64xf32>
    %311 = vector.shape_cast %310 : vector<1x1x20x64xf32> to vector<20x64xf32>
    %c0_384 = arith.constant 0 : index
    %c18_385 = arith.constant 18 : index
    %c1_386 = arith.constant 1 : index
    %c0_387 = arith.constant 0 : index
    %312 = vector.load %arg1[%c0_384, %c18_385, %c1_386, %c0_387] : memref<1x21x21x64xf32, #tpu.memory_space<vmem>>, vector<1x1x20x64xf32>
    %313 = vector.shape_cast %312 : vector<1x1x20x64xf32> to vector<20x64xf32>
    %314 = tpu.concatenate %307, %309, %311, %313 in 1 : vector<20x64xf32>, vector<20x64xf32>, vector<20x64xf32>, vector<20x64xf32> -> vector<20x256xf32>
    %315 = arith.truncf %314 : vector<20x256xf32> to vector<20x256xbf16>
    %c0_388 = arith.constant 0 : index
    %c0_389 = arith.constant 0 : index
    %316 = vector.load %arg2[%c0_388, %c0_389] : memref<256x16xbf16, #tpu.memory_space<vmem>>, vector<256x16xbf16>
    %cst_390 = arith.constant dense<0.000000e+00> : vector<20x16xf32>
    %317 = tpu.matmul %315, %316, %cst_390 {dimension_numbers = #tpu.dot_dimension_numbers<[1], [0], [0], [1], [0, 0, 1, 1], [], []>} : vector<20x256xbf16>, vector<256x16xbf16>, vector<20x16xf32> -> vector<20x16xf32>
    %c0_391 = arith.constant 0 : index
    %c0_392 = arith.constant 0 : index
    %318 = vector.load %arg3[%c0_391, %c0_392] : memref<1x16xf32, #tpu.memory_space<vmem>>, vector<1x16xf32>
    %319 = vector.broadcast %318 : vector<1x16xf32> to vector<20x16xf32>
    %320 = arith.addf %317, %319 : vector<20x16xf32>
    %cst_393 = arith.constant 0.000000e+00 : f32
    %321 = vector.broadcast %cst_393 : f32 to vector<20x16xf32>
    %322 = arith.maximumf %320, %321 : vector<20x16xf32>
    %c340 = arith.constant 340 : index
    %c0_394 = arith.constant 0 : index
    %323 = vector.load %arg7[%c340, %c0_394] : memref<400x16xf32, #tpu.memory_space<vmem>>, vector<20x16xf32>
    tpu.vector_store %arg7[%c340, %c0_394], %322 {strides = array<i32>} : memref<400x16xf32, #tpu.memory_space<vmem>>, vector<20x16xf32>,
    %c0_395 = arith.constant 0 : index
    %c18_396 = arith.constant 18 : index
    %c0_397 = arith.constant 0 : index
    %c0_398 = arith.constant 0 : index
    %324 = vector.load %arg1[%c0_395, %c18_396, %c0_397, %c0_398] : memref<1x21x21x64xf32, #tpu.memory_space<vmem>>, vector<1x1x20x64xf32>
    %325 = vector.shape_cast %324 : vector<1x1x20x64xf32> to vector<20x64xf32>
    %c0_399 = arith.constant 0 : index
    %c18_400 = arith.constant 18 : index
    %c1_401 = arith.constant 1 : index
    %c0_402 = arith.constant 0 : index
    %326 = vector.load %arg1[%c0_399, %c18_400, %c1_401, %c0_402] : memref<1x21x21x64xf32, #tpu.memory_space<vmem>>, vector<1x1x20x64xf32>
    %327 = vector.shape_cast %326 : vector<1x1x20x64xf32> to vector<20x64xf32>
    %c0_403 = arith.constant 0 : index
    %c19 = arith.constant 19 : index
    %c0_404 = arith.constant 0 : index
    %c0_405 = arith.constant 0 : index
    %328 = vector.load %arg1[%c0_403, %c19, %c0_404, %c0_405] : memref<1x21x21x64xf32, #tpu.memory_space<vmem>>, vector<1x1x20x64xf32>
    %329 = vector.shape_cast %328 : vector<1x1x20x64xf32> to vector<20x64xf32>
    %c0_406 = arith.constant 0 : index
    %c19_407 = arith.constant 19 : index
    %c1_408 = arith.constant 1 : index
    %c0_409 = arith.constant 0 : index
    %330 = vector.load %arg1[%c0_406, %c19_407, %c1_408, %c0_409] : memref<1x21x21x64xf32, #tpu.memory_space<vmem>>, vector<1x1x20x64xf32>
    %331 = vector.shape_cast %330 : vector<1x1x20x64xf32> to vector<20x64xf32>
    %332 = tpu.concatenate %325, %327, %329, %331 in 1 : vector<20x64xf32>, vector<20x64xf32>, vector<20x64xf32>, vector<20x64xf32> -> vector<20x256xf32>
    %333 = arith.truncf %332 : vector<20x256xf32> to vector<20x256xbf16>
    %c0_410 = arith.constant 0 : index
    %c0_411 = arith.constant 0 : index
    %334 = vector.load %arg2[%c0_410, %c0_411] : memref<256x16xbf16, #tpu.memory_space<vmem>>, vector<256x16xbf16>
    %cst_412 = arith.constant dense<0.000000e+00> : vector<20x16xf32>
    %335 = tpu.matmul %333, %334, %cst_412 {dimension_numbers = #tpu.dot_dimension_numbers<[1], [0], [0], [1], [0, 0, 1, 1], [], []>} : vector<20x256xbf16>, vector<256x16xbf16>, vector<20x16xf32> -> vector<20x16xf32>
    %c0_413 = arith.constant 0 : index
    %c0_414 = arith.constant 0 : index
    %336 = vector.load %arg3[%c0_413, %c0_414] : memref<1x16xf32, #tpu.memory_space<vmem>>, vector<1x16xf32>
    %337 = vector.broadcast %336 : vector<1x16xf32> to vector<20x16xf32>
    %338 = arith.addf %335, %337 : vector<20x16xf32>
    %cst_415 = arith.constant 0.000000e+00 : f32
    %339 = vector.broadcast %cst_415 : f32 to vector<20x16xf32>
    %340 = arith.maximumf %338, %339 : vector<20x16xf32>
    %c360 = arith.constant 360 : index
    %c0_416 = arith.constant 0 : index
    %341 = vector.load %arg7[%c360, %c0_416] : memref<400x16xf32, #tpu.memory_space<vmem>>, vector<20x16xf32>
    tpu.vector_store %arg7[%c360, %c0_416], %340 {strides = array<i32>} : memref<400x16xf32, #tpu.memory_space<vmem>>, vector<20x16xf32>,
    %c0_417 = arith.constant 0 : index
    %c19_418 = arith.constant 19 : index
    %c0_419 = arith.constant 0 : index
    %c0_420 = arith.constant 0 : index
    %342 = vector.load %arg1[%c0_417, %c19_418, %c0_419, %c0_420] : memref<1x21x21x64xf32, #tpu.memory_space<vmem>>, vector<1x1x20x64xf32>
    %343 = vector.shape_cast %342 : vector<1x1x20x64xf32> to vector<20x64xf32>
    %c0_421 = arith.constant 0 : index
    %c19_422 = arith.constant 19 : index
    %c1_423 = arith.constant 1 : index
    %c0_424 = arith.constant 0 : index
    %344 = vector.load %arg1[%c0_421, %c19_422, %c1_423, %c0_424] : memref<1x21x21x64xf32, #tpu.memory_space<vmem>>, vector<1x1x20x64xf32>
    %345 = vector.shape_cast %344 : vector<1x1x20x64xf32> to vector<20x64xf32>
    %c0_425 = arith.constant 0 : index
    %c20_426 = arith.constant 20 : index
    %c0_427 = arith.constant 0 : index
    %c0_428 = arith.constant 0 : index
    %346 = vector.load %arg1[%c0_425, %c20_426, %c0_427, %c0_428] : memref<1x21x21x64xf32, #tpu.memory_space<vmem>>, vector<1x1x20x64xf32>
    %347 = vector.shape_cast %346 : vector<1x1x20x64xf32> to vector<20x64xf32>
    %c0_429 = arith.constant 0 : index
    %c20_430 = arith.constant 20 : index
    %c1_431 = arith.constant 1 : index
    %c0_432 = arith.constant 0 : index
    %348 = vector.load %arg1[%c0_429, %c20_430, %c1_431, %c0_432] : memref<1x21x21x64xf32, #tpu.memory_space<vmem>>, vector<1x1x20x64xf32>
    %349 = vector.shape_cast %348 : vector<1x1x20x64xf32> to vector<20x64xf32>
    %350 = tpu.concatenate %343, %345, %347, %349 in 1 : vector<20x64xf32>, vector<20x64xf32>, vector<20x64xf32>, vector<20x64xf32> -> vector<20x256xf32>
    %351 = arith.truncf %350 : vector<20x256xf32> to vector<20x256xbf16>
    %c0_433 = arith.constant 0 : index
    %c0_434 = arith.constant 0 : index
    %352 = vector.load %arg2[%c0_433, %c0_434] : memref<256x16xbf16, #tpu.memory_space<vmem>>, vector<256x16xbf16>
    %cst_435 = arith.constant dense<0.000000e+00> : vector<20x16xf32>
    %353 = tpu.matmul %351, %352, %cst_435 {dimension_numbers = #tpu.dot_dimension_numbers<[1], [0], [0], [1], [0, 0, 1, 1], [], []>} : vector<20x256xbf16>, vector<256x16xbf16>, vector<20x16xf32> -> vector<20x16xf32>
    %c0_436 = arith.constant 0 : index
    %c0_437 = arith.constant 0 : index
    %354 = vector.load %arg3[%c0_436, %c0_437] : memref<1x16xf32, #tpu.memory_space<vmem>>, vector<1x16xf32>
    %355 = vector.broadcast %354 : vector<1x16xf32> to vector<20x16xf32>
    %356 = arith.addf %353, %355 : vector<20x16xf32>
    %cst_438 = arith.constant 0.000000e+00 : f32
    %357 = vector.broadcast %cst_438 : f32 to vector<20x16xf32>
    %358 = arith.maximumf %356, %357 : vector<20x16xf32>
    %c380 = arith.constant 380 : index
    %c0_439 = arith.constant 0 : index
    %359 = vector.load %arg7[%c380, %c0_439] : memref<400x16xf32, #tpu.memory_space<vmem>>, vector<20x16xf32>
    tpu.vector_store %arg7[%c380, %c0_439], %358 {strides = array<i32>} : memref<400x16xf32, #tpu.memory_space<vmem>>, vector<20x16xf32>,
    %cst_440 = arith.constant 0.000000e+00 : bf16
    %360 = vector.broadcast %cst_440 : bf16 to vector<3x32xbf16>
    %c0_441 = arith.constant 0 : index
    %c81 = arith.constant 81 : index
    %c0_442 = arith.constant 0 : index
    %361 = vector.load %arg6[%c0_441, %c81, %c0_442] : memref<1x84x32xbf16, #tpu.memory_space<vmem>>, vector<1x3x32xbf16>
    %362 = vector.shape_cast %361 : vector<1x3x32xbf16> to vector<3x32xbf16>
    %363 = vector.shape_cast %360 : vector<3x32xbf16> to vector<1x3x32xbf16>
    tpu.vector_store %arg6[%c0_441, %c81, %c0_442], %363 {strides = array<i32>} : memref<1x84x32xbf16, #tpu.memory_space<vmem>>, vector<1x3x32xbf16>,
    %c0_443 = arith.constant 0 : index
    %c0_444 = arith.constant 0 : index
    %364 = tpu.strided_load %arg7[%c0_443, %c0_444] {strides = array<i32: 2, 1>} : memref<400x16xf32, #tpu.memory_space<vmem>>, vector<9x16xf32>
    %c1_445 = arith.constant 1 : index
    %c0_446 = arith.constant 0 : index
    %365 = tpu.strided_load %arg7[%c1_445, %c0_446] {strides = array<i32: 2, 1>} : memref<400x16xf32, #tpu.memory_space<vmem>>, vector<9x16xf32>
    %c2_447 = arith.constant 2 : index
    %c0_448 = arith.constant 0 : index
    %366 = tpu.strided_load %arg7[%c2_447, %c0_448] {strides = array<i32: 2, 1>} : memref<400x16xf32, #tpu.memory_space<vmem>>, vector<9x16xf32>
    %c3_449 = arith.constant 3 : index
    %c0_450 = arith.constant 0 : index
    %367 = tpu.strided_load %arg7[%c3_449, %c0_450] {strides = array<i32: 2, 1>} : memref<400x16xf32, #tpu.memory_space<vmem>>, vector<9x16xf32>
    %c20_451 = arith.constant 20 : index
    %c0_452 = arith.constant 0 : index
    %368 = tpu.strided_load %arg7[%c20_451, %c0_452] {strides = array<i32: 2, 1>} : memref<400x16xf32, #tpu.memory_space<vmem>>, vector<9x16xf32>
    %c21 = arith.constant 21 : index
    %c0_453 = arith.constant 0 : index
    %369 = tpu.strided_load %arg7[%c21, %c0_453] {strides = array<i32: 2, 1>} : memref<400x16xf32, #tpu.memory_space<vmem>>, vector<9x16xf32>
    %c22 = arith.constant 22 : index
    %c0_454 = arith.constant 0 : index
    %370 = tpu.strided_load %arg7[%c22, %c0_454] {strides = array<i32: 2, 1>} : memref<400x16xf32, #tpu.memory_space<vmem>>, vector<9x16xf32>
    %c23 = arith.constant 23 : index
    %c0_455 = arith.constant 0 : index
    %371 = tpu.strided_load %arg7[%c23, %c0_455] {strides = array<i32: 2, 1>} : memref<400x16xf32, #tpu.memory_space<vmem>>, vector<9x16xf32>
    %c40_456 = arith.constant 40 : index
    %c0_457 = arith.constant 0 : index
    %372 = tpu.strided_load %arg7[%c40_456, %c0_457] {strides = array<i32: 2, 1>} : memref<400x16xf32, #tpu.memory_space<vmem>>, vector<9x16xf32>
    %c41 = arith.constant 41 : index
    %c0_458 = arith.constant 0 : index
    %373 = tpu.strided_load %arg7[%c41, %c0_458] {strides = array<i32: 2, 1>} : memref<400x16xf32, #tpu.memory_space<vmem>>, vector<9x16xf32>
    %c42 = arith.constant 42 : index
    %c0_459 = arith.constant 0 : index
    %374 = tpu.strided_load %arg7[%c42, %c0_459] {strides = array<i32: 2, 1>} : memref<400x16xf32, #tpu.memory_space<vmem>>, vector<9x16xf32>
    %c43 = arith.constant 43 : index
    %c0_460 = arith.constant 0 : index
    %375 = tpu.strided_load %arg7[%c43, %c0_460] {strides = array<i32: 2, 1>} : memref<400x16xf32, #tpu.memory_space<vmem>>, vector<9x16xf32>
    %c60_461 = arith.constant 60 : index
    %c0_462 = arith.constant 0 : index
    %376 = tpu.strided_load %arg7[%c60_461, %c0_462] {strides = array<i32: 2, 1>} : memref<400x16xf32, #tpu.memory_space<vmem>>, vector<9x16xf32>
    %c61 = arith.constant 61 : index
    %c0_463 = arith.constant 0 : index
    %377 = tpu.strided_load %arg7[%c61, %c0_463] {strides = array<i32: 2, 1>} : memref<400x16xf32, #tpu.memory_space<vmem>>, vector<9x16xf32>
    %c62 = arith.constant 62 : index
    %c0_464 = arith.constant 0 : index
    %378 = tpu.strided_load %arg7[%c62, %c0_464] {strides = array<i32: 2, 1>} : memref<400x16xf32, #tpu.memory_space<vmem>>, vector<9x16xf32>
    %c63 = arith.constant 63 : index
    %c0_465 = arith.constant 0 : index
    %379 = tpu.strided_load %arg7[%c63, %c0_465] {strides = array<i32: 2, 1>} : memref<400x16xf32, #tpu.memory_space<vmem>>, vector<9x16xf32>
    %380 = tpu.concatenate %364, %365, %366, %367, %368, %369, %370, %371, %372, %373, %374, %375, %376, %377, %378, %379 in 1 : vector<9x16xf32>, vector<9x16xf32>, vector<9x16xf32>, vector<9x16xf32>, vector<9x16xf32>, vector<9x16xf32>, vector<9x16xf32>, vector<9x16xf32>, vector<9x16xf32>, vector<9x16xf32>, vector<9x16xf32>, vector<9x16xf32>, vector<9x16xf32>, vector<9x16xf32>, vector<9x16xf32>, vector<9x16xf32> -> vector<9x256xf32>
    %381 = arith.truncf %380 : vector<9x256xf32> to vector<9x256xbf16>
    %c0_466 = arith.constant 0 : index
    %c0_467 = arith.constant 0 : index
    %382 = vector.load %arg4[%c0_466, %c0_467] : memref<256x32xbf16, #tpu.memory_space<vmem>>, vector<256x32xbf16>
    %cst_468 = arith.constant dense<0.000000e+00> : vector<9x32xf32>
    %383 = tpu.matmul %381, %382, %cst_468 {dimension_numbers = #tpu.dot_dimension_numbers<[1], [0], [0], [1], [0, 0, 1, 1], [], []>} : vector<9x256xbf16>, vector<256x32xbf16>, vector<9x32xf32> -> vector<9x32xf32>
    %c0_469 = arith.constant 0 : index
    %c0_470 = arith.constant 0 : index
    %384 = vector.load %arg5[%c0_469, %c0_470] : memref<1x32xf32, #tpu.memory_space<vmem>>, vector<1x32xf32>
    %385 = vector.broadcast %384 : vector<1x32xf32> to vector<9x32xf32>
    %386 = arith.addf %383, %385 : vector<9x32xf32>
    %cst_471 = arith.constant 0.000000e+00 : f32
    %387 = vector.broadcast %cst_471 : f32 to vector<9x32xf32>
    %388 = arith.maximumf %386, %387 : vector<9x32xf32>
    %389 = arith.truncf %388 : vector<9x32xf32> to vector<9x32xbf16>
    %c0_472 = arith.constant 0 : index
    %c0_473 = arith.constant 0 : index
    %c0_474 = arith.constant 0 : index
    %390 = vector.load %arg6[%c0_472, %c0_473, %c0_474] : memref<1x84x32xbf16, #tpu.memory_space<vmem>>, vector<1x9x32xbf16>
    %391 = vector.shape_cast %390 : vector<1x9x32xbf16> to vector<9x32xbf16>
    %392 = vector.shape_cast %389 : vector<9x32xbf16> to vector<1x9x32xbf16>
    tpu.vector_store %arg6[%c0_472, %c0_473, %c0_474], %392 {strides = array<i32>} : memref<1x84x32xbf16, #tpu.memory_space<vmem>>, vector<1x9x32xbf16>,
    %c40_475 = arith.constant 40 : index
    %c0_476 = arith.constant 0 : index
    %393 = tpu.strided_load %arg7[%c40_475, %c0_476] {strides = array<i32: 2, 1>} : memref<400x16xf32, #tpu.memory_space<vmem>>, vector<9x16xf32>
    %c41_477 = arith.constant 41 : index
    %c0_478 = arith.constant 0 : index
    %394 = tpu.strided_load %arg7[%c41_477, %c0_478] {strides = array<i32: 2, 1>} : memref<400x16xf32, #tpu.memory_space<vmem>>, vector<9x16xf32>
    %c42_479 = arith.constant 42 : index
    %c0_480 = arith.constant 0 : index
    %395 = tpu.strided_load %arg7[%c42_479, %c0_480] {strides = array<i32: 2, 1>} : memref<400x16xf32, #tpu.memory_space<vmem>>, vector<9x16xf32>
    %c43_481 = arith.constant 43 : index
    %c0_482 = arith.constant 0 : index
    %396 = tpu.strided_load %arg7[%c43_481, %c0_482] {strides = array<i32: 2, 1>} : memref<400x16xf32, #tpu.memory_space<vmem>>, vector<9x16xf32>
    %c60_483 = arith.constant 60 : index
    %c0_484 = arith.constant 0 : index
    %397 = tpu.strided_load %arg7[%c60_483, %c0_484] {strides = array<i32: 2, 1>} : memref<400x16xf32, #tpu.memory_space<vmem>>, vector<9x16xf32>
    %c61_485 = arith.constant 61 : index
    %c0_486 = arith.constant 0 : index
    %398 = tpu.strided_load %arg7[%c61_485, %c0_486] {strides = array<i32: 2, 1>} : memref<400x16xf32, #tpu.memory_space<vmem>>, vector<9x16xf32>
    %c62_487 = arith.constant 62 : index
    %c0_488 = arith.constant 0 : index
    %399 = tpu.strided_load %arg7[%c62_487, %c0_488] {strides = array<i32: 2, 1>} : memref<400x16xf32, #tpu.memory_space<vmem>>, vector<9x16xf32>
    %c63_489 = arith.constant 63 : index
    %c0_490 = arith.constant 0 : index
    %400 = tpu.strided_load %arg7[%c63_489, %c0_490] {strides = array<i32: 2, 1>} : memref<400x16xf32, #tpu.memory_space<vmem>>, vector<9x16xf32>
    %c80_491 = arith.constant 80 : index
    %c0_492 = arith.constant 0 : index
    %401 = tpu.strided_load %arg7[%c80_491, %c0_492] {strides = array<i32: 2, 1>} : memref<400x16xf32, #tpu.memory_space<vmem>>, vector<9x16xf32>
    %c81_493 = arith.constant 81 : index
    %c0_494 = arith.constant 0 : index
    %402 = tpu.strided_load %arg7[%c81_493, %c0_494] {strides = array<i32: 2, 1>} : memref<400x16xf32, #tpu.memory_space<vmem>>, vector<9x16xf32>
    %c82 = arith.constant 82 : index
    %c0_495 = arith.constant 0 : index
    %403 = tpu.strided_load %arg7[%c82, %c0_495] {strides = array<i32: 2, 1>} : memref<400x16xf32, #tpu.memory_space<vmem>>, vector<9x16xf32>
    %c83 = arith.constant 83 : index
    %c0_496 = arith.constant 0 : index
    %404 = tpu.strided_load %arg7[%c83, %c0_496] {strides = array<i32: 2, 1>} : memref<400x16xf32, #tpu.memory_space<vmem>>, vector<9x16xf32>
    %c100_497 = arith.constant 100 : index
    %c0_498 = arith.constant 0 : index
    %405 = tpu.strided_load %arg7[%c100_497, %c0_498] {strides = array<i32: 2, 1>} : memref<400x16xf32, #tpu.memory_space<vmem>>, vector<9x16xf32>
    %c101 = arith.constant 101 : index
    %c0_499 = arith.constant 0 : index
    %406 = tpu.strided_load %arg7[%c101, %c0_499] {strides = array<i32: 2, 1>} : memref<400x16xf32, #tpu.memory_space<vmem>>, vector<9x16xf32>
    %c102 = arith.constant 102 : index
    %c0_500 = arith.constant 0 : index
    %407 = tpu.strided_load %arg7[%c102, %c0_500] {strides = array<i32: 2, 1>} : memref<400x16xf32, #tpu.memory_space<vmem>>, vector<9x16xf32>
    %c103 = arith.constant 103 : index
    %c0_501 = arith.constant 0 : index
    %408 = tpu.strided_load %arg7[%c103, %c0_501] {strides = array<i32: 2, 1>} : memref<400x16xf32, #tpu.memory_space<vmem>>, vector<9x16xf32>
    %409 = tpu.concatenate %393, %394, %395, %396, %397, %398, %399, %400, %401, %402, %403, %404, %405, %406, %407, %408 in 1 : vector<9x16xf32>, vector<9x16xf32>, vector<9x16xf32>, vector<9x16xf32>, vector<9x16xf32>, vector<9x16xf32>, vector<9x16xf32>, vector<9x16xf32>, vector<9x16xf32>, vector<9x16xf32>, vector<9x16xf32>, vector<9x16xf32>, vector<9x16xf32>, vector<9x16xf32>, vector<9x16xf32>, vector<9x16xf32> -> vector<9x256xf32>
    %410 = arith.truncf %409 : vector<9x256xf32> to vector<9x256xbf16>
    %c0_502 = arith.constant 0 : index
    %c0_503 = arith.constant 0 : index
    %411 = vector.load %arg4[%c0_502, %c0_503] : memref<256x32xbf16, #tpu.memory_space<vmem>>, vector<256x32xbf16>
    %cst_504 = arith.constant dense<0.000000e+00> : vector<9x32xf32>
    %412 = tpu.matmul %410, %411, %cst_504 {dimension_numbers = #tpu.dot_dimension_numbers<[1], [0], [0], [1], [0, 0, 1, 1], [], []>} : vector<9x256xbf16>, vector<256x32xbf16>, vector<9x32xf32> -> vector<9x32xf32>
    %c0_505 = arith.constant 0 : index
    %c0_506 = arith.constant 0 : index
    %413 = vector.load %arg5[%c0_505, %c0_506] : memref<1x32xf32, #tpu.memory_space<vmem>>, vector<1x32xf32>
    %414 = vector.broadcast %413 : vector<1x32xf32> to vector<9x32xf32>
    %415 = arith.addf %412, %414 : vector<9x32xf32>
    %cst_507 = arith.constant 0.000000e+00 : f32
    %416 = vector.broadcast %cst_507 : f32 to vector<9x32xf32>
    %417 = arith.maximumf %415, %416 : vector<9x32xf32>
    %418 = arith.truncf %417 : vector<9x32xf32> to vector<9x32xbf16>
    %c0_508 = arith.constant 0 : index
    %c9_509 = arith.constant 9 : index
    %c0_510 = arith.constant 0 : index
    %419 = vector.load %arg6[%c0_508, %c9_509, %c0_510] : memref<1x84x32xbf16, #tpu.memory_space<vmem>>, vector<1x9x32xbf16>
    %420 = vector.shape_cast %419 : vector<1x9x32xbf16> to vector<9x32xbf16>
    %421 = vector.shape_cast %418 : vector<9x32xbf16> to vector<1x9x32xbf16>
    tpu.vector_store %arg6[%c0_508, %c9_509, %c0_510], %421 {strides = array<i32>} : memref<1x84x32xbf16, #tpu.memory_space<vmem>>, vector<1x9x32xbf16>,
    %c80_511 = arith.constant 80 : index
    %c0_512 = arith.constant 0 : index
    %422 = tpu.strided_load %arg7[%c80_511, %c0_512] {strides = array<i32: 2, 1>} : memref<400x16xf32, #tpu.memory_space<vmem>>, vector<9x16xf32>
    %c81_513 = arith.constant 81 : index
    %c0_514 = arith.constant 0 : index
    %423 = tpu.strided_load %arg7[%c81_513, %c0_514] {strides = array<i32: 2, 1>} : memref<400x16xf32, #tpu.memory_space<vmem>>, vector<9x16xf32>
    %c82_515 = arith.constant 82 : index
    %c0_516 = arith.constant 0 : index
    %424 = tpu.strided_load %arg7[%c82_515, %c0_516] {strides = array<i32: 2, 1>} : memref<400x16xf32, #tpu.memory_space<vmem>>, vector<9x16xf32>
    %c83_517 = arith.constant 83 : index
    %c0_518 = arith.constant 0 : index
    %425 = tpu.strided_load %arg7[%c83_517, %c0_518] {strides = array<i32: 2, 1>} : memref<400x16xf32, #tpu.memory_space<vmem>>, vector<9x16xf32>
    %c100_519 = arith.constant 100 : index
    %c0_520 = arith.constant 0 : index
    %426 = tpu.strided_load %arg7[%c100_519, %c0_520] {strides = array<i32: 2, 1>} : memref<400x16xf32, #tpu.memory_space<vmem>>, vector<9x16xf32>
    %c101_521 = arith.constant 101 : index
    %c0_522 = arith.constant 0 : index
    %427 = tpu.strided_load %arg7[%c101_521, %c0_522] {strides = array<i32: 2, 1>} : memref<400x16xf32, #tpu.memory_space<vmem>>, vector<9x16xf32>
    %c102_523 = arith.constant 102 : index
    %c0_524 = arith.constant 0 : index
    %428 = tpu.strided_load %arg7[%c102_523, %c0_524] {strides = array<i32: 2, 1>} : memref<400x16xf32, #tpu.memory_space<vmem>>, vector<9x16xf32>
    %c103_525 = arith.constant 103 : index
    %c0_526 = arith.constant 0 : index
    %429 = tpu.strided_load %arg7[%c103_525, %c0_526] {strides = array<i32: 2, 1>} : memref<400x16xf32, #tpu.memory_space<vmem>>, vector<9x16xf32>
    %c120_527 = arith.constant 120 : index
    %c0_528 = arith.constant 0 : index
    %430 = tpu.strided_load %arg7[%c120_527, %c0_528] {strides = array<i32: 2, 1>} : memref<400x16xf32, #tpu.memory_space<vmem>>, vector<9x16xf32>
    %c121 = arith.constant 121 : index
    %c0_529 = arith.constant 0 : index
    %431 = tpu.strided_load %arg7[%c121, %c0_529] {strides = array<i32: 2, 1>} : memref<400x16xf32, #tpu.memory_space<vmem>>, vector<9x16xf32>
    %c122 = arith.constant 122 : index
    %c0_530 = arith.constant 0 : index
    %432 = tpu.strided_load %arg7[%c122, %c0_530] {strides = array<i32: 2, 1>} : memref<400x16xf32, #tpu.memory_space<vmem>>, vector<9x16xf32>
    %c123 = arith.constant 123 : index
    %c0_531 = arith.constant 0 : index
    %433 = tpu.strided_load %arg7[%c123, %c0_531] {strides = array<i32: 2, 1>} : memref<400x16xf32, #tpu.memory_space<vmem>>, vector<9x16xf32>
    %c140_532 = arith.constant 140 : index
    %c0_533 = arith.constant 0 : index
    %434 = tpu.strided_load %arg7[%c140_532, %c0_533] {strides = array<i32: 2, 1>} : memref<400x16xf32, #tpu.memory_space<vmem>>, vector<9x16xf32>
    %c141 = arith.constant 141 : index
    %c0_534 = arith.constant 0 : index
    %435 = tpu.strided_load %arg7[%c141, %c0_534] {strides = array<i32: 2, 1>} : memref<400x16xf32, #tpu.memory_space<vmem>>, vector<9x16xf32>
    %c142 = arith.constant 142 : index
    %c0_535 = arith.constant 0 : index
    %436 = tpu.strided_load %arg7[%c142, %c0_535] {strides = array<i32: 2, 1>} : memref<400x16xf32, #tpu.memory_space<vmem>>, vector<9x16xf32>
    %c143 = arith.constant 143 : index
    %c0_536 = arith.constant 0 : index
    %437 = tpu.strided_load %arg7[%c143, %c0_536] {strides = array<i32: 2, 1>} : memref<400x16xf32, #tpu.memory_space<vmem>>, vector<9x16xf32>
    %438 = tpu.concatenate %422, %423, %424, %425, %426, %427, %428, %429, %430, %431, %432, %433, %434, %435, %436, %437 in 1 : vector<9x16xf32>, vector<9x16xf32>, vector<9x16xf32>, vector<9x16xf32>, vector<9x16xf32>, vector<9x16xf32>, vector<9x16xf32>, vector<9x16xf32>, vector<9x16xf32>, vector<9x16xf32>, vector<9x16xf32>, vector<9x16xf32>, vector<9x16xf32>, vector<9x16xf32>, vector<9x16xf32>, vector<9x16xf32> -> vector<9x256xf32>
    %439 = arith.truncf %438 : vector<9x256xf32> to vector<9x256xbf16>
    %c0_537 = arith.constant 0 : index
    %c0_538 = arith.constant 0 : index
    %440 = vector.load %arg4[%c0_537, %c0_538] : memref<256x32xbf16, #tpu.memory_space<vmem>>, vector<256x32xbf16>
    %cst_539 = arith.constant dense<0.000000e+00> : vector<9x32xf32>
    %441 = tpu.matmul %439, %440, %cst_539 {dimension_numbers = #tpu.dot_dimension_numbers<[1], [0], [0], [1], [0, 0, 1, 1], [], []>} : vector<9x256xbf16>, vector<256x32xbf16>, vector<9x32xf32> -> vector<9x32xf32>
    %c0_540 = arith.constant 0 : index
    %c0_541 = arith.constant 0 : index
    %442 = vector.load %arg5[%c0_540, %c0_541] : memref<1x32xf32, #tpu.memory_space<vmem>>, vector<1x32xf32>
    %443 = vector.broadcast %442 : vector<1x32xf32> to vector<9x32xf32>
    %444 = arith.addf %441, %443 : vector<9x32xf32>
    %cst_542 = arith.constant 0.000000e+00 : f32
    %445 = vector.broadcast %cst_542 : f32 to vector<9x32xf32>
    %446 = arith.maximumf %444, %445 : vector<9x32xf32>
    %447 = arith.truncf %446 : vector<9x32xf32> to vector<9x32xbf16>
    %c0_543 = arith.constant 0 : index
    %c18_544 = arith.constant 18 : index
    %c0_545 = arith.constant 0 : index
    %448 = vector.load %arg6[%c0_543, %c18_544, %c0_545] : memref<1x84x32xbf16, #tpu.memory_space<vmem>>, vector<1x9x32xbf16>
    %449 = vector.shape_cast %448 : vector<1x9x32xbf16> to vector<9x32xbf16>
    %450 = vector.shape_cast %447 : vector<9x32xbf16> to vector<1x9x32xbf16>
    tpu.vector_store %arg6[%c0_543, %c18_544, %c0_545], %450 {strides = array<i32>} : memref<1x84x32xbf16, #tpu.memory_space<vmem>>, vector<1x9x32xbf16>,
    %c120_546 = arith.constant 120 : index
    %c0_547 = arith.constant 0 : index
    %451 = tpu.strided_load %arg7[%c120_546, %c0_547] {strides = array<i32: 2, 1>} : memref<400x16xf32, #tpu.memory_space<vmem>>, vector<9x16xf32>
    %c121_548 = arith.constant 121 : index
    %c0_549 = arith.constant 0 : index
    %452 = tpu.strided_load %arg7[%c121_548, %c0_549] {strides = array<i32: 2, 1>} : memref<400x16xf32, #tpu.memory_space<vmem>>, vector<9x16xf32>
    %c122_550 = arith.constant 122 : index
    %c0_551 = arith.constant 0 : index
    %453 = tpu.strided_load %arg7[%c122_550, %c0_551] {strides = array<i32: 2, 1>} : memref<400x16xf32, #tpu.memory_space<vmem>>, vector<9x16xf32>
    %c123_552 = arith.constant 123 : index
    %c0_553 = arith.constant 0 : index
    %454 = tpu.strided_load %arg7[%c123_552, %c0_553] {strides = array<i32: 2, 1>} : memref<400x16xf32, #tpu.memory_space<vmem>>, vector<9x16xf32>
    %c140_554 = arith.constant 140 : index
    %c0_555 = arith.constant 0 : index
    %455 = tpu.strided_load %arg7[%c140_554, %c0_555] {strides = array<i32: 2, 1>} : memref<400x16xf32, #tpu.memory_space<vmem>>, vector<9x16xf32>
    %c141_556 = arith.constant 141 : index
    %c0_557 = arith.constant 0 : index
    %456 = tpu.strided_load %arg7[%c141_556, %c0_557] {strides = array<i32: 2, 1>} : memref<400x16xf32, #tpu.memory_space<vmem>>, vector<9x16xf32>
    %c142_558 = arith.constant 142 : index
    %c0_559 = arith.constant 0 : index
    %457 = tpu.strided_load %arg7[%c142_558, %c0_559] {strides = array<i32: 2, 1>} : memref<400x16xf32, #tpu.memory_space<vmem>>, vector<9x16xf32>
    %c143_560 = arith.constant 143 : index
    %c0_561 = arith.constant 0 : index
    %458 = tpu.strided_load %arg7[%c143_560, %c0_561] {strides = array<i32: 2, 1>} : memref<400x16xf32, #tpu.memory_space<vmem>>, vector<9x16xf32>
    %c160_562 = arith.constant 160 : index
    %c0_563 = arith.constant 0 : index
    %459 = tpu.strided_load %arg7[%c160_562, %c0_563] {strides = array<i32: 2, 1>} : memref<400x16xf32, #tpu.memory_space<vmem>>, vector<9x16xf32>
    %c161 = arith.constant 161 : index
    %c0_564 = arith.constant 0 : index
    %460 = tpu.strided_load %arg7[%c161, %c0_564] {strides = array<i32: 2, 1>} : memref<400x16xf32, #tpu.memory_space<vmem>>, vector<9x16xf32>
    %c162 = arith.constant 162 : index
    %c0_565 = arith.constant 0 : index
    %461 = tpu.strided_load %arg7[%c162, %c0_565] {strides = array<i32: 2, 1>} : memref<400x16xf32, #tpu.memory_space<vmem>>, vector<9x16xf32>
    %c163 = arith.constant 163 : index
    %c0_566 = arith.constant 0 : index
    %462 = tpu.strided_load %arg7[%c163, %c0_566] {strides = array<i32: 2, 1>} : memref<400x16xf32, #tpu.memory_space<vmem>>, vector<9x16xf32>
    %c180_567 = arith.constant 180 : index
    %c0_568 = arith.constant 0 : index
    %463 = tpu.strided_load %arg7[%c180_567, %c0_568] {strides = array<i32: 2, 1>} : memref<400x16xf32, #tpu.memory_space<vmem>>, vector<9x16xf32>
    %c181 = arith.constant 181 : index
    %c0_569 = arith.constant 0 : index
    %464 = tpu.strided_load %arg7[%c181, %c0_569] {strides = array<i32: 2, 1>} : memref<400x16xf32, #tpu.memory_space<vmem>>, vector<9x16xf32>
    %c182 = arith.constant 182 : index
    %c0_570 = arith.constant 0 : index
    %465 = tpu.strided_load %arg7[%c182, %c0_570] {strides = array<i32: 2, 1>} : memref<400x16xf32, #tpu.memory_space<vmem>>, vector<9x16xf32>
    %c183 = arith.constant 183 : index
    %c0_571 = arith.constant 0 : index
    %466 = tpu.strided_load %arg7[%c183, %c0_571] {strides = array<i32: 2, 1>} : memref<400x16xf32, #tpu.memory_space<vmem>>, vector<9x16xf32>
    %467 = tpu.concatenate %451, %452, %453, %454, %455, %456, %457, %458, %459, %460, %461, %462, %463, %464, %465, %466 in 1 : vector<9x16xf32>, vector<9x16xf32>, vector<9x16xf32>, vector<9x16xf32>, vector<9x16xf32>, vector<9x16xf32>, vector<9x16xf32>, vector<9x16xf32>, vector<9x16xf32>, vector<9x16xf32>, vector<9x16xf32>, vector<9x16xf32>, vector<9x16xf32>, vector<9x16xf32>, vector<9x16xf32>, vector<9x16xf32> -> vector<9x256xf32>
    %468 = arith.truncf %467 : vector<9x256xf32> to vector<9x256xbf16>
    %c0_572 = arith.constant 0 : index
    %c0_573 = arith.constant 0 : index
    %469 = vector.load %arg4[%c0_572, %c0_573] : memref<256x32xbf16, #tpu.memory_space<vmem>>, vector<256x32xbf16>
    %cst_574 = arith.constant dense<0.000000e+00> : vector<9x32xf32>
    %470 = tpu.matmul %468, %469, %cst_574 {dimension_numbers = #tpu.dot_dimension_numbers<[1], [0], [0], [1], [0, 0, 1, 1], [], []>} : vector<9x256xbf16>, vector<256x32xbf16>, vector<9x32xf32> -> vector<9x32xf32>
    %c0_575 = arith.constant 0 : index
    %c0_576 = arith.constant 0 : index
    %471 = vector.load %arg5[%c0_575, %c0_576] : memref<1x32xf32, #tpu.memory_space<vmem>>, vector<1x32xf32>
    %472 = vector.broadcast %471 : vector<1x32xf32> to vector<9x32xf32>
    %473 = arith.addf %470, %472 : vector<9x32xf32>
    %cst_577 = arith.constant 0.000000e+00 : f32
    %474 = vector.broadcast %cst_577 : f32 to vector<9x32xf32>
    %475 = arith.maximumf %473, %474 : vector<9x32xf32>
    %476 = arith.truncf %475 : vector<9x32xf32> to vector<9x32xbf16>
    %c0_578 = arith.constant 0 : index
    %c27 = arith.constant 27 : index
    %c0_579 = arith.constant 0 : index
    %477 = vector.load %arg6[%c0_578, %c27, %c0_579] : memref<1x84x32xbf16, #tpu.memory_space<vmem>>, vector<1x9x32xbf16>
    %478 = vector.shape_cast %477 : vector<1x9x32xbf16> to vector<9x32xbf16>
    %479 = vector.shape_cast %476 : vector<9x32xbf16> to vector<1x9x32xbf16>
    tpu.vector_store %arg6[%c0_578, %c27, %c0_579], %479 {strides = array<i32>} : memref<1x84x32xbf16, #tpu.memory_space<vmem>>, vector<1x9x32xbf16>,
    %c160_580 = arith.constant 160 : index
    %c0_581 = arith.constant 0 : index
    %480 = tpu.strided_load %arg7[%c160_580, %c0_581] {strides = array<i32: 2, 1>} : memref<400x16xf32, #tpu.memory_space<vmem>>, vector<9x16xf32>
    %c161_582 = arith.constant 161 : index
    %c0_583 = arith.constant 0 : index
    %481 = tpu.strided_load %arg7[%c161_582, %c0_583] {strides = array<i32: 2, 1>} : memref<400x16xf32, #tpu.memory_space<vmem>>, vector<9x16xf32>
    %c162_584 = arith.constant 162 : index
    %c0_585 = arith.constant 0 : index
    %482 = tpu.strided_load %arg7[%c162_584, %c0_585] {strides = array<i32: 2, 1>} : memref<400x16xf32, #tpu.memory_space<vmem>>, vector<9x16xf32>
    %c163_586 = arith.constant 163 : index
    %c0_587 = arith.constant 0 : index
    %483 = tpu.strided_load %arg7[%c163_586, %c0_587] {strides = array<i32: 2, 1>} : memref<400x16xf32, #tpu.memory_space<vmem>>, vector<9x16xf32>
    %c180_588 = arith.constant 180 : index
    %c0_589 = arith.constant 0 : index
    %484 = tpu.strided_load %arg7[%c180_588, %c0_589] {strides = array<i32: 2, 1>} : memref<400x16xf32, #tpu.memory_space<vmem>>, vector<9x16xf32>
    %c181_590 = arith.constant 181 : index
    %c0_591 = arith.constant 0 : index
    %485 = tpu.strided_load %arg7[%c181_590, %c0_591] {strides = array<i32: 2, 1>} : memref<400x16xf32, #tpu.memory_space<vmem>>, vector<9x16xf32>
    %c182_592 = arith.constant 182 : index
    %c0_593 = arith.constant 0 : index
    %486 = tpu.strided_load %arg7[%c182_592, %c0_593] {strides = array<i32: 2, 1>} : memref<400x16xf32, #tpu.memory_space<vmem>>, vector<9x16xf32>
    %c183_594 = arith.constant 183 : index
    %c0_595 = arith.constant 0 : index
    %487 = tpu.strided_load %arg7[%c183_594, %c0_595] {strides = array<i32: 2, 1>} : memref<400x16xf32, #tpu.memory_space<vmem>>, vector<9x16xf32>
    %c200_596 = arith.constant 200 : index
    %c0_597 = arith.constant 0 : index
    %488 = tpu.strided_load %arg7[%c200_596, %c0_597] {strides = array<i32: 2, 1>} : memref<400x16xf32, #tpu.memory_space<vmem>>, vector<9x16xf32>
    %c201 = arith.constant 201 : index
    %c0_598 = arith.constant 0 : index
    %489 = tpu.strided_load %arg7[%c201, %c0_598] {strides = array<i32: 2, 1>} : memref<400x16xf32, #tpu.memory_space<vmem>>, vector<9x16xf32>
    %c202 = arith.constant 202 : index
    %c0_599 = arith.constant 0 : index
    %490 = tpu.strided_load %arg7[%c202, %c0_599] {strides = array<i32: 2, 1>} : memref<400x16xf32, #tpu.memory_space<vmem>>, vector<9x16xf32>
    %c203 = arith.constant 203 : index
    %c0_600 = arith.constant 0 : index
    %491 = tpu.strided_load %arg7[%c203, %c0_600] {strides = array<i32: 2, 1>} : memref<400x16xf32, #tpu.memory_space<vmem>>, vector<9x16xf32>
    %c220_601 = arith.constant 220 : index
    %c0_602 = arith.constant 0 : index
    %492 = tpu.strided_load %arg7[%c220_601, %c0_602] {strides = array<i32: 2, 1>} : memref<400x16xf32, #tpu.memory_space<vmem>>, vector<9x16xf32>
    %c221 = arith.constant 221 : index
    %c0_603 = arith.constant 0 : index
    %493 = tpu.strided_load %arg7[%c221, %c0_603] {strides = array<i32: 2, 1>} : memref<400x16xf32, #tpu.memory_space<vmem>>, vector<9x16xf32>
    %c222 = arith.constant 222 : index
    %c0_604 = arith.constant 0 : index
    %494 = tpu.strided_load %arg7[%c222, %c0_604] {strides = array<i32: 2, 1>} : memref<400x16xf32, #tpu.memory_space<vmem>>, vector<9x16xf32>
    %c223 = arith.constant 223 : index
    %c0_605 = arith.constant 0 : index
    %495 = tpu.strided_load %arg7[%c223, %c0_605] {strides = array<i32: 2, 1>} : memref<400x16xf32, #tpu.memory_space<vmem>>, vector<9x16xf32>
    %496 = tpu.concatenate %480, %481, %482, %483, %484, %485, %486, %487, %488, %489, %490, %491, %492, %493, %494, %495 in 1 : vector<9x16xf32>, vector<9x16xf32>, vector<9x16xf32>, vector<9x16xf32>, vector<9x16xf32>, vector<9x16xf32>, vector<9x16xf32>, vector<9x16xf32>, vector<9x16xf32>, vector<9x16xf32>, vector<9x16xf32>, vector<9x16xf32>, vector<9x16xf32>, vector<9x16xf32>, vector<9x16xf32>, vector<9x16xf32> -> vector<9x256xf32>
    %497 = arith.truncf %496 : vector<9x256xf32> to vector<9x256xbf16>
    %c0_606 = arith.constant 0 : index
    %c0_607 = arith.constant 0 : index
    %498 = vector.load %arg4[%c0_606, %c0_607] : memref<256x32xbf16, #tpu.memory_space<vmem>>, vector<256x32xbf16>
    %cst_608 = arith.constant dense<0.000000e+00> : vector<9x32xf32>
    %499 = tpu.matmul %497, %498, %cst_608 {dimension_numbers = #tpu.dot_dimension_numbers<[1], [0], [0], [1], [0, 0, 1, 1], [], []>} : vector<9x256xbf16>, vector<256x32xbf16>, vector<9x32xf32> -> vector<9x32xf32>
    %c0_609 = arith.constant 0 : index
    %c0_610 = arith.constant 0 : index
    %500 = vector.load %arg5[%c0_609, %c0_610] : memref<1x32xf32, #tpu.memory_space<vmem>>, vector<1x32xf32>
    %501 = vector.broadcast %500 : vector<1x32xf32> to vector<9x32xf32>
    %502 = arith.addf %499, %501 : vector<9x32xf32>
    %cst_611 = arith.constant 0.000000e+00 : f32
    %503 = vector.broadcast %cst_611 : f32 to vector<9x32xf32>
    %504 = arith.maximumf %502, %503 : vector<9x32xf32>
    %505 = arith.truncf %504 : vector<9x32xf32> to vector<9x32xbf16>
    %c0_612 = arith.constant 0 : index
    %c36 = arith.constant 36 : index
    %c0_613 = arith.constant 0 : index
    %506 = vector.load %arg6[%c0_612, %c36, %c0_613] : memref<1x84x32xbf16, #tpu.memory_space<vmem>>, vector<1x9x32xbf16>
    %507 = vector.shape_cast %506 : vector<1x9x32xbf16> to vector<9x32xbf16>
    %508 = vector.shape_cast %505 : vector<9x32xbf16> to vector<1x9x32xbf16>
    tpu.vector_store %arg6[%c0_612, %c36, %c0_613], %508 {strides = array<i32>} : memref<1x84x32xbf16, #tpu.memory_space<vmem>>, vector<1x9x32xbf16>,
    %c200_614 = arith.constant 200 : index
    %c0_615 = arith.constant 0 : index
    %509 = tpu.strided_load %arg7[%c200_614, %c0_615] {strides = array<i32: 2, 1>} : memref<400x16xf32, #tpu.memory_space<vmem>>, vector<9x16xf32>
    %c201_616 = arith.constant 201 : index
    %c0_617 = arith.constant 0 : index
    %510 = tpu.strided_load %arg7[%c201_616, %c0_617] {strides = array<i32: 2, 1>} : memref<400x16xf32, #tpu.memory_space<vmem>>, vector<9x16xf32>
    %c202_618 = arith.constant 202 : index
    %c0_619 = arith.constant 0 : index
    %511 = tpu.strided_load %arg7[%c202_618, %c0_619] {strides = array<i32: 2, 1>} : memref<400x16xf32, #tpu.memory_space<vmem>>, vector<9x16xf32>
    %c203_620 = arith.constant 203 : index
    %c0_621 = arith.constant 0 : index
    %512 = tpu.strided_load %arg7[%c203_620, %c0_621] {strides = array<i32: 2, 1>} : memref<400x16xf32, #tpu.memory_space<vmem>>, vector<9x16xf32>
    %c220_622 = arith.constant 220 : index
    %c0_623 = arith.constant 0 : index
    %513 = tpu.strided_load %arg7[%c220_622, %c0_623] {strides = array<i32: 2, 1>} : memref<400x16xf32, #tpu.memory_space<vmem>>, vector<9x16xf32>
    %c221_624 = arith.constant 221 : index
    %c0_625 = arith.constant 0 : index
    %514 = tpu.strided_load %arg7[%c221_624, %c0_625] {strides = array<i32: 2, 1>} : memref<400x16xf32, #tpu.memory_space<vmem>>, vector<9x16xf32>
    %c222_626 = arith.constant 222 : index
    %c0_627 = arith.constant 0 : index
    %515 = tpu.strided_load %arg7[%c222_626, %c0_627] {strides = array<i32: 2, 1>} : memref<400x16xf32, #tpu.memory_space<vmem>>, vector<9x16xf32>
    %c223_628 = arith.constant 223 : index
    %c0_629 = arith.constant 0 : index
    %516 = tpu.strided_load %arg7[%c223_628, %c0_629] {strides = array<i32: 2, 1>} : memref<400x16xf32, #tpu.memory_space<vmem>>, vector<9x16xf32>
    %c240_630 = arith.constant 240 : index
    %c0_631 = arith.constant 0 : index
    %517 = tpu.strided_load %arg7[%c240_630, %c0_631] {strides = array<i32: 2, 1>} : memref<400x16xf32, #tpu.memory_space<vmem>>, vector<9x16xf32>
    %c241 = arith.constant 241 : index
    %c0_632 = arith.constant 0 : index
    %518 = tpu.strided_load %arg7[%c241, %c0_632] {strides = array<i32: 2, 1>} : memref<400x16xf32, #tpu.memory_space<vmem>>, vector<9x16xf32>
    %c242 = arith.constant 242 : index
    %c0_633 = arith.constant 0 : index
    %519 = tpu.strided_load %arg7[%c242, %c0_633] {strides = array<i32: 2, 1>} : memref<400x16xf32, #tpu.memory_space<vmem>>, vector<9x16xf32>
    %c243 = arith.constant 243 : index
    %c0_634 = arith.constant 0 : index
    %520 = tpu.strided_load %arg7[%c243, %c0_634] {strides = array<i32: 2, 1>} : memref<400x16xf32, #tpu.memory_space<vmem>>, vector<9x16xf32>
    %c260_635 = arith.constant 260 : index
    %c0_636 = arith.constant 0 : index
    %521 = tpu.strided_load %arg7[%c260_635, %c0_636] {strides = array<i32: 2, 1>} : memref<400x16xf32, #tpu.memory_space<vmem>>, vector<9x16xf32>
    %c261 = arith.constant 261 : index
    %c0_637 = arith.constant 0 : index
    %522 = tpu.strided_load %arg7[%c261, %c0_637] {strides = array<i32: 2, 1>} : memref<400x16xf32, #tpu.memory_space<vmem>>, vector<9x16xf32>
    %c262 = arith.constant 262 : index
    %c0_638 = arith.constant 0 : index
    %523 = tpu.strided_load %arg7[%c262, %c0_638] {strides = array<i32: 2, 1>} : memref<400x16xf32, #tpu.memory_space<vmem>>, vector<9x16xf32>
    %c263 = arith.constant 263 : index
    %c0_639 = arith.constant 0 : index
    %524 = tpu.strided_load %arg7[%c263, %c0_639] {strides = array<i32: 2, 1>} : memref<400x16xf32, #tpu.memory_space<vmem>>, vector<9x16xf32>
    %525 = tpu.concatenate %509, %510, %511, %512, %513, %514, %515, %516, %517, %518, %519, %520, %521, %522, %523, %524 in 1 : vector<9x16xf32>, vector<9x16xf32>, vector<9x16xf32>, vector<9x16xf32>, vector<9x16xf32>, vector<9x16xf32>, vector<9x16xf32>, vector<9x16xf32>, vector<9x16xf32>, vector<9x16xf32>, vector<9x16xf32>, vector<9x16xf32>, vector<9x16xf32>, vector<9x16xf32>, vector<9x16xf32>, vector<9x16xf32> -> vector<9x256xf32>
    %526 = arith.truncf %525 : vector<9x256xf32> to vector<9x256xbf16>
    %c0_640 = arith.constant 0 : index
    %c0_641 = arith.constant 0 : index
    %527 = vector.load %arg4[%c0_640, %c0_641] : memref<256x32xbf16, #tpu.memory_space<vmem>>, vector<256x32xbf16>
    %cst_642 = arith.constant dense<0.000000e+00> : vector<9x32xf32>
    %528 = tpu.matmul %526, %527, %cst_642 {dimension_numbers = #tpu.dot_dimension_numbers<[1], [0], [0], [1], [0, 0, 1, 1], [], []>} : vector<9x256xbf16>, vector<256x32xbf16>, vector<9x32xf32> -> vector<9x32xf32>
    %c0_643 = arith.constant 0 : index
    %c0_644 = arith.constant 0 : index
    %529 = vector.load %arg5[%c0_643, %c0_644] : memref<1x32xf32, #tpu.memory_space<vmem>>, vector<1x32xf32>
    %530 = vector.broadcast %529 : vector<1x32xf32> to vector<9x32xf32>
    %531 = arith.addf %528, %530 : vector<9x32xf32>
    %cst_645 = arith.constant 0.000000e+00 : f32
    %532 = vector.broadcast %cst_645 : f32 to vector<9x32xf32>
    %533 = arith.maximumf %531, %532 : vector<9x32xf32>
    %534 = arith.truncf %533 : vector<9x32xf32> to vector<9x32xbf16>
    %c0_646 = arith.constant 0 : index
    %c45 = arith.constant 45 : index
    %c0_647 = arith.constant 0 : index
    %535 = vector.load %arg6[%c0_646, %c45, %c0_647] : memref<1x84x32xbf16, #tpu.memory_space<vmem>>, vector<1x9x32xbf16>
    %536 = vector.shape_cast %535 : vector<1x9x32xbf16> to vector<9x32xbf16>
    %537 = vector.shape_cast %534 : vector<9x32xbf16> to vector<1x9x32xbf16>
    tpu.vector_store %arg6[%c0_646, %c45, %c0_647], %537 {strides = array<i32>} : memref<1x84x32xbf16, #tpu.memory_space<vmem>>, vector<1x9x32xbf16>,
    %c240_648 = arith.constant 240 : index
    %c0_649 = arith.constant 0 : index
    %538 = tpu.strided_load %arg7[%c240_648, %c0_649] {strides = array<i32: 2, 1>} : memref<400x16xf32, #tpu.memory_space<vmem>>, vector<9x16xf32>
    %c241_650 = arith.constant 241 : index
    %c0_651 = arith.constant 0 : index
    %539 = tpu.strided_load %arg7[%c241_650, %c0_651] {strides = array<i32: 2, 1>} : memref<400x16xf32, #tpu.memory_space<vmem>>, vector<9x16xf32>
    %c242_652 = arith.constant 242 : index
    %c0_653 = arith.constant 0 : index
    %540 = tpu.strided_load %arg7[%c242_652, %c0_653] {strides = array<i32: 2, 1>} : memref<400x16xf32, #tpu.memory_space<vmem>>, vector<9x16xf32>
    %c243_654 = arith.constant 243 : index
    %c0_655 = arith.constant 0 : index
    %541 = tpu.strided_load %arg7[%c243_654, %c0_655] {strides = array<i32: 2, 1>} : memref<400x16xf32, #tpu.memory_space<vmem>>, vector<9x16xf32>
    %c260_656 = arith.constant 260 : index
    %c0_657 = arith.constant 0 : index
    %542 = tpu.strided_load %arg7[%c260_656, %c0_657] {strides = array<i32: 2, 1>} : memref<400x16xf32, #tpu.memory_space<vmem>>, vector<9x16xf32>
    %c261_658 = arith.constant 261 : index
    %c0_659 = arith.constant 0 : index
    %543 = tpu.strided_load %arg7[%c261_658, %c0_659] {strides = array<i32: 2, 1>} : memref<400x16xf32, #tpu.memory_space<vmem>>, vector<9x16xf32>
    %c262_660 = arith.constant 262 : index
    %c0_661 = arith.constant 0 : index
    %544 = tpu.strided_load %arg7[%c262_660, %c0_661] {strides = array<i32: 2, 1>} : memref<400x16xf32, #tpu.memory_space<vmem>>, vector<9x16xf32>
    %c263_662 = arith.constant 263 : index
    %c0_663 = arith.constant 0 : index
    %545 = tpu.strided_load %arg7[%c263_662, %c0_663] {strides = array<i32: 2, 1>} : memref<400x16xf32, #tpu.memory_space<vmem>>, vector<9x16xf32>
    %c280_664 = arith.constant 280 : index
    %c0_665 = arith.constant 0 : index
    %546 = tpu.strided_load %arg7[%c280_664, %c0_665] {strides = array<i32: 2, 1>} : memref<400x16xf32, #tpu.memory_space<vmem>>, vector<9x16xf32>
    %c281 = arith.constant 281 : index
    %c0_666 = arith.constant 0 : index
    %547 = tpu.strided_load %arg7[%c281, %c0_666] {strides = array<i32: 2, 1>} : memref<400x16xf32, #tpu.memory_space<vmem>>, vector<9x16xf32>
    %c282 = arith.constant 282 : index
    %c0_667 = arith.constant 0 : index
    %548 = tpu.strided_load %arg7[%c282, %c0_667] {strides = array<i32: 2, 1>} : memref<400x16xf32, #tpu.memory_space<vmem>>, vector<9x16xf32>
    %c283 = arith.constant 283 : index
    %c0_668 = arith.constant 0 : index
    %549 = tpu.strided_load %arg7[%c283, %c0_668] {strides = array<i32: 2, 1>} : memref<400x16xf32, #tpu.memory_space<vmem>>, vector<9x16xf32>
    %c300_669 = arith.constant 300 : index
    %c0_670 = arith.constant 0 : index
    %550 = tpu.strided_load %arg7[%c300_669, %c0_670] {strides = array<i32: 2, 1>} : memref<400x16xf32, #tpu.memory_space<vmem>>, vector<9x16xf32>
    %c301 = arith.constant 301 : index
    %c0_671 = arith.constant 0 : index
    %551 = tpu.strided_load %arg7[%c301, %c0_671] {strides = array<i32: 2, 1>} : memref<400x16xf32, #tpu.memory_space<vmem>>, vector<9x16xf32>
    %c302 = arith.constant 302 : index
    %c0_672 = arith.constant 0 : index
    %552 = tpu.strided_load %arg7[%c302, %c0_672] {strides = array<i32: 2, 1>} : memref<400x16xf32, #tpu.memory_space<vmem>>, vector<9x16xf32>
    %c303 = arith.constant 303 : index
    %c0_673 = arith.constant 0 : index
    %553 = tpu.strided_load %arg7[%c303, %c0_673] {strides = array<i32: 2, 1>} : memref<400x16xf32, #tpu.memory_space<vmem>>, vector<9x16xf32>
    %554 = tpu.concatenate %538, %539, %540, %541, %542, %543, %544, %545, %546, %547, %548, %549, %550, %551, %552, %553 in 1 : vector<9x16xf32>, vector<9x16xf32>, vector<9x16xf32>, vector<9x16xf32>, vector<9x16xf32>, vector<9x16xf32>, vector<9x16xf32>, vector<9x16xf32>, vector<9x16xf32>, vector<9x16xf32>, vector<9x16xf32>, vector<9x16xf32>, vector<9x16xf32>, vector<9x16xf32>, vector<9x16xf32>, vector<9x16xf32> -> vector<9x256xf32>
    %555 = arith.truncf %554 : vector<9x256xf32> to vector<9x256xbf16>
    %c0_674 = arith.constant 0 : index
    %c0_675 = arith.constant 0 : index
    %556 = vector.load %arg4[%c0_674, %c0_675] : memref<256x32xbf16, #tpu.memory_space<vmem>>, vector<256x32xbf16>
    %cst_676 = arith.constant dense<0.000000e+00> : vector<9x32xf32>
    %557 = tpu.matmul %555, %556, %cst_676 {dimension_numbers = #tpu.dot_dimension_numbers<[1], [0], [0], [1], [0, 0, 1, 1], [], []>} : vector<9x256xbf16>, vector<256x32xbf16>, vector<9x32xf32> -> vector<9x32xf32>
    %c0_677 = arith.constant 0 : index
    %c0_678 = arith.constant 0 : index
    %558 = vector.load %arg5[%c0_677, %c0_678] : memref<1x32xf32, #tpu.memory_space<vmem>>, vector<1x32xf32>
    %559 = vector.broadcast %558 : vector<1x32xf32> to vector<9x32xf32>
    %560 = arith.addf %557, %559 : vector<9x32xf32>
    %cst_679 = arith.constant 0.000000e+00 : f32
    %561 = vector.broadcast %cst_679 : f32 to vector<9x32xf32>
    %562 = arith.maximumf %560, %561 : vector<9x32xf32>
    %563 = arith.truncf %562 : vector<9x32xf32> to vector<9x32xbf16>
    %c0_680 = arith.constant 0 : index
    %c54 = arith.constant 54 : index
    %c0_681 = arith.constant 0 : index
    %564 = vector.load %arg6[%c0_680, %c54, %c0_681] : memref<1x84x32xbf16, #tpu.memory_space<vmem>>, vector<1x9x32xbf16>
    %565 = vector.shape_cast %564 : vector<1x9x32xbf16> to vector<9x32xbf16>
    %566 = vector.shape_cast %563 : vector<9x32xbf16> to vector<1x9x32xbf16>
    tpu.vector_store %arg6[%c0_680, %c54, %c0_681], %566 {strides = array<i32>} : memref<1x84x32xbf16, #tpu.memory_space<vmem>>, vector<1x9x32xbf16>,
    %c280_682 = arith.constant 280 : index
    %c0_683 = arith.constant 0 : index
    %567 = tpu.strided_load %arg7[%c280_682, %c0_683] {strides = array<i32: 2, 1>} : memref<400x16xf32, #tpu.memory_space<vmem>>, vector<9x16xf32>
    %c281_684 = arith.constant 281 : index
    %c0_685 = arith.constant 0 : index
    %568 = tpu.strided_load %arg7[%c281_684, %c0_685] {strides = array<i32: 2, 1>} : memref<400x16xf32, #tpu.memory_space<vmem>>, vector<9x16xf32>
    %c282_686 = arith.constant 282 : index
    %c0_687 = arith.constant 0 : index
    %569 = tpu.strided_load %arg7[%c282_686, %c0_687] {strides = array<i32: 2, 1>} : memref<400x16xf32, #tpu.memory_space<vmem>>, vector<9x16xf32>
    %c283_688 = arith.constant 283 : index
    %c0_689 = arith.constant 0 : index
    %570 = tpu.strided_load %arg7[%c283_688, %c0_689] {strides = array<i32: 2, 1>} : memref<400x16xf32, #tpu.memory_space<vmem>>, vector<9x16xf32>
    %c300_690 = arith.constant 300 : index
    %c0_691 = arith.constant 0 : index
    %571 = tpu.strided_load %arg7[%c300_690, %c0_691] {strides = array<i32: 2, 1>} : memref<400x16xf32, #tpu.memory_space<vmem>>, vector<9x16xf32>
    %c301_692 = arith.constant 301 : index
    %c0_693 = arith.constant 0 : index
    %572 = tpu.strided_load %arg7[%c301_692, %c0_693] {strides = array<i32: 2, 1>} : memref<400x16xf32, #tpu.memory_space<vmem>>, vector<9x16xf32>
    %c302_694 = arith.constant 302 : index
    %c0_695 = arith.constant 0 : index
    %573 = tpu.strided_load %arg7[%c302_694, %c0_695] {strides = array<i32: 2, 1>} : memref<400x16xf32, #tpu.memory_space<vmem>>, vector<9x16xf32>
    %c303_696 = arith.constant 303 : index
    %c0_697 = arith.constant 0 : index
    %574 = tpu.strided_load %arg7[%c303_696, %c0_697] {strides = array<i32: 2, 1>} : memref<400x16xf32, #tpu.memory_space<vmem>>, vector<9x16xf32>
    %c320_698 = arith.constant 320 : index
    %c0_699 = arith.constant 0 : index
    %575 = tpu.strided_load %arg7[%c320_698, %c0_699] {strides = array<i32: 2, 1>} : memref<400x16xf32, #tpu.memory_space<vmem>>, vector<9x16xf32>
    %c321 = arith.constant 321 : index
    %c0_700 = arith.constant 0 : index
    %576 = tpu.strided_load %arg7[%c321, %c0_700] {strides = array<i32: 2, 1>} : memref<400x16xf32, #tpu.memory_space<vmem>>, vector<9x16xf32>
    %c322 = arith.constant 322 : index
    %c0_701 = arith.constant 0 : index
    %577 = tpu.strided_load %arg7[%c322, %c0_701] {strides = array<i32: 2, 1>} : memref<400x16xf32, #tpu.memory_space<vmem>>, vector<9x16xf32>
    %c323 = arith.constant 323 : index
    %c0_702 = arith.constant 0 : index
    %578 = tpu.strided_load %arg7[%c323, %c0_702] {strides = array<i32: 2, 1>} : memref<400x16xf32, #tpu.memory_space<vmem>>, vector<9x16xf32>
    %c340_703 = arith.constant 340 : index
    %c0_704 = arith.constant 0 : index
    %579 = tpu.strided_load %arg7[%c340_703, %c0_704] {strides = array<i32: 2, 1>} : memref<400x16xf32, #tpu.memory_space<vmem>>, vector<9x16xf32>
    %c341 = arith.constant 341 : index
    %c0_705 = arith.constant 0 : index
    %580 = tpu.strided_load %arg7[%c341, %c0_705] {strides = array<i32: 2, 1>} : memref<400x16xf32, #tpu.memory_space<vmem>>, vector<9x16xf32>
    %c342 = arith.constant 342 : index
    %c0_706 = arith.constant 0 : index
    %581 = tpu.strided_load %arg7[%c342, %c0_706] {strides = array<i32: 2, 1>} : memref<400x16xf32, #tpu.memory_space<vmem>>, vector<9x16xf32>
    %c343 = arith.constant 343 : index
    %c0_707 = arith.constant 0 : index
    %582 = tpu.strided_load %arg7[%c343, %c0_707] {strides = array<i32: 2, 1>} : memref<400x16xf32, #tpu.memory_space<vmem>>, vector<9x16xf32>
    %583 = tpu.concatenate %567, %568, %569, %570, %571, %572, %573, %574, %575, %576, %577, %578, %579, %580, %581, %582 in 1 : vector<9x16xf32>, vector<9x16xf32>, vector<9x16xf32>, vector<9x16xf32>, vector<9x16xf32>, vector<9x16xf32>, vector<9x16xf32>, vector<9x16xf32>, vector<9x16xf32>, vector<9x16xf32>, vector<9x16xf32>, vector<9x16xf32>, vector<9x16xf32>, vector<9x16xf32>, vector<9x16xf32>, vector<9x16xf32> -> vector<9x256xf32>
    %584 = arith.truncf %583 : vector<9x256xf32> to vector<9x256xbf16>
    %c0_708 = arith.constant 0 : index
    %c0_709 = arith.constant 0 : index
    %585 = vector.load %arg4[%c0_708, %c0_709] : memref<256x32xbf16, #tpu.memory_space<vmem>>, vector<256x32xbf16>
    %cst_710 = arith.constant dense<0.000000e+00> : vector<9x32xf32>
    %586 = tpu.matmul %584, %585, %cst_710 {dimension_numbers = #tpu.dot_dimension_numbers<[1], [0], [0], [1], [0, 0, 1, 1], [], []>} : vector<9x256xbf16>, vector<256x32xbf16>, vector<9x32xf32> -> vector<9x32xf32>
    %c0_711 = arith.constant 0 : index
    %c0_712 = arith.constant 0 : index
    %587 = vector.load %arg5[%c0_711, %c0_712] : memref<1x32xf32, #tpu.memory_space<vmem>>, vector<1x32xf32>
    %588 = vector.broadcast %587 : vector<1x32xf32> to vector<9x32xf32>
    %589 = arith.addf %586, %588 : vector<9x32xf32>
    %cst_713 = arith.constant 0.000000e+00 : f32
    %590 = vector.broadcast %cst_713 : f32 to vector<9x32xf32>
    %591 = arith.maximumf %589, %590 : vector<9x32xf32>
    %592 = arith.truncf %591 : vector<9x32xf32> to vector<9x32xbf16>
    %c0_714 = arith.constant 0 : index
    %c63_715 = arith.constant 63 : index
    %c0_716 = arith.constant 0 : index
    %593 = vector.load %arg6[%c0_714, %c63_715, %c0_716] : memref<1x84x32xbf16, #tpu.memory_space<vmem>>, vector<1x9x32xbf16>
    %594 = vector.shape_cast %593 : vector<1x9x32xbf16> to vector<9x32xbf16>
    %595 = vector.shape_cast %592 : vector<9x32xbf16> to vector<1x9x32xbf16>
    tpu.vector_store %arg6[%c0_714, %c63_715, %c0_716], %595 {strides = array<i32>} : memref<1x84x32xbf16, #tpu.memory_space<vmem>>, vector<1x9x32xbf16>,
    %c320_717 = arith.constant 320 : index
    %c0_718 = arith.constant 0 : index
    %596 = tpu.strided_load %arg7[%c320_717, %c0_718] {strides = array<i32: 2, 1>} : memref<400x16xf32, #tpu.memory_space<vmem>>, vector<9x16xf32>
    %c321_719 = arith.constant 321 : index
    %c0_720 = arith.constant 0 : index
    %597 = tpu.strided_load %arg7[%c321_719, %c0_720] {strides = array<i32: 2, 1>} : memref<400x16xf32, #tpu.memory_space<vmem>>, vector<9x16xf32>
    %c322_721 = arith.constant 322 : index
    %c0_722 = arith.constant 0 : index
    %598 = tpu.strided_load %arg7[%c322_721, %c0_722] {strides = array<i32: 2, 1>} : memref<400x16xf32, #tpu.memory_space<vmem>>, vector<9x16xf32>
    %c323_723 = arith.constant 323 : index
    %c0_724 = arith.constant 0 : index
    %599 = tpu.strided_load %arg7[%c323_723, %c0_724] {strides = array<i32: 2, 1>} : memref<400x16xf32, #tpu.memory_space<vmem>>, vector<9x16xf32>
    %c340_725 = arith.constant 340 : index
    %c0_726 = arith.constant 0 : index
    %600 = tpu.strided_load %arg7[%c340_725, %c0_726] {strides = array<i32: 2, 1>} : memref<400x16xf32, #tpu.memory_space<vmem>>, vector<9x16xf32>
    %c341_727 = arith.constant 341 : index
    %c0_728 = arith.constant 0 : index
    %601 = tpu.strided_load %arg7[%c341_727, %c0_728] {strides = array<i32: 2, 1>} : memref<400x16xf32, #tpu.memory_space<vmem>>, vector<9x16xf32>
    %c342_729 = arith.constant 342 : index
    %c0_730 = arith.constant 0 : index
    %602 = tpu.strided_load %arg7[%c342_729, %c0_730] {strides = array<i32: 2, 1>} : memref<400x16xf32, #tpu.memory_space<vmem>>, vector<9x16xf32>
    %c343_731 = arith.constant 343 : index
    %c0_732 = arith.constant 0 : index
    %603 = tpu.strided_load %arg7[%c343_731, %c0_732] {strides = array<i32: 2, 1>} : memref<400x16xf32, #tpu.memory_space<vmem>>, vector<9x16xf32>
    %c360_733 = arith.constant 360 : index
    %c0_734 = arith.constant 0 : index
    %604 = tpu.strided_load %arg7[%c360_733, %c0_734] {strides = array<i32: 2, 1>} : memref<400x16xf32, #tpu.memory_space<vmem>>, vector<9x16xf32>
    %c361 = arith.constant 361 : index
    %c0_735 = arith.constant 0 : index
    %605 = tpu.strided_load %arg7[%c361, %c0_735] {strides = array<i32: 2, 1>} : memref<400x16xf32, #tpu.memory_space<vmem>>, vector<9x16xf32>
    %c362 = arith.constant 362 : index
    %c0_736 = arith.constant 0 : index
    %606 = tpu.strided_load %arg7[%c362, %c0_736] {strides = array<i32: 2, 1>} : memref<400x16xf32, #tpu.memory_space<vmem>>, vector<9x16xf32>
    %c363 = arith.constant 363 : index
    %c0_737 = arith.constant 0 : index
    %607 = tpu.strided_load %arg7[%c363, %c0_737] {strides = array<i32: 2, 1>} : memref<400x16xf32, #tpu.memory_space<vmem>>, vector<9x16xf32>
    %c380_738 = arith.constant 380 : index
    %c0_739 = arith.constant 0 : index
    %608 = tpu.strided_load %arg7[%c380_738, %c0_739] {strides = array<i32: 2, 1>} : memref<400x16xf32, #tpu.memory_space<vmem>>, vector<9x16xf32>
    %c381 = arith.constant 381 : index
    %c0_740 = arith.constant 0 : index
    %609 = tpu.strided_load %arg7[%c381, %c0_740] {strides = array<i32: 2, 1>} : memref<400x16xf32, #tpu.memory_space<vmem>>, vector<9x16xf32>
    %c382 = arith.constant 382 : index
    %c0_741 = arith.constant 0 : index
    %610 = tpu.strided_load %arg7[%c382, %c0_741] {strides = array<i32: 2, 1>} : memref<400x16xf32, #tpu.memory_space<vmem>>, vector<9x16xf32>
    %c383 = arith.constant 383 : index
    %c0_742 = arith.constant 0 : index
    %611 = tpu.strided_load %arg7[%c383, %c0_742] {strides = array<i32: 2, 1>} : memref<400x16xf32, #tpu.memory_space<vmem>>, vector<9x16xf32>
    %612 = tpu.concatenate %596, %597, %598, %599, %600, %601, %602, %603, %604, %605, %606, %607, %608, %609, %610, %611 in 1 : vector<9x16xf32>, vector<9x16xf32>, vector<9x16xf32>, vector<9x16xf32>, vector<9x16xf32>, vector<9x16xf32>, vector<9x16xf32>, vector<9x16xf32>, vector<9x16xf32>, vector<9x16xf32>, vector<9x16xf32>, vector<9x16xf32>, vector<9x16xf32>, vector<9x16xf32>, vector<9x16xf32>, vector<9x16xf32> -> vector<9x256xf32>
    %613 = arith.truncf %612 : vector<9x256xf32> to vector<9x256xbf16>
    %c0_743 = arith.constant 0 : index
    %c0_744 = arith.constant 0 : index
    %614 = vector.load %arg4[%c0_743, %c0_744] : memref<256x32xbf16, #tpu.memory_space<vmem>>, vector<256x32xbf16>
    %cst_745 = arith.constant dense<0.000000e+00> : vector<9x32xf32>
    %615 = tpu.matmul %613, %614, %cst_745 {dimension_numbers = #tpu.dot_dimension_numbers<[1], [0], [0], [1], [0, 0, 1, 1], [], []>} : vector<9x256xbf16>, vector<256x32xbf16>, vector<9x32xf32> -> vector<9x32xf32>
    %c0_746 = arith.constant 0 : index
    %c0_747 = arith.constant 0 : index
    %616 = vector.load %arg5[%c0_746, %c0_747] : memref<1x32xf32, #tpu.memory_space<vmem>>, vector<1x32xf32>
    %617 = vector.broadcast %616 : vector<1x32xf32> to vector<9x32xf32>
    %618 = arith.addf %615, %617 : vector<9x32xf32>
    %cst_748 = arith.constant 0.000000e+00 : f32
    %619 = vector.broadcast %cst_748 : f32 to vector<9x32xf32>
    %620 = arith.maximumf %618, %619 : vector<9x32xf32>
    %621 = arith.truncf %620 : vector<9x32xf32> to vector<9x32xbf16>
    %c0_749 = arith.constant 0 : index
    %c72 = arith.constant 72 : index
    %c0_750 = arith.constant 0 : index
    %622 = vector.load %arg6[%c0_749, %c72, %c0_750] : memref<1x84x32xbf16, #tpu.memory_space<vmem>>, vector<1x9x32xbf16>
    %623 = vector.shape_cast %622 : vector<1x9x32xbf16> to vector<9x32xbf16>
    %624 = vector.shape_cast %621 : vector<9x32xbf16> to vector<1x9x32xbf16>
    tpu.vector_store %arg6[%c0_749, %c72, %c0_750], %624 {strides = array<i32>} : memref<1x84x32xbf16, #tpu.memory_space<vmem>>, vector<1x9x32xbf16>,
    return
  }
  func.func @transform_0(%arg0: i32) -> (i32, i32, i32, i32) {
    %c0_i32 = arith.constant 0 : i32
    %c0_i32_0 = arith.constant 0 : i32
    %c0_i32_1 = arith.constant 0 : i32
    %c0_i32_2 = arith.constant 0 : i32
    return %arg0, %c0_i32, %c0_i32_0, %c0_i32_1 : i32, i32, i32, i32
  }
  func.func @transform_1(%arg0: i32) -> (i32, i32) {
    %c0_i32 = arith.constant 0 : i32
    %c0_i32_0 = arith.constant 0 : i32
    %c0_i32_1 = arith.constant 0 : i32
    return %c0_i32, %c0_i32_0 : i32, i32
  }
  func.func @transform_2(%arg0: i32) -> (i32, i32) {
    %c0_i32 = arith.constant 0 : i32
    %c0_i32_0 = arith.constant 0 : i32
    %c0_i32_1 = arith.constant 0 : i32
    return %c0_i32, %c0_i32_0 : i32, i32
  }
  func.func @transform_3(%arg0: i32) -> (i32, i32) {
    %c0_i32 = arith.constant 0 : i32
    %c0_i32_0 = arith.constant 0 : i32
    %c0_i32_1 = arith.constant 0 : i32
    return %c0_i32, %c0_i32_0 : i32, i32
  }
  func.func @transform_4(%arg0: i32) -> (i32, i32) {
    %c0_i32 = arith.constant 0 : i32
    %c0_i32_0 = arith.constant 0 : i32
    %c0_i32_1 = arith.constant 0 : i32
    return %c0_i32, %c0_i32_0 : i32, i32
  }
  func.func @transform_5(%arg0: i32) -> (i32, i32, i32) {
    %c0_i32 = arith.constant 0 : i32
    %c0_i32_0 = arith.constant 0 : i32
    %c0_i32_1 = arith.constant 0 : i32
    return %arg0, %c0_i32, %c0_i32_0 : i32, i32, i32
  }
}

module attributes {stable_mosaic.version = 11 : i64} {
  func.func @_fc_heads_kernel(%arg0: i32, %arg1: memref<2x2688xbf16, #tpu.memory_space<vmem>>, %arg2: memref<2688x256xbf16, #tpu.memory_space<vmem>>, %arg3: memref<1x256xf32, #tpu.memory_space<vmem>>, %arg4: memref<256x7xbf16, #tpu.memory_space<vmem>>, %arg5: memref<1x7xf32, #tpu.memory_space<vmem>>, %arg6: memref<2x6xf32, #tpu.memory_space<vmem>>, %arg7: memref<2x6xf32, #tpu.memory_space<vmem>>, %arg8: memref<2x1xf32, #tpu.memory_space<vmem>>) attributes {dimension_semantics = [#tpu.dimension_semantics<parallel>], iteration_bounds = array<i64: 1>, scalar_prefetch = 0 : i64, scratch_operands = 0 : i64, tpu.core_type = #tpu.core_type<tc>, window_params = [{transform_indices = @transform_0, window_bounds = array<i64: 2, 2688>}, {pipeline_mode = #tpu.pipeline_mode<synchronous>, transform_indices = @transform_1, window_bounds = array<i64: 2688, 256>}, {pipeline_mode = #tpu.pipeline_mode<synchronous>, transform_indices = @transform_2, window_bounds = array<i64: 1, 256>}, {pipeline_mode = #tpu.pipeline_mode<synchronous>, transform_indices = @transform_3, window_bounds = array<i64: 256, 7>}, {pipeline_mode = #tpu.pipeline_mode<synchronous>, transform_indices = @transform_4, window_bounds = array<i64: 1, 7>}, {transform_indices = @transform_5, window_bounds = array<i64: 2, 6>}, {transform_indices = @transform_6, window_bounds = array<i64: 2, 6>}, {transform_indices = @transform_7, window_bounds = array<i64: 2, 1>}]} {
    %c0 = arith.constant 0 : index
    %c0_0 = arith.constant 0 : index
    %0 = vector.load %arg1[%c0, %c0_0] : memref<2x2688xbf16, #tpu.memory_space<vmem>>, vector<2x2688xbf16>
    %c0_1 = arith.constant 0 : index
    %c0_2 = arith.constant 0 : index
    %1 = vector.load %arg2[%c0_1, %c0_2] : memref<2688x256xbf16, #tpu.memory_space<vmem>>, vector<2688x256xbf16>
    %cst = arith.constant dense<0.000000e+00> : vector<2x256xf32>
    %2 = tpu.matmul %0, %1, %cst {dimension_numbers = #tpu.dot_dimension_numbers<[1], [0], [0], [1], [0, 0, 1, 1], [], []>} : vector<2x2688xbf16>, vector<2688x256xbf16>, vector<2x256xf32> -> vector<2x256xf32>
    %c0_3 = arith.constant 0 : index
    %c0_4 = arith.constant 0 : index
    %3 = vector.load %arg3[%c0_3, %c0_4] : memref<1x256xf32, #tpu.memory_space<vmem>>, vector<1x256xf32>
    %4 = vector.broadcast %3 : vector<1x256xf32> to vector<2x256xf32>
    %5 = arith.addf %2, %4 : vector<2x256xf32>
    %cst_5 = arith.constant 0.000000e+00 : f32
    %6 = vector.broadcast %cst_5 : f32 to vector<2x256xf32>
    %7 = arith.maximumf %5, %6 : vector<2x256xf32>
    %8 = arith.truncf %7 : vector<2x256xf32> to vector<2x256xbf16>
    %c0_6 = arith.constant 0 : index
    %c0_7 = arith.constant 0 : index
    %9 = vector.load %arg4[%c0_6, %c0_7] : memref<256x7xbf16, #tpu.memory_space<vmem>>, vector<256x7xbf16>
    %cst_8 = arith.constant dense<0.000000e+00> : vector<2x7xf32>
    %10 = tpu.matmul %8, %9, %cst_8 {dimension_numbers = #tpu.dot_dimension_numbers<[1], [0], [0], [1], [0, 0, 1, 1], [], []>} : vector<2x256xbf16>, vector<256x7xbf16>, vector<2x7xf32> -> vector<2x7xf32>
    %c0_9 = arith.constant 0 : index
    %c0_10 = arith.constant 0 : index
    %11 = vector.load %arg5[%c0_9, %c0_10] : memref<1x7xf32, #tpu.memory_space<vmem>>, vector<1x7xf32>
    %12 = vector.broadcast %11 : vector<1x7xf32> to vector<2x7xf32>
    %13 = arith.addf %10, %12 : vector<2x7xf32>
    %14 = vector.extract_strided_slice %13 {offsets = [0, 0], sizes = [2, 6], strides = [1, 1]} : vector<2x7xf32> to vector<2x6xf32>
    %cst_11 = arith.constant dense<0xFF800000> : vector<2xf32>
    %15 = vector.multi_reduction <maximumf>, %14, %cst_11 [1] : vector<2x6xf32> to vector<2xf32>
    %16 = vector.shape_cast %15 : vector<2xf32> to vector<2x1xf32>
    %17 = vector.broadcast %16 : vector<2x1xf32> to vector<2x6xf32>
    %18 = arith.subf %14, %17 : vector<2x6xf32>
    %19 = math.exp %18 : vector<2x6xf32>
    %cst_12 = arith.constant dense<0.000000e+00> : vector<2xf32>
    %20 = vector.multi_reduction <add>, %19, %cst_12 [1] : vector<2x6xf32> to vector<2xf32>
    %21 = vector.shape_cast %20 : vector<2xf32> to vector<2x1xf32>
    %22 = vector.broadcast %21 : vector<2x1xf32> to vector<2x6xf32>
    %23 = arith.divf %19, %22 : vector<2x6xf32>
    %c0_13 = arith.constant 0 : index
    %c0_14 = arith.constant 0 : index
    %24 = vector.load %arg6[%c0_13, %c0_14] : memref<2x6xf32, #tpu.memory_space<vmem>>, vector<2x6xf32>
    tpu.vector_store %arg6[%c0_13, %c0_14], %14 {strides = array<i32>} : memref<2x6xf32, #tpu.memory_space<vmem>>, vector<2x6xf32>,
    %c0_15 = arith.constant 0 : index
    %c0_16 = arith.constant 0 : index
    %25 = vector.load %arg7[%c0_15, %c0_16] : memref<2x6xf32, #tpu.memory_space<vmem>>, vector<2x6xf32>
    tpu.vector_store %arg7[%c0_15, %c0_16], %23 {strides = array<i32>} : memref<2x6xf32, #tpu.memory_space<vmem>>, vector<2x6xf32>,
    %26 = vector.extract_strided_slice %13 {offsets = [0, 6], sizes = [2, 1], strides = [1, 1]} : vector<2x7xf32> to vector<2x1xf32>
    %c0_17 = arith.constant 0 : index
    %c0_18 = arith.constant 0 : index
    %27 = vector.load %arg8[%c0_17, %c0_18] : memref<2x1xf32, #tpu.memory_space<vmem>>, vector<2x1xf32>
    tpu.vector_store %arg8[%c0_17, %c0_18], %26 {strides = array<i32>} : memref<2x1xf32, #tpu.memory_space<vmem>>, vector<2x1xf32>,
    return
  }
  func.func @transform_0(%arg0: i32) -> (i32, i32) {
    %c0_i32 = arith.constant 0 : i32
    %c0_i32_0 = arith.constant 0 : i32
    return %arg0, %c0_i32 : i32, i32
  }
  func.func @transform_1(%arg0: i32) -> (i32, i32) {
    %c0_i32 = arith.constant 0 : i32
    %c0_i32_0 = arith.constant 0 : i32
    %c0_i32_1 = arith.constant 0 : i32
    return %c0_i32, %c0_i32_0 : i32, i32
  }
  func.func @transform_2(%arg0: i32) -> (i32, i32) {
    %c0_i32 = arith.constant 0 : i32
    %c0_i32_0 = arith.constant 0 : i32
    %c0_i32_1 = arith.constant 0 : i32
    return %c0_i32, %c0_i32_0 : i32, i32
  }
  func.func @transform_3(%arg0: i32) -> (i32, i32) {
    %c0_i32 = arith.constant 0 : i32
    %c0_i32_0 = arith.constant 0 : i32
    %c0_i32_1 = arith.constant 0 : i32
    return %c0_i32, %c0_i32_0 : i32, i32
  }
  func.func @transform_4(%arg0: i32) -> (i32, i32) {
    %c0_i32 = arith.constant 0 : i32
    %c0_i32_0 = arith.constant 0 : i32
    %c0_i32_1 = arith.constant 0 : i32
    return %c0_i32, %c0_i32_0 : i32, i32
  }
  func.func @transform_5(%arg0: i32) -> (i32, i32) {
    %c0_i32 = arith.constant 0 : i32
    %c0_i32_0 = arith.constant 0 : i32
    return %arg0, %c0_i32 : i32, i32
  }
  func.func @transform_6(%arg0: i32) -> (i32, i32) {
    %c0_i32 = arith.constant 0 : i32
    %c0_i32_0 = arith.constant 0 : i32
    return %arg0, %c0_i32 : i32, i32
  }
  func.func @transform_7(%arg0: i32) -> (i32, i32) {
    %c0_i32 = arith.constant 0 : i32
    %c0_i32_0 = arith.constant 0 : i32
    return %arg0, %c0_i32 : i32, i32
  }
}

</mosaic_0001>

<bundles_post_ra>
// kernel: a3c_cnn_policy_forward.3
= control target key start
LH: loop header
LB: loop body
LE: loop exit
PB: predicated region body
PF: predicated region fallthrough
CT: control target
= control target key end

     0   :  { %13 = vsyncpa [#allocation3], 0  ;;  %v367_v38 = vlaneseq  ;;  %v3895_v39 = vmov 1966171168   ;;  %s5141_s0 = inlined_call_operand.vmem [shape: bf16[2,2688], index: 0, kind: input, shape index: {}]   ;;  %s5142_s1 = inlined_call_operand.vmem [shape: bf16[2688,256], index: 1, kind: input, shape index: {}]   ;;  %s5143_s2 = inlined_call_operand.vmem [shape: f32[1,256], index: 2, kind: input, shape index: {}]   ;;  %s5144_s3 = inlined_call_operand.vmem [shape: bf16[256,7], index: 3, kind: input, shape index: {}]   ;;  %s5145_s4 = inlined_call_operand.vmem [shape: f32[1,7], index: 4, kind: input, shape index: {}]   ;;  %s5146_s5 = inlined_call_operand.hbm [shape: f32[2,6], index: 5, kind: output, shape index: {0}]   ;;  %s5147_s6 = inlined_call_operand.hbm [shape: f32[2,6], index: 6, kind: output, shape index: {1}]   ;;  %s5148_s7 = inlined_call_operand.vmem [shape: f32[2,1], index: 7, kind: output, shape index: {2}]  }
   0x1   :  { %v3320_v0 = vld [vmem:[%s5142_s1 + $0x4] ss:$8 sps:$4 sm:$0xff]   ;;  %v3324_v2 = vld [vmem:[%s5142_s1] ss:$8 sps:$4 sm:$0xff]   ;;  %v3326_v4 = vld [vmem:[%s5142_s1 + $0x14] ss:$8 sps:$4 sm:$0xff]   ;;  %v382_v40 = vunpack.c.l.s4 %v3895_v39 }
   0x2   :  { %v3322_v1 = vld [vmem:[%s5142_s1 + $0x504] ss:$8 sps:$4 sm:$0xff]   ;;  %2218 = vmatprep.subr.bf16.mxu1 %v3320_v0  ;;  %v3325_v3 = vld [vmem:[%s5142_s1 + $0x500] ss:$8 sps:$4 sm:$0xff]   ;;  %v3328_v5 = vld [vmem:[%s5142_s1 + $0x514] ss:$8 sps:$4 sm:$0xff]  }
   0x3   :  { %2423 = vmatprep.subr.bf16.mxu0 %v3322_v1  ;;  %2219 = vmatpush1.bf16.msra.mxu1 %v3324_v2  ;;  %v3330_v6 = vld [vmem:[%s5142_s1 + $0x10] ss:$8 sps:$4 sm:$0xff]   ;;  %v3332_v8 = vld [vmem:[%s5142_s1 + $0x24] ss:$8 sps:$4 sm:$0xff]   ;;  %v3336_v10 = vld [vmem:[%s5142_s1 + $0x20] ss:$8 sps:$4 sm:$0xff]   ;;  %v383_v46 = vunpack.c.0.s8 %v382_v40 }
   0x4   :  { %2424 = vmatpush1.bf16.msra.mxu0 %v3325_v3  ;;  %2220 = vmatprep.subr.bf16.mxu1 %v3326_v4  ;;  %v3331_v7 = vld [vmem:[%s5142_s1 + $0x510] ss:$8 sps:$4 sm:$0xff]   ;;  %v3334_v9 = vld [vmem:[%s5142_s1 + $0x524] ss:$8 sps:$4 sm:$0xff]   ;;  %v3337_v11 = vld [vmem:[%s5142_s1 + $0x520] ss:$8 sps:$4 sm:$0xff]  }
   0x5   :  { %2425 = vmatprep.subr.bf16.mxu0 %v3328_v5  ;;  %v3338_v12 = vld [vmem:[%s5142_s1 + $0x34] ss:$8 sps:$4 sm:$0xff]   ;;  %v3342_v14 = vld [vmem:[%s5142_s1 + $0x30] ss:$8 sps:$4 sm:$0xff]   ;;  %v3344_v16 = vld [vmem:[%s5142_s1 + $0x44] ss:$8 sps:$4 sm:$0xff]  }
   0x6   :  { %v3340_v13 = vld [vmem:[%s5142_s1 + $0x534] ss:$8 sps:$4 sm:$0xff]   ;;  %v3343_v15 = vld [vmem:[%s5142_s1 + $0x530] ss:$8 sps:$4 sm:$0xff]   ;;  %v3346_v17 = vld [vmem:[%s5142_s1 + $0x544] ss:$8 sps:$4 sm:$0xff]  }
   0x7   :  { %2221 = vmatpush1.bf16.msra.mxu1 %v3330_v6  ;;  %v3348_v18 = vld [vmem:[%s5142_s1 + $0x40] ss:$8 sps:$4 sm:$0xff]   ;;  %v3350_v20 = vld [vmem:[%s5142_s1 + $0x54] ss:$8 sps:$4 sm:$0xff]   ;;  %v3354_v22 = vld [vmem:[%s5142_s1 + $0x50] ss:$8 sps:$4 sm:$0xff]  }
   0x8   :  { %2426 = vmatpush1.bf16.msra.mxu0 %v3331_v7  ;;  %2222 = vmatprep.subr.bf16.mxu1 %v3332_v8  ;;  %v3349_v19 = vld [vmem:[%s5142_s1 + $0x540] ss:$8 sps:$4 sm:$0xff]   ;;  %v3352_v21 = vld [vmem:[%s5142_s1 + $0x554] ss:$8 sps:$4 sm:$0xff]   ;;  %v3355_v23 = vld [vmem:[%s5142_s1 + $0x550] ss:$8 sps:$4 sm:$0xff]  }
   0x9   :  { %2427 = vmatprep.subr.bf16.mxu0 %v3334_v9  ;;  %v3356_v24 = vld [vmem:[%s5142_s1 + $0x64] ss:$8 sps:$4 sm:$0xff]   ;;  %v3360_v26 = vld [vmem:[%s5142_s1 + $0x60] ss:$8 sps:$4 sm:$0xff]   ;;  %v3362_v28 = vld [vmem:[%s5142_s1 + $0x74] ss:$8 sps:$4 sm:$0xff]  }
   0xa   :  { %v3358_v25 = vld [vmem:[%s5142_s1 + $0x564] ss:$8 sps:$4 sm:$0xff]   ;;  %v3361_v27 = vld [vmem:[%s5142_s1 + $0x560] ss:$8 sps:$4 sm:$0xff]   ;;  %v3364_v29 = vld [vmem:[%s5142_s1 + $0x574] ss:$8 sps:$4 sm:$0xff]  }
   0xb   :  { %2223 = vmatpush1.bf16.msra.mxu1 %v3336_v10  ;;  %v3366_v30 = vld [vmem:[%s5142_s1 + $0x70] ss:$8 sps:$4 sm:$0xff]   ;;  %v3368_v32 = vld [vmem:[%s5142_s1 + $0x84] ss:$8 sps:$4 sm:$0xff]   ;;  %v3372_v34 = vld [vmem:[%s5142_s1 + $0x80] ss:$8 sps:$4 sm:$0xff]  }
   0xc   :  { %2428 = vmatpush1.bf16.msra.mxu0 %v3337_v11  ;;  %2224 = vmatprep.subr.bf16.mxu1 %v3338_v12  ;;  %v3367_v31 = vld [vmem:[%s5142_s1 + $0x570] ss:$8 sps:$4 sm:$0xff]   ;;  %v3370_v33 = vld [vmem:[%s5142_s1 + $0x584] ss:$8 sps:$4 sm:$0xff]   ;;  %v3373_v35 = vld [vmem:[%s5142_s1 + $0x580] ss:$8 sps:$4 sm:$0xff]  }
   0xd   :  { %2429 = vmatprep.subr.bf16.mxu0 %v3340_v13  ;;  %v3374_v36 = vld [vmem:[%s5142_s1 + $0x94] ss:$8 sps:$4 sm:$0xff]   ;;  %v3378_v41 = vld [vmem:[%s5142_s1 + $0x90] ss:$8 sps:$4 sm:$0xff]   ;;  %v3380_v43 = vld [vmem:[%s5142_s1 + $0xa4] ss:$8 sps:$4 sm:$0xff]  }
   0xe   :  { %v3376_v37 = vld [vmem:[%s5142_s1 + $0x594] ss:$8 sps:$4 sm:$0xff]   ;;  %v3379_v42 = vld [vmem:[%s5142_s1 + $0x590] ss:$8 sps:$4 sm:$0xff]   ;;  %v3382_v44 = vld [vmem:[%s5142_s1 + $0x5a4] ss:$8 sps:$4 sm:$0xff]  }
   0xf   :  { %2225 = vmatpush1.bf16.msra.mxu1 %v3342_v14  ;;  %v4066_v45 = vshrl.u32 %v367_v38, 7  ;;  %v3384_v47 = vld [vmem:[%s5142_s1 + $0xa0] ss:$8 sps:$4 sm:$0xff]   ;;  %v3386_v49 = vld [vmem:[%s5142_s1 + $0xb4] ss:$8 sps:$4 sm:$0xff]  }
  0x10   :  { %2430 = vmatpush1.bf16.msra.mxu0 %v3343_v15  ;;  %2226 = vmatprep.subr.bf16.mxu1 %v3344_v16  ;;  %v3385_v48 = vld [vmem:[%s5142_s1 + $0x5a0] ss:$8 sps:$4 sm:$0xff]   ;;  %v3388_v50 = vld [vmem:[%s5142_s1 + $0x5b4] ss:$8 sps:$4 sm:$0xff]   ;;  %v3390_v53 = vld [vmem:[%s5142_s1 + $0xb0] ss:$8 sps:$4 sm:$0xff]  }
  0x11   :  { %2431 = vmatprep.subr.bf16.mxu0 %v3346_v17  ;;  %v4081_v51 = vsub.s32 %v383_v46, %v4066_v45  ;;  %v4086_v52 = vld [vmem:[%s5141_s0] sm:$0xff]  ;;  %v3391_v55 = vld [vmem:[%s5142_s1 + $0x5b0] ss:$8 sps:$4 sm:$0xff]   ;;  %v27_v56 = vld [vmem:[%s5141_s0 + $0x8] sm:$0xff] }
  0x12   :  { %v3392_v57 = vld [vmem:[%s5142_s1 + $0xc4] ss:$8 sps:$4 sm:$0xff]   ;;  %v3396_v63 = vld [vmem:[%s5142_s1 + $0xc0] ss:$8 sps:$4 sm:$0xff]   ;;  %v3398_v1 = vld [vmem:[%s5142_s1 + $0xd4] ss:$8 sps:$4 sm:$0xff]   ;;  %v429_v9 = vcombine.high %v27_v56, %v27_v56 }
  0x13   :  { %2227 = vmatpush1.bf16.msra.mxu1 %v3348_v18  ;;  %v387_v54 = vrot.slane %v4086_v52, %v4081_v51  ;;  %v3394_v58 = vld [vmem:[%s5142_s1 + $0x5c4] ss:$8 sps:$4 sm:$0xff]   ;;  %v436_v60 = vrot.slane %v27_v56, %v4081_v51  ;;  %v3397_v0 = vld [vmem:[%s5142_s1 + $0x5c0] ss:$8 sps:$4 sm:$0xff]   ;;  %v3400_v2 = vld [vmem:[%s5142_s1 + $0x5d4] ss:$8 sps:$4 sm:$0xff]  }
  0x14   :  { %2432 = vmatpush1.bf16.msra.mxu0 %v3349_v19  ;;  %2228 = vmatprep.subr.bf16.mxu1 %v3350_v20  ;;  %v3402_v5 = vld [vmem:[%s5142_s1 + $0xd0] ss:$8 sps:$4 sm:$0xff]   ;;  %v3404_v7 = vld [vmem:[%s5142_s1 + $0xe4] ss:$8 sps:$4 sm:$0xff]   ;;  %v3408_v10 = vld [vmem:[%s5142_s1 + $0xe0] ss:$8 sps:$4 sm:$0xff]   ;;  %v4152_v14 = vrot.slane %v429_v9, %v4081_v51 }
  0x15   :  { %2433 = vmatprep.subr.bf16.mxu0 %v3352_v21  ;;  %v395_v59 = vcombine.high %v387_v54, %v387_v54  ;;  %v444_v62 = vcombine.high %v436_v60, %v436_v60  ;;  %v3403_v6 = vld [vmem:[%s5142_s1 + $0x5d0] ss:$8 sps:$4 sm:$0xff]   ;;  %v3406_v8 = vld [vmem:[%s5142_s1 + $0x5e4] ss:$8 sps:$4 sm:$0xff]   ;;  %v3409_v11 = vld [vmem:[%s5142_s1 + $0x5e0] ss:$8 sps:$4 sm:$0xff]   ;;  %v4155_v15 = vrot.slane %v436_v60, %v4081_v51  ;;  %v4172_v21 = vrot.slane %v387_v54, %v4081_v51 }
  0x16   :  { %v3410_v12 = vld [vmem:[%s5142_s1 + $0xf4] ss:$8 sps:$4 sm:$0xff]   ;;  %v3414_v16 = vld [vmem:[%s5142_s1 + $0xf0] ss:$8 sps:$4 sm:$0xff]   ;;  %v3419_v18 = vld [vmem:[%s5142_s1 + $0x104] ss:$8 sps:$4 sm:$0xff]   ;;  %v445_v20 = vcombine.high %v4152_v14, %v4152_v14 }
  0x17   :  { %2229 = vmatpush1.bf16.msra.mxu1 %v3354_v22  ;;  %v4107_v61 = vrot.slane %v395_v59, %v4081_v51  ;;  %v4122_v3 = vrot.slane %v444_v62, %v4081_v51  ;;  %v3412_v13 = vld [vmem:[%s5142_s1 + $0x5f4] ss:$8 sps:$4 sm:$0xff]   ;;  %v3415_v17 = vld [vmem:[%s5142_s1 + $0x5f0] ss:$8 sps:$4 sm:$0xff]   ;;  %v3423_v19 = vld [vmem:[%s5142_s1 + $0x604] ss:$8 sps:$4 sm:$0xff]   ;;  %v474_v22 = vcombine.high %v4155_v15, %v4155_v15 }
  0x18   :  { %2434 = vmatpush1.bf16.msra.mxu0 %v3355_v23  ;;  %2230 = vmatprep.subr.bf16.mxu1 %v3356_v24  ;;  %v3417_v23 = vld [vmem:[%s5142_s1 + $0x100] ss:$8 sps:$4 sm:$0xff]   ;;  %v3439_v38 = vld [vmem:[%s5142_s1 + $0x630] ss:$8 sps:$4 sm:$0xff]   ;;  %v3444_v39 = vld [vmem:[%s5142_s1 + $0x144] ss:$8 sps:$4 sm:$0xff]  }
  0x19   :  { %2435 = vmatprep.subr.bf16.mxu0 %v3358_v25  ;;  %2250 = vmatprep.mubr.bf16.mxu1 %v4107_v61  ;;  %v476_v4 = vcombine.high %v4122_v3, %v4122_v3  ;;  %v3421_v24 = vld [vmem:[%s5142_s1 + $0x600] ss:$8 sps:$4 sm:$0xff]   ;;  %v3426_v25 = vld [vmem:[%s5142_s1 + $0x114] ss:$8 sps:$4 sm:$0xff]   ;;  %v3447_v40 = vld [vmem:[%s5142_s1 + $0x644] ss:$8 sps:$4 sm:$0xff]  }
  0x1a   :  { %v3448_v46 = vld [vmem:[%s5142_s1 + $0x150] ss:$8 sps:$4 sm:$0xff]   ;;  %v3462_v54 = vld [vmem:[%s5142_s1 + $0x174] ss:$8 sps:$4 sm:$0xff]   ;;  %v3471_v59 = vld [vmem:[%s5142_s1 + $0x684] ss:$8 sps:$4 sm:$0xff]  }
  0x1b   :  { %2231 = vmatpush1.bf16.msra.mxu1 %v3360_v26  ;;  %2455 = vmatprep.mubr.bf16.mxu0 %v476_v4  ;;  %v3429_v26 = vld [vmem:[%s5142_s1 + $0x614] ss:$8 sps:$4 sm:$0xff]   ;;  %v3460_v56 = vld [vmem:[%s5142_s1 + $0x170] ss:$8 sps:$4 sm:$0xff]   ;;  %v3466_v60 = vld [vmem:[%s5142_s1 + $0x180] ss:$8 sps:$4 sm:$0xff]  }
  0x1c   :  { %2436 = vmatpush1.bf16.msra.mxu0 %v3361_v27  ;;  %2232 = vmatprep.subr.bf16.mxu1 %v3362_v28  ;;  %v427_v27 = vcombine.high %v4107_v61, %v4107_v61  ;;  %v4191_v28 = vrot.slane %v445_v20, %v4081_v51  ;;  %v3469_v61 = vld [vmem:[%s5142_s1 + $0x680] ss:$8 sps:$4 sm:$0xff]   ;;  %v3474_v62 = vld [vmem:[%s5142_s1 + $0x194] ss:$8 sps:$4 sm:$0xff]   ;;  %v3483_v4 = vld [vmem:[%s5142_s1 + $0x6a4] ss:$8 sps:$4 sm:$0xff]  }
  0x1d   :  { %2437 = vmatprep.subr.bf16.mxu0 %v3364_v29  ;;  %v3424_v29 = vld [vmem:[%s5142_s1 + $0x110] ss:$8 sps:$4 sm:$0xff]  }
  0x1e   :  { %v3484_v9 = vld [vmem:[%s5142_s1 + $0x1b0] ss:$8 sps:$4 sm:$0xff]  }
  0x1f   :  { %2233 = vmatpush1.bf16.msra.mxu1 %v3366_v30  ;;  %v3427_v30 = vld [vmem:[%s5142_s1 + $0x610] ss:$8 sps:$4 sm:$0xff]  }
  0x20   :  { %2438 = vmatpush1.bf16.msra.mxu0 %v3367_v31  ;;  %2234 = vmatprep.subr.bf16.mxu1 %v3368_v32  ;;  %v3432_v31 = vld [vmem:[%s5142_s1 + $0x124] ss:$8 sps:$4 sm:$0xff]   ;;  %v3499_v20 = vld [vmem:[%s5142_s1 + $0x6d0] ss:$8 sps:$4 sm:$0xff]  }
  0x21   :  { %2439 = vmatprep.subr.bf16.mxu0 %v3370_v33  ;;  %v3435_v32 = vld [vmem:[%s5142_s1 + $0x624] ss:$8 sps:$4 sm:$0xff]   ;;  %v3430_v33 = vld [vmem:[%s5142_s1 + $0x120] ss:$8 sps:$4 sm:$0xff]  }
  0x23   :  { %2235 = vmatpush1.bf16.msra.mxu1 %v3372_v34  ;;  %v3433_v34 = vld [vmem:[%s5142_s1 + $0x620] ss:$8 sps:$4 sm:$0xff]  }
  0x24   :  { %2440 = vmatpush1.bf16.msra.mxu0 %v3373_v35  ;;  %2236 = vmatprep.subr.bf16.mxu1 %v3374_v36  ;;  %v3438_v35 = vld [vmem:[%s5142_s1 + $0x134] ss:$8 sps:$4 sm:$0xff]  }
  0x25   :  { %2441 = vmatprep.subr.bf16.mxu0 %v3376_v37  ;;  %v3441_v36 = vld [vmem:[%s5142_s1 + $0x634] ss:$8 sps:$4 sm:$0xff]   ;;  %v3436_v37 = vld [vmem:[%s5142_s1 + $0x130] ss:$8 sps:$4 sm:$0xff]  }
  0x27   :  { %2237 = vmatpush1.bf16.msra.mxu1 %v3378_v41  ;;  %v3442_v41 = vld [vmem:[%s5142_s1 + $0x140] ss:$8 sps:$4 sm:$0xff]  }
  0x28   :  { %2442 = vmatpush1.bf16.msra.mxu0 %v3379_v42  ;;  %2238 = vmatprep.subr.bf16.mxu1 %v3380_v43  ;;  %v3445_v42 = vld [vmem:[%s5142_s1 + $0x640] ss:$8 sps:$4 sm:$0xff]   ;;  %v3450_v43 = vld [vmem:[%s5142_s1 + $0x154] ss:$8 sps:$4 sm:$0xff]  }
  0x29   :  { %2443 = vmatprep.subr.bf16.mxu0 %v3382_v44  ;;  %v3453_v44 = vld [vmem:[%s5142_s1 + $0x654] ss:$8 sps:$4 sm:$0xff]  }
  0x2b   :  { %2239 = vmatpush1.bf16.msra.mxu1 %v3384_v47  ;;  %v3451_v47 = vld [vmem:[%s5142_s1 + $0x650] ss:$8 sps:$4 sm:$0xff]  }
  0x2c   :  { %2444 = vmatpush1.bf16.msra.mxu0 %v3385_v48  ;;  %2240 = vmatprep.subr.bf16.mxu1 %v3386_v49  ;;  %v3456_v48 = vld [vmem:[%s5142_s1 + $0x164] ss:$8 sps:$4 sm:$0xff]  }
  0x2d   :  { %2445 = vmatprep.subr.bf16.mxu0 %v3388_v50  ;;  %v3459_v49 = vld [vmem:[%s5142_s1 + $0x664] ss:$8 sps:$4 sm:$0xff]   ;;  %v3454_v50 = vld [vmem:[%s5142_s1 + $0x160] ss:$8 sps:$4 sm:$0xff]  }
  0x2f   :  { %2241 = vmatpush1.bf16.msra.mxu1 %v3390_v53  ;;  %v3457_v53 = vld [vmem:[%s5142_s1 + $0x660] ss:$8 sps:$4 sm:$0xff]  }
  0x30   :  { %2446 = vmatpush1.bf16.msra.mxu0 %v3391_v55  ;;  %2242 = vmatprep.subr.bf16.mxu1 %v3392_v57  ;;  %v3465_v55 = vld [vmem:[%s5142_s1 + $0x674] ss:$8 sps:$4 sm:$0xff]   ;;  %v3463_v57 = vld [vmem:[%s5142_s1 + $0x670] ss:$8 sps:$4 sm:$0xff]  }
  0x31   :  { %2447 = vmatprep.subr.bf16.mxu0 %v3394_v58  ;;  %v3468_v58 = vld [vmem:[%s5142_s1 + $0x184] ss:$8 sps:$4 sm:$0xff]  }
  0x33   :  { %2243 = vmatpush1.bf16.msra.mxu1 %v3396_v63  ;;  %v3477_v63 = vld [vmem:[%s5142_s1 + $0x694] ss:$8 sps:$4 sm:$0xff]  }
  0x34   :  { %2448 = vmatpush1.bf16.msra.mxu0 %v3397_v0  ;;  %2244 = vmatprep.subr.bf16.mxu1 %v3398_v1  ;;  %v3472_v0 = vld [vmem:[%s5142_s1 + $0x190] ss:$8 sps:$4 sm:$0xff]  }
  0x35   :  { %2449 = vmatprep.subr.bf16.mxu0 %v3400_v2  ;;  %v3475_v1 = vld [vmem:[%s5142_s1 + $0x690] ss:$8 sps:$4 sm:$0xff]   ;;  %v3480_v2 = vld [vmem:[%s5142_s1 + $0x1a4] ss:$8 sps:$4 sm:$0xff]  }
  0x37   :  { %2245 = vmatpush1.bf16.msra.mxu1 %v3402_v5  ;;  %v3478_v5 = vld [vmem:[%s5142_s1 + $0x1a0] ss:$8 sps:$4 sm:$0xff]  }
  0x38   :  { %2450 = vmatpush1.bf16.msra.mxu0 %v3403_v6  ;;  %2246 = vmatprep.subr.bf16.mxu1 %v3404_v7  ;;  %v3481_v6 = vld [vmem:[%s5142_s1 + $0x6a0] ss:$8 sps:$4 sm:$0xff]   ;;  %v3486_v7 = vld [vmem:[%s5142_s1 + $0x1b4] ss:$8 sps:$4 sm:$0xff]  }
  0x39   :  { %2451 = vmatprep.subr.bf16.mxu0 %v3406_v8  ;;  %v3489_v8 = vld [vmem:[%s5142_s1 + $0x6b4] ss:$8 sps:$4 sm:$0xff]  }
  0x3b   :  { %2247 = vmatpush1.bf16.msra.mxu1 %v3408_v10  ;;  %v3487_v10 = vld [vmem:[%s5142_s1 + $0x6b0] ss:$8 sps:$4 sm:$0xff]  }
  0x3c   :  { %2452 = vmatpush1.bf16.msra.mxu0 %v3409_v11  ;;  %2248 = vmatprep.subr.bf16.mxu1 %v3410_v12  ;;  %v3492_v11 = vld [vmem:[%s5142_s1 + $0x1c4] ss:$8 sps:$4 sm:$0xff]  }
  0x3d   :  { %2453 = vmatprep.subr.bf16.mxu0 %v3412_v13  ;;  %v3495_v12 = vld [vmem:[%s5142_s1 + $0x6c4] ss:$8 sps:$4 sm:$0xff]   ;;  %v3490_v13 = vld [vmem:[%s5142_s1 + $0x1c0] ss:$8 sps:$4 sm:$0xff]  }
  0x3f   :  { %2249 = vmatpush1.bf16.msra.mxu1 %v3414_v16  ;;  %v3493_v16 = vld [vmem:[%s5142_s1 + $0x6c0] ss:$8 sps:$4 sm:$0xff]  }
  0x40   :  { %2454 = vmatpush1.bf16.msra.mxu0 %v3415_v17  ;;  %2259 = vmatprep.subr.bf16.mxu1 %v3419_v18  ;;  %v3498_v17 = vld [vmem:[%s5142_s1 + $0x1d4] ss:$8 sps:$4 sm:$0xff]  }
  0x41   :  { %2464 = vmatprep.subr.bf16.mxu0 %v3423_v19  ;;  %v3501_v18 = vld [vmem:[%s5142_s1 + $0x6d4] ss:$8 sps:$4 sm:$0xff]   ;;  %v3496_v19 = vld [vmem:[%s5142_s1 + $0x1d0] ss:$8 sps:$4 sm:$0xff]  }
  0x42   :  { %2251 = vmatmul.mubr.bf16.vlgmr.msra.gmra.mrb[0].mxu1 %v4172_v21 }
  0x43   :  { %2456 = vmatmul.mubr.bf16.vlgmr.msra.gmra.mrb[0].mxu0 %v474_v22  ;;  %2260 = vmatpush1.bf16.msra.mxu1 %v3417_v23  ;;  %v3504_v22 = vld [vmem:[%s5142_s1 + $0x1e4] ss:$8 sps:$4 sm:$0xff]  }
  0x44   :  { %2465 = vmatpush1.bf16.msra.mxu0 %v3421_v24  ;;  %2261 = vmatprep.subr.bf16.mxu1 %v3426_v25  ;;  %v3507_v23 = vld [vmem:[%s5142_s1 + $0x6e4] ss:$8 sps:$4 sm:$0xff]   ;;  %v380_v24 = vcombine.high %v4086_v52, %v4086_v52  ;;  %v3502_v25 = vld [vmem:[%s5142_s1 + $0x1e0] ss:$8 sps:$4 sm:$0xff]   ;;  %v3513_v52 = vld [vmem:[%s5142_s1 + $0x6f4] ss:$8 sps:$4 sm:$0xff]  }
  0x45   :  { %2466 = vmatprep.subr.bf16.mxu0 %v3429_v26  ;;  %2291 = vmatprep.mubr.bf16.mxu1 %v427_v27  ;;  %v3505_v26 = vld [vmem:[%s5142_s1 + $0x6e0] ss:$8 sps:$4 sm:$0xff]   ;;  %v3510_v27 = vld [vmem:[%s5142_s1 + $0x1f4] ss:$8 sps:$4 sm:$0xff]  }
  0x46   :  { %2496 = vmatprep.mubr.bf16.mxu0 %v4191_v28 }
  0x47   :  { %2262 = vmatpush1.bf16.msra.mxu1 %v3424_v29  ;;  %v4366_v29 = vrot.slane %v380_v24, %v4081_v51  ;;  %v3583_v24 = vld [vmem:[%s5142_s1 + $0x7b0] ss:$8 sps:$4 sm:$0xff]  }
  0x48   :  { %2467 = vmatpush1.bf16.msra.mxu0 %v3427_v30  ;;  %2263 = vmatprep.subr.bf16.mxu1 %v3432_v31  ;;  %v3508_v30 = vld [vmem:[%s5142_s1 + $0x1f0] ss:$8 sps:$4 sm:$0xff]  }
  0x49   :  { %2468 = vmatprep.subr.bf16.mxu0 %v3435_v32  ;;  %v3511_v31 = vld [vmem:[%s5142_s1 + $0x6f0] ss:$8 sps:$4 sm:$0xff]   ;;  %v3516_v32 = vld [vmem:[%s5142_s1 + $0x204] ss:$8 sps:$4 sm:$0xff]  }
  0x4b   :  { %2264 = vmatpush1.bf16.msra.mxu1 %v3430_v33  ;;  %v3519_v33 = vld [vmem:[%s5142_s1 + $0x704] ss:$8 sps:$4 sm:$0xff]  }
  0x4c   :  { %2469 = vmatpush1.bf16.msra.mxu0 %v3433_v34  ;;  %2265 = vmatprep.subr.bf16.mxu1 %v3438_v35  ;;  %v396_v34 = vcombine.high %v4366_v29, %v4366_v29  ;;  %v425_v35 = vcombine.high %v4172_v21, %v4172_v21  ;;  %v3522_v21 = vld [vmem:[%s5142_s1 + $0x214] ss:$8 sps:$4 sm:$0xff]  }
  0x4d   :  { %2470 = vmatprep.subr.bf16.mxu0 %v3441_v36  ;;  %v4386_v36 = vrot.slane %v4152_v14, %v4081_v51  ;;  %v3525_v14 = vld [vmem:[%s5142_s1 + $0x714] ss:$8 sps:$4 sm:$0xff]  }
  0x4f   :  { %2266 = vmatpush1.bf16.msra.mxu1 %v3436_v37  ;;  %v3514_v37 = vld [vmem:[%s5142_s1 + $0x200] ss:$8 sps:$4 sm:$0xff]  }
  0x50   :  { %2471 = vmatpush1.bf16.msra.mxu0 %v3439_v38  ;;  %2267 = vmatprep.subr.bf16.mxu1 %v3444_v39  ;;  %v3517_v38 = vld [vmem:[%s5142_s1 + $0x700] ss:$8 sps:$4 sm:$0xff]   ;;  %v4401_v39 = vrot.slane %v396_v34, %v4081_v51  ;;  %v3600_v34 = vld [vmem:[%s5142_s1 + $0x2e4] ss:$8 sps:$4 sm:$0xff]  }
  0x51   :  { %2472 = vmatprep.subr.bf16.mxu0 %v3447_v40  ;;  %v477_v40 = vcombine.high %v4191_v28, %v4191_v28  ;;  %v3531_v28 = vld [vmem:[%s5142_s1 + $0x724] ss:$8 sps:$4 sm:$0xff]  }
  0x53   :  { %2268 = vmatpush1.bf16.msra.mxu1 %v3442_v41  ;;  %v3520_v41 = vld [vmem:[%s5142_s1 + $0x210] ss:$8 sps:$4 sm:$0xff]  }
  0x54   :  { %2473 = vmatpush1.bf16.msra.mxu0 %v3445_v42  ;;  %2269 = vmatprep.subr.bf16.mxu1 %v3450_v43  ;;  %v3523_v42 = vld [vmem:[%s5142_s1 + $0x710] ss:$8 sps:$4 sm:$0xff]   ;;  %v3528_v43 = vld [vmem:[%s5142_s1 + $0x224] ss:$8 sps:$4 sm:$0xff]  }
  0x55   :  { %2474 = vmatprep.subr.bf16.mxu0 %v3453_v44  ;;  %v3526_v44 = vld [vmem:[%s5142_s1 + $0x220] ss:$8 sps:$4 sm:$0xff]  }
  0x57   :  { %2270 = vmatpush1.bf16.msra.mxu1 %v3448_v46  ;;  %v3529_v46 = vld [vmem:[%s5142_s1 + $0x720] ss:$8 sps:$4 sm:$0xff]  }
  0x58   :  { %2475 = vmatpush1.bf16.msra.mxu0 %v3451_v47  ;;  %2271 = vmatprep.subr.bf16.mxu1 %v3456_v48  ;;  %v3534_v47 = vld [vmem:[%s5142_s1 + $0x234] ss:$8 sps:$4 sm:$0xff]  }
  0x59   :  { %2476 = vmatprep.subr.bf16.mxu0 %v3459_v49  ;;  %v3537_v48 = vld [vmem:[%s5142_s1 + $0x734] ss:$8 sps:$4 sm:$0xff]   ;;  %v3532_v49 = vld [vmem:[%s5142_s1 + $0x230] ss:$8 sps:$4 sm:$0xff]  }
  0x5b   :  { %2272 = vmatpush1.bf16.msra.mxu1 %v3454_v50  ;;  %v3535_v50 = vld [vmem:[%s5142_s1 + $0x730] ss:$8 sps:$4 sm:$0xff]  }
  0x5c   :  { %2477 = vmatpush1.bf16.msra.mxu0 %v3457_v53  ;;  %2273 = vmatprep.subr.bf16.mxu1 %v3462_v54  ;;  %v3540_v53 = vld [vmem:[%s5142_s1 + $0x244] ss:$8 sps:$4 sm:$0xff]  }
  0x5d   :  { %2478 = vmatprep.subr.bf16.mxu0 %v3465_v55  ;;  %v3543_v54 = vld [vmem:[%s5142_s1 + $0x744] ss:$8 sps:$4 sm:$0xff]   ;;  %v3538_v55 = vld [vmem:[%s5142_s1 + $0x240] ss:$8 sps:$4 sm:$0xff]  }
  0x5f   :  { %2274 = vmatpush1.bf16.msra.mxu1 %v3460_v56  ;;  %v3541_v56 = vld [vmem:[%s5142_s1 + $0x740] ss:$8 sps:$4 sm:$0xff]  }
  0x60   :  { %2479 = vmatpush1.bf16.msra.mxu0 %v3463_v57  ;;  %2275 = vmatprep.subr.bf16.mxu1 %v3468_v58  ;;  %v3546_v57 = vld [vmem:[%s5142_s1 + $0x254] ss:$8 sps:$4 sm:$0xff]  }
  0x61   :  { %2480 = vmatprep.subr.bf16.mxu0 %v3471_v59  ;;  %v3549_v58 = vld [vmem:[%s5142_s1 + $0x754] ss:$8 sps:$4 sm:$0xff]   ;;  %v3544_v59 = vld [vmem:[%s5142_s1 + $0x250] ss:$8 sps:$4 sm:$0xff]  }
  0x63   :  { %2276 = vmatpush1.bf16.msra.mxu1 %v3466_v60  ;;  %v3547_v60 = vld [vmem:[%s5142_s1 + $0x750] ss:$8 sps:$4 sm:$0xff]  }
  0x64   :  { %2481 = vmatpush1.bf16.msra.mxu0 %v3469_v61  ;;  %2277 = vmatprep.subr.bf16.mxu1 %v3474_v62  ;;  %v3552_v61 = vld [vmem:[%s5142_s1 + $0x264] ss:$8 sps:$4 sm:$0xff]  }
  0x65   :  { %2482 = vmatprep.subr.bf16.mxu0 %v3477_v63  ;;  %v3555_v62 = vld [vmem:[%s5142_s1 + $0x764] ss:$8 sps:$4 sm:$0xff]   ;;  %v3550_v63 = vld [vmem:[%s5142_s1 + $0x260] ss:$8 sps:$4 sm:$0xff]  }
  0x67   :  { %2278 = vmatpush1.bf16.msra.mxu1 %v3472_v0  ;;  %v3553_v0 = vld [vmem:[%s5142_s1 + $0x760] ss:$8 sps:$4 sm:$0xff]  }
  0x68   :  { %2483 = vmatpush1.bf16.msra.mxu0 %v3475_v1  ;;  %2279 = vmatprep.subr.bf16.mxu1 %v3480_v2  ;;  %v3558_v1 = vld [vmem:[%s5142_s1 + $0x274] ss:$8 sps:$4 sm:$0xff]  }
  0x69   :  { %2484 = vmatprep.subr.bf16.mxu0 %v3483_v4  ;;  %v3561_v2 = vld [vmem:[%s5142_s1 + $0x774] ss:$8 sps:$4 sm:$0xff]   ;;  %v3556_v4 = vld [vmem:[%s5142_s1 + $0x270] ss:$8 sps:$4 sm:$0xff]  }
  0x6b   :  { %2280 = vmatpush1.bf16.msra.mxu1 %v3478_v5  ;;  %v3559_v5 = vld [vmem:[%s5142_s1 + $0x770] ss:$8 sps:$4 sm:$0xff]  }
  0x6c   :  { %2485 = vmatpush1.bf16.msra.mxu0 %v3481_v6  ;;  %2281 = vmatprep.subr.bf16.mxu1 %v3486_v7  ;;  %v3564_v6 = vld [vmem:[%s5142_s1 + $0x284] ss:$8 sps:$4 sm:$0xff]  }
  0x6d   :  { %2486 = vmatprep.subr.bf16.mxu0 %v3489_v8  ;;  %v3567_v7 = vld [vmem:[%s5142_s1 + $0x784] ss:$8 sps:$4 sm:$0xff]   ;;  %v3562_v8 = vld [vmem:[%s5142_s1 + $0x280] ss:$8 sps:$4 sm:$0xff]  }
  0x6f   :  { %2282 = vmatpush1.bf16.msra.mxu1 %v3484_v9  ;;  %v3565_v9 = vld [vmem:[%s5142_s1 + $0x780] ss:$8 sps:$4 sm:$0xff]  }
  0x70   :  { %2487 = vmatpush1.bf16.msra.mxu0 %v3487_v10  ;;  %2283 = vmatprep.subr.bf16.mxu1 %v3492_v11  ;;  %v3570_v10 = vld [vmem:[%s5142_s1 + $0x294] ss:$8 sps:$4 sm:$0xff]  }
  0x71   :  { %2488 = vmatprep.subr.bf16.mxu0 %v3495_v12  ;;  %v3573_v11 = vld [vmem:[%s5142_s1 + $0x794] ss:$8 sps:$4 sm:$0xff]   ;;  %v3568_v12 = vld [vmem:[%s5142_s1 + $0x290] ss:$8 sps:$4 sm:$0xff]  }
  0x73   :  { %2284 = vmatpush1.bf16.msra.mxu1 %v3490_v13  ;;  %v3571_v13 = vld [vmem:[%s5142_s1 + $0x790] ss:$8 sps:$4 sm:$0xff]  }
  0x74   :  { %2489 = vmatpush1.bf16.msra.mxu0 %v3493_v16  ;;  %2285 = vmatprep.subr.bf16.mxu1 %v3498_v17  ;;  %v3576_v16 = vld [vmem:[%s5142_s1 + $0x2a4] ss:$8 sps:$4 sm:$0xff]  }
  0x75   :  { %2490 = vmatprep.subr.bf16.mxu0 %v3501_v18  ;;  %v3579_v17 = vld [vmem:[%s5142_s1 + $0x7a4] ss:$8 sps:$4 sm:$0xff]   ;;  %v3574_v18 = vld [vmem:[%s5142_s1 + $0x2a0] ss:$8 sps:$4 sm:$0xff]  }
  0x77   :  { %2286 = vmatpush1.bf16.msra.mxu1 %v3496_v19  ;;  %v3577_v19 = vld [vmem:[%s5142_s1 + $0x7a0] ss:$8 sps:$4 sm:$0xff]  }
  0x78   :  { %2491 = vmatpush1.bf16.msra.mxu0 %v3499_v20  ;;  %2287 = vmatprep.subr.bf16.mxu1 %v3504_v22  ;;  %v3582_v20 = vld [vmem:[%s5142_s1 + $0x2b4] ss:$8 sps:$4 sm:$0xff]  }
  0x79   :  { %2492 = vmatprep.subr.bf16.mxu0 %v3507_v23  ;;  %v3585_v22 = vld [vmem:[%s5142_s1 + $0x7b4] ss:$8 sps:$4 sm:$0xff]   ;;  %v3580_v23 = vld [vmem:[%s5142_s1 + $0x2b0] ss:$8 sps:$4 sm:$0xff]  }
  0x7b   :  { %2288 = vmatpush1.bf16.msra.mxu1 %v3502_v25  ;;  %v3588_v25 = vld [vmem:[%s5142_s1 + $0x2c4] ss:$8 sps:$4 sm:$0xff]  }
  0x7c   :  { %2493 = vmatpush1.bf16.msra.mxu0 %v3505_v26  ;;  %2289 = vmatprep.subr.bf16.mxu1 %v3510_v27  ;;  %v3591_v26 = vld [vmem:[%s5142_s1 + $0x7c4] ss:$8 sps:$4 sm:$0xff]   ;;  %v3586_v27 = vld [vmem:[%s5142_s1 + $0x2c0] ss:$8 sps:$4 sm:$0xff]  }
  0x7d   :  { %2494 = vmatprep.subr.bf16.mxu0 %v3513_v52  ;;  %v3589_v52 = vld [vmem:[%s5142_s1 + $0x7c0] ss:$8 sps:$4 sm:$0xff]  }
  0x7f   :  { %2290 = vmatpush1.bf16.msra.mxu1 %v3508_v30  ;;  %v3594_v30 = vld [vmem:[%s5142_s1 + $0x2d4] ss:$8 sps:$4 sm:$0xff]  }
  0x80   :  { %2495 = vmatpush1.bf16.msra.mxu0 %v3511_v31  ;;  %2300 = vmatprep.subr.bf16.mxu1 %v3516_v32  ;;  %v3597_v31 = vld [vmem:[%s5142_s1 + $0x7d4] ss:$8 sps:$4 sm:$0xff]   ;;  %v3592_v32 = vld [vmem:[%s5142_s1 + $0x2d0] ss:$8 sps:$4 sm:$0xff]  }
  0x81   :  { %2505 = vmatprep.subr.bf16.mxu0 %v3519_v33  ;;  %v3595_v33 = vld [vmem:[%s5142_s1 + $0x7d0] ss:$8 sps:$4 sm:$0xff]  }
  0x82   :  { %2292 = vmatmul.mubr.bf16.vlgmr.msra.gmra.mrb[0].mxu1 %v425_v35  ;;  %v3603_v35 = vld [vmem:[%s5142_s1 + $0x7e4] ss:$8 sps:$4 sm:$0xff]  }
  0x83   :  { %2497 = vmatmul.mubr.bf16.vlgmr.msra.gmra.mrb[0].mxu0 %v4386_v36  ;;  %2301 = vmatpush1.bf16.msra.mxu1 %v3514_v37  ;;  %v3598_v37 = vld [vmem:[%s5142_s1 + $0x2e0] ss:$8 sps:$4 sm:$0xff]  }
  0x84   :  { %2506 = vmatpush1.bf16.msra.mxu0 %v3517_v38  ;;  %2302 = vmatprep.subr.bf16.mxu1 %v3522_v21  ;;  %v4569_v38 = vld [vmem:[%s5141_s0 + $0x10] sm:$0x1f]  ;;  %v3601_v21 = vld [vmem:[%s5142_s1 + $0x7e0] ss:$8 sps:$4 sm:$0xff]  }
  0x85   :  { %2507 = vmatprep.subr.bf16.mxu0 %v3525_v14  ;;  %2332 = vmatprep.mubr.bf16.mxu1 %v4401_v39  ;;  %v3606_v14 = vld [vmem:[%s5142_s1 + $0x2f4] ss:$8 sps:$4 sm:$0xff]  }
  0x86   :  { %2537 = vmatprep.mubr.bf16.mxu0 %v477_v40  ;;  %v3609_v40 = vld [vmem:[%s5142_s1 + $0x7f4] ss:$8 sps:$4 sm:$0xff]  }
  0x87   :  { %2303 = vmatpush1.bf16.msra.mxu1 %v3520_v41  ;;  %v4582_v41 = vrot.slane %v4569_v38, %v4081_v51 }
  0x88   :  { %2508 = vmatpush1.bf16.msra.mxu0 %v3523_v42  ;;  %2304 = vmatprep.subr.bf16.mxu1 %v3528_v43  ;;  %v3604_v42 = vld [vmem:[%s5142_s1 + $0x2f0] ss:$8 sps:$4 sm:$0xff]  }
  0x89   :  { %2509 = vmatprep.subr.bf16.mxu0 %v3531_v28  ;;  %v3607_v43 = vld [vmem:[%s5142_s1 + $0x7f0] ss:$8 sps:$4 sm:$0xff]   ;;  %v3612_v28 = vld [vmem:[%s5142_s1 + $0x304] ss:$8 sps:$4 sm:$0xff]  }
  0x8b   :  { %2305 = vmatpush1.bf16.msra.mxu1 %v3526_v44  ;;  %v3615_v44 = vld [vmem:[%s5142_s1 + $0x804] ss:$8 sps:$4 sm:$0xff]  }
  0x8c   :  { %2510 = vmatpush1.bf16.msra.mxu0 %v3529_v46  ;;  %2306 = vmatprep.subr.bf16.mxu1 %v3534_v47  ;;  %v493_v46 = vcombine.high %v4582_v41, %v4582_v41  ;;  %v3610_v47 = vld [vmem:[%s5142_s1 + $0x300] ss:$8 sps:$4 sm:$0xff]  }
  0x8d   :  { %2511 = vmatprep.subr.bf16.mxu0 %v3537_v48  ;;  %v4603_v48 = vrot.slane %v4366_v29, %v4081_v51  ;;  %v3621_v29 = vld [vmem:[%s5142_s1 + $0x814] ss:$8 sps:$4 sm:$0xff]  }
  0x8f   :  { %2307 = vmatpush1.bf16.msra.mxu1 %v3532_v49  ;;  %v475_v49 = vcombine.high %v4386_v36, %v4386_v36  ;;  %v4619_v36 = vrot.slane %v493_v46, %v4081_v51 }
  0x90   :  { %2512 = vmatpush1.bf16.msra.mxu0 %v3535_v50  ;;  %2308 = vmatprep.subr.bf16.mxu1 %v3540_v53  ;;  %v3613_v50 = vld [vmem:[%s5142_s1 + $0x800] ss:$8 sps:$4 sm:$0xff]   ;;  %v3618_v53 = vld [vmem:[%s5142_s1 + $0x314] ss:$8 sps:$4 sm:$0xff]  }
  0x91   :  { %2513 = vmatprep.subr.bf16.mxu0 %v3543_v54  ;;  %v428_v54 = vcombine.high %v4401_v39, %v4401_v39  ;;  %v3624_v39 = vld [vmem:[%s5142_s1 + $0x324] ss:$8 sps:$4 sm:$0xff]  }
  0x93   :  { %2309 = vmatpush1.bf16.msra.mxu1 %v3538_v55  ;;  %v3616_v55 = vld [vmem:[%s5142_s1 + $0x310] ss:$8 sps:$4 sm:$0xff]  }
  0x94   :  { %2514 = vmatpush1.bf16.msra.mxu0 %v3541_v56  ;;  %2310 = vmatprep.subr.bf16.mxu1 %v3546_v57  ;;  %v3619_v56 = vld [vmem:[%s5142_s1 + $0x810] ss:$8 sps:$4 sm:$0xff]   ;;  %v3627_v57 = vld [vmem:[%s5142_s1 + $0x824] ss:$8 sps:$4 sm:$0xff]  }
  0x95   :  { %2515 = vmatprep.subr.bf16.mxu0 %v3549_v58  ;;  %v3622_v58 = vld [vmem:[%s5142_s1 + $0x320] ss:$8 sps:$4 sm:$0xff]  }
  0x97   :  { %2311 = vmatpush1.bf16.msra.mxu1 %v3544_v59  ;;  %v3625_v59 = vld [vmem:[%s5142_s1 + $0x820] ss:$8 sps:$4 sm:$0xff]  }
  0x98   :  { %2516 = vmatpush1.bf16.msra.mxu0 %v3547_v60  ;;  %2312 = vmatprep.subr.bf16.mxu1 %v3552_v61  ;;  %v3630_v60 = vld [vmem:[%s5142_s1 + $0x334] ss:$8 sps:$4 sm:$0xff]  }
  0x99   :  { %2517 = vmatprep.subr.bf16.mxu0 %v3555_v62  ;;  %v3633_v61 = vld [vmem:[%s5142_s1 + $0x834] ss:$8 sps:$4 sm:$0xff]   ;;  %v3628_v62 = vld [vmem:[%s5142_s1 + $0x330] ss:$8 sps:$4 sm:$0xff]  }
  0x9b   :  { %2313 = vmatpush1.bf16.msra.mxu1 %v3550_v63  ;;  %v3631_v63 = vld [vmem:[%s5142_s1 + $0x830] ss:$8 sps:$4 sm:$0xff]  }
  0x9c   :  { %2518 = vmatpush1.bf16.msra.mxu0 %v3553_v0  ;;  %2314 = vmatprep.subr.bf16.mxu1 %v3558_v1  ;;  %v3636_v0 = vld [vmem:[%s5142_s1 + $0x344] ss:$8 sps:$4 sm:$0xff]  }
  0x9d   :  { %2519 = vmatprep.subr.bf16.mxu0 %v3561_v2  ;;  %v3639_v1 = vld [vmem:[%s5142_s1 + $0x844] ss:$8 sps:$4 sm:$0xff]   ;;  %v3634_v2 = vld [vmem:[%s5142_s1 + $0x340] ss:$8 sps:$4 sm:$0xff]  }
  0x9f   :  { %2315 = vmatpush1.bf16.msra.mxu1 %v3556_v4  ;;  %v3637_v4 = vld [vmem:[%s5142_s1 + $0x840] ss:$8 sps:$4 sm:$0xff]  }
  0xa0   :  { %2520 = vmatpush1.bf16.msra.mxu0 %v3559_v5  ;;  %2316 = vmatprep.subr.bf16.mxu1 %v3564_v6  ;;  %v3642_v5 = vld [vmem:[%s5142_s1 + $0x354] ss:$8 sps:$4 sm:$0xff]  }
  0xa1   :  { %2521 = vmatprep.subr.bf16.mxu0 %v3567_v7  ;;  %v3645_v6 = vld [vmem:[%s5142_s1 + $0x854] ss:$8 sps:$4 sm:$0xff]   ;;  %v3640_v7 = vld [vmem:[%s5142_s1 + $0x350] ss:$8 sps:$4 sm:$0xff]  }
  0xa3   :  { %2317 = vmatpush1.bf16.msra.mxu1 %v3562_v8  ;;  %v3643_v8 = vld [vmem:[%s5142_s1 + $0x850] ss:$8 sps:$4 sm:$0xff]  }
  0xa4   :  { %2522 = vmatpush1.bf16.msra.mxu0 %v3565_v9  ;;  %2318 = vmatprep.subr.bf16.mxu1 %v3570_v10  ;;  %v3648_v9 = vld [vmem:[%s5142_s1 + $0x364] ss:$8 sps:$4 sm:$0xff]  }
  0xa5   :  { %2523 = vmatprep.subr.bf16.mxu0 %v3573_v11  ;;  %v3651_v10 = vld [vmem:[%s5142_s1 + $0x864] ss:$8 sps:$4 sm:$0xff]   ;;  %v3646_v11 = vld [vmem:[%s5142_s1 + $0x360] ss:$8 sps:$4 sm:$0xff]  }
  0xa7   :  { %2319 = vmatpush1.bf16.msra.mxu1 %v3568_v12  ;;  %v3649_v12 = vld [vmem:[%s5142_s1 + $0x860] ss:$8 sps:$4 sm:$0xff]  }
  0xa8   :  { %2524 = vmatpush1.bf16.msra.mxu0 %v3571_v13  ;;  %2320 = vmatprep.subr.bf16.mxu1 %v3576_v16  ;;  %v3654_v13 = vld [vmem:[%s5142_s1 + $0x374] ss:$8 sps:$4 sm:$0xff]  }
  0xa9   :  { %2525 = vmatprep.subr.bf16.mxu0 %v3579_v17  ;;  %v3657_v16 = vld [vmem:[%s5142_s1 + $0x874] ss:$8 sps:$4 sm:$0xff]   ;;  %v3652_v17 = vld [vmem:[%s5142_s1 + $0x370] ss:$8 sps:$4 sm:$0xff]  }
  0xab   :  { %2321 = vmatpush1.bf16.msra.mxu1 %v3574_v18  ;;  %v3655_v18 = vld [vmem:[%s5142_s1 + $0x870] ss:$8 sps:$4 sm:$0xff]  }
  0xac   :  { %2526 = vmatpush1.bf16.msra.mxu0 %v3577_v19  ;;  %2322 = vmatprep.subr.bf16.mxu1 %v3582_v20  ;;  %v3660_v19 = vld [vmem:[%s5142_s1 + $0x384] ss:$8 sps:$4 sm:$0xff]  }
  0xad   :  { %2527 = vmatprep.subr.bf16.mxu0 %v3585_v22  ;;  %v3663_v20 = vld [vmem:[%s5142_s1 + $0x884] ss:$8 sps:$4 sm:$0xff]   ;;  %v3658_v22 = vld [vmem:[%s5142_s1 + $0x380] ss:$8 sps:$4 sm:$0xff]  }
  0xaf   :  { %2323 = vmatpush1.bf16.msra.mxu1 %v3580_v23  ;;  %v3661_v23 = vld [vmem:[%s5142_s1 + $0x880] ss:$8 sps:$4 sm:$0xff]  }
  0xb0   :  { %2528 = vmatpush1.bf16.msra.mxu0 %v3583_v24  ;;  %2324 = vmatprep.subr.bf16.mxu1 %v3588_v25  ;;  %v3666_v24 = vld [vmem:[%s5142_s1 + $0x394] ss:$8 sps:$4 sm:$0xff]  }
  0xb1   :  { %2529 = vmatprep.subr.bf16.mxu0 %v3591_v26  ;;  %v3669_v25 = vld [vmem:[%s5142_s1 + $0x894] ss:$8 sps:$4 sm:$0xff]   ;;  %v3664_v26 = vld [vmem:[%s5142_s1 + $0x390] ss:$8 sps:$4 sm:$0xff]  }
  0xb3   :  { %2325 = vmatpush1.bf16.msra.mxu1 %v3586_v27  ;;  %v3667_v27 = vld [vmem:[%s5142_s1 + $0x890] ss:$8 sps:$4 sm:$0xff]  }
  0xb4   :  { %2530 = vmatpush1.bf16.msra.mxu0 %v3589_v52  ;;  %2326 = vmatprep.subr.bf16.mxu1 %v3594_v30  ;;  %v3672_v52 = vld [vmem:[%s5142_s1 + $0x3a4] ss:$8 sps:$4 sm:$0xff]  }
  0xb5   :  { %2531 = vmatprep.subr.bf16.mxu0 %v3597_v31  ;;  %v3675_v30 = vld [vmem:[%s5142_s1 + $0x8a4] ss:$8 sps:$4 sm:$0xff]   ;;  %v3670_v31 = vld [vmem:[%s5142_s1 + $0x3a0] ss:$8 sps:$4 sm:$0xff]  }
  0xb7   :  { %2327 = vmatpush1.bf16.msra.mxu1 %v3592_v32  ;;  %v3673_v32 = vld [vmem:[%s5142_s1 + $0x8a0] ss:$8 sps:$4 sm:$0xff]  }
  0xb8   :  { %2532 = vmatpush1.bf16.msra.mxu0 %v3595_v33  ;;  %2328 = vmatprep.subr.bf16.mxu1 %v3600_v34  ;;  %v3678_v33 = vld [vmem:[%s5142_s1 + $0x3b4] ss:$8 sps:$4 sm:$0xff]  }
  0xb9   :  { %2533 = vmatprep.subr.bf16.mxu0 %v3603_v35  ;;  %v3681_v34 = vld [vmem:[%s5142_s1 + $0x8b4] ss:$8 sps:$4 sm:$0xff]   ;;  %v3676_v35 = vld [vmem:[%s5142_s1 + $0x3b0] ss:$8 sps:$4 sm:$0xff]  }
  0xbb   :  { %2329 = vmatpush1.bf16.msra.mxu1 %v3598_v37  ;;  %v3679_v37 = vld [vmem:[%s5142_s1 + $0x8b0] ss:$8 sps:$4 sm:$0xff]  }
  0xbc   :  { %2534 = vmatpush1.bf16.msra.mxu0 %v3601_v21  ;;  %2330 = vmatprep.subr.bf16.mxu1 %v3606_v14 }
  0xbd   :  { %2535 = vmatprep.subr.bf16.mxu0 %v3609_v40 }
  0xbf   :  { %2331 = vmatpush1.bf16.msra.mxu1 %v3604_v42 }
  0xc0   :  { %2536 = vmatpush1.bf16.msra.mxu0 %v3607_v43  ;;  %2341 = vmatprep.subr.bf16.mxu1 %v3612_v28 }
  0xc1   :  { %2546 = vmatprep.subr.bf16.mxu0 %v3615_v44 }
  0xc2   :  { %2333 = vmatmul.mubr.bf16.vlgmr.msra.gmra.mrb[0].mxu1 %v4603_v48 }
  0xc3   :  { %2538 = vmatmul.mubr.bf16.vlgmr.msra.gmra.mrb[0].mxu0 %v475_v49  ;;  %2342 = vmatpush1.bf16.msra.mxu1 %v3610_v47 }
  0xc4   :  { %2547 = vmatpush1.bf16.msra.mxu0 %v3613_v50  ;;  %2343 = vmatprep.subr.bf16.mxu1 %v3618_v53 }
  0xc5   :  { %2548 = vmatprep.subr.bf16.mxu0 %v3621_v29  ;;  %2373 = vmatprep.mubr.bf16.mxu1 %v428_v54 }
  0xc6   :  { %2578 = vmatprep.mubr.bf16.mxu0 %v4619_v36 }
  0xc7   :  { %2344 = vmatpush1.bf16.msra.mxu1 %v3616_v55 }
  0xc8   :  { %2549 = vmatpush1.bf16.msra.mxu0 %v3619_v56  ;;  %2345 = vmatprep.subr.bf16.mxu1 %v3624_v39 }
  0xc9   :  { %2550 = vmatprep.subr.bf16.mxu0 %v3627_v57 }
  0xcb   :  { %2346 = vmatpush1.bf16.msra.mxu1 %v3622_v58 }
  0xcc   :  { %2551 = vmatpush1.bf16.msra.mxu0 %v3625_v59  ;;  %2347 = vmatprep.subr.bf16.mxu1 %v3630_v60 }
  0xcd   :  { %2552 = vmatprep.subr.bf16.mxu0 %v3633_v61 }
  0xcf   :  { %2348 = vmatpush1.bf16.msra.mxu1 %v3628_v62 }
  0xd0   :  { %2553 = vmatpush1.bf16.msra.mxu0 %v3631_v63  ;;  %2349 = vmatprep.subr.bf16.mxu1 %v3636_v0 }
  0xd1   :  { %2554 = vmatprep.subr.bf16.mxu0 %v3639_v1 }
  0xd3   :  { %2350 = vmatpush1.bf16.msra.mxu1 %v3634_v2 }
  0xd4   :  { %2555 = vmatpush1.bf16.msra.mxu0 %v3637_v4  ;;  %2351 = vmatprep.subr.bf16.mxu1 %v3642_v5 }
  0xd5   :  { %2556 = vmatprep.subr.bf16.mxu0 %v3645_v6 }
  0xd7   :  { %2352 = vmatpush1.bf16.msra.mxu1 %v3640_v7 }
  0xd8   :  { %2557 = vmatpush1.bf16.msra.mxu0 %v3643_v8  ;;  %2353 = vmatprep.subr.bf16.mxu1 %v3648_v9 }
  0xd9   :  { %2558 = vmatprep.subr.bf16.mxu0 %v3651_v10 }
  0xdb   :  { %2354 = vmatpush1.bf16.msra.mxu1 %v3646_v11 }
  0xdc   :  { %2559 = vmatpush1.bf16.msra.mxu0 %v3649_v12  ;;  %2355 = vmatprep.subr.bf16.mxu1 %v3654_v13 }
  0xdd   :  { %2560 = vmatprep.subr.bf16.mxu0 %v3657_v16 }
  0xdf   :  { %2356 = vmatpush1.bf16.msra.mxu1 %v3652_v17 }
  0xe0   :  { %2561 = vmatpush1.bf16.msra.mxu0 %v3655_v18  ;;  %2357 = vmatprep.subr.bf16.mxu1 %v3660_v19 }
  0xe1   :  { %2562 = vmatprep.subr.bf16.mxu0 %v3663_v20 }
  0xe3   :  { %2358 = vmatpush1.bf16.msra.mxu1 %v3658_v22 }
  0xe4   :  { %2563 = vmatpush1.bf16.msra.mxu0 %v3661_v23  ;;  %2359 = vmatprep.subr.bf16.mxu1 %v3666_v24 }
  0xe5   :  { %2564 = vmatprep.subr.bf16.mxu0 %v3669_v25 }
  0xe7   :  { %2360 = vmatpush1.bf16.msra.mxu1 %v3664_v26 }
  0xe8   :  { %2565 = vmatpush1.bf16.msra.mxu0 %v3667_v27  ;;  %2361 = vmatprep.subr.bf16.mxu1 %v3672_v52 }
  0xe9   :  { %2566 = vmatprep.subr.bf16.mxu0 %v3675_v30 }
  0xeb   :  { %2362 = vmatpush1.bf16.msra.mxu1 %v3670_v31 }
  0xec   :  { %2567 = vmatpush1.bf16.msra.mxu0 %v3673_v32 }
  0xed   :  { %14 = vsyncpa [#allocation5], 0  ;;  %2363 = vmatprep.subr.bf16.mxu1 %v3678_v33  ;;  %2568 = vmatprep.subr.bf16.mxu0 %v3681_v34  ;;  %v3684_v21 = vld [vmem:[%s5142_s1 + $0x3c4] ss:$8 sps:$4 sm:$0xff]   ;;  %v3682_v40 = vld [vmem:[%s5142_s1 + $0x3c0] ss:$8 sps:$4 sm:$0xff]   ;;  %v426_v58 = vcombine.high %v4603_v48, %v4603_v48  ;;  %v4807_v59 = vrot.slane %v4582_v41, %v4081_v51  ;;  %v516_v62 = vcombine.high %v4619_v36, %v4619_v36 }
  0xee   :  { %v3687_v14 = vld [vmem:[%s5142_s1 + $0x8c4] ss:$8 sps:$4 sm:$0xff]   ;;  %v3685_v42 = vld [vmem:[%s5142_s1 + $0x8c0] ss:$8 sps:$4 sm:$0xff]   ;;  %v3690_v43 = vld [vmem:[%s5142_s1 + $0x3d4] ss:$8 sps:$4 sm:$0xff]  }
  0xef   :  { %2364 = vmatpush1.bf16.msra.mxu1 %v3676_v35  ;;  %v3693_v28 = vld [vmem:[%s5142_s1 + $0x8d4] ss:$8 sps:$4 sm:$0xff]   ;;  %v3688_v44 = vld [vmem:[%s5142_s1 + $0x3d0] ss:$8 sps:$4 sm:$0xff]   ;;  %v3696_v47 = vld [vmem:[%s5142_s1 + $0x3e4] ss:$8 sps:$4 sm:$0xff]  }
  0xf0   :  { %2569 = vmatpush1.bf16.msra.mxu0 %v3679_v37  ;;  %2365 = vmatprep.subr.bf16.mxu1 %v3684_v21  ;;  %v3691_v46 = vld [vmem:[%s5142_s1 + $0x8d0] ss:$8 sps:$4 sm:$0xff]   ;;  %v3699_v49 = vld [vmem:[%s5142_s1 + $0x8e4] ss:$8 sps:$4 sm:$0xff]   ;;  %v3694_v50 = vld [vmem:[%s5142_s1 + $0x3e0] ss:$8 sps:$4 sm:$0xff]  }
  0xf1   :  { %2570 = vmatprep.subr.bf16.mxu0 %v3687_v14  ;;  %v3697_v53 = vld [vmem:[%s5142_s1 + $0x8e0] ss:$8 sps:$4 sm:$0xff]   ;;  %v3702_v29 = vld [vmem:[%s5142_s1 + $0x3f4] ss:$8 sps:$4 sm:$0xff]   ;;  %v3700_v55 = vld [vmem:[%s5142_s1 + $0x3f0] ss:$8 sps:$4 sm:$0xff]  }
  0xf2   :  { %v3705_v54 = vld [vmem:[%s5142_s1 + $0x8f4] ss:$8 sps:$4 sm:$0xff]   ;;  %v3703_v56 = vld [vmem:[%s5142_s1 + $0x8f0] ss:$8 sps:$4 sm:$0xff]   ;;  %v3708_v39 = vld [vmem:[%s5142_s1 + $0x404] ss:$8 sps:$4 sm:$0xff]  }
  0xf3   :  { %2366 = vmatpush1.bf16.msra.mxu1 %v3682_v40  ;;  %v3712_v57 = vld [vmem:[%s5142_s1 + $0x904] ss:$8 sps:$4 sm:$0xff]   ;;  %v3706_v60 = vld [vmem:[%s5142_s1 + $0x400] ss:$8 sps:$4 sm:$0xff]   ;;  %v3715_v48 = vld [vmem:[%s5142_s1 + $0x414] ss:$8 sps:$4 sm:$0xff]  }
  0xf4   :  { %2571 = vmatpush1.bf16.msra.mxu0 %v3685_v42  ;;  %2367 = vmatprep.subr.bf16.mxu1 %v3690_v43  ;;  %v3710_v61 = vld [vmem:[%s5142_s1 + $0x900] ss:$8 sps:$4 sm:$0xff]   ;;  %v3718_v41 = vld [vmem:[%s5142_s1 + $0x914] ss:$8 sps:$4 sm:$0xff]   ;;  %v3713_v63 = vld [vmem:[%s5142_s1 + $0x410] ss:$8 sps:$4 sm:$0xff]  }
  0xf5   :  { %2572 = vmatprep.subr.bf16.mxu0 %v3693_v28  ;;  %v3716_v0 = vld [vmem:[%s5142_s1 + $0x910] ss:$8 sps:$4 sm:$0xff]   ;;  %v3721_v1 = vld [vmem:[%s5142_s1 + $0x424] ss:$8 sps:$4 sm:$0xff]   ;;  %v3719_v2 = vld [vmem:[%s5142_s1 + $0x420] ss:$8 sps:$4 sm:$0xff]  }
  0xf6   :  { %v3724_v36 = vld [vmem:[%s5142_s1 + $0x924] ss:$8 sps:$4 sm:$0xff]   ;;  %v3722_v4 = vld [vmem:[%s5142_s1 + $0x920] ss:$8 sps:$4 sm:$0xff]   ;;  %v3727_v5 = vld [vmem:[%s5142_s1 + $0x434] ss:$8 sps:$4 sm:$0xff]  }
  0xf7   :  { %2368 = vmatpush1.bf16.msra.mxu1 %v3688_v44  ;;  %v3725_v6 = vld [vmem:[%s5142_s1 + $0x430] ss:$8 sps:$4 sm:$0xff]   ;;  %v3733_v8 = vld [vmem:[%s5142_s1 + $0x444] ss:$8 sps:$4 sm:$0xff]   ;;  %v3731_v10 = vld [vmem:[%s5142_s1 + $0x440] ss:$8 sps:$4 sm:$0xff]  }
  0xf8   :  { %2573 = vmatpush1.bf16.msra.mxu0 %v3691_v46  ;;  %2369 = vmatprep.subr.bf16.mxu1 %v3696_v47  ;;  %v3728_v7 = vld [vmem:[%s5142_s1 + $0x930] ss:$8 sps:$4 sm:$0xff]   ;;  %v3736_v9 = vld [vmem:[%s5142_s1 + $0x944] ss:$8 sps:$4 sm:$0xff]   ;;  %v3734_v11 = vld [vmem:[%s5142_s1 + $0x940] ss:$8 sps:$4 sm:$0xff]  }
  0xf9   :  { %2574 = vmatprep.subr.bf16.mxu0 %v3699_v49  ;;  %v3739_v12 = vld [vmem:[%s5142_s1 + $0x454] ss:$8 sps:$4 sm:$0xff]   ;;  %v3737_v16 = vld [vmem:[%s5142_s1 + $0x450] ss:$8 sps:$4 sm:$0xff]   ;;  %v3745_v18 = vld [vmem:[%s5142_s1 + $0x464] ss:$8 sps:$4 sm:$0xff]  }
  0xfa   :  { %v3742_v13 = vld [vmem:[%s5142_s1 + $0x954] ss:$8 sps:$4 sm:$0xff]   ;;  %v3740_v17 = vld [vmem:[%s5142_s1 + $0x950] ss:$8 sps:$4 sm:$0xff]   ;;  %v3748_v19 = vld [vmem:[%s5142_s1 + $0x964] ss:$8 sps:$4 sm:$0xff]  }
  0xfb   :  { %2370 = vmatpush1.bf16.msra.mxu1 %v3694_v50  ;;  %v3743_v20 = vld [vmem:[%s5142_s1 + $0x460] ss:$8 sps:$4 sm:$0xff]   ;;  %v3751_v23 = vld [vmem:[%s5142_s1 + $0x474] ss:$8 sps:$4 sm:$0xff]   ;;  %v3749_v25 = vld [vmem:[%s5142_s1 + $0x470] ss:$8 sps:$4 sm:$0xff]  }
  0xfc   :  { %2575 = vmatpush1.bf16.msra.mxu0 %v3697_v53  ;;  %2371 = vmatprep.subr.bf16.mxu1 %v3702_v29  ;;  %v3746_v22 = vld [vmem:[%s5142_s1 + $0x960] ss:$8 sps:$4 sm:$0xff]   ;;  %v3754_v24 = vld [vmem:[%s5142_s1 + $0x974] ss:$8 sps:$4 sm:$0xff]   ;;  %v3752_v26 = vld [vmem:[%s5142_s1 + $0x970] ss:$8 sps:$4 sm:$0xff]  }
  0xfd   :  { %2576 = vmatprep.subr.bf16.mxu0 %v3705_v54  ;;  %v3757_v27 = vld [vmem:[%s5142_s1 + $0x484] ss:$8 sps:$4 sm:$0xff]   ;;  %v3755_v30 = vld [vmem:[%s5142_s1 + $0x480] ss:$8 sps:$4 sm:$0xff]   ;;  %v3763_v32 = vld [vmem:[%s5142_s1 + $0x494] ss:$8 sps:$4 sm:$0xff]  }
  0xfe   :  { %v3760_v52 = vld [vmem:[%s5142_s1 + $0x984] ss:$8 sps:$4 sm:$0xff]   ;;  %v3758_v31 = vld [vmem:[%s5142_s1 + $0x980] ss:$8 sps:$4 sm:$0xff]   ;;  %v3766_v33 = vld [vmem:[%s5142_s1 + $0x994] ss:$8 sps:$4 sm:$0xff]  }
  0xff   :  { %2372 = vmatpush1.bf16.msra.mxu1 %v3700_v55  ;;  %v3761_v34 = vld [vmem:[%s5142_s1 + $0x490] ss:$8 sps:$4 sm:$0xff]   ;;  %v3769_v37 = vld [vmem:[%s5142_s1 + $0x4a4] ss:$8 sps:$4 sm:$0xff]   ;;  %v3767_v14 = vld [vmem:[%s5142_s1 + $0x4a0] ss:$8 sps:$4 sm:$0xff]  }
 0x100   :  { %2577 = vmatpush1.bf16.msra.mxu0 %v3703_v56  ;;  %2382 = vmatprep.subr.bf16.mxu1 %v3708_v39  ;;  %v3764_v35 = vld [vmem:[%s5142_s1 + $0x990] ss:$8 sps:$4 sm:$0xff]   ;;  %v3772_v21 = vld [vmem:[%s5142_s1 + $0x9a4] ss:$8 sps:$4 sm:$0xff]   ;;  %v3770_v40 = vld [vmem:[%s5142_s1 + $0x9a0] ss:$8 sps:$4 sm:$0xff]  }
 0x101   :  { %2587 = vmatprep.subr.bf16.mxu0 %v3712_v57  ;;  %v3775_v42 = vld [vmem:[%s5142_s1 + $0x4b4] ss:$8 sps:$4 sm:$0xff]   ;;  %v3773_v28 = vld [vmem:[%s5142_s1 + $0x4b0] ss:$8 sps:$4 sm:$0xff]   ;;  %v3781_v46 = vld [vmem:[%s5142_s1 + $0x4c4] ss:$8 sps:$4 sm:$0xff]  }
 0x102   :  { %2374 = vmatmul.mubr.bf16.vlgmr.msra.gmra.mrb[0].mxu1 %v426_v58  ;;  %v3778_v43 = vld [vmem:[%s5142_s1 + $0x9b4] ss:$8 sps:$4 sm:$0xff]   ;;  %v3776_v44 = vld [vmem:[%s5142_s1 + $0x9b0] ss:$8 sps:$4 sm:$0xff]   ;;  %v3784_v47 = vld [vmem:[%s5142_s1 + $0x9c4] ss:$8 sps:$4 sm:$0xff]  }
 0x103   :  { %2579 = vmatmul.mubr.bf16.vlgmr.msra.gmra.mrb[0].mxu0 %v4807_v59  ;;  %2383 = vmatpush1.bf16.msra.mxu1 %v3706_v60  ;;  %v3779_v49 = vld [vmem:[%s5142_s1 + $0x4c0] ss:$8 sps:$4 sm:$0xff]   ;;  %v3787_v53 = vld [vmem:[%s5142_s1 + $0x4d4] ss:$8 sps:$4 sm:$0xff]   ;;  %v3785_v54 = vld [vmem:[%s5142_s1 + $0x4d0] ss:$8 sps:$4 sm:$0xff]  }
 0x104   :  { %2588 = vmatpush1.bf16.msra.mxu0 %v3710_v61  ;;  %2384 = vmatprep.subr.bf16.mxu1 %v3715_v48  ;;  %v3782_v50 = vld [vmem:[%s5142_s1 + $0x9c0] ss:$8 sps:$4 sm:$0xff]   ;;  %v3790_v29 = vld [vmem:[%s5142_s1 + $0x9d4] ss:$8 sps:$4 sm:$0xff]   ;;  %v3788_v55 = vld [vmem:[%s5142_s1 + $0x9d0] ss:$8 sps:$4 sm:$0xff]  }
 0x105   :  { %2589 = vmatprep.subr.bf16.mxu0 %v3718_v41  ;;  %2414 = vmatprep.mubr.bf16.mxu1 %v4122_v3  ;;  %v3730_v3 = vld [vmem:[%s5142_s1 + $0x934] ss:$8 sps:$4 sm:$0xff]   ;;  %v3793_v56 = vld [vmem:[%s5142_s1 + $0x4e4] ss:$8 sps:$4 sm:$0xff]   ;;  %v3791_v57 = vld [vmem:[%s5142_s1 + $0x4e0] ss:$8 sps:$4 sm:$0xff]  }
 0x106   :  { %2619 = vmatprep.mubr.bf16.mxu0 %v516_v62  ;;  %v3796_v39 = vld [vmem:[%s5142_s1 + $0x9e4] ss:$8 sps:$4 sm:$0xff]   ;;  %v3794_v58 = vld [vmem:[%s5142_s1 + $0x9e0] ss:$8 sps:$4 sm:$0xff]   ;;  %v3799_v60 = vld [vmem:[%s5142_s1 + $0x4f4] ss:$8 sps:$4 sm:$0xff]  }
 0x107   :  { %2385 = vmatpush1.bf16.msra.mxu1 %v3713_v63  ;;  %v3802_v61 = vld [vmem:[%s5142_s1 + $0x9f4] ss:$8 sps:$4 sm:$0xff]   ;;  %v3797_v48 = vld [vmem:[%s5142_s1 + $0x4f0] ss:$8 sps:$4 sm:$0xff]   ;;  %v3805_v62 = vld [vmem:[%s5142_s1 + $0xa04] ss:$8 sps:$4 sm:$0xff]   ;;  %v515_v63 = vcombine.high %v4807_v59, %v4807_v59 }
 0x108   :  { %2590 = vmatpush1.bf16.msra.mxu0 %v3716_v0  ;;  %2386 = vmatprep.subr.bf16.mxu1 %v3721_v1  ;;  %v3800_v41 = vld [vmem:[%s5142_s1 + $0x9f0] ss:$8 sps:$4 sm:$0xff]   ;;  %v3803_v0 = vld [vmem:[%s5142_s1 + $0xa00] ss:$8 sps:$4 sm:$0xff]   ;;  %v3808_v1 = vld [vmem:[%s5142_s1 + $0xa14] ss:$8 sps:$4 sm:$0xff]  }
 0x109   :  { %2591 = vmatprep.subr.bf16.mxu0 %v3724_v36  ;;  %v3806_v36 = vld [vmem:[%s5142_s1 + $0xa10] ss:$8 sps:$4 sm:$0xff]   ;;  %v3896_v59 = vmov 0   ;;  %vm2848_vm0 = vcmask 41984   ;;  %s3897_s30 = smov 122   ;;  %vm2866_vm1 = vcmask 1024  }
 0x10b   :  { %2387 = vmatpush1.bf16.msra.mxu1 %v3719_v2  ;;  %v3811_v2 = vld [vmem:[%s5142_s1 + $0xa24] ss:$8 sps:$4 sm:$0xff]  }
 0x10c   :  { %2592 = vmatpush1.bf16.msra.mxu0 %v3722_v4  ;;  %2388 = vmatprep.subr.bf16.mxu1 %v3727_v5  ;;  %v3809_v4 = vld [vmem:[%s5142_s1 + $0xa20] ss:$8 sps:$4 sm:$0xff]   ;;  %v3812_v5 = vld [vmem:[%s5142_s1 + $0xa30] ss:$8 sps:$4 sm:$0xff]  }
 0x10d   :  { %2593 = vmatprep.subr.bf16.mxu0 %v3730_v3  ;;  %v3817_v3 = vld [vmem:[%s5142_s1 + $0xa44] ss:$8 sps:$4 sm:$0xff]  }
 0x10f   :  { %2389 = vmatpush1.bf16.msra.mxu1 %v3725_v6  ;;  %v3815_v6 = vld [vmem:[%s5142_s1 + $0xa40] ss:$8 sps:$4 sm:$0xff]  }
 0x110   :  { %2594 = vmatpush1.bf16.msra.mxu0 %v3728_v7  ;;  %2390 = vmatprep.subr.bf16.mxu1 %v3733_v8  ;;  %v3820_v7 = vld [vmem:[%s5142_s1 + $0xa54] ss:$8 sps:$4 sm:$0xff]   ;;  %v3818_v8 = vld [vmem:[%s5142_s1 + $0xa50] ss:$8 sps:$4 sm:$0xff]  }
 0x111   :  { %2595 = vmatprep.subr.bf16.mxu0 %v3736_v9  ;;  %v3823_v9 = vld [vmem:[%s5142_s1 + $0xa64] ss:$8 sps:$4 sm:$0xff]  }
 0x113   :  { %2391 = vmatpush1.bf16.msra.mxu1 %v3731_v10  ;;  %v478_v10 = vcombine.high %v4569_v38, %v4569_v38 }
 0x114   :  { %2596 = vmatpush1.bf16.msra.mxu0 %v3734_v11  ;;  %2392 = vmatprep.subr.bf16.mxu1 %v3739_v12  ;;  %v3821_v11 = vld [vmem:[%s5142_s1 + $0xa60] ss:$8 sps:$4 sm:$0xff]   ;;  %v3826_v12 = vld [vmem:[%s5142_s1 + $0xa74] ss:$8 sps:$4 sm:$0xff]  }
 0x115   :  { %2597 = vmatprep.subr.bf16.mxu0 %v3742_v13  ;;  %v492_v13 = vrot.slane %v478_v10, %v4081_v51 }
 0x117   :  { %2393 = vmatpush1.bf16.msra.mxu1 %v3737_v16  ;;  %v3824_v16 = vld [vmem:[%s5142_s1 + $0xa70] ss:$8 sps:$4 sm:$0xff]   ;;  %v507_v38 = vrot.slane %v492_v13, %v4081_v51  ;;  %v3830_v51 = vld [vmem:[%s5144_s3 + $0x8] sm:$0xff]  }
 0x118   :  { %2598 = vmatpush1.bf16.msra.mxu0 %v3740_v17  ;;  %2394 = vmatprep.subr.bf16.mxu1 %v3745_v18  ;;  %v3827_v17 = vld [vmem:[%s5144_s3 + $0x40] sm:$0xff]  }
 0x119   :  { %2599 = vmatprep.subr.bf16.mxu0 %v3748_v19  ;;  %v3828_v18 = vld [vmem:[%s5144_s3] sm:$0xff]   ;;  %v3829_v19 = vld [vmem:[%s5144_s3 + $0x48] sm:$0xff]  }
 0x11b   :  { %2395 = vmatpush1.bf16.msra.mxu1 %v3743_v20  ;;  %v3831_v20 = vld [vmem:[%s5144_s3 + $0x50] sm:$0xff]  }
 0x11c   :  { %2600 = vmatpush1.bf16.msra.mxu0 %v3746_v22  ;;  %2396 = vmatprep.subr.bf16.mxu1 %v3751_v23  ;;  %v3832_v22 = vld [vmem:[%s5144_s3 + $0x10] sm:$0xff]   ;;  %v3833_v23 = vld [vmem:[%s5144_s3 + $0x58] sm:$0xff]  }
 0x11d   :  { %2601 = vmatprep.subr.bf16.mxu0 %v3754_v24  ;;  %v3834_v24 = vld [vmem:[%s5144_s3 + $0x18] sm:$0xff]  }
 0x11f   :  { %2397 = vmatpush1.bf16.msra.mxu1 %v3749_v25  ;;  %v3835_v25 = vld [vmem:[%s5144_s3 + $0x60] sm:$0xff]  }
 0x120   :  { %2602 = vmatpush1.bf16.msra.mxu0 %v3752_v26  ;;  %2398 = vmatprep.subr.bf16.mxu1 %v3757_v27  ;;  %v3836_v26 = vld [vmem:[%s5144_s3 + $0x20] sm:$0xff]   ;;  %v3837_v27 = vld [vmem:[%s5144_s3 + $0x68] sm:$0xff]  }
 0x121   :  { %2603 = vmatprep.subr.bf16.mxu0 %v3760_v52  ;;  %v3838_v52 = vld [vmem:[%s5144_s3 + $0x28] sm:$0xff]  }
 0x123   :  { %2399 = vmatpush1.bf16.msra.mxu1 %v3755_v30  ;;  %v3839_v30 = vld [vmem:[%s5144_s3 + $0x70] sm:$0xff]  }
 0x124   :  { %2604 = vmatpush1.bf16.msra.mxu0 %v3758_v31  ;;  %2400 = vmatprep.subr.bf16.mxu1 %v3763_v32  ;;  %v3840_v31 = vld [vmem:[%s5144_s3 + $0x30] sm:$0xff]   ;;  %v3841_v32 = vld [vmem:[%s5144_s3 + $0x78] sm:$0xff]  }
 0x125   :  { %2605 = vmatprep.subr.bf16.mxu0 %v3766_v33  ;;  %v3842_v33 = vld [vmem:[%s5144_s3 + $0x38] sm:$0xff]  }
 0x127   :  { %2401 = vmatpush1.bf16.msra.mxu1 %v3761_v34 }
 0x128   :  { %2606 = vmatpush1.bf16.msra.mxu0 %v3764_v35  ;;  %2402 = vmatprep.subr.bf16.mxu1 %v3769_v37 }
 0x129   :  { %2607 = vmatprep.subr.bf16.mxu0 %v3772_v21 }
 0x12b   :  { %2403 = vmatpush1.bf16.msra.mxu1 %v3767_v14  ;;  %v369_v14 = vsub.s32 0, %v4066_v45 }
 0x12c   :  { %2608 = vmatpush1.bf16.msra.mxu0 %v3770_v40  ;;  %2404 = vmatprep.subr.bf16.mxu1 %v3775_v42  ;;  %v365_v40 = vld [vmem:[%s5143_s2] sm:$0x3]  ;;  %v373_v42 = vsub.s32 1, %v4066_v45 }
 0x12d   :  { %2609 = vmatprep.subr.bf16.mxu0 %v3778_v43  ;;  %v370_v43 = vrot.slane %v365_v40, %v369_v14  ;;  %v3236_v45 = vld [vmem:[%s5145_s4] ss:$0 sm:$0xff]  ;;  %s3898_s4 = smov [#allocation2]  }
 0x12e   :  { %s2874_s10 = sshll.u32 %s3898_s4, 4  ;;  %s2875_s10 = int_to_ptr.vmem [resolvable:$true] %s2874_s10 }
 0x12f   :  { %2405 = vmatpush1.bf16.msra.mxu1 %v3773_v28  ;;  %v374_v28 = vrot.slane %v365_v40, %v373_v42  ;;  %s3847_s11 = scalar_lea.vmem %s2875_s10, 32  ;;  %p3852_p1 = scmp.lt.s32.totalorder %s2875_s10, %s2875_s10 }
 0x130   :  { %2610 = vmatpush1.bf16.msra.mxu0 %v3776_v44  ;;  %2406 = vmatprep.subr.bf16.mxu1 %v3781_v46  ;;  %p3848_p0 = scmp.ne.s32.totalorder %s2875_s10, %s3847_s11  ;;  %p3853_p2 = scmp.lt.s32.totalorder %s3847_s11, %s3847_s11 }
 0x131   :  { %2611 = vmatprep.subr.bf16.mxu0 %v3784_v47 }
 0x132   :  { %p3854_p3 = por %p3853_p2, %p3852_p1 }
 0x133   :  { %2407 = vmatpush1.bf16.msra.mxu1 %v3779_v49 }
 0x134   :  { %2612 = vmatpush1.bf16.msra.mxu0 %v3782_v50  ;;  %2408 = vmatprep.subr.bf16.mxu1 %v3787_v53  ;;  %p3855_p4 = pnand %p3854_p3, %p3848_p0 }
 0x135   :  { %2613 = vmatprep.subr.bf16.mxu0 %v3790_v29 }
 0x137   :  { %2409 = vmatpush1.bf16.msra.mxu1 %v3785_v54 }
 0x138   :  { %2614 = vmatpush1.bf16.msra.mxu0 %v3788_v55  ;;  %2410 = vmatprep.subr.bf16.mxu1 %v3793_v56 }
 0x139   :  { %2615 = vmatprep.subr.bf16.mxu0 %v3796_v39 }
 0x13b   :  { %2411 = vmatpush1.bf16.msra.mxu1 %v3791_v57 }
 0x13c   :  { %2616 = vmatpush1.bf16.msra.mxu0 %v3794_v58  ;;  %2412 = vmatprep.subr.bf16.mxu1 %v3799_v60 }
 0x13d   :  { %2617 = vmatprep.subr.bf16.mxu0 %v3802_v61 }
 0x13f   :  { %2413 = vmatpush1.bf16.msra.mxu1 %v3797_v48 }
 0x140   :  { %2618 = vmatpush1.bf16.msra.mxu0 %v3800_v41  ;;  %3253 = vmatprep.subr.bf16.mxu1 %v3827_v17 }
 0x141   :  { %2628 = vmatprep.subr.bf16.mxu0 %v3805_v62 }
 0x142   :  { %2415 = vmatmul.mubr.bf16.vlgmr.msra.gmra.mrb[0].mxu1 %v4155_v15  ;;  %v3814_v15 = vld [vmem:[%s5142_s1 + $0xa34] ss:$8 sps:$4 sm:$0xff]  }
 0x143   :  { %2620 = vmatmul.mubr.bf16.vlgmr.msra.gmra.mrb[0].mxu0 %v515_v63  ;;  %3254 = vmatpush3.bf16.msra.mxu1 %v3828_v18 }
 0x144   :  { %2629 = vmatpush1.bf16.msra.mxu0 %v3803_v0  ;;  %2660 = vmatprep.mubr.bf16.mxu0 %v3896_v59 }
 0x145   :  { %2630 = vmatprep.subr.bf16.mxu0 %v3808_v1  ;;  %3255 = vmatprep.subr.bf16.mxu1 %v3829_v19 }
 0x147   :  { %3256 = vmatpush3.bf16.msra.mxu1 %v3830_v51 }
 0x148   :  { %2631 = vmatpush1.bf16.msra.mxu0 %v3806_v36  ;;  %3257 = vmatprep.subr.bf16.mxu1 %v3831_v20 }
 0x149   :  { %2632 = vmatprep.subr.bf16.mxu0 %v3811_v2 }
 0x14b   :  { %3258 = vmatpush3.bf16.msra.mxu1 %v3832_v22 }
 0x14c   :  { %2633 = vmatpush1.bf16.msra.mxu0 %v3809_v4  ;;  %3259 = vmatprep.subr.bf16.mxu1 %v3833_v23 }
 0x14d   :  { %2634 = vmatprep.subr.bf16.mxu0 %v3814_v15 }
 0x14f   :  { %3260 = vmatpush3.bf16.msra.mxu1 %v3834_v24 }
 0x150   :  { %2635 = vmatpush1.bf16.msra.mxu0 %v3812_v5  ;;  %3261 = vmatprep.subr.bf16.mxu1 %v3835_v25 }
 0x151   :  { %2636 = vmatprep.subr.bf16.mxu0 %v3817_v3 }
 0x153   :  { %3262 = vmatpush3.bf16.msra.mxu1 %v3836_v26 }
 0x154   :  { %2637 = vmatpush1.bf16.msra.mxu0 %v3815_v6  ;;  %3263 = vmatprep.subr.bf16.mxu1 %v3837_v27 }
 0x155   :  { %2638 = vmatprep.subr.bf16.mxu0 %v3820_v7 }
 0x157   :  { %3264 = vmatpush3.bf16.msra.mxu1 %v3838_v52 }
 0x158   :  { %2639 = vmatpush1.bf16.msra.mxu0 %v3818_v8  ;;  %3265 = vmatprep.subr.bf16.mxu1 %v3839_v30 }
 0x159   :  { %2640 = vmatprep.subr.bf16.mxu0 %v3823_v9 }
 0x15b   :  { %3266 = vmatpush3.bf16.msra.mxu1 %v3840_v31 }
 0x15c   :  { %2641 = vmatpush1.bf16.msra.mxu0 %v3821_v11  ;;  %3267 = vmatprep.subr.bf16.mxu1 %v3841_v32 }
 0x15d   :  { %2642 = vmatprep.subr.bf16.mxu0 %v3826_v12 }
 0x15f   :  { %3268 = vmatpush3.bf16.msra.mxu1 %v3842_v33 }
 0x160   :  { %2643 = vmatpush1.bf16.msra.mxu0 %v3824_v16 }
 0x163   :  { %2661 = vmatmul.mubr.bf16.vlgmr.msra.gmra.mrb[0].mxu0 %v507_v38 }
 0x215   :  { %v2416_v34 = vpop.f32.mrb[0].mxu1 }
 0x216   :  { %v2418_v35 = vpop.f32.mrb[1].mxu1  ;;  %v3275_v44 = vadd.f32 %v2416_v34, %v370_v43 }
 0x217   :  { %v2420_v37 = vpop.f32.mrb[2].mxu1  ;;  %v3277_v46 = vadd.f32 %v2418_v35, %v374_v28 }
 0x218   :  { %v2421_v21 = vpop.f32.mrb[3].mxu1 }
 0x236   :  { %v2662_v47 = vpop.f32.mrb[0].mxu0 }
 0x237   :  { %v3276_v49 = vadd.f32 %v3275_v44, %v2662_v47  ;;  %v2664_v50 = vpop.f32.mrb[1].mxu0 }
 0x238   :  { %v3278_v53 = vadd.f32 %v3277_v46, %v2664_v50  ;;  %v2666_v29 = vpop.f32.mrb[2].mxu0 }
 0x239   :  { %v2669_v54 = vmax.f32 %v3276_v49, 0.0  ;;  %v2667_v55 = vpop.f32.mrb[3].mxu0 }
 0x23a   :  { %v2670_v56 = vmax.f32 %v3278_v53, 0.0 }
 0x23b   :  { %v2671_v57 = vpack.c.bf16 %v2669_v54, %v2669_v54 }
 0x23c   :  { %v2672_v39 = vpack.c.bf16 %v2670_v56, %v2670_v56 }
 0x23e   :  { %2840 = vmatprep.mubr.bf16.mxu1 %v2672_v39 }
 0x23f   :  { %2841 = vmatmul.mubr.bf16.vlgmr.msra.gmra.mrb[4].mxu1 %v2671_v57 }
 0x312   :  { %v3269_v58 = vpop.f32.mrb[4].mxu1 }
 0x313   :  { %v3270_v60 = vpop.f32.mrb[5].mxu1 }
 0x314   :  { %v3271_v61 = vadd.f32 %v3270_v60, %v3269_v58  ;;  %v3272_v48 = vpop.f32.mrb[6].mxu1 }
 0x315   :  { %v3273_v41 = vpop.f32.mrb[7].mxu1 }
 0x316   :  { %v2843_v62 = vadd.f32 %v3271_v61, %v3236_v45 }
 0x318   :  { %2863 = vrot.lane.b32.xlu1 %v2843_v62, %s3897_s30  ;;  %v2849_v63 = vsel %vm2848_vm0, %v2843_v62, -inf  ;;  %2860 = vst.msk [vmem:[#allocation2] sm:$0x3] %vm2848_vm0, %v2843_v62 }
 0x319   :  { %2850 = vmax.xlane.f32.xlu0 %v2849_v63 }
 0x38a   :  { %v2864_v0 = vpop.permute.xlu1 %2863 }
 0x38b   :  { %2867 = vst.msk [vmem:[%s5148_s7] sm:$0x3] %vm2866_vm1, %v2864_v0 }
 0x3a6   :  { %v2851_v1 = vpop.xlane.xlu0 %2850 }
 0x3a7   :  { %v2852_v36 = vsub.f32 %v2843_v62, %v2851_v1 }
 0x3a9   :  { %v2853_v59 = vmul.f32 1.442695, %v2852_v36 }
 0x3ab   :  { %3843 = vpow2.f32 %v2853_v59 }
 0x3b5   :  { %v3844_v2 = vpop.eup %3843 }
 0x3b6   :  { %v2855_v4 = vsel %vm2848_vm0, %v3844_v2, 0.0 }
 0x3b7   :  { %2856 = vadd.xlane.f32.xlu0 %v2855_v4 }
 0x3b8   :  { %3858 = shalt.err (!%p3855_p4)
}
 0x3b9   :  { %s3859_s13 = scalar_lea.hbm %s5146_s5, 32 }
 0x3ba   :  { %p3860_p5 = scmp.ne.s32.totalorder %s5146_s5, %s3859_s13  ;;  %p3863_p6 = scmp.lt.u32.totalorder %s3859_s13, %s5146_s5 }
 0x3bc   :  { %p3865_p7 = pnand %p3863_p6, %p3860_p5 }
 0x3be   :  { %3868 = shalt.err (!%p3865_p7)
}
 0x3bf   :  { %2877 = dma.vmem_to_hbm [thread:$0]  %s2875_s10, 32, %s5146_s5, [#allocation3]  }
 0x3c0   :  { %s3899_s19 = smov [#allocation4]  }
 0x3c1   :  { %s2884_s20 = sshll.u32 %s3899_s19, 4  ;;  %s2885_s20 = int_to_ptr.vmem [resolvable:$true] %s2884_s20 }
 0x3c2   :  { %s3869_s21 = scalar_lea.vmem %s2885_s20, 32  ;;  %p3874_p9 = scmp.lt.s32.totalorder %s2885_s20, %s2885_s20 }
 0x3c3   :  { %p3870_p8 = scmp.ne.s32.totalorder %s2885_s20, %s3869_s21  ;;  %p3875_p10 = scmp.lt.s32.totalorder %s3869_s21, %s3869_s21 }
 0x3c5   :  { %p3876_p11 = por %p3875_p10, %p3874_p9 }
 0x3c7   :  { %p3877_p12 = pnand %p3876_p11, %p3870_p8 }
 0x444   :  { %v2857_v15 = vpop.xlane.xlu0 %2856 }
 0x445   :  { %3845 = vrcp.f32 %v2857_v15 }
 0x44f   :  { %v3846_v5 = vpop.eup %3845 }
 0x450   :  { %v2859_v3 = vmul.f32 %v3846_v5, %v3844_v2 }
 0x452   :  { %2861 = vst.msk [vmem:[#allocation4] sm:$0x3] %vm2848_vm0, %v2859_v3 }
 0x453   :  { %3880 = shalt.err (!%p3877_p12)
}
 0x454   :  { %s3881_s5 = scalar_lea.hbm %s5147_s6, 32 }
 0x455   :  { %p3882_p13 = scmp.ne.s32.totalorder %s5147_s6, %s3881_s5  ;;  %p3885_p0 = scmp.lt.u32.totalorder %s3881_s5, %s5147_s6 }
 0x457   :  { %p3887_p1 = pnand %p3885_p0, %p3882_p13 }
 0x459   :  { %3890 = shalt.err (!%p3887_p1)
}
 0x45a   :  { %2887 = dma.vmem_to_hbm [thread:$0]  %s2885_s20, 32, %s5147_s6, [#allocation5]  }
 0x45b   :  { %3891 = dma.done.wait [#allocation3], 32  }
 0x45c   :  { %3892 = vsyncadd [#allocation3], 4294967264 }
 0x45d   :  { %3893 = dma.done.wait [#allocation5], 32  }
 0x45e   :  { %3894 = vsyncadd [#allocation5], 4294967264 }
 0x45f   :  { %2898 = vsyncpa [#allocation3], 1 }
 0x460   :  { %2899 = vsyncpa [#allocation5], 1 }

// kernel: a3c_cnn_policy_forward.2
= control target key start
LH: loop header
LB: loop body
LE: loop exit
PB: predicated region body
PF: predicated region fallthrough
CT: control target
= control target key end

     0   :  { %s11550_s18 = smov 0   ;;  %s14523_s0 = inlined_call_operand.vmem [shape: f32[2,21,21,64], index: 0, kind: input, shape index: {}]   ;;  %s14524_s1 = inlined_call_operand.vmem [shape: bf16[256,16], index: 1, kind: input, shape index: {}]   ;;  %s14525_s2 = inlined_call_operand.vmem [shape: f32[1,16], index: 2, kind: input, shape index: {}]   ;;  %s14526_s3 = inlined_call_operand.vmem [shape: bf16[256,32], index: 3, kind: input, shape index: {}]   ;;  %s14527_s4 = inlined_call_operand.vmem [shape: f32[1,32], index: 4, kind: input, shape index: {}]   ;;  %s14528_s5 = inlined_call_operand.vmem [shape: bf16[2,84,32], index: 5, kind: output, shape index: {}]  }
   0x1 LB: > { %s8561_s19 = sadd.s32 4294967295, %s11511_s18   ;;  %p8565_p0 = scmp.ge.s32.totalorder %s11511_s18, 1  ;;  %s11511_s18 = sphi %s11550_s18, %s15_s18  }
   0x2   : > { %p187_p1 = scmp.lt.s32.totalorder %s11511_s18, 3 }
   0x4   : > { %p188_p2 = pnand %p8565_p0, %p187_p1 }
   0x5   : > { %p215_p3 = scmp.lt.s32.totalorder (!%p188_p2), %s8561_s19, 1  ;;  %v11038_v0 = vld [vmem:[%s14524_s1 + $0x40] sm:$0xff] (!%p188_p2)   ;;  %v11042_v4 = vld [vmem:[%s14524_s1 + $0x48] sm:$0xff] (!%p188_p2)   ;;  %s11513_s11 = smov (!%p188_p2), 64   ;;  %v11046_v28 = vld [vmem:[%s14524_s1 + $0x50] sm:$0xff] (!%p188_p2)   ;;  %vm263_vm0 = vcmask (!%p188_p2), 523264  }
   0x6   : > { %191 = sbr.rel (%p188_p2) target bundleno = 1037 (0x40d), region = 40  ;;  %v11039_v1 = vld [vmem:[%s14524_s1 + $0x40] sm:$0xff] (!%p188_p2)   ;;  %9333 = vmatprep.subr.bf16.mxu0 (!%p188_p2), %v11038_v0  ;;  %v11043_v5 = vld [vmem:[%s14524_s1 + $0x48] sm:$0xff] (!%p188_p2)   ;;  %v11047_v29 = vld [vmem:[%s14524_s1 + $0x50] sm:$0xff] (!%p188_p2)   ;;  %vm460_vm1 = vcmask (!%p188_p2), 130048   ;;  %vm463_vm2 = vcmask (!%p188_p2), 125952  }
   0x7   : > { %v11040_v2 = vld [vmem:[%s14524_s1] sm:$0xff] (!%p188_p2)   ;;  %9361 = vmatprep.subr.bf16.mxu1 (!%p188_p2), %v11039_v1  ;;  %v11044_v23 = vld [vmem:[%s14524_s1 + $0x8] sm:$0xff] (!%p188_p2)   ;;  %v11048_v32 = vld [vmem:[%s14524_s1 + $0x10] sm:$0xff] (!%p188_p2)   ;;  %s11514_s9 = smov (!%p188_p2), 32   ;;  %s11515_s13 = smov (!%p188_p2), 16   ;;  %vm5132_vm3 = vcmask (!%p188_p2), 261120  }
   0x8   : > { %v11041_v3 = vld [vmem:[%s14524_s1] sm:$0xff] (!%p188_p2)   ;;  %9334 = vmatpush3.bf16.msra.mxu0 (!%p188_p2), %v11040_v2  ;;  %v11045_v24 = vld [vmem:[%s14524_s1 + $0x8] sm:$0xff] (!%p188_p2)   ;;  %v11049_v35 = vld [vmem:[%s14524_s1 + $0x10] sm:$0xff] (!%p188_p2)   ;;  %s11516_s24 = smov (!%p188_p2), 48   ;;  %s11517_s6 = smov (!%p188_p2), 96   ;;  %vm5135_vm4 = vcmask (!%p188_p2), 392192  }
   0x9   : > { %9362 = vmatpush3.bf16.msra.mxu1 (!%p188_p2), %v11041_v3  ;;  %9335 = vmatprep.subr.bf16.mxu0 (!%p188_p2), %v11042_v4  ;;  %v11050_v37 = vld [vmem:[%s14524_s1 + $0x58] sm:$0xff] (!%p188_p2)   ;;  %v11054_v45 = vld [vmem:[%s14524_s1 + $0x60] sm:$0xff] (!%p188_p2)   ;;  %v11058_v52 = vld [vmem:[%s14524_s1 + $0x68] sm:$0xff] (!%p188_p2)   ;;  %s11518_s7 = smov (!%p188_p2), 80   ;;  %s11519_s25 = smov (!%p188_p2), 112   ;;  %vm5140_vm5 = vcmask (!%p188_p2), 654336  }
   0xa   : > { %9363 = vmatprep.subr.bf16.mxu1 (!%p188_p2), %v11043_v5  ;;  %v11051_v38 = vld [vmem:[%s14524_s1 + $0x58] sm:$0xff] (!%p188_p2)   ;;  %v11055_v46 = vld [vmem:[%s14524_s1 + $0x60] sm:$0xff] (!%p188_p2)   ;;  %v11059_v55 = vld [vmem:[%s14524_s1 + $0x68] sm:$0xff] (!%p188_p2)   ;;  %vm5143_vm6 = vcmask (!%p188_p2), 785408   ;;  %vm5146_vm7 = vcmask (!%p188_p2), 916480   ;;  %vm4949_vm9 = vcmask (!%p188_p2), 254976  }
   0xb   : > { %v11052_v39 = vld [vmem:[%s14524_s1 + $0x18] sm:$0xff] (!%p188_p2)   ;;  %v11056_v49 = vld [vmem:[%s14524_s1 + $0x20] sm:$0xff] (!%p188_p2)   ;;  %v11060_v58 = vld [vmem:[%s14524_s1 + $0x28] sm:$0xff] (!%p188_p2)   ;;  %vm4950_vm8 = vsmask.f32 (!%p188_p2), 7938  ;;  %vm5351_vm11 = vcmask (!%p188_p2), 257024  }
   0xc   : > { %9336 = vmatpush3.bf16.msra.mxu0 (!%p188_p2), %v11044_v23  ;;  %v11053_v41 = vld [vmem:[%s14524_s1 + $0x18] sm:$0xff] (!%p188_p2)   ;;  %v11057_v51 = vld [vmem:[%s14524_s1 + $0x20] sm:$0xff] (!%p188_p2)   ;;  %v11061_v60 = vld [vmem:[%s14524_s1 + $0x28] sm:$0xff] (!%p188_p2)   ;;  %vm5353_vm12 = vcmask (!%p188_p2), 253952   ;;  %vm5354_vm13 = vsmask.f32 (!%p188_p2), 256 }
   0xd   : > { %s14534_s19 = smov (!%p215_p3, %s8561_s19), 1  ;;  %9364 = vmatpush3.bf16.msra.mxu1 %v11045_v24  ;;  %9337 = vmatprep.subr.bf16.mxu0 %v11046_v28  ;;  %v11062_v61 = vld [vmem:[%s14524_s1 + $0x70] sm:$0xff]   ;;  %v11066_v5 = vld [vmem:[%s14524_s1 + $0x78] sm:$0xff]   ;;  %vm4951_vm10 = vmand %vm4949_vm9, %vm4950_vm8  ;;  %vm5733_vm15 = vsmask.f32 4368 }
   0xe   : > { %s10091_s26 = smul.u32 504, %s14534_s19  ;;  %9365 = vmatprep.subr.bf16.mxu1 %v11047_v29  ;;  %v11063_v62 = vld [vmem:[%s14524_s1 + $0x70] sm:$0xff]   ;;  %vm14361_vm14 = vmand %vm5353_vm12, %vm5354_vm13 }
   0xf   : > { %v11064_v2 = vld [vmem:[%s14524_s1 + $0x30] sm:$0xff]  }
  0x10   : > { %s11579_s8 = scalar_lea.vmem %s14523_s0, %s10091_s26  ;;  %9338 = vmatpush3.bf16.msra.mxu0 %v11048_v32  ;;  %v11065_v4 = vld [vmem:[%s14524_s1 + $0x30] sm:$0xff]  }
  0x11   : > { %v8600_v6 = vld [vmem:[%s11579_s8 + $0x31] sm:$0xff]  ;;  %v8601_v7 = vld [vmem:[%s11579_s8 + $0x39] sm:$0xff]  ;;  %v8572_v10 = vld [vmem:[%s11579_s8 + $0x21] sm:$0xff]  ;;  %9366 = vmatpush3.bf16.msra.mxu1 %v11049_v35  ;;  %9339 = vmatprep.subr.bf16.mxu0 %v11050_v37 }
  0x12   : > { %v8571_v8 = vld [vmem:[%s11579_s8 + $0x19] sm:$0xff]  ;;  %v10118_v9 = vpack.i.bf16 %v8601_v7, %v8600_v6  ;;  %v229_v11 = vld [vmem:[%s11579_s8 + $0x1] sm:$0xff]  ;;  %v230_v12 = vld [vmem:[%s11579_s8 + $0x9] sm:$0xff]  ;;  %9367 = vmatprep.subr.bf16.mxu1 %v11051_v38 }
  0x13   : > { %v10108_v13 = vpack.i.bf16 %v8572_v10, %v8571_v8  ;;  %v10113_v14 = vpack.i.bf16 %v230_v12, %v229_v11  ;;  %v8596_v15 = vld [vmem:[%s11579_s8 + $0x29] sm:$0xf]  ;;  %v8602_v16 = vld [vmem:[%s11579_s8 + $0x41] sm:$0xf]  ;;  %v231_v17 = vld [vmem:[%s11579_s8 + $0x11] sm:$0xf] }
  0x14   : > { %10119 = vrot.lane.b32.xlu1 %v10118_v9, %s11513_s11  ;;  %v8573_v18 = vld [vmem:[%s11579_s8 + $0x29] sm:$0xf]  ;;  %v10133_v19 = vpack.i.bf16 %v8596_v15, %v8602_v16  ;;  %v8630_v22 = vld [vmem:[%s11579_s8 + $0x51] sm:$0xff]  ;;  %v8658_v25 = vld [vmem:[%s11579_s8 + $0x61] sm:$0xff]  ;;  %9340 = vmatpush3.bf16.msra.mxu0 %v11052_v39 }
  0x15   : > { %10109 = vrot.lane.b32.xlu0 %v10108_v13, %s11513_s11  ;;  %v10128_v20 = vpack.i.bf16 %v231_v17, %v8573_v18  ;;  %v8629_v21 = vld [vmem:[%s11579_s8 + $0x49] sm:$0xff]  ;;  %v8654_v30 = vld [vmem:[%s11579_s8 + $0x59] sm:$0xf]  ;;  %v8660_v31 = vld [vmem:[%s11579_s8 + $0x71] sm:$0xf]  ;;  %9368 = vmatpush3.bf16.msra.mxu1 %v11053_v41 }
  0x16   : > { %v8659_v26 = vld [vmem:[%s11579_s8 + $0x69] sm:$0xff]  ;;  %v10138_v27 = vpack.i.bf16 %v8630_v22, %v8629_v21  ;;  %v8625_v33 = vld [vmem:[%s11579_s8 + $0x41] sm:$0xf]  ;;  %v8631_v34 = vld [vmem:[%s11579_s8 + $0x59] sm:$0xf]  ;;  %v10163_v40 = vpack.i.bf16 %v8654_v30, %v8660_v31  ;;  %9341 = vmatprep.subr.bf16.mxu0 %v11054_v45  ;;  %9369 = vmatprep.subr.bf16.mxu1 %v11055_v46 }
  0x17   : > { %v10148_v36 = vpack.i.bf16 %v8659_v26, %v8658_v25  ;;  %v10158_v42 = vpack.i.bf16 %v8625_v33, %v8631_v34  ;;  %v8687_v43 = vld [vmem:[%s11579_s8 + $0x79] sm:$0xff]  ;;  %v8688_v44 = vld [vmem:[%s11579_s8 + $0x81] sm:$0xff]  ;;  %v8716_v47 = vld [vmem:[%s11579_s8 + $0x91] sm:$0xff] }
  0x18   : > { %10124 = vrot.lane.b32.xlu1 %v10108_v13, %s11513_s11  ;;  %v8717_v48 = vld [vmem:[%s11579_s8 + $0x99] sm:$0xff]  ;;  %v10168_v50 = vpack.i.bf16 %v8688_v44, %v8687_v43  ;;  %9342 = vmatpush3.bf16.msra.mxu0 %v11056_v49  ;;  %v8712_v53 = vld [vmem:[%s11579_s8 + $0x89] sm:$0xf]  ;;  %v8718_v54 = vld [vmem:[%s11579_s8 + $0xa1] sm:$0xf] }
  0x19   : > { %10114 = vrot.lane.b32.xlu0 %v10113_v14, %s11513_s11  ;;  %9370 = vmatpush3.bf16.msra.mxu1 %v11057_v51  ;;  %v8683_v56 = vld [vmem:[%s11579_s8 + $0x71] sm:$0xf]  ;;  %v8689_v57 = vld [vmem:[%s11579_s8 + $0x89] sm:$0xf]  ;;  %v10178_v59 = vpack.i.bf16 %v8717_v48, %v8716_v47  ;;  %v10193_v63 = vpack.i.bf16 %v8712_v53, %v8718_v54  ;;  %v11067_v6 = vld [vmem:[%s14524_s1 + $0x78] sm:$0xff]  }
  0x1a   : > { %9343 = vmatprep.subr.bf16.mxu0 %v11058_v52  ;;  %9371 = vmatprep.subr.bf16.mxu1 %v11059_v55  ;;  %v8745_v0 = vld [vmem:[%s11579_s8 + $0xa9] sm:$0xff]  ;;  %v8746_v1 = vld [vmem:[%s11579_s8 + $0xb1] sm:$0xff]  ;;  %v10188_v3 = vpack.i.bf16 %v8683_v56, %v8689_v57  ;;  %v8770_v12 = vld [vmem:[%s11579_s8 + $0xb9] sm:$0xf] }
  0x1b   : > { %v11068_v7 = vld [vmem:[%s14524_s1 + $0x38] sm:$0xff]   ;;  %v10198_v8 = vpack.i.bf16 %v8746_v1, %v8745_v0  ;;  %v8775_v10 = vld [vmem:[%s11579_s8 + $0xc9] sm:$0xff]  ;;  %v11070_v13 = vld [vmem:[%s14524_s1 + $0x40] sm:$0xff]  }
  0x1c   : > { %10134 = vrot.lane.b32.xlu1 %v10133_v19, %s11513_s11  ;;  %9344 = vmatpush3.bf16.msra.mxu0 %v11060_v58  ;;  %v11069_v11 = vld [vmem:[%s14524_s1 + $0x38] sm:$0xff]   ;;  %v11071_v14 = vld [vmem:[%s14524_s1 + $0x40] sm:$0xff]   ;;  %v8776_v16 = vld [vmem:[%s11579_s8 + $0xd1] sm:$0xf] }
  0x1d   : > { %10129 = vrot.lane.b32.xlu0 %v10128_v20, %s11513_s11  ;;  %9372 = vmatpush3.bf16.msra.mxu1 %v11061_v60  ;;  %v8741_v17 = vld [vmem:[%s11579_s8 + $0xa1] sm:$0xf]  ;;  %v8747_v18 = vld [vmem:[%s11579_s8 + $0xb9] sm:$0xf]  ;;  %v10223_v19 = vpack.i.bf16 %v8770_v12, %v8776_v16  ;;  %v8832_v24 = vld [vmem:[%s11579_s8 + $0xf1] sm:$0xff] }
  0x1e   : > { %9345 = vmatprep.subr.bf16.mxu0 %v11062_v61  ;;  %9373 = vmatprep.subr.bf16.mxu1 %v11063_v62  ;;  %v10218_v20 = vpack.i.bf16 %v8741_v17, %v8747_v18  ;;  %v8803_v21 = vld [vmem:[%s11579_s8 + $0xd9] sm:$0xff]  ;;  %v8804_v22 = vld [vmem:[%s11579_s8 + $0xe1] sm:$0xff]  ;;  %v8799_v30 = vld [vmem:[%s11579_s8 + $0xd1] sm:$0xf] }
  0x1f   : > { %v10228_v23 = vpack.i.bf16 %v8804_v22, %v8803_v21  ;;  %v8833_v25 = vld [vmem:[%s11579_s8 + $0xf9] sm:$0xff]  ;;  %v8834_v28 = vld [vmem:[%s11579_s8 + $0x101] sm:$0xf]  ;;  %v8805_v31 = vld [vmem:[%s11579_s8 + $0xe9] sm:$0xf] }
  0x20   : > { %10144 = vrot.lane.b32.xlu1 %v10118_v9, %s11513_s11  ;;  %9346 = vmatpush3.bf16.msra.mxu0 %v11064_v2  ;;  %v8774_v9 = vld [vmem:[%s11579_s8 + $0xc1] sm:$0xff]  ;;  %v10238_v26 = vpack.i.bf16 %v8833_v25, %v8832_v24  ;;  %v10248_v32 = vpack.i.bf16 %v8799_v30, %v8805_v31  ;;  %v8861_v33 = vld [vmem:[%s11579_s8 + $0x109] sm:$0xff]  ;;  %v8862_v34 = vld [vmem:[%s11579_s8 + $0x111] sm:$0xff] }
  0x21   : > { %10139 = vrot.lane.b32.xlu0 %v10138_v27, %s11513_s11  ;;  %9374 = vmatpush3.bf16.msra.mxu1 %v11065_v4  ;;  %v10208_v15 = vpack.i.bf16 %v8775_v10, %v8774_v9  ;;  %v10258_v35 = vpack.i.bf16 %v8862_v34, %v8861_v33  ;;  %v8891_v37 = vld [vmem:[%s11579_s8 + $0x129] sm:$0xff]  ;;  %v8886_v39 = vld [vmem:[%s11579_s8 + $0x119] sm:$0xf]  ;;  %v8857_v41 = vld [vmem:[%s11579_s8 + $0x101] sm:$0xf] }
  0x22   : > { %9347 = vmatprep.subr.bf16.mxu0 %v11066_v5  ;;  %9375 = vmatprep.subr.bf16.mxu1 %v11067_v6  ;;  %v8568_v45 = vld [vmem:[%s11579_s8 + $0x18] sm:$0xff]  ;;  %v8569_v46 = vld [vmem:[%s11579_s8 + $0x20] sm:$0xff]  ;;  %v11758_v47 = vld [vmem:[%s11579_s8 + $0x30] sm:$0xff] }
  0x23   : > { %v11761_v49 = vld [vmem:[%s11579_s8 + $0x38] sm:$0xff]  ;;  %v8920_v54 = vld [vmem:[%s11579_s8 + $0x141] sm:$0xff]  ;;  %v11078_v34 = vld [vmem:[%s14524_s1 + $0x50] sm:$0xff]  }
  0x24   : > { %10154 = vrot.lane.b32.xlu1 %v10138_v27, %s11513_s11  ;;  %9348 = vmatpush3.bf16.msra.mxu0 %v11068_v7  ;;  %v8828_v27 = vld [vmem:[%s11579_s8 + $0xe9] sm:$0xf]  ;;  %v226_v0 = vld [vmem:[%s11579_s8] sm:$0xff]  ;;  %v8948_v6 = vld [vmem:[%s11579_s8 + $0x151] sm:$0xff] }
  0x25   : > { %10149 = vrot.lane.b32.xlu0 %v10148_v36, %s11513_s11  ;;  %9376 = vmatpush3.bf16.msra.mxu1 %v11069_v11  ;;  %v10253_v29 = vpack.i.bf16 %v8828_v27, %v8834_v28  ;;  %v227_v5 = vld [vmem:[%s11579_s8 + $0x8] sm:$0xff]  ;;  %v8949_v7 = vld [vmem:[%s11579_s8 + $0x159] sm:$0xff]  ;;  %v228_v28 = vld [vmem:[%s11579_s8 + $0x10] sm:$0xf] }
  0x26   : > { %9389 = vmatprep.subr.bf16.mxu0 %v11070_v13  ;;  %9417 = vmatprep.subr.bf16.mxu1 %v11071_v14  ;;  %v11072_v10 = vld [vmem:[%s14524_s1] sm:$0xff]   ;;  %v11075_v12 = vld [vmem:[%s14524_s1 + $0x48] sm:$0xff]   ;;  %v11786_v13 = vpack.i.bf16 %v8949_v7, %v8948_v6 }
  0x27   : > { %v11073_v11 = vld [vmem:[%s14524_s1] sm:$0xff]   ;;  %v11074_v16 = vld [vmem:[%s14524_s1 + $0x48] sm:$0xff]  }
  0x28   : > { %10164 = vrot.lane.b32.xlu1 %v10163_v40, %s11513_s11  ;;  %v8892_v40 = vld [vmem:[%s11579_s8 + $0x131] sm:$0xf]  ;;  %v8570_v17 = vld [vmem:[%s11579_s8 + $0x28] sm:$0xf]  ;;  %v8599_v18 = vld [vmem:[%s11579_s8 + $0x40] sm:$0xf] }
  0x29   : > { %10159 = vrot.lane.b32.xlu0 %v10158_v42, %s11513_s11  ;;  %v8863_v42 = vld [vmem:[%s11579_s8 + $0x119] sm:$0xf]  ;;  %v10283_v43 = vpack.i.bf16 %v8886_v39, %v8892_v40  ;;  %v11076_v31 = vld [vmem:[%s14524_s1 + $0x8] sm:$0xff]   ;;  %v11087_v6 = vld [vmem:[%s14524_s1 + $0x60] sm:$0xff]  }
  0x2a   : > { %v10278_v44 = vpack.i.bf16 %v8857_v41, %v8863_v42  ;;  %v11818_v40 = vld [vmem:[%s11579_s8 + $0x48] sm:$0xff]  ;;  %v11081_v42 = vld [vmem:[%s14524_s1 + $0x10] sm:$0xff]  }
  0x2c   : > { %10174 = vrot.lane.b32.xlu1 %v10148_v36, %s11513_s11  ;;  %v8890_v36 = vld [vmem:[%s11579_s8 + $0x121] sm:$0xff] }
  0x2d   : > { %10169 = vrot.lane.b32.xlu0 %v10168_v50, %s11513_s11  ;;  %v10268_v38 = vpack.i.bf16 %v8891_v37, %v8890_v36 }
  0x30   : > { %10184 = vrot.lane.b32.xlu1 %v10168_v50, %s11513_s11  ;;  %v8919_v50 = vld [vmem:[%s11579_s8 + $0x139] sm:$0xff] }
  0x31   : > { %10179 = vrot.lane.b32.xlu0 %v10178_v59, %s11513_s11  ;;  %v10288_v57 = vpack.i.bf16 %v8920_v54, %v8919_v50  ;;  %v11836_v54 = vld [vmem:[%s11579_s8 + $0x60] sm:$0xff] }
  0x34   : > { %10194 = vrot.lane.b32.xlu1 %v10193_v63, %s11513_s11 }
  0x35   : > { %10189 = vrot.lane.b32.xlu0 %v10188_v3, %s11513_s11 }
  0x38   : > { %10204 = vrot.lane.b32.xlu1 %v10178_v59, %s11513_s11 }
  0x39   : > { %10199 = vrot.lane.b32.xlu0 %v10198_v8, %s11513_s11 }
  0x3c   : > { %10214 = vrot.lane.b32.xlu1 %v10198_v8, %s11513_s11 }
  0x3d   : > { %10209 = vrot.lane.b32.xlu0 %v10208_v15, %s11513_s11 }
  0x40   : > { %10224 = vrot.lane.b32.xlu1 %v10223_v19, %s11513_s11 }
  0x41   : > { %10219 = vrot.lane.b32.xlu0 %v10218_v20, %s11513_s11 }
  0x44   : > { %10234 = vrot.lane.b32.xlu1 %v10208_v15, %s11513_s11 }
  0x45   : > { %10229 = vrot.lane.b32.xlu0 %v10228_v23, %s11513_s11 }
  0x48   : > { %10244 = vrot.lane.b32.xlu1 %v10228_v23, %s11513_s11  ;;  %v8593_v23 = vld [vmem:[%s11579_s8 + $0x28] sm:$0xf] }
  0x49   : > { %10239 = vrot.lane.b32.xlu0 %v10238_v26, %s11513_s11 }
  0x4c   : > { %10254 = vrot.lane.b32.xlu1 %v10253_v29, %s11513_s11 }
  0x4d   : > { %10249 = vrot.lane.b32.xlu0 %v10248_v32, %s11513_s11  ;;  %v11077_v32 = vld [vmem:[%s14524_s1 + $0x8] sm:$0xff]  }
  0x50   : > { %10264 = vrot.lane.b32.xlu1 %v10238_v26, %s11513_s11 }
  0x51   : > { %10259 = vrot.lane.b32.xlu0 %v10258_v35, %s11513_s11 }
  0x54   : > { %10274 = vrot.lane.b32.xlu1 %v10258_v35, %s11513_s11  ;;  %v11079_v35 = vld [vmem:[%s14524_s1 + $0x50] sm:$0xff]  }
  0x55   : > { %10269 = vrot.lane.b32.xlu0 %v10268_v38, %s11513_s11 }
  0x58   : > { %10284 = vrot.lane.b32.xlu1 %v10283_v43, %s11513_s11 }
  0x59   : > { %10279 = vrot.lane.b32.xlu0 %v10278_v44, %s11513_s11  ;;  %v11824_v44 = vld [vmem:[%s11579_s8 + $0x50] sm:$0xff] }
  0x5c   : > { %10294 = vrot.lane.b32.xlu1 %v10268_v38, %s11513_s11 }
  0x5d   : > { %10289 = vrot.lane.b32.xlu0 %v10288_v57, %s11513_s11 }
  0x60   : > { %10304 = vrot.lane.b32.xlu1 %v10288_v57, %s11513_s11 }
  0x61   : > { %10299 = vrot.lane.b32.xlu0 %v11786_v13, %s11513_s11 }
  0x86   : > { %v10120_v48 = vpop.permute.xlu1 %10119 }
  0x87   : > { %v10122_v51 = vunpack.i.h.bf16 %v10120_v48  ;;  %v10121_v52 = vunpack.i.l.bf16 %v10120_v48  ;;  %v10110_v53 = vpop.permute.xlu0 %10109  ;;  %v11083_v48 = vld [vmem:[%s14524_s1 + $0x58] sm:$0xff]  }
  0x88   : > { %v10112_v55 = vunpack.i.h.bf16 %v10110_v53  ;;  %v10111_v56 = vunpack.i.l.bf16 %v10110_v53  ;;  %v11082_v53 = vld [vmem:[%s14524_s1 + $0x58] sm:$0xff]  }
  0x89   : > { %v505_v58 = vsel %vm263_vm0, %v11758_v47, %v10121_v52  ;;  %v506_v59 = vsel %vm263_vm0, %v11761_v49, %v10122_v51 }
  0x8a   : > { %v10125_v60 = vpop.permute.xlu1 %10124  ;;  %v267_v61 = vsel %vm263_vm0, %v8568_v45, %v10111_v56  ;;  %v268_v62 = vsel %vm263_vm0, %v8569_v46, %v10112_v55  ;;  %v509_v63 = vpack.c.bf16 %v506_v59, %v505_v58  ;;  %v8944_v55 = vld [vmem:[%s11579_s8 + $0x149] sm:$0xf]  ;;  %v8950_v56 = vld [vmem:[%s11579_s8 + $0x161] sm:$0xf]  ;;  %v8915_v59 = vld [vmem:[%s11579_s8 + $0x131] sm:$0xf] }
  0x8b   : > { %v10127_v1 = vunpack.i.h.bf16 %v10125_v60  ;;  %v10126_v2 = vunpack.i.l.bf16 %v10125_v60  ;;  %v10115_v3 = vpop.permute.xlu0 %10114  ;;  %v271_v4 = vpack.c.bf16 %v268_v62, %v267_v61  ;;  %v8921_v60 = vld [vmem:[%s11579_s8 + $0x149] sm:$0xf] }
  0x8c   : > { %v10117_v8 = vunpack.i.h.bf16 %v10115_v3  ;;  %v10116_v9 = vunpack.i.l.bf16 %v10115_v3  ;;  %679 = vmatprep.mubr.bf16.mxu1 %v509_v63  ;;  %v11847_v63 = vld [vmem:[%s11579_s8 + $0x68] sm:$0xff]  ;;  %v10313_v3 = vpack.i.bf16 %v8944_v55, %v8950_v56 }
  0x8d   : > { %441 = vmatprep.mubr.bf16.mxu0 %v271_v4  ;;  %v502_v14 = vsel %vm263_vm0, %v8568_v45, %v10126_v2  ;;  %v503_v15 = vsel %vm263_vm0, %v8569_v46, %v10127_v1  ;;  %v11080_v46 = vld [vmem:[%s14524_s1 + $0x10] sm:$0xff]   ;;  %v10308_v4 = vpack.i.bf16 %v8915_v59, %v8921_v60  ;;  %v11109_v60 = vld [vmem:[%s14524_s1 + $0x8] sm:$0xff]  }
  0x8e   : > { %v264_v19 = vsel %vm263_vm0, %v226_v0, %v10116_v9  ;;  %v265_v20 = vsel %vm263_vm0, %v227_v5, %v10117_v8  ;;  %v508_v21 = vpack.c.bf16 %v503_v15, %v502_v14  ;;  %v10135_v22 = vpop.permute.xlu1 %10134  ;;  %v11084_v0 = vld [vmem:[%s14524_s1 + $0x18] sm:$0xff]   ;;  %v11086_v9 = vld [vmem:[%s14524_s1 + $0x60] sm:$0xff]   ;;  %10314 = vrot.lane.b32.xlu1 %v10313_v3, %s11513_s11  ;;  %v11091_v15 = vld [vmem:[%s14524_s1 + $0x68] sm:$0xff]  }
  0x8f   : > { %v270_v24 = vpack.c.bf16 %v265_v20, %v264_v19  ;;  %v10137_v25 = vunpack.i.h.bf16 %v10135_v22  ;;  %v10136_v26 = vunpack.i.l.bf16 %v10135_v22  ;;  %v10130_v27 = vpop.permute.xlu0 %10129  ;;  %v11085_v5 = vld [vmem:[%s14524_s1 + $0x18] sm:$0xff]   ;;  %10309 = vrot.lane.b32.xlu0 %v10308_v4, %s11513_s11  ;;  %v11089_v14 = vld [vmem:[%s14524_s1 + $0x20] sm:$0xff]   ;;  %v11095_v19 = vld [vmem:[%s14524_s1 + $0x70] sm:$0xff]  }
  0x90   : > { %680 = vmatmul.mubr.bf16.vlgmr.msra.gmra.mrb[0].mxu1 %v508_v21  ;;  %v10132_v29 = vunpack.i.h.bf16 %v10130_v27  ;;  %v10131_v30 = vunpack.i.l.bf16 %v10130_v27  ;;  %v11094_v21 = vld [vmem:[%s14524_s1 + $0x70] sm:$0xff]   ;;  %v11961_v4 = vld [vmem:[%s11579_s8 + $0x78] sm:$0xff] }
  0x91   : > { %442 = vmatmul.mubr.bf16.vlgmr.msra.gmra.mrb[0].mxu0 %v270_v24  ;;  %9418 = vmatpush3.bf16.msra.mxu1 %v11073_v11  ;;  %v507_v33 = vsel %vm263_vm0, %v8599_v18, %v10136_v26  ;;  %v504_v36 = vsel %vm263_vm0, %v8593_v23, %v10137_v25  ;;  %v11088_v11 = vld [vmem:[%s14524_s1 + $0x20] sm:$0xff]   ;;  %v11093_v18 = vld [vmem:[%s14524_s1 + $0x28] sm:$0xff]   ;;  %v11097_v23 = vld [vmem:[%s14524_s1 + $0x30] sm:$0xff]  }
  0x92   : > { %9390 = vmatpush3.bf16.msra.mxu0 %v11072_v10  ;;  %9419 = vmatprep.subr.bf16.mxu1 %v11075_v12  ;;  %v269_v37 = vsel %vm263_vm0, %v8570_v17, %v10131_v30  ;;  %v511_v38 = vpack.c.bf16 %v507_v33, %v507_v33  ;;  %v266_v39 = vsel %vm263_vm0, %v228_v28, %v10132_v29  ;;  %v10145_v12 = vpop.permute.xlu1 %10144  ;;  %v11092_v17 = vld [vmem:[%s14524_s1 + $0x28] sm:$0xff]   ;;  %v11099_v28 = vld [vmem:[%s14524_s1 + $0x78] sm:$0xff]   ;;  %v11103_v33 = vld [vmem:[%s14524_s1 + $0x40] sm:$0xff]  }
  0x93   : > { %9391 = vmatprep.subr.bf16.mxu0 %v11074_v16  ;;  %v273_v41 = vpack.c.bf16 %v269_v37, %v269_v37  ;;  %v10140_v43 = vpop.permute.xlu0 %10139  ;;  %v510_v45 = vpack.c.bf16 %v504_v36, %v504_v36  ;;  %v272_v52 = vpack.c.bf16 %v266_v39, %v266_v39  ;;  %v11090_v16 = vld [vmem:[%s14524_s1 + $0x68] sm:$0xff]   ;;  %10324 = vrot.lane.b32.xlu1 %v11786_v13, %s11513_s11  ;;  %v11096_v13 = vld [vmem:[%s14524_s1 + $0x30] sm:$0xff]   ;;  %v10147_v26 = vunpack.i.h.bf16 %v10145_v12  ;;  %v11098_v30 = vld [vmem:[%s14524_s1 + $0x78] sm:$0xff]  }
  0x94   : > { %687 = vmatprep.mubr.bf16.mxu1 %v511_v38  ;;  %v10142_v50 = vunpack.i.h.bf16 %v10140_v43  ;;  %v10141_v51 = vunpack.i.l.bf16 %v10140_v43  ;;  %v10146_v27 = vunpack.i.l.bf16 %v10145_v12  ;;  %v8628_v39 = vld [vmem:[%s11579_s8 + $0x58] sm:$0xf]  ;;  %v8657_v43 = vld [vmem:[%s11579_s8 + $0x70] sm:$0xf] }
  0x95   : > { %9420 = vmatpush3.bf16.msra.mxu1 %v11077_v32  ;;  %449 = vmatprep.mubr.bf16.mxu0 %v273_v41  ;;  %v11100_v32 = vld [vmem:[%s14524_s1 + $0x38] sm:$0xff]   ;;  %v739_v41 = vsel %vm263_vm0, %v11761_v49, %v10147_v26  ;;  %v11105_v49 = vld [vmem:[%s14524_s1] sm:$0xff]   ;;  %v11111_v12 = vld [vmem:[%s14524_s1 + $0x50] sm:$0xff]  }
  0x96   : > { %9392 = vmatpush3.bf16.msra.mxu0 %v11076_v31  ;;  %9421 = vmatprep.subr.bf16.mxu1 %v11079_v35  ;;  %v741_v57 = vsel %vm263_vm0, %v11818_v40, %v10141_v51  ;;  %v742_v58 = vsel %vm263_vm0, %v11824_v44, %v10142_v50  ;;  %v10155_v20 = vpop.permute.xlu1 %10154  ;;  %v11101_v31 = vld [vmem:[%s14524_s1 + $0x38] sm:$0xff]  }
  0x97   : > { %9393 = vmatprep.subr.bf16.mxu0 %v11078_v34  ;;  %v10150_v61 = vpop.permute.xlu0 %10149  ;;  %v745_v62 = vpack.c.bf16 %v742_v58, %v741_v57  ;;  %v10157_v24 = vunpack.i.h.bf16 %v10155_v20  ;;  %v10156_v25 = vunpack.i.l.bf16 %v10155_v20  ;;  %v8651_v58 = vld [vmem:[%s11579_s8 + $0x58] sm:$0xf] }
  0x98   : > { %688 = vmatmul.mubr.bf16.gmra.mrb[4].mxu1 %v510_v45  ;;  %v10152_v1 = vunpack.i.h.bf16 %v10150_v61  ;;  %v10151_v2 = vunpack.i.l.bf16 %v10150_v61  ;;  %v11114_v26 = vld [vmem:[%s14524_s1 + $0x58] sm:$0xff]  }
  0x99   : > { %450 = vmatmul.mubr.bf16.gmra.mrb[4].mxu0 %v272_v52  ;;  %9422 = vmatpush3.bf16.msra.mxu1 %v11081_v42  ;;  %v975_v36 = vsel %vm263_vm0, %v11824_v44, %v10157_v24  ;;  %v974_v37 = vsel %vm263_vm0, %v11818_v40, %v10156_v25  ;;  %v738_v42 = vsel %vm263_vm0, %v11758_v47, %v10146_v27  ;;  %v11102_v44 = vld [vmem:[%s14524_s1 + $0x40] sm:$0xff]   ;;  %v11106_v52 = vld [vmem:[%s14524_s1 + $0x48] sm:$0xff]   ;;  %v11115_v25 = vld [vmem:[%s14524_s1 + $0x58] sm:$0xff]  }
  0x9a   : > { %9394 = vmatpush3.bf16.msra.mxu0 %v11080_v46  ;;  %9423 = vmatprep.subr.bf16.mxu1 %v11083_v48  ;;  %v977_v7 = vsel %vm263_vm0, %v11836_v54, %v10151_v2  ;;  %v978_v8 = vsel %vm263_vm0, %v11847_v63, %v10152_v1  ;;  %v10165_v29 = vpop.permute.xlu1 %10164  ;;  %v980_v45 = vpack.c.bf16 %v975_v36, %v974_v37  ;;  %v11104_v40 = vld [vmem:[%s14524_s1] sm:$0xff]   ;;  %v8977_v46 = vld [vmem:[%s11579_s8 + $0x169] sm:$0xff]  ;;  %v8978_v48 = vld [vmem:[%s11579_s8 + $0x171] sm:$0xff] }
  0x9b   : > { %9395 = vmatprep.subr.bf16.mxu0 %v11082_v53  ;;  %915 = vmatprep.mubr.bf16.mxu0 %v745_v62  ;;  %v981_v10 = vpack.c.bf16 %v978_v8, %v977_v7  ;;  %v11896_v22 = vpop.permute.xlu0 %10159  ;;  %v10166_v38 = vunpack.i.l.bf16 %v10165_v29  ;;  %v744_v50 = vpack.c.bf16 %v739_v41, %v738_v42  ;;  %v10167_v51 = vunpack.i.h.bf16 %v10165_v29  ;;  %v11107_v53 = vld [vmem:[%s14524_s1 + $0x48] sm:$0xff]   ;;  %v8622_v62 = vld [vmem:[%s11579_s8 + $0x40] sm:$0xf]  ;;  %v11117_v29 = vld [vmem:[%s14524_s1 + $0x18] sm:$0xff]  }
  0x9c   : > { %v10161_v34 = vunpack.i.l.bf16 %v11896_v22  ;;  %v10318_v56 = vpack.i.bf16 %v8978_v48, %v8977_v46  ;;  %v10162_v57 = vunpack.i.h.bf16 %v11896_v22  ;;  %v11966_v8 = vld [vmem:[%s11579_s8 + $0x80] sm:$0xff]  ;;  %v11113_v22 = vld [vmem:[%s14524_s1 + $0x10] sm:$0xff]  }
  0x9d   : > { %9424 = vmatpush3.bf16.msra.mxu1 %v11085_v5  ;;  %1151 = vmatprep.mubr.bf16.mxu1 %v981_v10  ;;  %v979_v55 = vsel %vm263_vm0, %v8657_v43, %v10166_v38  ;;  %v976_v5 = vsel %vm263_vm0, %v8651_v58, %v10167_v51  ;;  %v9007_v10 = vld [vmem:[%s11579_s8 + $0x189] sm:$0xff]  ;;  %v11120_v36 = vld [vmem:[%s14524_s1 + $0x20] sm:$0xff]  }
  0x9e   : > { %9396 = vmatpush3.bf16.msra.mxu0 %v11084_v0  ;;  %9425 = vmatprep.subr.bf16.mxu1 %v11087_v6  ;;  %v743_v47 = vsel %vm263_vm0, %v8628_v39, %v10161_v34  ;;  %v11108_v0 = vld [vmem:[%s14524_s1 + $0x8] sm:$0xff]   ;;  %v983_v1 = vpack.c.bf16 %v979_v55, %v979_v55  ;;  %v9008_v34 = vld [vmem:[%s11579_s8 + $0x191] sm:$0xf]  ;;  %v10175_v37 = vpop.permute.xlu1 %10174  ;;  %v8979_v39 = vld [vmem:[%s11579_s8 + $0x179] sm:$0xf] }
  0x9f   : > { %9397 = vmatprep.subr.bf16.mxu0 %v11086_v9  ;;  %v11917_v35 = vpop.permute.xlu0 %10169  ;;  %v747_v61 = vpack.c.bf16 %v743_v47, %v743_v47  ;;  %10319 = vrot.lane.b32.xlu0 %v10318_v56, %s11513_s11  ;;  %v9006_v9 = vld [vmem:[%s11579_s8 + $0x181] sm:$0xff]  ;;  %v11126_v46 = vld [vmem:[%s14524_s1 + $0x70] sm:$0xff]   ;;  %v10177_v55 = vunpack.i.h.bf16 %v10175_v37 }
  0xa0   : > { %v10172_v2 = vunpack.i.h.bf16 %v11917_v35  ;;  %v10171_v3 = vunpack.i.l.bf16 %v11917_v35  ;;  %10334 = vrot.lane.b32.xlu1 %v10318_v56, %s11513_s11  ;;  %v8973_v35 = vld [vmem:[%s11579_s8 + $0x161] sm:$0xf]  ;;  %v11123_v43 = vld [vmem:[%s14524_s1 + $0x68] sm:$0xff]   ;;  %v11128_v48 = vld [vmem:[%s14524_s1 + $0x30] sm:$0xff]   ;;  %v10176_v56 = vunpack.i.l.bf16 %v10175_v37 }
  0xa1   : > { %9426 = vmatpush3.bf16.msra.mxu1 %v11089_v14  ;;  %v11975_v14 = vld [vmem:[%s11579_s8 + $0x90] sm:$0xff]  ;;  %v11121_v41 = vld [vmem:[%s14524_s1 + $0x20] sm:$0xff]   ;;  %v10338_v42 = vpack.i.bf16 %v8973_v35, %v8979_v39 }
  0xa2   : > { %9398 = vmatpush3.bf16.msra.mxu0 %v11088_v11  ;;  %9427 = vmatprep.subr.bf16.mxu1 %v11091_v15  ;;  %v740_v11 = vsel %vm263_vm0, %v8622_v62, %v10162_v57  ;;  %v11978_v15 = vld [vmem:[%s11579_s8 + $0x98] sm:$0xff]  ;;  %v1213_v20 = vsel %vm263_vm0, %v11961_v4, %v10171_v3  ;;  %v10185_v47 = vpop.permute.xlu1 %10184  ;;  %v11129_v51 = vld [vmem:[%s14524_s1 + $0x30] sm:$0xff]   ;;  %v11135_v62 = vld [vmem:[%s14524_s1 + $0x40] sm:$0xff]  }
  0xa3   : > { %9399 = vmatprep.subr.bf16.mxu0 %v11090_v16  ;;  %v10180_v59 = vpop.permute.xlu0 %10179  ;;  %v11110_v16 = vld [vmem:[%s14524_s1 + $0x50] sm:$0xff]   ;;  %v11131_v57 = vld [vmem:[%s14524_s1 + $0x78] sm:$0xff]   ;;  %v9036_v39 = vld [vmem:[%s11579_s8 + $0x1a1] sm:$0xff] }
  0xa4   : > { %v10182_v6 = vunpack.i.h.bf16 %v10180_v59  ;;  %v10181_v7 = vunpack.i.l.bf16 %v10180_v59  ;;  %v11130_v59 = vld [vmem:[%s14524_s1 + $0x78] sm:$0xff]  }
  0xa5   : > { %9428 = vmatpush3.bf16.msra.mxu1 %v11092_v17  ;;  %v10328_v17 = vpack.i.bf16 %v9007_v10, %v9006_v9  ;;  %v1210_v9 = vsel %vm263_vm0, %v11836_v54, %v10176_v56  ;;  %v8715_v10 = vld [vmem:[%s11579_s8 + $0xa0] sm:$0xf]  ;;  %v11148_v56 = vld [vmem:[%s14524_s1 + $0x18] sm:$0xff]  }
  0xa6   : > { %9400 = vmatpush3.bf16.msra.mxu0 %v11093_v18  ;;  %9429 = vmatprep.subr.bf16.mxu1 %v11095_v19  ;;  %v982_v18 = vpack.c.bf16 %v976_v5, %v976_v5  ;;  %v11112_v19 = vld [vmem:[%s14524_s1 + $0x10] sm:$0xff]   ;;  %v1450_v24 = vsel %vm263_vm0, %v11978_v15, %v10182_v6  ;;  %v10195_v58 = vpop.permute.xlu1 %10194  ;;  %v8686_v6 = vld [vmem:[%s11579_s8 + $0x88] sm:$0xf]  ;;  %v9035_v37 = vld [vmem:[%s11579_s8 + $0x199] sm:$0xff] }
  0xa7   : > { %9401 = vmatprep.subr.bf16.mxu0 %v11094_v21  ;;  %v1214_v21 = vsel %vm263_vm0, %v11966_v8, %v10172_v2  ;;  %10329 = vrot.lane.b32.xlu0 %v10328_v17, %s11513_s11  ;;  %v10196_v5 = vunpack.i.l.bf16 %v10195_v58 }
  0xa8   : > { %v1217_v27 = vpack.c.bf16 %v1214_v21, %v1213_v20  ;;  %v8680_v20 = vld [vmem:[%s11579_s8 + $0x70] sm:$0xf] }
  0xa9   : > { %9430 = vmatpush3.bf16.msra.mxu1 %v11096_v13  ;;  %v746_v13 = vpack.c.bf16 %v740_v11, %v740_v11 }
  0xaa   : > { %9402 = vmatpush3.bf16.msra.mxu0 %v11097_v23  ;;  %9431 = vmatprep.subr.bf16.mxu1 %v11099_v28  ;;  %v1449_v23 = vsel %vm263_vm0, %v11975_v14, %v10181_v7  ;;  %v11116_v28 = vld [vmem:[%s14524_s1 + $0x18] sm:$0xff]   ;;  %v1211_v7 = vsel %vm263_vm0, %v11847_v63, %v10177_v55  ;;  %v11137_v63 = vld [vmem:[%s14524_s1] sm:$0xff]  }
  0xab   : > { %9403 = vmatprep.subr.bf16.mxu0 %v11098_v30  ;;  %v1453_v30 = vpack.c.bf16 %v1450_v24, %v1449_v23  ;;  %10339 = vrot.lane.b32.xlu0 %v10338_v42, %s11513_s11  ;;  %v11141_v23 = vld [vmem:[%s14524_s1 + $0x8] sm:$0xff]   ;;  %v10348_v42 = vpack.i.bf16 %v9036_v39, %v9035_v37  ;;  %v8744_v37 = vld [vmem:[%s11579_s8 + $0xb8] sm:$0xf] }
  0xad   : > { %9432 = vmatpush3.bf16.msra.mxu1 %v11101_v31  ;;  %v11118_v31 = vld [vmem:[%s14524_s1 + $0x60] sm:$0xff]  }
  0xae   : > { %9404 = vmatpush3.bf16.msra.mxu0 %v11100_v32  ;;  %9473 = vmatprep.subr.bf16.mxu1 %v11103_v33  ;;  %v11119_v32 = vld [vmem:[%s14524_s1 + $0x60] sm:$0xff]   ;;  %v9002_v33 = vld [vmem:[%s11579_s8 + $0x179] sm:$0xf] }
  0xaf   : > { %9445 = vmatprep.subr.bf16.mxu0 %v11102_v44  ;;  %v10343_v38 = vpack.i.bf16 %v9002_v33, %v9008_v34  ;;  %v11122_v44 = vld [vmem:[%s14524_s1 + $0x68] sm:$0xff]   ;;  %10349 = vrot.lane.b32.xlu0 %v10348_v42, %s11513_s11 }
  0xb0   : > { %1152 = vmatmul.mubr.bf16.vlgmr.msra.gmra.mrb[8].mxu1 %v980_v45  ;;  %v11124_v45 = vld [vmem:[%s14524_s1 + $0x28] sm:$0xff]  }
  0xb1   : > { %916 = vmatmul.mubr.bf16.vlgmr.msra.gmra.mrb[8].mxu0 %v744_v50  ;;  %9474 = vmatpush3.bf16.msra.mxu1 %v11105_v49  ;;  %v11127_v49 = vld [vmem:[%s14524_s1 + $0x70] sm:$0xff]   ;;  %v12050_v50 = vpop.permute.xlu0 %10189 }
  0xb2   : > { %9446 = vmatpush3.bf16.msra.mxu0 %v11104_v40  ;;  %9475 = vmatprep.subr.bf16.mxu1 %v11107_v53  ;;  %v11125_v40 = vld [vmem:[%s14524_s1 + $0x28] sm:$0xff]   ;;  %v10186_v53 = vunpack.i.l.bf16 %v10185_v47  ;;  %v10192_v21 = vunpack.i.h.bf16 %v12050_v50 }
  0xb3   : > { %9447 = vmatprep.subr.bf16.mxu0 %v11106_v52  ;;  %923 = vmatprep.mubr.bf16.mxu0 %v747_v61  ;;  %v10187_v52 = vunpack.i.h.bf16 %v10185_v47  ;;  %v11133_v61 = vld [vmem:[%s14524_s1 + $0x38] sm:$0xff]   ;;  %v11145_v47 = vld [vmem:[%s14524_s1 + $0x10] sm:$0xff]  }
  0xb4   : > { %1159 = vmatprep.mubr.bf16.mxu1 %v983_v1  ;;  %10344 = vrot.lane.b32.xlu1 %v10343_v38, %s11513_s11  ;;  %v1446_v3 = vsel %vm263_vm0, %v11961_v4, %v10186_v53  ;;  %v11136_v4 = vld [vmem:[%s14524_s1] sm:$0xff]   ;;  %v1212_v38 = vsel %vm263_vm0, %v8680_v20, %v10192_v21  ;;  %v11146_v53 = vld [vmem:[%s14524_s1 + $0x58] sm:$0xff]  }
  0xb5   : > { %9476 = vmatpush3.bf16.msra.mxu1 %v11109_v60  ;;  %v11132_v60 = vld [vmem:[%s14524_s1 + $0x38] sm:$0xff]   ;;  %v10200_v1 = vpop.permute.xlu0 %10199  ;;  %v1447_v2 = vsel %vm263_vm0, %v11966_v8, %v10187_v52  ;;  %v11134_v8 = vld [vmem:[%s14524_s1 + $0x40] sm:$0xff]  }
  0xb6   : > { %9448 = vmatpush3.bf16.msra.mxu0 %v11108_v0  ;;  %9477 = vmatprep.subr.bf16.mxu1 %v11111_v12  ;;  %v10191_v0 = vunpack.i.l.bf16 %v12050_v50  ;;  %v1452_v11 = vpack.c.bf16 %v1447_v2, %v1446_v3  ;;  %v1216_v12 = vpack.c.bf16 %v1211_v7, %v1210_v9  ;;  %v11147_v50 = vld [vmem:[%s14524_s1 + $0x58] sm:$0xff]   ;;  %v11155_v2 = vld [vmem:[%s14524_s1 + $0x68] sm:$0xff]   ;;  %v9066_v9 = vld [vmem:[%s11579_s8 + $0x1c1] sm:$0xf] }
  0xb7   : > { %9449 = vmatprep.subr.bf16.mxu0 %v11110_v16  ;;  %v10197_v16 = vunpack.i.h.bf16 %v10195_v58  ;;  %v9065_v52 = vld [vmem:[%s11579_s8 + $0x1b9] sm:$0xff]  ;;  %v11154_v3 = vld [vmem:[%s14524_s1 + $0x68] sm:$0xff]  }
  0xb8   : > { %1160 = vmatmul.mubr.bf16.gmra.mrb[12].mxu1 %v982_v18  ;;  %10354 = vrot.lane.b32.xlu1 %v10328_v17, %s11513_s11  ;;  %v1215_v54 = vsel %vm263_vm0, %v8686_v6, %v10191_v0  ;;  %v11138_v17 = vld [vmem:[%s14524_s1 + $0x48] sm:$0xff]   ;;  %v10205_v0 = vpop.permute.xlu1 %10204  ;;  %v11162_v21 = vld [vmem:[%s14524_s1 + $0x78] sm:$0xff]  }
  0xb9   : > { %924 = vmatmul.mubr.bf16.gmra.mrb[12].mxu0 %v746_v13  ;;  %9478 = vmatpush3.bf16.msra.mxu1 %v11113_v22  ;;  %v11139_v18 = vld [vmem:[%s14524_s1 + $0x48] sm:$0xff]   ;;  %v10210_v22 = vpop.permute.xlu0 %10209  ;;  %v1219_v24 = vpack.c.bf16 %v1215_v54, %v1215_v54 }
  0xba   : > { %9450 = vmatpush3.bf16.msra.mxu0 %v11112_v19  ;;  %9479 = vmatprep.subr.bf16.mxu1 %v11115_v25  ;;  %v1451_v19 = vsel %vm263_vm0, %v8715_v10, %v10196_v5  ;;  %v8709_v13 = vld [vmem:[%s11579_s8 + $0x88] sm:$0xf]  ;;  %v10212_v34 = vunpack.i.h.bf16 %v10210_v22  ;;  %v10211_v35 = vunpack.i.l.bf16 %v10210_v22  ;;  %v10206_v22 = vunpack.i.l.bf16 %v10205_v0 }
  0xbb   : > { %9451 = vmatprep.subr.bf16.mxu0 %v11114_v26  ;;  %1387 = vmatprep.mubr.bf16.mxu0 %v1217_v27  ;;  %v12105_v25 = vld [vmem:[%s11579_s8 + $0xa8] sm:$0xff]  ;;  %v12108_v26 = vld [vmem:[%s11579_s8 + $0xb0] sm:$0xff]  ;;  %v1448_v33 = vsel %vm263_vm0, %v8709_v13, %v10197_v16  ;;  %v10207_v13 = vunpack.i.h.bf16 %v10205_v0 }
  0xbc   : > { %1623 = vmatprep.mubr.bf16.mxu1 %v1453_v30  ;;  %v11140_v27 = vld [vmem:[%s14524_s1 + $0x8] sm:$0xff]   ;;  %v10202_v30 = vunpack.i.h.bf16 %v10200_v1  ;;  %10364 = vrot.lane.b32.xlu1 %v10348_v42, %s11513_s11  ;;  %v11160_v16 = vld [vmem:[%s14524_s1 + $0x30] sm:$0xff]   ;;  %v1682_v39 = vsel %vm263_vm0, %v11975_v14, %v10206_v22  ;;  %v11183_v22 = vld [vmem:[%s14524_s1 + $0x60] sm:$0xff]  }
  0xbd   : > { %9480 = vmatpush3.bf16.msra.mxu1 %v11117_v29  ;;  %v11143_v29 = vld [vmem:[%s14524_s1 + $0x50] sm:$0xff]   ;;  %v11156_v5 = vld [vmem:[%s14524_s1 + $0x28] sm:$0xff]  }
  0xbe   : > { %9452 = vmatpush3.bf16.msra.mxu0 %v11116_v28  ;;  %9481 = vmatprep.subr.bf16.mxu1 %v11119_v32  ;;  %v1455_v28 = vpack.c.bf16 %v1451_v19, %v1451_v19  ;;  %v12117_v32 = vld [vmem:[%s11579_s8 + $0xc0] sm:$0xff]  ;;  %v11157_v6 = vld [vmem:[%s14524_s1 + $0x28] sm:$0xff]  }
  0xbf   : > { %9453 = vmatprep.subr.bf16.mxu0 %v11118_v31  ;;  %v10201_v31 = vunpack.i.l.bf16 %v10200_v1  ;;  %v11153_v1 = vld [vmem:[%s14524_s1 + $0x20] sm:$0xff]   ;;  %v9060_v7 = vld [vmem:[%s11579_s8 + $0x1a9] sm:$0xf] }
  0xc0   : > { %v10373_v10 = vpack.i.bf16 %v9060_v7, %v9066_v9  ;;  %v11176_v7 = vld [vmem:[%s14524_s1 + $0x10] sm:$0xff]  }
  0xc1   : > { %9482 = vmatpush3.bf16.msra.mxu1 %v11121_v41  ;;  %v11142_v41 = vld [vmem:[%s14524_s1 + $0x50] sm:$0xff]  }
  0xc2   : > { %9454 = vmatpush3.bf16.msra.mxu0 %v11120_v36  ;;  %9483 = vmatprep.subr.bf16.mxu1 %v11123_v43  ;;  %v12121_v36 = vld [vmem:[%s11579_s8 + $0xc8] sm:$0xff]  ;;  %v1454_v43 = vpack.c.bf16 %v1448_v33, %v1448_v33  ;;  %v11177_v9 = vld [vmem:[%s14524_s1 + $0x10] sm:$0xff]  }
  0xc3   : > { %9455 = vmatprep.subr.bf16.mxu0 %v11122_v44  ;;  %v11144_v44 = vld [vmem:[%s14524_s1 + $0x10] sm:$0xff]   ;;  %10374 = vrot.lane.b32.xlu1 %v10373_v10, %s11513_s11 }
  0xc5   : > { %9484 = vmatpush3.bf16.msra.mxu1 %v11125_v40  ;;  %v1686_v40 = vsel %vm263_vm0, %v12108_v26, %v10202_v30 }
  0xc6   : > { %9456 = vmatpush3.bf16.msra.mxu0 %v11124_v45  ;;  %9485 = vmatprep.subr.bf16.mxu1 %v11127_v49  ;;  %v1685_v45 = vsel %vm263_vm0, %v12105_v25, %v10201_v31  ;;  %v1218_v49 = vpack.c.bf16 %v1212_v38, %v1212_v38  ;;  %v1683_v38 = vsel %vm263_vm0, %v11978_v15, %v10207_v13  ;;  %v11169_v15 = vld [vmem:[%s14524_s1] sm:$0xff]   ;;  %v11181_v13 = vld [vmem:[%s14524_s1 + $0x18] sm:$0xff]  }
  0xc7   : > { %9457 = vmatprep.subr.bf16.mxu0 %v11126_v46  ;;  %v1921_v46 = vsel %vm263_vm0, %v12117_v32, %v10211_v35  ;;  %v1689_v55 = vpack.c.bf16 %v1686_v40, %v1685_v45  ;;  %v11170_v45 = vld [vmem:[%s14524_s1 + $0x48] sm:$0xff]  }
  0xc8   : > { %v11171_v40 = vld [vmem:[%s14524_s1 + $0x48] sm:$0xff]  }
  0xc9   : > { %9486 = vmatpush3.bf16.msra.mxu1 %v11129_v51  ;;  %v9064_v51 = vld [vmem:[%s11579_s8 + $0x1b1] sm:$0xff] }
  0xca   : > { %9458 = vmatpush3.bf16.msra.mxu0 %v11128_v48  ;;  %9487 = vmatprep.subr.bf16.mxu1 %v11131_v57  ;;  %v1922_v48 = vsel %vm263_vm0, %v12121_v36, %v10212_v34  ;;  %v10358_v58 = vpack.i.bf16 %v9065_v52, %v9064_v51  ;;  %v8738_v52 = vld [vmem:[%s11579_s8 + $0xa0] sm:$0xf] }
  0xcb   : > { %9459 = vmatprep.subr.bf16.mxu0 %v11130_v59  ;;  %v1925_v57 = vpack.c.bf16 %v1922_v48, %v1921_v46  ;;  %v11149_v59 = vld [vmem:[%s14524_s1 + $0x18] sm:$0xff]  }
  0xcc   : > { %10359 = vrot.lane.b32.xlu0 %v10358_v58, %s11513_s11  ;;  %10384 = vrot.lane.b32.xlu1 %v10358_v58, %s11513_s11  ;;  %v8767_v46 = vld [vmem:[%s11579_s8 + $0xb8] sm:$0xf] }
  0xcd   : > { %9488 = vmatpush3.bf16.msra.mxu1 %v11133_v61  ;;  %v11150_v61 = vld [vmem:[%s14524_s1 + $0x60] sm:$0xff]   ;;  %v12258_v58 = vld [vmem:[%s11579_s8 + $0xd8] sm:$0xff] }
  0xce   : > { %9460 = vmatpush3.bf16.msra.mxu0 %v11132_v60  ;;  %9529 = vmatprep.subr.bf16.mxu1 %v11135_v62  ;;  %v11151_v60 = vld [vmem:[%s14524_s1 + $0x60] sm:$0xff]  }
  0xcf   : > { %9501 = vmatprep.subr.bf16.mxu0 %v11134_v8  ;;  %v11152_v62 = vld [vmem:[%s14524_s1 + $0x20] sm:$0xff]   ;;  %v9031_v8 = vld [vmem:[%s11579_s8 + $0x191] sm:$0xf] }
  0xd0   : > { %1624 = vmatmul.mubr.bf16.vlgmr.msra.gmra.mrb[16].mxu1 %v1452_v11  ;;  %v9037_v11 = vld [vmem:[%s11579_s8 + $0x1a9] sm:$0xf] }
  0xd1   : > { %1388 = vmatmul.mubr.bf16.vlgmr.msra.gmra.mrb[16].mxu0 %v1216_v12  ;;  %9530 = vmatpush3.bf16.msra.mxu1 %v11137_v63  ;;  %v10215_v63 = vpop.permute.xlu1 %10214  ;;  %v10368_v54 = vpack.i.bf16 %v9031_v8, %v9037_v11  ;;  %v11158_v12 = vld [vmem:[%s14524_s1 + $0x70] sm:$0xff]  }
  0xd2   : > { %9502 = vmatpush3.bf16.msra.mxu0 %v11136_v4  ;;  %9531 = vmatprep.subr.bf16.mxu1 %v11139_v18  ;;  %v11159_v4 = vld [vmem:[%s14524_s1 + $0x70] sm:$0xff]   ;;  %v12201_v18 = vpop.permute.xlu0 %10219  ;;  %v10217_v19 = vunpack.i.h.bf16 %v10215_v63  ;;  %v10216_v20 = vunpack.i.l.bf16 %v10215_v63 }
  0xd3   : > { %9503 = vmatprep.subr.bf16.mxu0 %v11138_v17  ;;  %1395 = vmatprep.mubr.bf16.mxu0 %v1219_v24  ;;  %v11161_v17 = vld [vmem:[%s14524_s1 + $0x30] sm:$0xff]   ;;  %v10221_v30 = vunpack.i.l.bf16 %v12201_v18 }
  0xd4   : > { %1631 = vmatprep.mubr.bf16.mxu1 %v1455_v28  ;;  %10369 = vrot.lane.b32.xlu0 %v10368_v54, %s11513_s11  ;;  %v11164_v28 = vld [vmem:[%s14524_s1 + $0x38] sm:$0xff]   ;;  %v1919_v33 = vsel %vm263_vm0, %v12108_v26, %v10217_v19  ;;  %v1918_v34 = vsel %vm263_vm0, %v12105_v25, %v10216_v20  ;;  %v11166_v26 = vld [vmem:[%s14524_s1 + $0x40] sm:$0xff]  }
  0xd5   : > { %9532 = vmatpush3.bf16.msra.mxu1 %v11141_v23  ;;  %v11163_v23 = vld [vmem:[%s14524_s1 + $0x78] sm:$0xff]   ;;  %v10225_v24 = vpop.permute.xlu1 %10224  ;;  %v1924_v42 = vpack.c.bf16 %v1919_v33, %v1918_v34  ;;  %v11168_v25 = vld [vmem:[%s14524_s1] sm:$0xff]   ;;  %v1687_v14 = vsel %vm263_vm0, %v8744_v37, %v10221_v30  ;;  %v11187_v33 = vld [vmem:[%s14524_s1 + $0x68] sm:$0xff]  }
  0xd6   : > { %9504 = vmatpush3.bf16.msra.mxu0 %v11140_v27  ;;  %9533 = vmatprep.subr.bf16.mxu1 %v11143_v29  ;;  %v11165_v27 = vld [vmem:[%s14524_s1 + $0x38] sm:$0xff]   ;;  %v11167_v29 = vld [vmem:[%s14524_s1 + $0x40] sm:$0xff]   ;;  %v10230_v31 = vpop.permute.xlu0 %10229  ;;  %v10226_v35 = vunpack.i.l.bf16 %v10225_v24  ;;  %v1691_v51 = vpack.c.bf16 %v1687_v14, %v1687_v14  ;;  %v11186_v34 = vld [vmem:[%s14524_s1 + $0x68] sm:$0xff]  }
  0xd7   : > { %9505 = vmatprep.subr.bf16.mxu0 %v11142_v41  ;;  %v8773_v41 = vld [vmem:[%s11579_s8 + $0xd0] sm:$0xf]  ;;  %v11180_v19 = vld [vmem:[%s14524_s1 + $0x18] sm:$0xff]   ;;  %v11185_v30 = vld [vmem:[%s14524_s1 + $0x20] sm:$0xff]  }
  0xd8   : > { %1632 = vmatmul.mubr.bf16.gmra.mrb[20].mxu1 %v1454_v43  ;;  %v1688_v43 = vpack.c.bf16 %v1683_v38, %v1682_v39  ;;  %v11189_v37 = vld [vmem:[%s14524_s1 + $0x28] sm:$0xff]   ;;  %v11191_v38 = vld [vmem:[%s14524_s1 + $0x70] sm:$0xff]  }
  0xd9   : > { %1396 = vmatmul.mubr.bf16.gmra.mrb[20].mxu0 %v1218_v49  ;;  %9534 = vmatpush3.bf16.msra.mxu1 %v11145_v47  ;;  %v1923_v49 = vsel %vm263_vm0, %v8773_v41, %v10226_v35  ;;  %v10222_v47 = vunpack.i.h.bf16 %v12201_v18  ;;  %v9094_v18 = vld [vmem:[%s11579_s8 + $0x1d1] sm:$0xff]  ;;  %v11188_v35 = vld [vmem:[%s14524_s1 + $0x28] sm:$0xff]  }
  0xda   : > { %9506 = vmatpush3.bf16.msra.mxu0 %v11144_v44  ;;  %9535 = vmatprep.subr.bf16.mxu1 %v11147_v50  ;;  %v10227_v44 = vunpack.i.h.bf16 %v10225_v24  ;;  %v10240_v48 = vpop.permute.xlu0 %10239  ;;  %v11173_v50 = vld [vmem:[%s14524_s1 + $0x8] sm:$0xff]   ;;  %v11190_v41 = vld [vmem:[%s14524_s1 + $0x70] sm:$0xff]  }
  0xdb   : > { %9507 = vmatprep.subr.bf16.mxu0 %v11146_v53  ;;  %1859 = vmatprep.mubr.bf16.mxu0 %v1689_v55  ;;  %v11172_v53 = vld [vmem:[%s14524_s1 + $0x8] sm:$0xff]   ;;  %v1927_v55 = vpack.c.bf16 %v1923_v49, %v1923_v49  ;;  %v1684_v0 = vsel %vm263_vm0, %v8738_v52, %v10222_v47 }
  0xdc   : > { %2095 = vmatprep.mubr.bf16.mxu1 %v1925_v57  ;;  %v10231_v57 = vunpack.i.l.bf16 %v10230_v31  ;;  %v1690_v11 = vpack.c.bf16 %v1684_v0, %v1684_v0  ;;  %v9122_v24 = vld [vmem:[%s11579_s8 + $0x1e1] sm:$0xff] }
  0xdd   : > { %9536 = vmatpush3.bf16.msra.mxu1 %v11149_v59  ;;  %v1920_v59 = vsel %vm263_vm0, %v8767_v46, %v10227_v44  ;;  %v11195_v44 = vld [vmem:[%s14524_s1 + $0x78] sm:$0xff]   ;;  %v9124_v46 = vld [vmem:[%s11579_s8 + $0x1f1] sm:$0xf]  ;;  %v11198_v0 = vld [vmem:[%s14524_s1 + $0x40] sm:$0xff]  }
  0xde   : > { %9508 = vmatpush3.bf16.msra.mxu0 %v11148_v56  ;;  %9537 = vmatprep.subr.bf16.mxu1 %v11151_v60  ;;  %v10232_v56 = vunpack.i.h.bf16 %v10230_v31  ;;  %v10242_v60 = vunpack.i.h.bf16 %v10240_v48  ;;  %v2157_v10 = vsel %vm263_vm0, %v12258_v58, %v10231_v57 }
  0xdf   : > { %9509 = vmatprep.subr.bf16.mxu0 %v11150_v61  ;;  %v10241_v61 = vunpack.i.l.bf16 %v10240_v48  ;;  %v9089_v48 = vld [vmem:[%s11579_s8 + $0x1c1] sm:$0xf] }
  0xe1   : > { %9538 = vmatpush3.bf16.msra.mxu1 %v11153_v1  ;;  %v11175_v1 = vld [vmem:[%s14524_s1 + $0x50] sm:$0xff]  }
  0xe2   : > { %9510 = vmatpush3.bf16.msra.mxu0 %v11152_v62  ;;  %9539 = vmatprep.subr.bf16.mxu1 %v11155_v2  ;;  %v12262_v62 = vld [vmem:[%s11579_s8 + $0xe0] sm:$0xff]  ;;  %v12269_v2 = vld [vmem:[%s11579_s8 + $0xf0] sm:$0xff] }
  0xe3   : > { %9511 = vmatprep.subr.bf16.mxu0 %v11154_v3  ;;  %v12272_v3 = vld [vmem:[%s11579_s8 + $0xf8] sm:$0xff]  ;;  %v2158_v8 = vsel %vm263_vm0, %v12262_v62, %v10232_v56  ;;  %v2393_v63 = vsel %vm263_vm0, %v12269_v2, %v10241_v61  ;;  %v11199_v56 = vld [vmem:[%s14524_s1 + $0x40] sm:$0xff]  }
  0xe4   : > { %v2394_v54 = vsel %vm263_vm0, %v12272_v3, %v10242_v60 }
  0xe5   : > { %9540 = vmatpush3.bf16.msra.mxu1 %v11157_v6  ;;  %v1926_v6 = vpack.c.bf16 %v1920_v59, %v1920_v59  ;;  %v2397_v20 = vpack.c.bf16 %v2394_v54, %v2393_v63  ;;  %v8796_v54 = vld [vmem:[%s11579_s8 + $0xd0] sm:$0xf] }
  0xe6   : > { %9512 = vmatpush3.bf16.msra.mxu0 %v11156_v5  ;;  %9541 = vmatprep.subr.bf16.mxu1 %v11159_v4  ;;  %v11174_v5 = vld [vmem:[%s14524_s1 + $0x50] sm:$0xff]   ;;  %v11178_v4 = vld [vmem:[%s14524_s1 + $0x58] sm:$0xff]  }
  0xe7   : > { %9513 = vmatprep.subr.bf16.mxu0 %v11158_v12  ;;  %v11179_v12 = vld [vmem:[%s14524_s1 + $0x58] sm:$0xff]  }
  0xe9   : > { %9542 = vmatpush3.bf16.msra.mxu1 %v11161_v17  ;;  %v9093_v17 = vld [vmem:[%s11579_s8 + $0x1c9] sm:$0xff] }
  0xea   : > { %9514 = vmatpush3.bf16.msra.mxu0 %v11160_v16  ;;  %9543 = vmatprep.subr.bf16.mxu1 %v11163_v23  ;;  %v2161_v16 = vpack.c.bf16 %v2158_v8, %v2157_v10  ;;  %v11182_v23 = vld [vmem:[%s14524_s1 + $0x60] sm:$0xff]  }
  0xeb   : > { %9515 = vmatprep.subr.bf16.mxu0 %v11162_v21  ;;  %v10378_v21 = vpack.i.bf16 %v9094_v18, %v9093_v17  ;;  %v11205_v18 = vld [vmem:[%s14524_s1 + $0x8] sm:$0xff]  }
  0xed   : > { %9544 = vmatpush3.bf16.msra.mxu1 %v11165_v27  ;;  %v10235_v27 = vpop.permute.xlu1 %10234  ;;  %10379 = vrot.lane.b32.xlu0 %v10378_v21, %s11513_s11 }
  0xee   : > { %9516 = vmatpush3.bf16.msra.mxu0 %v11164_v28  ;;  %9585 = vmatprep.subr.bf16.mxu1 %v11167_v29  ;;  %v9123_v28 = vld [vmem:[%s11579_s8 + $0x1e9] sm:$0xff]  ;;  %v11184_v29 = vld [vmem:[%s14524_s1 + $0x20] sm:$0xff]   ;;  %v10236_v49 = vunpack.i.l.bf16 %v10235_v27 }
  0xef   : > { %9557 = vmatprep.subr.bf16.mxu0 %v11166_v26  ;;  %v10388_v31 = vpack.i.bf16 %v9123_v28, %v9122_v24  ;;  %10394 = vrot.lane.b32.xlu1 %v10378_v21, %s11513_s11  ;;  %v11192_v26 = vld [vmem:[%s14524_s1 + $0x30] sm:$0xff]   ;;  %v11204_v21 = vld [vmem:[%s14524_s1 + $0x8] sm:$0xff]  }
  0xf0   : > { %2096 = vmatmul.mubr.bf16.vlgmr.msra.gmra.mrb[24].mxu1 %v1924_v42  ;;  %v11193_v42 = vld [vmem:[%s14524_s1 + $0x30] sm:$0xff]  }
  0xf1   : > { %1860 = vmatmul.mubr.bf16.vlgmr.msra.gmra.mrb[24].mxu0 %v1688_v43  ;;  %9586 = vmatpush3.bf16.msra.mxu1 %v11169_v15  ;;  %v10245_v39 = vpop.permute.xlu1 %10244  ;;  %v11194_v43 = vld [vmem:[%s14524_s1 + $0x78] sm:$0xff]  }
  0xf2   : > { %9558 = vmatpush3.bf16.msra.mxu0 %v11168_v25  ;;  %9587 = vmatprep.subr.bf16.mxu1 %v11171_v40  ;;  %v12346_v25 = vpop.permute.xlu0 %10249  ;;  %v10247_v15 = vunpack.i.h.bf16 %v10245_v39  ;;  %v10246_v14 = vunpack.i.l.bf16 %v10245_v39  ;;  %v10237_v40 = vunpack.i.h.bf16 %v10235_v27  ;;  %v12413_v27 = vld [vmem:[%s11579_s8 + $0x110] sm:$0xff] }
  0xf3   : > { %9559 = vmatprep.subr.bf16.mxu0 %v11170_v45  ;;  %1867 = vmatprep.mubr.bf16.mxu0 %v1691_v51  ;;  %v9118_v45 = vld [vmem:[%s11579_s8 + $0x1d9] sm:$0xf]  ;;  %v10251_v57 = vunpack.i.l.bf16 %v12346_v25 }
  0xf4   : > { %2103 = vmatprep.mubr.bf16.mxu1 %v1927_v55  ;;  %10389 = vrot.lane.b32.xlu0 %v10388_v31, %s11513_s11  ;;  %v11197_v51 = vld [vmem:[%s14524_s1 + $0x38] sm:$0xff]   ;;  %v10403_v52 = vpack.i.bf16 %v9118_v45, %v9124_v46  ;;  %v2391_v60 = vsel %vm263_vm0, %v12262_v62, %v10247_v15  ;;  %v2390_v61 = vsel %vm263_vm0, %v12258_v58, %v10246_v14  ;;  %v8831_v62 = vld [vmem:[%s11579_s8 + $0x100] sm:$0xf] }
  0xf5   : > { %9588 = vmatpush3.bf16.msra.mxu1 %v11173_v50  ;;  %v10255_v47 = vpop.permute.xlu1 %10254  ;;  %v9095_v50 = vld [vmem:[%s11579_s8 + $0x1d9] sm:$0xf]  ;;  %v11201_v58 = vld [vmem:[%s14524_s1] sm:$0xff]  }
  0xf6   : > { %9560 = vmatpush3.bf16.msra.mxu0 %v11172_v53  ;;  %9589 = vmatprep.subr.bf16.mxu1 %v11175_v1  ;;  %v10398_v53 = vpack.i.bf16 %v9089_v48, %v9095_v50  ;;  %v11196_v55 = vld [vmem:[%s14524_s1 + $0x38] sm:$0xff]   ;;  %v10260_v59 = vpop.permute.xlu0 %10259  ;;  %v10256_v1 = vunpack.i.l.bf16 %v10255_v47  ;;  %v12417_v31 = vld [vmem:[%s11579_s8 + $0x120] sm:$0xff] }
  0xf7   : > { %9561 = vmatprep.subr.bf16.mxu0 %v11174_v5  ;;  %v8802_v5 = vld [vmem:[%s11579_s8 + $0xe8] sm:$0xf]  ;;  %10404 = vrot.lane.b32.xlu1 %v10403_v52, %s11513_s11  ;;  %v10261_v24 = vunpack.i.l.bf16 %v10260_v59  ;;  %v11211_v14 = vld [vmem:[%s14524_s1 + $0x58] sm:$0xff]   ;;  %v11214_v46 = vld [vmem:[%s14524_s1 + $0x60] sm:$0xff]  }
  0xf8   : > { %2104 = vmatmul.mubr.bf16.gmra.mrb[28].mxu1 %v1926_v6  ;;  %v2155_v6 = vsel %vm263_vm0, %v12121_v36, %v10237_v40  ;;  %10399 = vrot.lane.b32.xlu0 %v10398_v53, %s11513_s11  ;;  %v11200_v36 = vld [vmem:[%s14524_s1] sm:$0xff]   ;;  %v2159_v10 = vsel %vm263_vm0, %v8802_v5, %v10251_v57  ;;  %v2395_v63 = vsel %vm263_vm0, %v8831_v62, %v10256_v1  ;;  %v11212_v45 = vld [vmem:[%s14524_s1 + $0x18] sm:$0xff]   ;;  %v11219_v52 = vld [vmem:[%s14524_s1 + $0x68] sm:$0xff]  }
  0xf9   : > { %1868 = vmatmul.mubr.bf16.gmra.mrb[28].mxu0 %v1690_v11  ;;  %9590 = vmatpush3.bf16.msra.mxu1 %v11177_v9  ;;  %v2396_v9 = vpack.c.bf16 %v2391_v60, %v2390_v61  ;;  %v10257_v11 = vunpack.i.h.bf16 %v10255_v47  ;;  %v11215_v47 = vld [vmem:[%s14524_s1 + $0x60] sm:$0xff]   ;;  %v10265_v50 = vpop.permute.xlu1 %10264  ;;  %v11218_v53 = vld [vmem:[%s14524_s1 + $0x68] sm:$0xff]   ;;  %v11223_v57 = vld [vmem:[%s14524_s1 + $0x70] sm:$0xff]  }
  0xfa   : > { %9562 = vmatpush3.bf16.msra.mxu0 %v11176_v7  ;;  %9591 = vmatprep.subr.bf16.mxu1 %v11179_v12  ;;  %v2154_v7 = vsel %vm263_vm0, %v12117_v32, %v10236_v49  ;;  %v11203_v32 = vld [vmem:[%s14524_s1 + $0x48] sm:$0xff]   ;;  %v10252_v12 = vunpack.i.h.bf16 %v12346_v25  ;;  %v10270_v17 = vpop.permute.xlu0 %10269  ;;  %v11213_v49 = vld [vmem:[%s14524_s1 + $0x18] sm:$0xff]   ;;  %v11216_v48 = vld [vmem:[%s14524_s1 + $0x20] sm:$0xff]   ;;  %v10267_v62 = vunpack.i.h.bf16 %v10265_v50 }
  0xfb   : > { %9563 = vmatprep.subr.bf16.mxu0 %v11178_v4  ;;  %2331 = vmatprep.mubr.bf16.mxu0 %v2161_v16  ;;  %v2160_v8 = vpack.c.bf16 %v2155_v6, %v2154_v7  ;;  %v11202_v4 = vld [vmem:[%s14524_s1 + $0x48] sm:$0xff]   ;;  %v11222_v60 = vld [vmem:[%s14524_s1 + $0x70] sm:$0xff]   ;;  %v11226_v7 = vld [vmem:[%s14524_s1 + $0x78] sm:$0xff]  }
  0xfc   : > { %2567 = vmatprep.mubr.bf16.mxu1 %v2397_v20  ;;  %v8825_v16 = vld [vmem:[%s11579_s8 + $0xe8] sm:$0xf]  ;;  %v11224_v61 = vld [vmem:[%s14524_s1 + $0x30] sm:$0xff]  }
  0xfd   : > { %9592 = vmatpush3.bf16.msra.mxu1 %v11181_v13  ;;  %v12404_v20 = vld [vmem:[%s11579_s8 + $0x108] sm:$0xff]  ;;  %v2399_v13 = vpack.c.bf16 %v2395_v63, %v2395_v63  ;;  %v2392_v28 = vsel %vm263_vm0, %v8825_v16, %v10257_v11  ;;  %v8860_v16 = vld [vmem:[%s11579_s8 + $0x118] sm:$0xf] }
  0xfe   : > { %9564 = vmatpush3.bf16.msra.mxu0 %v11180_v19  ;;  %9593 = vmatprep.subr.bf16.mxu1 %v11183_v22  ;;  %v2163_v19 = vpack.c.bf16 %v2159_v10, %v2159_v10  ;;  %v11207_v22 = vld [vmem:[%s14524_s1 + $0x50] sm:$0xff]   ;;  %v2629_v39 = vsel %vm263_vm0, %v12404_v20, %v10261_v24  ;;  %v12488_v1 = vpop.permute.xlu0 %10279  ;;  %v11228_v10 = vld [vmem:[%s14524_s1 + $0x38] sm:$0xff]   ;;  %v11234_v24 = vld [vmem:[%s14524_s1 + $0x48] sm:$0xff]  }
  0xff   : > { %9565 = vmatprep.subr.bf16.mxu0 %v11182_v23  ;;  %v10262_v23 = vunpack.i.h.bf16 %v10260_v59  ;;  %v10275_v59 = vpop.permute.xlu1 %10274  ;;  %v10281_v11 = vunpack.i.l.bf16 %v12488_v1 }
 0x100   : > { %v10277_v5 = vunpack.i.h.bf16 %v10275_v59  ;;  %v10276_v6 = vunpack.i.l.bf16 %v10275_v59  ;;  %v11243_v59 = vld [vmem:[%s14524_s1 + $0x58] sm:$0xff]  }
 0x101   : > { %9594 = vmatpush3.bf16.msra.mxu1 %v11185_v30  ;;  %v10271_v30 = vunpack.i.l.bf16 %v10270_v17 }
 0x102   : > { %9566 = vmatpush3.bf16.msra.mxu0 %v11184_v29  ;;  %9595 = vmatprep.subr.bf16.mxu1 %v11187_v33  ;;  %v10272_v29 = vunpack.i.h.bf16 %v10270_v17  ;;  %v2156_v33 = vsel %vm263_vm0, %v8796_v54, %v10252_v12  ;;  %v2863_v63 = vsel %vm263_vm0, %v12413_v27, %v10277_v5  ;;  %v2862_v54 = vsel %vm263_vm0, %v12404_v20, %v10276_v6  ;;  %v11232_v20 = vld [vmem:[%s14524_s1] sm:$0xff]   ;;  %v11244_v5 = vld [vmem:[%s14524_s1 + $0x18] sm:$0xff]  }
 0x103   : > { %9567 = vmatprep.subr.bf16.mxu0 %v11186_v34  ;;  %v12421_v34 = vld [vmem:[%s11579_s8 + $0x128] sm:$0xff]  ;;  %v2865_v25 = vsel %vm263_vm0, %v12417_v31, %v10271_v30  ;;  %v2627_v17 = vsel %vm263_vm0, %v12272_v3, %v10267_v62  ;;  %v11233_v3 = vld [vmem:[%s14524_s1] sm:$0xff]   ;;  %v8883_v30 = vld [vmem:[%s11579_s8 + $0x118] sm:$0xf] }
 0x104   : > { %v2866_v15 = vsel %vm263_vm0, %v12421_v34, %v10272_v29  ;;  %v10282_v29 = vunpack.i.h.bf16 %v12488_v1  ;;  %v11245_v1 = vld [vmem:[%s14524_s1 + $0x18] sm:$0xff]   ;;  %v11247_v6 = vld [vmem:[%s14524_s1 + $0x60] sm:$0xff]  }
 0x105   : > { %9596 = vmatpush3.bf16.msra.mxu1 %v11189_v37  ;;  %v2398_v37 = vpack.c.bf16 %v2392_v28, %v2392_v28  ;;  %v2869_v40 = vpack.c.bf16 %v2866_v15, %v2865_v25  ;;  %v11248_v62 = vld [vmem:[%s14524_s1 + $0x20] sm:$0xff]  }
 0x106   : > { %9568 = vmatpush3.bf16.msra.mxu0 %v11188_v35  ;;  %9597 = vmatprep.subr.bf16.mxu1 %v11191_v38  ;;  %v11206_v35 = vld [vmem:[%s14524_s1 + $0x50] sm:$0xff]  }
 0x107   : > { %9569 = vmatprep.subr.bf16.mxu0 %v11190_v41  ;;  %v11208_v38 = vld [vmem:[%s14524_s1 + $0x10] sm:$0xff]   ;;  %v2630_v41 = vsel %vm263_vm0, %v12413_v27, %v10262_v23  ;;  %v11235_v27 = vld [vmem:[%s14524_s1 + $0x48] sm:$0xff]  }
 0x109   : > { %9598 = vmatpush3.bf16.msra.mxu1 %v11193_v42  ;;  %v11209_v42 = vld [vmem:[%s14524_s1 + $0x10] sm:$0xff]  }
 0x10a   : > { %9570 = vmatpush3.bf16.msra.mxu0 %v11192_v26  ;;  %9599 = vmatprep.subr.bf16.mxu1 %v11195_v44  ;;  %v2162_v26 = vpack.c.bf16 %v2156_v33, %v2156_v33  ;;  %v2633_v44 = vpack.c.bf16 %v2630_v41, %v2629_v39  ;;  %v12540_v39 = vld [vmem:[%s11579_s8 + $0x138] sm:$0xff]  ;;  %v11236_v41 = vld [vmem:[%s14524_s1 + $0x8] sm:$0xff]  }
 0x10b   : > { %9571 = vmatprep.subr.bf16.mxu0 %v11194_v43  ;;  %v11210_v43 = vld [vmem:[%s14524_s1 + $0x58] sm:$0xff]  }
 0x10d   : > { %9600 = vmatpush3.bf16.msra.mxu1 %v11197_v51  ;;  %v11217_v51 = vld [vmem:[%s14524_s1 + $0x20] sm:$0xff]  }
 0x10e   : > { %9572 = vmatpush3.bf16.msra.mxu0 %v11196_v55  ;;  %9641 = vmatprep.subr.bf16.mxu1 %v11199_v56  ;;  %v11220_v55 = vld [vmem:[%s14524_s1 + $0x28] sm:$0xff]  }
 0x10f   : > { %9613 = vmatprep.subr.bf16.mxu0 %v11198_v0  ;;  %v11221_v56 = vld [vmem:[%s14524_s1 + $0x28] sm:$0xff]   ;;  %v11225_v0 = vld [vmem:[%s14524_s1 + $0x30] sm:$0xff]  }
 0x110   : > { %2568 = vmatmul.mubr.bf16.vlgmr.msra.gmra.mrb[32].mxu1 %v2396_v9  ;;  %v11227_v9 = vld [vmem:[%s14524_s1 + $0x78] sm:$0xff]  }
 0x111   : > { %2332 = vmatmul.mubr.bf16.vlgmr.msra.gmra.mrb[32].mxu0 %v2160_v8  ;;  %9642 = vmatpush3.bf16.msra.mxu1 %v11201_v58  ;;  %v10266_v58 = vunpack.i.l.bf16 %v10265_v50  ;;  %v11231_v8 = vld [vmem:[%s14524_s1 + $0x40] sm:$0xff]  }
 0x112   : > { %9614 = vmatpush3.bf16.msra.mxu0 %v11200_v36  ;;  %9643 = vmatprep.subr.bf16.mxu1 %v11203_v32  ;;  %v10285_v36 = vpop.permute.xlu1 %10284  ;;  %v11229_v32 = vld [vmem:[%s14524_s1 + $0x38] sm:$0xff]  }
 0x113   : > { %9615 = vmatprep.subr.bf16.mxu0 %v11202_v4  ;;  %2339 = vmatprep.mubr.bf16.mxu0 %v2163_v19  ;;  %v10290_v4 = vpop.permute.xlu0 %10289  ;;  %v10286_v12 = vunpack.i.l.bf16 %v10285_v36  ;;  %v8889_v19 = vld [vmem:[%s11579_s8 + $0x130] sm:$0xf]  ;;  %v10287_v23 = vunpack.i.h.bf16 %v10285_v36  ;;  %v11251_v36 = vld [vmem:[%s14524_s1 + $0x68] sm:$0xff]  }
 0x114   : > { %2575 = vmatprep.mubr.bf16.mxu1 %v2399_v13  ;;  %v2868_v13 = vpack.c.bf16 %v2863_v63, %v2862_v54  ;;  %v10292_v25 = vunpack.i.h.bf16 %v10290_v4  ;;  %v10291_v15 = vunpack.i.l.bf16 %v10290_v4  ;;  %v11254_v63 = vld [vmem:[%s14524_s1 + $0x70] sm:$0xff]  }
 0x115   : > { %9644 = vmatpush3.bf16.msra.mxu1 %v11205_v18  ;;  %v2626_v18 = vsel %vm263_vm0, %v12269_v2, %v10266_v58  ;;  %v2631_v2 = vsel %vm263_vm0, %v8860_v16, %v10281_v11  ;;  %v2867_v28 = vsel %vm263_vm0, %v8889_v19, %v10286_v12  ;;  %v11255_v11 = vld [vmem:[%s14524_s1 + $0x70] sm:$0xff]   ;;  %v11258_v19 = vld [vmem:[%s14524_s1 + $0x78] sm:$0xff]  }
 0x116   : > { %9616 = vmatpush3.bf16.msra.mxu0 %v11204_v21  ;;  %9645 = vmatprep.subr.bf16.mxu1 %v11207_v22  ;;  %v11230_v21 = vld [vmem:[%s14524_s1 + $0x40] sm:$0xff]   ;;  %v2632_v22 = vpack.c.bf16 %v2627_v17, %v2626_v18  ;;  %v3101_v50 = vsel %vm263_vm0, %v12540_v39, %v10291_v15  ;;  %v10295_v58 = vpop.permute.xlu1 %10294  ;;  %v11256_v54 = vld [vmem:[%s14524_s1 + $0x30] sm:$0xff]  }
 0x117   : > { %9617 = vmatprep.subr.bf16.mxu0 %v11206_v35  ;;  %v10300_v33 = vpop.permute.xlu0 %10299  ;;  %v11237_v35 = vld [vmem:[%s14524_s1 + $0x8] sm:$0xff]   ;;  %v11257_v12 = vld [vmem:[%s14524_s1 + $0x30] sm:$0xff]  }
 0x118   : > { %2576 = vmatmul.mubr.bf16.gmra.mrb[36].mxu1 %v2398_v37  ;;  %v2635_v37 = vpack.c.bf16 %v2631_v2, %v2631_v2  ;;  %v11261_v2 = vld [vmem:[%s14524_s1 + $0x38] sm:$0xff]  }
 0x119   : > { %2340 = vmatmul.mubr.bf16.gmra.mrb[36].mxu0 %v2162_v26  ;;  %9646 = vmatpush3.bf16.msra.mxu1 %v11209_v42  ;;  %v2871_v26 = vpack.c.bf16 %v2867_v28, %v2867_v28  ;;  %v11239_v42 = vld [vmem:[%s14524_s1 + $0x50] sm:$0xff]  }
 0x11a   : > { %9618 = vmatpush3.bf16.msra.mxu0 %v11208_v38  ;;  %9647 = vmatprep.subr.bf16.mxu1 %v11211_v14  ;;  %v8854_v38 = vld [vmem:[%s11579_s8 + $0x100] sm:$0xf]  ;;  %v10305_v4 = vpop.permute.xlu1 %10304 }
 0x11b   : > { %9619 = vmatprep.subr.bf16.mxu0 %v11210_v43  ;;  %2803 = vmatprep.mubr.bf16.mxu0 %v2633_v44  ;;  %v12549_v14 = vld [vmem:[%s11579_s8 + $0x140] sm:$0xff]  ;;  %v2864_v43 = vsel %vm263_vm0, %v8883_v30, %v10287_v23  ;;  %v10302_v44 = vunpack.i.h.bf16 %v10300_v33  ;;  %v12624_v16 = vpop.permute.xlu0 %10309  ;;  %v10307_v17 = vunpack.i.h.bf16 %v10305_v4  ;;  %v10306_v18 = vunpack.i.l.bf16 %v10305_v4  ;;  %v11275_v4 = vld [vmem:[%s14524_s1 + $0x58] sm:$0xff]  }
 0x11c   : > { %3039 = vmatprep.mubr.bf16.mxu1 %v2869_v40  ;;  %v12553_v40 = vld [vmem:[%s11579_s8 + $0x150] sm:$0xff]  ;;  %v11263_v23 = vld [vmem:[%s14524_s1 + $0x40] sm:$0xff]  }
 0x11d   : > { %9648 = vmatpush3.bf16.msra.mxu1 %v11213_v49  ;;  %v2628_v49 = vsel %vm263_vm0, %v8854_v38, %v10282_v29  ;;  %v3335_v28 = vsel %vm263_vm0, %v12549_v14, %v10307_v17  ;;  %v3334_v29 = vsel %vm263_vm0, %v12540_v39, %v10306_v18  ;;  %v11262_v30 = vld [vmem:[%s14524_s1 + $0x40] sm:$0xff]   ;;  %v11277_v18 = vld [vmem:[%s14524_s1 + $0x18] sm:$0xff]  }
 0x11e   : > { %9620 = vmatpush3.bf16.msra.mxu0 %v11212_v45  ;;  %9649 = vmatprep.subr.bf16.mxu1 %v11215_v47  ;;  %v10301_v45 = vunpack.i.l.bf16 %v10300_v33  ;;  %v12557_v47 = vld [vmem:[%s11579_s8 + $0x158] sm:$0xff]  ;;  %v11265_v39 = vld [vmem:[%s14524_s1] sm:$0xff]  }
 0x11f   : > { %9621 = vmatprep.subr.bf16.mxu0 %v11214_v46  ;;  %v11238_v46 = vld [vmem:[%s14524_s1 + $0x50] sm:$0xff]  }
 0x121   : > { %9650 = vmatpush3.bf16.msra.mxu1 %v11217_v51  ;;  %v3102_v51 = vsel %vm263_vm0, %v12549_v14, %v10292_v25  ;;  %v11266_v14 = vld [vmem:[%s14524_s1 + $0x48] sm:$0xff]  }
 0x122   : > { %9622 = vmatpush3.bf16.msra.mxu0 %v11216_v48  ;;  %9651 = vmatprep.subr.bf16.mxu1 %v11219_v52  ;;  %v2870_v48 = vpack.c.bf16 %v2864_v43, %v2864_v43  ;;  %v2634_v52 = vpack.c.bf16 %v2628_v49, %v2628_v49  ;;  %v8941_v49 = vld [vmem:[%s11579_s8 + $0x148] sm:$0xf] }
 0x123   : > { %9623 = vmatprep.subr.bf16.mxu0 %v11218_v53  ;;  %v11241_v53 = vld [vmem:[%s14524_s1 + $0x10] sm:$0xff]  }
 0x125   : > { %9652 = vmatpush3.bf16.msra.mxu1 %v11221_v56  ;;  %v3338_v56 = vsel %vm263_vm0, %v12557_v47, %v10302_v44  ;;  %v8912_v44 = vld [vmem:[%s11579_s8 + $0x130] sm:$0xf] }
 0x126   : > { %9624 = vmatpush3.bf16.msra.mxu0 %v11220_v55  ;;  %9653 = vmatprep.subr.bf16.mxu1 %v11223_v57  ;;  %v3337_v55 = vsel %vm263_vm0, %v12553_v40, %v10301_v45  ;;  %v11240_v57 = vld [vmem:[%s14524_s1 + $0x10] sm:$0xff]   ;;  %v10312_v45 = vunpack.i.h.bf16 %v12624_v16 }
 0x127   : > { %9625 = vmatprep.subr.bf16.mxu0 %v11222_v60  ;;  %v11242_v60 = vld [vmem:[%s14524_s1 + $0x58] sm:$0xff]  }
 0x129   : > { %9654 = vmatpush3.bf16.msra.mxu1 %v11225_v0  ;;  %v3341_v0 = vpack.c.bf16 %v3338_v56, %v3337_v55  ;;  %v11271_v55 = vld [vmem:[%s14524_s1 + $0x50] sm:$0xff]  }
 0x12a   : > { %9626 = vmatpush3.bf16.msra.mxu0 %v11224_v61  ;;  %9655 = vmatprep.subr.bf16.mxu1 %v11227_v9  ;;  %v3105_v61 = vpack.c.bf16 %v3102_v51, %v3101_v50  ;;  %v11249_v9 = vld [vmem:[%s14524_s1 + $0x20] sm:$0xff]   ;;  %v12676_v51 = vld [vmem:[%s11579_s8 + $0x168] sm:$0xff] }
 0x12b   : > { %9627 = vmatprep.subr.bf16.mxu0 %v11226_v7  ;;  %v11246_v7 = vld [vmem:[%s14524_s1 + $0x60] sm:$0xff]  }
 0x12d   : > { %9656 = vmatpush3.bf16.msra.mxu1 %v11229_v32  ;;  %v11250_v32 = vld [vmem:[%s14524_s1 + $0x68] sm:$0xff]  }
 0x12e   : > { %9628 = vmatpush3.bf16.msra.mxu0 %v11228_v10  ;;  %9697 = vmatprep.subr.bf16.mxu1 %v11231_v8  ;;  %v11252_v10 = vld [vmem:[%s14524_s1 + $0x28] sm:$0xff]  }
 0x12f   : > { %9669 = vmatprep.subr.bf16.mxu0 %v11230_v21  ;;  %v11253_v8 = vld [vmem:[%s14524_s1 + $0x28] sm:$0xff]   ;;  %v10297_v21 = vunpack.i.h.bf16 %v10295_v58 }
 0x130   : > { %3040 = vmatmul.mubr.bf16.vlgmr.msra.gmra.mrb[40].mxu1 %v2868_v13  ;;  %v10296_v13 = vunpack.i.l.bf16 %v10295_v58  ;;  %v11272_v58 = vld [vmem:[%s14524_s1 + $0x10] sm:$0xff]  }
 0x131   : > { %2804 = vmatmul.mubr.bf16.vlgmr.msra.gmra.mrb[40].mxu0 %v2632_v22  ;;  %9698 = vmatpush3.bf16.msra.mxu1 %v11233_v3  ;;  %v10315_v3 = vpop.permute.xlu1 %10314  ;;  %v11260_v22 = vld [vmem:[%s14524_s1 + $0x38] sm:$0xff]  }
 0x132   : > { %9670 = vmatpush3.bf16.msra.mxu0 %v11232_v20  ;;  %9699 = vmatprep.subr.bf16.mxu1 %v11235_v27  ;;  %v11259_v20 = vld [vmem:[%s14524_s1 + $0x78] sm:$0xff]   ;;  %v10320_v27 = vpop.permute.xlu0 %10319  ;;  %v10316_v33 = vunpack.i.l.bf16 %v10315_v3  ;;  %v3098_v38 = vsel %vm263_vm0, %v12417_v31, %v10296_v13  ;;  %v10317_v15 = vunpack.i.h.bf16 %v10315_v3  ;;  %v11280_v13 = vld [vmem:[%s14524_s1 + $0x20] sm:$0xff]   ;;  %v11283_v3 = vld [vmem:[%s14524_s1 + $0x68] sm:$0xff]  }
 0x133   : > { %9671 = vmatprep.subr.bf16.mxu0 %v11234_v24  ;;  %2811 = vmatprep.mubr.bf16.mxu0 %v2635_v37  ;;  %v10311_v24 = vunpack.i.l.bf16 %v12624_v16  ;;  %v3099_v37 = vsel %vm263_vm0, %v12421_v34, %v10297_v21  ;;  %v11267_v34 = vld [vmem:[%s14524_s1 + $0x48] sm:$0xff]   ;;  %v10322_v56 = vunpack.i.h.bf16 %v10320_v27  ;;  %v11278_v21 = vld [vmem:[%s14524_s1 + $0x60] sm:$0xff]  }
 0x134   : > { %3047 = vmatprep.mubr.bf16.mxu1 %v2871_v26  ;;  %v3340_v26 = vpack.c.bf16 %v3335_v28, %v3334_v29  ;;  %v3104_v25 = vpack.c.bf16 %v3099_v37, %v3098_v38  ;;  %v11287_v28 = vld [vmem:[%s14524_s1 + $0x70] sm:$0xff]  }
 0x135   : > { %9700 = vmatpush3.bf16.msra.mxu1 %v11237_v35  ;;  %v8918_v35 = vld [vmem:[%s11579_s8 + $0x148] sm:$0xf]  ;;  %v12721_v16 = vpop.permute.xlu1 %10324 }
 0x136   : > { %9672 = vmatpush3.bf16.msra.mxu0 %v11236_v41  ;;  %9701 = vmatprep.subr.bf16.mxu1 %v11239_v42  ;;  %v8947_v41 = vld [vmem:[%s11579_s8 + $0x160] sm:$0xf]  ;;  %v3103_v31 = vsel %vm263_vm0, %v8918_v35, %v10311_v24  ;;  %v11284_v24 = vld [vmem:[%s14524_s1 + $0x28] sm:$0xff]   ;;  %v11286_v35 = vld [vmem:[%s14524_s1 + $0x70] sm:$0xff]  }
 0x137   : > { %9673 = vmatprep.subr.bf16.mxu0 %v11238_v46  ;;  %v11264_v42 = vld [vmem:[%s14524_s1] sm:$0xff]   ;;  %v3339_v43 = vsel %vm263_vm0, %v8947_v41, %v10316_v33  ;;  %v10330_v46 = vpop.permute.xlu0 %10329  ;;  %v3107_v50 = vpack.c.bf16 %v3103_v31, %v3103_v31 }
 0x138   : > { %3048 = vmatmul.mubr.bf16.gmra.mrb[44].mxu1 %v2870_v48  ;;  %v11269_v48 = vld [vmem:[%s14524_s1 + $0x8] sm:$0xff]  }
 0x139   : > { %2812 = vmatmul.mubr.bf16.gmra.mrb[44].mxu0 %v2634_v52  ;;  %9702 = vmatpush3.bf16.msra.mxu1 %v11241_v53  ;;  %v11268_v52 = vld [vmem:[%s14524_s1 + $0x8] sm:$0xff]   ;;  %v3343_v53 = vpack.c.bf16 %v3339_v43, %v3339_v43  ;;  %v10326_v43 = vunpack.i.l.bf16 %v12721_v16 }
 0x13a   : > { %9674 = vmatpush3.bf16.msra.mxu0 %v11240_v57  ;;  %9703 = vmatprep.subr.bf16.mxu1 %v11243_v59  ;;  %v10321_v57 = vunpack.i.l.bf16 %v10320_v27  ;;  %v12685_v59 = vld [vmem:[%s11579_s8 + $0x170] sm:$0xff]  ;;  %v11285_v27 = vld [vmem:[%s14524_s1 + $0x28] sm:$0xff]  }
 0x13b   : > { %9675 = vmatprep.subr.bf16.mxu0 %v11242_v60  ;;  %3275 = vmatprep.mubr.bf16.mxu0 %v3105_v61  ;;  %v3336_v60 = vsel %vm263_vm0, %v8941_v49, %v10317_v15  ;;  %v10332_v61 = vunpack.i.h.bf16 %v10330_v46 }
 0x13c   : > { %3511 = vmatprep.mubr.bf16.mxu1 %v3341_v0  ;;  %v10331_v0 = vunpack.i.l.bf16 %v10330_v46  ;;  %v11291_v46 = vld [vmem:[%s14524_s1 + $0x78] sm:$0xff]  }
 0x13d   : > { %9704 = vmatpush3.bf16.msra.mxu1 %v11245_v1  ;;  %v12689_v1 = vld [vmem:[%s11579_s8 + $0x180] sm:$0xff] }
 0x13e   : > { %9676 = vmatpush3.bf16.msra.mxu0 %v11244_v5  ;;  %9705 = vmatprep.subr.bf16.mxu1 %v11247_v6  ;;  %v3100_v5 = vsel %vm263_vm0, %v8912_v44, %v10312_v45  ;;  %v12693_v6 = vld [vmem:[%s11579_s8 + $0x188] sm:$0xff]  ;;  %v11288_v45 = vld [vmem:[%s14524_s1 + $0x30] sm:$0xff]  }
 0x13f   : > { %9677 = vmatprep.subr.bf16.mxu0 %v11246_v7  ;;  %v11270_v7 = vld [vmem:[%s14524_s1 + $0x50] sm:$0xff]  }
 0x141   : > { %9706 = vmatpush3.bf16.msra.mxu1 %v11249_v9  ;;  %v3573_v9 = vsel %vm263_vm0, %v12676_v51, %v10321_v57 }
 0x142   : > { %9678 = vmatpush3.bf16.msra.mxu0 %v11248_v62  ;;  %9707 = vmatprep.subr.bf16.mxu1 %v11251_v36  ;;  %v3342_v62 = vpack.c.bf16 %v3336_v60, %v3336_v60  ;;  %v3574_v36 = vsel %vm263_vm0, %v12685_v59, %v10322_v56  ;;  %v8976_v56 = vld [vmem:[%s11579_s8 + $0x178] sm:$0xf] }
 0x143   : > { %9679 = vmatprep.subr.bf16.mxu0 %v11250_v32  ;;  %v3106_v32 = vpack.c.bf16 %v3100_v5, %v3100_v5 }
 0x145   : > { %9708 = vmatpush3.bf16.msra.mxu1 %v11253_v8  ;;  %v3809_v8 = vsel %vm263_vm0, %v12689_v1, %v10331_v0 }
 0x146   : > { %9680 = vmatpush3.bf16.msra.mxu0 %v11252_v10  ;;  %9709 = vmatprep.subr.bf16.mxu1 %v11255_v11  ;;  %v11273_v10 = vld [vmem:[%s14524_s1 + $0x10] sm:$0xff]   ;;  %v3810_v11 = vsel %vm263_vm0, %v12693_v6, %v10332_v61  ;;  %v11292_v61 = vld [vmem:[%s14524_s1 + $0x38] sm:$0xff]  }
 0x147   : > { %9681 = vmatprep.subr.bf16.mxu0 %v11254_v63  ;;  %v11274_v63 = vld [vmem:[%s14524_s1 + $0x58] sm:$0xff]   ;;  %v3813_v17 = vpack.c.bf16 %v3810_v11, %v3809_v8  ;;  %v3570_v11 = vsel %vm263_vm0, %v12553_v40, %v10326_v43 }
 0x149   : > { %9710 = vmatpush3.bf16.msra.mxu1 %v11257_v12  ;;  %v11276_v12 = vld [vmem:[%s14524_s1 + $0x18] sm:$0xff]  }
 0x14a   : > { %9682 = vmatpush3.bf16.msra.mxu0 %v11256_v54  ;;  %9711 = vmatprep.subr.bf16.mxu1 %v11259_v20  ;;  %v3577_v54 = vpack.c.bf16 %v3574_v36, %v3573_v9  ;;  %v11281_v20 = vld [vmem:[%s14524_s1 + $0x20] sm:$0xff]  }
 0x14b   : > { %9683 = vmatprep.subr.bf16.mxu0 %v11258_v19  ;;  %v11279_v19 = vld [vmem:[%s14524_s1 + $0x60] sm:$0xff]  }
 0x14d   : > { %9712 = vmatpush3.bf16.msra.mxu1 %v11261_v2  ;;  %v10335_v2 = vpop.permute.xlu1 %10334 }
 0x14e   : > { %9684 = vmatpush3.bf16.msra.mxu0 %v11260_v22  ;;  %9753 = vmatprep.subr.bf16.mxu1 %v11263_v23  ;;  %v11282_v22 = vld [vmem:[%s14524_s1 + $0x68] sm:$0xff]   ;;  %v12744_v23 = vpop.permute.xlu0 %10339  ;;  %v10336_v31 = vunpack.i.l.bf16 %v10335_v2 }
 0x14f   : > { %9725 = vmatprep.subr.bf16.mxu0 %v11262_v30  ;;  %v12760_v30 = vld [vmem:[%s14525_s2] ss:$0 sm:$0xff]  ;;  %v10341_v5 = vunpack.i.l.bf16 %v12744_v23 }
 0x150   : > { %3512 = vmatmul.mubr.bf16.vlgmr.msra.gmra.mrb[48].mxu1 %v3340_v26  ;;  %v3806_v9 = vsel %vm263_vm0, %v12676_v51, %v10336_v31  ;;  %v11295_v51 = vld [vmem:[%s14524_s1 + $0x40] sm:$0xff]   ;;  %v12838_v31 = vld [vmem:[%s11579_s8 + $0x198] sm:$0xff] }
 0x151   : > { %3276 = vmatmul.mubr.bf16.vlgmr.msra.gmra.mrb[48].mxu0 %v3104_v25  ;;  %9754 = vmatpush3.bf16.msra.mxu1 %v11265_v39  ;;  %v12755_v29 = vpop.permute.xlu1 %10344 }
 0x152   : > { %9726 = vmatpush3.bf16.msra.mxu0 %v11264_v42  ;;  %9755 = vmatprep.subr.bf16.mxu1 %v11267_v34  ;;  %v12765_v37 = vpop.permute.xlu0 %10349  ;;  %v11289_v42 = vld [vmem:[%s14524_s1 + $0x30] sm:$0xff]   ;;  %v10337_v34 = vunpack.i.h.bf16 %v10335_v2  ;;  %v10346_v0 = vunpack.i.l.bf16 %v12755_v29  ;;  %v10347_v2 = vunpack.i.h.bf16 %v12755_v29 }
 0x153   : > { %9727 = vmatprep.subr.bf16.mxu0 %v11266_v14  ;;  %3283 = vmatprep.mubr.bf16.mxu0 %v3107_v50  ;;  %v10327_v14 = vunpack.i.h.bf16 %v12721_v16  ;;  %v10352_v43 = vunpack.i.h.bf16 %v12765_v37 }
 0x154   : > { %3519 = vmatprep.mubr.bf16.mxu1 %v3343_v53  ;;  %v11290_v53 = vld [vmem:[%s14524_s1 + $0x78] sm:$0xff]  }
 0x155   : > { %9756 = vmatpush3.bf16.msra.mxu1 %v11269_v48  ;;  %v3571_v8 = vsel %vm263_vm0, %v12557_v47, %v10327_v14  ;;  %v11297_v47 = vld [vmem:[%s14524_s1] sm:$0xff]   ;;  %v11303_v14 = vld [vmem:[%s14524_s1 + $0x50] sm:$0xff]  }
 0x156   : > { %9728 = vmatpush3.bf16.msra.mxu0 %v11268_v52  ;;  %9757 = vmatprep.subr.bf16.mxu1 %v11271_v55  ;;  %v11293_v55 = vld [vmem:[%s14524_s1 + $0x38] sm:$0xff]  }
 0x157   : > { %9729 = vmatprep.subr.bf16.mxu0 %v11270_v7  ;;  %v9005_v7 = vld [vmem:[%s11579_s8 + $0x190] sm:$0xf] }
 0x158   : > { %3520 = vmatmul.mubr.bf16.gmra.mrb[52].mxu1 %v3342_v62 }
 0x159   : > { %3284 = vmatmul.mubr.bf16.gmra.mrb[52].mxu0 %v3106_v32  ;;  %9758 = vmatpush3.bf16.msra.mxu1 %v11273_v10  ;;  %v11294_v32 = vld [vmem:[%s14524_s1 + $0x40] sm:$0xff]  }
 0x15a   : > { %9730 = vmatpush3.bf16.msra.mxu0 %v11272_v58  ;;  %9759 = vmatprep.subr.bf16.mxu1 %v11275_v4  ;;  %v3807_v58 = vsel %vm263_vm0, %v12685_v59, %v10337_v34 }
 0x15b   : > { %9731 = vmatprep.subr.bf16.mxu0 %v11274_v63  ;;  %3747 = vmatprep.mubr.bf16.mxu0 %v3577_v54  ;;  %v12813_v54 = vpop.permute.xlu0 %10359 }
 0x15c   : > { %3983 = vmatprep.mubr.bf16.mxu1 %v3813_v17 }
 0x15d   : > { %9760 = vmatpush3.bf16.msra.mxu1 %v11277_v18  ;;  %v11296_v18 = vld [vmem:[%s14524_s1] sm:$0xff]  }
 0x15e   : > { %9732 = vmatpush3.bf16.msra.mxu0 %v11276_v12  ;;  %9761 = vmatprep.subr.bf16.mxu1 %v11279_v19  ;;  %v3812_v12 = vpack.c.bf16 %v3807_v58, %v3806_v9  ;;  %v11299_v19 = vld [vmem:[%s14524_s1 + $0x48] sm:$0xff]   ;;  %v11307_v9 = vld [vmem:[%s14524_s1 + $0x58] sm:$0xff]  }
 0x15f   : > { %9733 = vmatprep.subr.bf16.mxu0 %v11278_v21  ;;  %v3575_v21 = vsel %vm263_vm0, %v8976_v56, %v10341_v5  ;;  %v12860_v56 = vld [vmem:[%s11579_s8 + $0x1b8] sm:$0xff]  ;;  %v11304_v5 = vld [vmem:[%s14524_s1 + $0x10] sm:$0xff]  }
 0x161   : > { %9762 = vmatpush3.bf16.msra.mxu1 %v11281_v20 }
 0x162   : > { %9734 = vmatpush3.bf16.msra.mxu0 %v11280_v13  ;;  %9763 = vmatprep.subr.bf16.mxu1 %v11283_v3  ;;  %v3576_v13 = vpack.c.bf16 %v3571_v8, %v3570_v11  ;;  %v11309_v11 = vld [vmem:[%s14524_s1 + $0x18] sm:$0xff]  }
 0x163   : > { %9735 = vmatprep.subr.bf16.mxu0 %v11282_v22  ;;  %v9377_v33 = vpop.f32.mrb[0].mxu1  ;;  %v11298_v22 = vld [vmem:[%s14524_s1 + $0x48] sm:$0xff]  }
 0x164   : > { %v9349_v38 = vpop.f32.mrb[0].mxu0  ;;  %v9378_v41 = vpop.f32.mrb[1].mxu1 }
 0x165   : > { %v9350_v39 = vpop.f32.mrb[1].mxu0  ;;  %9764 = vmatpush3.bf16.msra.mxu1 %v11285_v27  ;;  %v9379_v26 = vadd.f32 %v9378_v41, %v9377_v33  ;;  %v9380_v25 = vpop.f32.mrb[2].mxu1  ;;  %v8970_v27 = vld [vmem:[%s11579_s8 + $0x160] sm:$0xf] }
 0x166   : > { %v9351_v15 = vadd.f32 %v9350_v39, %v9349_v38  ;;  %9736 = vmatpush3.bf16.msra.mxu0 %v11284_v24  ;;  %v9352_v44 = vpop.f32.mrb[2].mxu0  ;;  %9765 = vmatprep.subr.bf16.mxu1 %v11287_v28  ;;  %v9381_v49 = vpop.f32.mrb[3].mxu1  ;;  %v3811_v24 = vsel %vm263_vm0, %v9005_v7, %v10346_v0  ;;  %v8999_v28 = vld [vmem:[%s11579_s8 + $0x178] sm:$0xf]  ;;  %v10342_v38 = vunpack.i.h.bf16 %v12744_v23  ;;  %v11300_v23 = vld [vmem:[%s14524_s1 + $0x8] sm:$0xff]   ;;  %v11305_v7 = vld [vmem:[%s14524_s1 + $0x10] sm:$0xff]  }
 0x167   : > { %v9353_v48 = vpop.f32.mrb[3].mxu0  ;;  %9737 = vmatprep.subr.bf16.mxu0 %v11286_v35  ;;  %v682_v50 = vadd.f32 %v9379_v26, %v12760_v30  ;;  %v9382_v52 = vadd.f32 %v9381_v49, %v9380_v25  ;;  %v11301_v26 = vld [vmem:[%s14524_s1 + $0x8] sm:$0xff]  }
 0x168   : > { %v444_v57 = vadd.f32 %v9351_v15, %v12760_v30  ;;  %v9354_v60 = vadd.f32 %v9353_v48, %v9352_v44  ;;  %v3815_v15 = vpack.c.bf16 %v3811_v24, %v3811_v24  ;;  %v10351_v44 = vunpack.i.l.bf16 %v12765_v37  ;;  %v11302_v37 = vld [vmem:[%s14524_s1 + $0x50] sm:$0xff]   ;;  %v11317_v24 = vld [vmem:[%s14524_s1 + $0x28] sm:$0xff]  }
 0x169   : > { %v695_v62 = vmax.f32 %v682_v50, 0.0  ;;  %9766 = vmatpush3.bf16.msra.mxu1 %v11289_v42  ;;  %v685_v36 = vadd.f32 %v9382_v52, %v12760_v30  ;;  %v3579_v42 = vpack.c.bf16 %v3575_v21, %v3575_v21  ;;  %v10362_v48 = vunpack.i.h.bf16 %v12813_v54  ;;  %v12856_v52 = vld [vmem:[%s11579_s8 + $0x1b0] sm:$0xff] }
 0x16a   : > { %v457_v10 = vmax.f32 %v444_v57, 0.0  ;;  %v447_v4 = vadd.f32 %v9354_v60, %v12760_v30  ;;  %9738 = vmatpush3.bf16.msra.mxu0 %v11288_v45  ;;  %9767 = vmatprep.subr.bf16.mxu1 %v11291_v46  ;;  %v12850_v45 = vld [vmem:[%s11579_s8 + $0x1a0] sm:$0xff]  ;;  %v3808_v46 = vsel %vm263_vm0, %v8999_v28, %v10347_v2  ;;  %v10361_v50 = vunpack.i.l.bf16 %v12813_v54  ;;  %v11315_v2 = vld [vmem:[%s14524_s1 + $0x68] sm:$0xff]  }
 0x16b   : > { %698 = vst.msk [vmem:[#allocation2 + $0x14] sm:$0xff] %vm460_vm1, %v695_v62  ;;  %v696_v59 = vmax.f32 %v685_v36, 0.0  ;;  %v9383_v63 = vpop.f32.mrb[4].mxu1  ;;  %9739 = vmatprep.subr.bf16.mxu0 %v11290_v53  ;;  %v3814_v57 = vpack.c.bf16 %v3808_v46, %v3808_v46  ;;  %v4045_v60 = vsel %vm263_vm0, %v12838_v31, %v10351_v44  ;;  %v4282_v58 = vsel %vm263_vm0, %v12860_v56, %v10362_v48  ;;  %v11306_v36 = vld [vmem:[%s14524_s1 + $0x58] sm:$0xff]  }
 0x16c   : > { %461 = vst.msk [vmem:[#allocation2] sm:$0xff] %vm460_vm1, %v457_v10  ;;  %v458_v40 = vmax.f32 %v447_v4, 0.0  ;;  %v9355_v16 = vpop.f32.mrb[4].mxu0  ;;  %v9384_v17 = vpop.f32.mrb[5].mxu1  ;;  %v4281_v62 = vsel %vm263_vm0, %v12856_v52, %v10361_v50  ;;  %v11308_v4 = vld [vmem:[%s14524_s1 + $0x18] sm:$0xff]  }
 0x16d   : > { %699 = vst.msk [vmem:[#allocation2 + $0x1c] sm:$0xff] %vm460_vm1, %v696_v59  ;;  %v9356_v20 = vpop.f32.mrb[5].mxu0  ;;  %v9385_v3 = vadd.f32 %v9384_v17, %v9383_v63  ;;  %9768 = vmatpush3.bf16.msra.mxu1 %v11293_v55  ;;  %v9386_v33 = vpop.f32.mrb[6].mxu1  ;;  %v3572_v55 = vsel %vm263_vm0, %v8970_v27, %v10342_v38  ;;  %v4285_v8 = vpack.c.bf16 %v4282_v58, %v4281_v62  ;;  %v11313_v17 = vld [vmem:[%s14524_s1 + $0x20] sm:$0xff]   ;;  %v11316_v38 = vld [vmem:[%s14524_s1 + $0x28] sm:$0xff]   ;;  %v11323_v50 = vld [vmem:[%s14524_s1 + $0x78] sm:$0xff]  }
 0x16e   : > { %462 = vst.msk [vmem:[#allocation2 + $0x8] sm:$0xff] %vm460_vm1, %v458_v40  ;;  %v9357_v35 = vadd.f32 %v9356_v20, %v9355_v16  ;;  %9740 = vmatpush3.bf16.msra.mxu0 %v11292_v61  ;;  %9809 = vmatprep.subr.bf16.mxu1 %v11295_v51  ;;  %v9358_v41 = vpop.f32.mrb[6].mxu0  ;;  %v9387_v29 = vpop.f32.mrb[7].mxu1  ;;  %v4046_v61 = vsel %vm263_vm0, %v12850_v45, %v10352_v43  ;;  %v11310_v51 = vld [vmem:[%s14524_s1 + $0x60] sm:$0xff]  }
 0x16f   : > { %v690_v39 = vadd.f32 %v9385_v3, %v12760_v30  ;;  %9781 = vmatprep.subr.bf16.mxu0 %v11294_v32  ;;  %v9359_v34 = vpop.f32.mrb[7].mxu0  ;;  %v3578_v0 = vpack.c.bf16 %v3572_v55, %v3572_v55  ;;  %v4049_v32 = vpack.c.bf16 %v4046_v61, %v4045_v60  ;;  %v12887_v10 = vpop.permute.xlu1 %10354  ;;  %v11312_v16 = vld [vmem:[%s14524_s1 + $0x20] sm:$0xff]  }
 0x170   : > { %v452_v25 = vadd.f32 %v9357_v35, %v12760_v30  ;;  %3984 = vmatmul.mubr.bf16.vlgmr.msra.gmra.mrb[56].mxu1 %v3812_v12  ;;  %v12920_v33 = vpop.permute.xlu0 %10369  ;;  %v10356_v62 = vunpack.i.l.bf16 %v12887_v10 }
 0x171   : > { %v697_v49 = vmax.f32 %v690_v39, 0.0  ;;  %3748 = vmatmul.mubr.bf16.vlgmr.msra.gmra.mrb[56].mxu0 %v3576_v13  ;;  %9810 = vmatpush3.bf16.msra.mxu1 %v11297_v47  ;;  %v11311_v47 = vld [vmem:[%s14524_s1 + $0x60] sm:$0xff]   ;;  %v11314_v13 = vld [vmem:[%s14524_s1 + $0x68] sm:$0xff]   ;;  %v11318_v39 = vld [vmem:[%s14524_s1 + $0x70] sm:$0xff]  }
 0x172   : > { %v459_v53 = vmax.f32 %v452_v25, 0.0  ;;  %9782 = vmatpush3.bf16.msra.mxu0 %v11296_v18  ;;  %9811 = vmatprep.subr.bf16.mxu1 %v11299_v19 }
 0x173   : > { %700 = vst.msk [vmem:[#allocation2 + $0x24] sm:$0xf] %vm463_vm2, %v697_v49  ;;  %9783 = vmatprep.subr.bf16.mxu0 %v11298_v22  ;;  %3755 = vmatprep.mubr.bf16.mxu0 %v3579_v42  ;;  %v12914_v22 = vpop.permute.xlu1 %10364  ;;  %v11319_v42 = vld [vmem:[%s14524_s1 + $0x70] sm:$0xff]  }
 0x174   : > { %464 = vst.msk [vmem:[#allocation2 + $0x10] sm:$0xf] %vm463_vm2, %v459_v53  ;;  %3991 = vmatprep.mubr.bf16.mxu1 %v3815_v15  ;;  %v4971_v19 = vld [vmem:[#allocation2 + $0x14] ss:$2 sm:$0xff]  ;;  %v12938_v15 = vpop.permute.xlu0 %10379  ;;  %v10366_v46 = vunpack.i.l.bf16 %v12914_v22  ;;  %v10367_v60 = vunpack.i.h.bf16 %v12914_v22 }
 0x175   : > { %9812 = vmatpush3.bf16.msra.mxu1 %v11301_v26  ;;  %v4959_v40 = vld [vmem:[#allocation2 + $0x1] ss:$2 sm:$0xff]  ;;  %v11320_v49 = vld [vmem:[%s14524_s1 + $0x30] sm:$0xff]  }
 0x176   : > { %9784 = vmatpush3.bf16.msra.mxu0 %v11300_v23  ;;  %9813 = vmatprep.subr.bf16.mxu1 %v11303_v14  ;;  %v4975_v26 = vld [vmem:[#allocation2 + $0x15] ss:$2 sm:$0xff] }
 0x177   : > { %9785 = vmatprep.subr.bf16.mxu0 %v11302_v37  ;;  %v12932_v34 = vpop.permute.xlu1 %10374  ;;  %v11321_v23 = vld [vmem:[%s14524_s1 + $0x30] sm:$0xff]  }
 0x178   : > { %3992 = vmatmul.mubr.bf16.gmra.mrb[60].mxu1 %v3814_v57 }
 0x179   : > { %3756 = vmatmul.mubr.bf16.gmra.mrb[60].mxu0 %v3578_v0  ;;  %9814 = vmatpush3.bf16.msra.mxu1 %v11305_v7  ;;  %v10357_v7 = vunpack.i.h.bf16 %v12887_v10 }
 0x17a   : > { %9786 = vmatpush3.bf16.msra.mxu0 %v11304_v5  ;;  %9815 = vmatprep.subr.bf16.mxu1 %v11307_v9  ;;  %v4973_v21 = vld [vmem:[#allocation2 + $0x24] ss:$2 sm:$0x1]  ;;  %v4981_v28 = vld [vmem:[#allocation2 + $0x26] ss:$2 sm:$0x1] }
 0x17b   : > { %9787 = vmatprep.subr.bf16.mxu0 %v11306_v36  ;;  %v4963_v59 = vld [vmem:[#allocation2 + $0x2] ss:$2 sm:$0xff]  ;;  %v4965_v63 = vld [vmem:[#allocation2 + $0x12] ss:$2 sm:$0x1]  ;;  %4219 = vmatprep.mubr.bf16.mxu0 %v4049_v32  ;;  %v10423_v35 = vpack.i.bf16 %v4973_v21, %v4971_v19  ;;  %v4042_v19 = vsel %vm263_vm0, %v12689_v1, %v10356_v62  ;;  %v10381_v62 = vunpack.i.l.bf16 %v12938_v15 }
 0x17c   : > { %v10413_v54 = vpack.i.bf16 %v4965_v63, %v4963_v59  ;;  %v4961_v12 = vld [vmem:[#allocation2 + $0x11] ss:$2 sm:$0x1]  ;;  %4455 = vmatprep.mubr.bf16.mxu1 %v4285_v8  ;;  %v4969_v3 = vld [vmem:[#allocation2 + $0x13] ss:$2 sm:$0x1]  ;;  %v10371_v59 = vunpack.i.l.bf16 %v12920_v33 }
 0x17d   : > { %9816 = vmatpush3.bf16.msra.mxu1 %v11309_v11  ;;  %v10408_v18 = vpack.i.bf16 %v4961_v12, %v4959_v40  ;;  %v4967_v20 = vld [vmem:[#allocation2 + $0x3] ss:$2 sm:$0xff]  ;;  %v4979_v27 = vld [vmem:[#allocation2 + $0x16] ss:$2 sm:$0xff]  ;;  %v10376_v11 = vunpack.i.l.bf16 %v12932_v34 }
 0x17e   : > { %9788 = vmatpush3.bf16.msra.mxu0 %v11308_v4  ;;  %10414 = vrot.lane.b32.xlu1 %v10413_v54, %s11514_s9  ;;  %v4977_v41 = vld [vmem:[#allocation2 + $0x25] ss:$2 sm:$0x1]  ;;  %v10418_v29 = vpack.i.bf16 %v4969_v3, %v4967_v20  ;;  %v10433_v43 = vpack.i.bf16 %v4981_v28, %v4979_v27  ;;  %v4985_v48 = vld [vmem:[#allocation2 + $0x27] ss:$2 sm:$0x1] }
 0x17f   : > { %10409 = vrot.lane.b32.xlu0 %v10408_v18, %s11515_s13  ;;  %9789 = vmatprep.subr.bf16.mxu0 %v11310_v51  ;;  %v10428_v55 = vpack.i.bf16 %v4977_v41, %v4975_v26  ;;  %v4983_v61 = vld [vmem:[#allocation2 + $0x17] ss:$2 sm:$0xff]  ;;  %v4278_v51 = vsel %vm263_vm0, %v12838_v31, %v10366_v46  ;;  %v9034_v31 = vld [vmem:[%s11579_s8 + $0x1a8] sm:$0xf]  ;;  %v4043_v18 = vsel %vm263_vm0, %v12693_v6, %v10357_v7  ;;  %v10382_v7 = vunpack.i.h.bf16 %v12938_v15 }
 0x180   : > { %9817 = vmatprep.subr.bf16.mxu1 %v11311_v47  ;;  %v11322_v8 = vld [vmem:[%s14524_s1 + $0x78] sm:$0xff]   ;;  %v4279_v47 = vsel %vm263_vm0, %v12850_v45, %v10367_v60  ;;  %v10438_v40 = vpack.i.bf16 %v4985_v48, %v4983_v61  ;;  %v11326_v21 = vld [vmem:[%s14524_s1 + $0x40] sm:$0xff]   ;;  %v4047_v41 = vsel %vm263_vm0, %v9034_v31, %v10371_v59  ;;  %v9057_v46 = vld [vmem:[%s11579_s8 + $0x1a8] sm:$0xf] }
 0x181   : > { %9818 = vmatpush3.bf16.msra.mxu1 %v11313_v17  ;;  %v11324_v12 = vld [vmem:[%s14524_s1 + $0x38] sm:$0xff]   ;;  %v9063_v20 = vld [vmem:[%s11579_s8 + $0x1c0] sm:$0xf]  ;;  %v13016_v60 = vld [vmem:[%s11579_s8 + $0x1d0] sm:$0xff] }
 0x182   : > { %9790 = vmatpush3.bf16.msra.mxu0 %v11312_v16  ;;  %10424 = vrot.lane.b32.xlu1 %v10423_v35, %s11513_s11  ;;  %v11325_v16 = vld [vmem:[%s14524_s1 + $0x38] sm:$0xff]   ;;  %v11329_v6 = vld [vmem:[%s14524_s1] sm:$0xff]   ;;  %v9120_v15 = vld [vmem:[%s11579_s8 + $0x1e8] sm:$0xff] }
 0x183   : > { %10419 = vrot.lane.b32.xlu0 %v10418_v29, %s11516_s24  ;;  %9791 = vmatprep.subr.bf16.mxu0 %v11314_v13  ;;  %v9433_v25 = vpop.f32.mrb[8].mxu1  ;;  %v11327_v13 = vld [vmem:[%s14524_s1 + $0x40] sm:$0xff]   ;;  %v4048_v29 = vpack.c.bf16 %v4043_v18, %v4042_v19  ;;  %v11339_v31 = vld [vmem:[%s14524_s1 + $0x58] sm:$0xff]   ;;  %v13056_v19 = vpop.permute.xlu1 %10384 }
 0x184   : > { %v9405_v14 = vpop.f32.mrb[8].mxu0  ;;  %9819 = vmatprep.subr.bf16.mxu1 %v11315_v2  ;;  %v9434_v44 = vpop.f32.mrb[9].mxu1  ;;  %v11328_v35 = vld [vmem:[%s14524_s1] sm:$0xff]  }
 0x185   : > { %v9406_v53 = vpop.f32.mrb[9].mxu0  ;;  %9820 = vmatpush3.bf16.msra.mxu1 %v11317_v24  ;;  %v9435_v37 = vadd.f32 %v9434_v44, %v9433_v25  ;;  %v9436_v57 = vpop.f32.mrb[10].mxu1  ;;  %v4284_v24 = vpack.c.bf16 %v4279_v47, %v4278_v51  ;;  %v11330_v25 = vld [vmem:[%s14524_s1 + $0x48] sm:$0xff]  }
 0x186   : > { %v9407_v0 = vadd.f32 %v9406_v53, %v9405_v14  ;;  %v9408_v5 = vpop.f32.mrb[10].mxu0  ;;  %9792 = vmatpush3.bf16.msra.mxu0 %v11316_v38  ;;  %10434 = vrot.lane.b32.xlu1 %v10433_v43, %s11517_s6  ;;  %v9437_v58 = vpop.f32.mrb[11].mxu1  ;;  %v11331_v38 = vld [vmem:[%s14524_s1 + $0x48] sm:$0xff]   ;;  %v9028_v14 = vld [vmem:[%s11579_s8 + $0x190] sm:$0xf] }
 0x187   : > { %v9409_v9 = vpop.f32.mrb[11].mxu0  ;;  %10429 = vrot.lane.b32.xlu0 %v10428_v55, %s11518_s7  ;;  %v1154_v36 = vadd.f32 %v9435_v37, %v12760_v30  ;;  %9793 = vmatprep.subr.bf16.mxu0 %v11318_v39  ;;  %v9438_v32 = vadd.f32 %v9437_v58, %v9436_v57  ;;  %v12988_v2 = vpop.permute.xlu0 %10389  ;;  %v11333_v53 = vld [vmem:[%s14524_s1 + $0x8] sm:$0xff]   ;;  %v4051_v55 = vpack.c.bf16 %v4047_v41, %v4047_v41  ;;  %v11344_v41 = vld [vmem:[%s14524_s1 + $0x20] sm:$0xff]  }
 0x188   : > { %v918_v10 = vadd.f32 %v9407_v0, %v12760_v30  ;;  %v9410_v4 = vadd.f32 %v9409_v9, %v9408_v5  ;;  %9821 = vmatprep.subr.bf16.mxu1 %v11319_v42  ;;  %v10377_v42 = vunpack.i.h.bf16 %v12932_v34  ;;  %v13013_v57 = vld [vmem:[%s11579_s8 + $0x1c8] sm:$0xff]  ;;  %v11335_v5 = vld [vmem:[%s14524_s1 + $0x50] sm:$0xff]  }
 0x189   : > { %v1167_v63 = vmax.f32 %v1154_v36, 0.0  ;;  %9822 = vmatpush3.bf16.msra.mxu1 %v11321_v23  ;;  %v1157_v54 = vadd.f32 %v9438_v32, %v12760_v30  ;;  %v4283_v23 = vsel %vm263_vm0, %v9063_v20, %v10376_v11  ;;  %v11334_v36 = vld [vmem:[%s14524_s1 + $0x50] sm:$0xff]   ;;  %v10392_v32 = vunpack.i.h.bf16 %v12988_v2  ;;  %v9119_v11 = vld [vmem:[%s11579_s8 + $0x1e0] sm:$0xff] }
 0x18a   : > { %v931_v17 = vmax.f32 %v918_v10, 0.0  ;;  %v921_v45 = vadd.f32 %v9410_v4, %v12760_v30  ;;  %9794 = vmatpush3.bf16.msra.mxu0 %v11320_v49  ;;  %9823 = vmatprep.subr.bf16.mxu1 %v11323_v50  ;;  %v10372_v49 = vunpack.i.h.bf16 %v12920_v33  ;;  %v11332_v33 = vld [vmem:[%s14524_s1 + $0x8] sm:$0xff]   ;;  %v4287_v0 = vpack.c.bf16 %v4283_v23, %v4283_v23 }
 0x18b   : > { %1170 = vst.msk [vmem:[#allocation2 + $0x3c] sm:$0xff] %vm460_vm1, %v1167_v63  ;;  %v1168_v3 = vmax.f32 %v1157_v54, 0.0  ;;  %10439 = vrot.lane.b32.xlu0 %v10438_v40, %s11519_s25  ;;  %v9439_v1 = vpop.f32.mrb[12].mxu1  ;;  %9795 = vmatprep.subr.bf16.mxu0 %v11322_v8  ;;  %v4280_v9 = vsel %vm263_vm0, %v9057_v46, %v10377_v42  ;;  %v10391_v8 = vunpack.i.l.bf16 %v12988_v2  ;;  %v4517_v59 = vsel %vm263_vm0, %v13013_v57, %v10381_v62  ;;  %v11337_v54 = vld [vmem:[%s14524_s1 + $0x10] sm:$0xff]   ;;  %v11346_v42 = vld [vmem:[%s14524_s1 + $0x68] sm:$0xff]  }
 0x18c   : > { %934 = vst.msk [vmem:[#allocation2 + $0x28] sm:$0xff] %vm460_vm1, %v931_v17  ;;  %v932_v22 = vmax.f32 %v921_v45, 0.0  ;;  %v9411_v27 = vpop.f32.mrb[12].mxu0  ;;  %v9440_v28 = vpop.f32.mrb[13].mxu1  ;;  %v4044_v4 = vsel %vm263_vm0, %v9028_v14, %v10372_v49  ;;  %v4286_v51 = vpack.c.bf16 %v4280_v9, %v4280_v9  ;;  %v4518_v63 = vsel %vm263_vm0, %v13016_v60, %v10382_v7  ;;  %v11338_v17 = vld [vmem:[%s14524_s1 + $0x58] sm:$0xff]   ;;  %v11347_v23 = vld [vmem:[%s14524_s1 + $0x68] sm:$0xff]  }
 0x18d   : > { %1171 = vst.msk [vmem:[#allocation2 + $0x44] sm:$0xff] %vm460_vm1, %v1168_v3  ;;  %v9412_v39 = vpop.f32.mrb[13].mxu0  ;;  %v9441_v26 = vadd.f32 %v9440_v28, %v9439_v1  ;;  %9824 = vmatpush3.bf16.msra.mxu1 %v11325_v16  ;;  %v9442_v43 = vpop.f32.mrb[14].mxu1  ;;  %v4050_v47 = vpack.c.bf16 %v4044_v4, %v4044_v4  ;;  %v4753_v40 = vsel %vm263_vm0, %v9119_v11, %v10391_v8  ;;  %v11336_v16 = vld [vmem:[%s14524_s1 + $0x10] sm:$0xff]   ;;  %v11345_v28 = vld [vmem:[%s14524_s1 + $0x20] sm:$0xff]   ;;  %v11348_v14 = vld [vmem:[%s14524_s1 + $0x28] sm:$0xff]  }
 0x18e   : > { %935 = vst.msk [vmem:[#allocation2 + $0x30] sm:$0xff] %vm460_vm1, %v932_v22  ;;  %v9413_v44 = vadd.f32 %v9412_v39, %v9411_v27  ;;  %9796 = vmatpush3.bf16.msra.mxu0 %v11324_v12  ;;  %9865 = vmatprep.subr.bf16.mxu1 %v11327_v13  ;;  %v9414_v48 = vpop.f32.mrb[14].mxu0  ;;  %v9443_v34 = vpop.f32.mrb[15].mxu1  ;;  %v4754_v12 = vsel %vm263_vm0, %v9120_v15, %v10392_v32  ;;  %v11340_v13 = vld [vmem:[%s14524_s1 + $0x18] sm:$0xff]  }
 0x18f   : > { %v1162_v50 = vadd.f32 %v9441_v26, %v12760_v30  ;;  %9837 = vmatprep.subr.bf16.mxu0 %v11326_v21  ;;  %v9415_v37 = vpop.f32.mrb[15].mxu0  ;;  %v4521_v18 = vpack.c.bf16 %v4518_v63, %v4517_v59  ;;  %v4757_v45 = vpack.c.bf16 %v4754_v12, %v4753_v40  ;;  %v11341_v21 = vld [vmem:[%s14524_s1 + $0x18] sm:$0xff]   ;;  %v13077_v26 = vpop.permute.xlu1 %10394 }
 0x190   : > { %v926_v61 = vadd.f32 %v9413_v44, %v12760_v30  ;;  %4456 = vmatmul.mubr.bf16.vlgmr.msra.gmra.mrb[64].mxu1 %v4284_v24  ;;  %v11343_v24 = vld [vmem:[%s14524_s1 + $0x60] sm:$0xff]   ;;  %v11349_v44 = vld [vmem:[%s14524_s1 + $0x28] sm:$0xff]   ;;  %v10386_v37 = vunpack.i.l.bf16 %v13056_v19  ;;  %v13112_v7 = vpop.permute.xlu0 %10399  ;;  %v10396_v8 = vunpack.i.l.bf16 %v13077_v26  ;;  %v10397_v59 = vunpack.i.h.bf16 %v13077_v26  ;;  %v11354_v63 = vld [vmem:[%s14524_s1 + $0x78] sm:$0xff]  }
 0x191   : > { %v1169_v58 = vmax.f32 %v1162_v50, 0.0  ;;  %4220 = vmatmul.mubr.bf16.vlgmr.msra.gmra.mrb[64].mxu0 %v4048_v29  ;;  %9866 = vmatpush3.bf16.msra.mxu1 %v11329_v6  ;;  %v11342_v6 = vld [vmem:[%s14524_s1 + $0x60] sm:$0xff]   ;;  %v10387_v50 = vunpack.i.h.bf16 %v13056_v19 }
 0x192   : > { %v933_v10 = vmax.f32 %v926_v61, 0.0  ;;  %9838 = vmatpush3.bf16.msra.mxu0 %v11328_v35  ;;  %9867 = vmatprep.subr.bf16.mxu1 %v11331_v38 }
 0x193   : > { %1172 = vst.msk [vmem:[#allocation2 + $0x4c] sm:$0xf] %vm463_vm2, %v1169_v58  ;;  %9839 = vmatprep.subr.bf16.mxu0 %v11330_v25  ;;  %4227 = vmatprep.mubr.bf16.mxu0 %v4051_v55  ;;  %v13097_v55 = vpop.permute.xlu1 %10404  ;;  %v13126_v12 = vsel %vm263_vm0, %v12860_v56, %v10387_v50 }
 0x194   : > { %936 = vst.msk [vmem:[#allocation2 + $0x38] sm:$0xf] %vm463_vm2, %v933_v10  ;;  %4463 = vmatprep.mubr.bf16.mxu1 %v4287_v0  ;;  %v5003_v29 = vld [vmem:[#allocation2 + $0x3c] ss:$2 sm:$0xff]  ;;  %v5007_v49 = vld [vmem:[#allocation2 + $0x3d] ss:$2 sm:$0xff]  ;;  %v10406_v19 = vunpack.i.l.bf16 %v13097_v55 }
 0x195   : > { %9868 = vmatpush3.bf16.msra.mxu1 %v11333_v53  ;;  %v4991_v20 = vld [vmem:[#allocation2 + $0x29] ss:$2 sm:$0xff] }
 0x196   : > { %9840 = vmatpush3.bf16.msra.mxu0 %v11332_v33  ;;  %9869 = vmatprep.subr.bf16.mxu1 %v11335_v5  ;;  %v11350_v53 = vld [vmem:[%s14524_s1 + $0x70] sm:$0xff]   ;;  %v13104_v33 = vld [vmem:[%s14525_s2] ss:$0 sm:$0xff] }
 0x197   : > { %9841 = vmatprep.subr.bf16.mxu0 %v11334_v36  ;;  %v11351_v0 = vld [vmem:[%s14524_s1 + $0x70] sm:$0xff]  }
 0x198   : > { %4464 = vmatmul.mubr.bf16.gmra.mrb[68].mxu1 %v4286_v51  ;;  %v11353_v5 = vld [vmem:[%s14524_s1 + $0x30] sm:$0xff]  }
 0x199   : > { %4228 = vmatmul.mubr.bf16.gmra.mrb[68].mxu0 %v4050_v47  ;;  %9870 = vmatpush3.bf16.msra.mxu1 %v11337_v54  ;;  %v11352_v36 = vld [vmem:[%s14524_s1 + $0x30] sm:$0xff]  }
 0x19a   : > { %9842 = vmatpush3.bf16.msra.mxu0 %v11336_v16  ;;  %9871 = vmatprep.subr.bf16.mxu1 %v11339_v31  ;;  %v5005_v39 = vld [vmem:[#allocation2 + $0x4c] ss:$2 sm:$0x1]  ;;  %v5009_v46 = vld [vmem:[#allocation2 + $0x4d] ss:$2 sm:$0x1] }
 0x19b   : > { %9843 = vmatprep.subr.bf16.mxu0 %v11338_v17  ;;  %v4993_v3 = vld [vmem:[#allocation2 + $0x39] ss:$2 sm:$0x1]  ;;  %v4995_v1 = vld [vmem:[#allocation2 + $0x2a] ss:$2 sm:$0xff]  ;;  %4691 = vmatprep.mubr.bf16.mxu0 %v4521_v18  ;;  %v10458_v43 = vpack.i.bf16 %v5005_v39, %v5003_v29  ;;  %v10463_v58 = vpack.i.bf16 %v5009_v46, %v5007_v49  ;;  %v4751_v29 = vsel %vm263_vm0, %v13016_v60, %v10397_v59 }
 0x19c   : > { %v10443_v2 = vpack.i.bf16 %v4993_v3, %v4991_v20  ;;  %v4997_v22 = vld [vmem:[#allocation2 + $0x3a] ss:$2 sm:$0x1]  ;;  %4927 = vmatprep.mubr.bf16.mxu1 %v4757_v45  ;;  %v4999_v35 = vld [vmem:[#allocation2 + $0x2b] ss:$2 sm:$0xff] }
 0x19d   : > { %9872 = vmatpush3.bf16.msra.mxu1 %v11341_v21  ;;  %v10448_v27 = vpack.i.bf16 %v4997_v22, %v4995_v1  ;;  %v5001_v38 = vld [vmem:[#allocation2 + $0x3b] ss:$2 sm:$0x1]  ;;  %v5011_v48 = vld [vmem:[#allocation2 + $0x3e] ss:$2 sm:$0xff]  ;;  %v13136_v21 = vsel %vm263_vm0, %v12856_v52, %v10386_v37  ;;  %v4750_v52 = vsel %vm263_vm0, %v13013_v57, %v10396_v8 }
 0x19e   : > { %9844 = vmatpush3.bf16.msra.mxu0 %v11340_v13  ;;  %10444 = vrot.lane.b32.xlu1 %v10443_v2, %s11515_s13  ;;  %v10453_v25 = vpack.i.bf16 %v5001_v38, %v4999_v35  ;;  %v5013_v34 = vld [vmem:[#allocation2 + $0x4e] ss:$2 sm:$0x1]  ;;  %v5015_v32 = vld [vmem:[#allocation2 + $0x3f] ss:$2 sm:$0xff]  ;;  %v10401_v2 = vunpack.i.l.bf16 %v13112_v7  ;;  %v4520_v46 = vpack.c.bf16 %v13126_v12, %v13136_v21 }
 0x19f   : > { %10449 = vrot.lane.b32.xlu0 %v10448_v27, %s11514_s9  ;;  %9845 = vmatprep.subr.bf16.mxu0 %v11342_v6  ;;  %v10468_v10 = vpack.i.bf16 %v5013_v34, %v5011_v48  ;;  %v5017_v51 = vld [vmem:[#allocation2 + $0x4f] ss:$2 sm:$0x1]  ;;  %v9121_v47 = vld [vmem:[%s11579_s8 + $0x1f0] sm:$0xf]  ;;  %v11355_v18 = vld [vmem:[%s14524_s1 + $0x78] sm:$0xff]   ;;  %v4756_v34 = vpack.c.bf16 %v4751_v29, %v4750_v52 }
 0x1a0   : > { %9873 = vmatprep.subr.bf16.mxu1 %v11343_v24  ;;  %v5361_v16 = vld [vmem:[#allocation2 + $0x29] ss:$2 sm:$0xff]  ;;  %v5362_v31 = vld [vmem:[#allocation2 + $0x39] ss:$2 sm:$0x1]  ;;  %v10473_v27 = vpack.i.bf16 %v5017_v51, %v5015_v32  ;;  %v10402_v51 = vunpack.i.h.bf16 %v13112_v7 }
 0x1a1   : > { %9874 = vmatpush3.bf16.msra.mxu1 %v11345_v28  ;;  %v9092_v45 = vld [vmem:[%s11579_s8 + $0x1d8] sm:$0xf]  ;;  %v5369_v32 = vld [vmem:[#allocation2 + $0x3d] ss:$2 sm:$0xff] }
 0x1a2   : > { %9846 = vmatpush3.bf16.msra.mxu0 %v11344_v41  ;;  %10454 = vrot.lane.b32.xlu1 %v10453_v25, %s11516_s24  ;;  %v11357_v3 = vld [vmem:[%s14524_s1 + $0x38] sm:$0xff]   ;;  %v10478_v41 = vpack.i.bf16 %v5362_v31, %v5361_v16  ;;  %v4755_v25 = vsel %vm263_vm0, %v9121_v47, %v10406_v19  ;;  %v4519_v49 = vsel %vm263_vm0, %v9092_v45, %v10401_v2  ;;  %v11360_v16 = vld [vmem:[%s14526_s3 + $0x48] sm:$0xff]   ;;  %v11375_v19 = vld [vmem:[%s14526_s3] sm:$0xff]  }
 0x1a3   : > { %10459 = vrot.lane.b32.xlu0 %v10458_v43, %s11513_s11  ;;  %9847 = vmatprep.subr.bf16.mxu0 %v11346_v42  ;;  %v9489_v61 = vpop.f32.mrb[16].mxu1  ;;  %v5363_v1 = vld [vmem:[#allocation2 + $0x2a] ss:$2 sm:$0xff]  ;;  %v5364_v6 = vld [vmem:[#allocation2 + $0x3a] ss:$2 sm:$0x1]  ;;  %v4759_v8 = vpack.c.bf16 %v4755_v25, %v4755_v25  ;;  %v4523_v59 = vpack.c.bf16 %v4519_v49, %v4519_v49 }
 0x1a4   : > { %v9461_v62 = vpop.f32.mrb[16].mxu0  ;;  %9875 = vmatprep.subr.bf16.mxu1 %v11347_v23  ;;  %v9490_v9 = vpop.f32.mrb[17].mxu1  ;;  %v11356_v28 = vld [vmem:[%s14524_s1 + $0x38] sm:$0xff]   ;;  %v11502_v42 = vld [vmem:[%s14525_s2] ss:$0 sm:$0xff]  ;;  %v10483_v37 = vpack.i.bf16 %v5364_v6, %v5363_v1  ;;  %v11361_v1 = vld [vmem:[%s14526_s3 + $0x8] sm:$0xff]  }
 0x1a5   : > { %v9462_v11 = vpop.f32.mrb[17].mxu0  ;;  %9876 = vmatpush3.bf16.msra.mxu1 %v11349_v44  ;;  %v9491_v4 = vadd.f32 %v9490_v9, %v9489_v61  ;;  %v9492_v15 = vpop.f32.mrb[18].mxu1  ;;  %v5365_v35 = vld [vmem:[#allocation2 + $0x2b] ss:$2 sm:$0xff]  ;;  %v11358_v23 = vld [vmem:[%s14526_s3 + $0x40] sm:$0xff]  }
 0x1a6   : > { %v9463_v54 = vadd.f32 %v9462_v11, %v9461_v62  ;;  %v9464_v40 = vpop.f32.mrb[18].mxu0  ;;  %9848 = vmatpush3.bf16.msra.mxu0 %v11348_v14  ;;  %10464 = vrot.lane.b32.xlu1 %v10463_v58, %s11518_s7  ;;  %v9493_v17 = vpop.f32.mrb[19].mxu1  ;;  %v5367_v43 = vld [vmem:[#allocation2 + $0x3c] ss:$2 sm:$0xff] }
 0x1a7   : > { %10469 = vrot.lane.b32.xlu0 %v10468_v10, %s11517_s6  ;;  %v9465_v13 = vpop.f32.mrb[19].mxu0  ;;  %v1626_v56 = vadd.f32 %v9491_v4, %v13104_v33  ;;  %9849 = vmatprep.subr.bf16.mxu0 %v11350_v53  ;;  %v9494_v20 = vadd.f32 %v9493_v17, %v9492_v15  ;;  %v5368_v44 = vld [vmem:[#allocation2 + $0x4c] ss:$2 sm:$0x1]  ;;  %v9086_v11 = vld [vmem:[%s11579_s8 + $0x1c0] sm:$0xf] }
 0x1a8   : > { %v1390_v22 = vadd.f32 %v9463_v54, %v12760_v30  ;;  %v9466_v24 = vadd.f32 %v9465_v13, %v9464_v40  ;;  %9877 = vmatprep.subr.bf16.mxu1 %v11351_v0  ;;  %v5366_v30 = vld [vmem:[#allocation2 + $0x3b] ss:$2 sm:$0x1]  ;;  %v5370_v61 = vld [vmem:[#allocation2 + $0x4d] ss:$2 sm:$0x1]  ;;  %v10493_v17 = vpack.i.bf16 %v5368_v44, %v5367_v43 }
 0x1a9   : > { %v1639_v38 = vmax.f32 %v1626_v56, 0.0  ;;  %9878 = vmatpush3.bf16.msra.mxu1 %v11353_v5  ;;  %v1629_v39 = vadd.f32 %v9494_v20, %v13104_v33  ;;  %v9115_v0 = vld [vmem:[%s11579_s8 + $0x1d8] sm:$0xf]  ;;  %v11374_v5 = vld [vmem:[%s14526_s3 + $0x40] sm:$0xff]   ;;  %v10488_v9 = vpack.i.bf16 %v5366_v30, %v5365_v35  ;;  %v10498_v21 = vpack.i.bf16 %v5370_v61, %v5369_v32  ;;  %v11376_v56 = vld [vmem:[%s14526_s3 + $0x48] sm:$0xff]  }
 0x1aa   : > { %v1403_v26 = vmax.f32 %v1390_v22, 0.0  ;;  %v1393_v57 = vadd.f32 %v11502_v42, %v9466_v24  ;;  %9850 = vmatpush3.bf16.msra.mxu0 %v11352_v36  ;;  %10474 = vrot.lane.b32.xlu1 %v10473_v27, %s11519_s25  ;;  %v10407_v36 = vunpack.i.h.bf16 %v13097_v55  ;;  %v11359_v4 = vld [vmem:[%s14526_s3] sm:$0xff]   ;;  %v5372_v40 = vld [vmem:[#allocation2 + $0x4e] ss:$2 sm:$0x1]  ;;  %v11362_v22 = vld [vmem:[%s14526_s3 + $0x50] sm:$0xff]  }
 0x1ab   : > { %1642 = vst.msk [vmem:[#allocation2 + $0x64] sm:$0xff] %vm460_vm1, %v1639_v38  ;;  %10479 = vrot.lane.b32.xlu0 %v10478_v41, %s11515_s13  ;;  %v1640_v60 = vmax.f32 %v1629_v39, 0.0  ;;  %v9495_v14 = vpop.f32.mrb[20].mxu1  ;;  %9851 = vmatprep.subr.bf16.mxu0 %v11354_v63  ;;  %v5371_v54 = vld [vmem:[#allocation2 + $0x3e] ss:$2 sm:$0xff]  ;;  %v11363_v35 = vld [vmem:[%s14526_s3 + $0x10] sm:$0xff]  }
 0x1ac   : > { %1406 = vst.msk [vmem:[#allocation2 + $0x50] sm:$0xff] %vm460_vm1, %v1403_v26  ;;  %v1404_v48 = vmax.f32 %v1393_v57, 0.0  ;;  %v9467_v50 = vpop.f32.mrb[20].mxu0  ;;  %v9496_v53 = vpop.f32.mrb[21].mxu1  ;;  %9879 = vmatprep.subr.bf16.mxu1 %v11355_v18  ;;  %v5373_v18 = vld [vmem:[#allocation2 + $0x3f] ss:$2 sm:$0xff]  ;;  %v4752_v13 = vsel %vm263_vm0, %v9115_v0, %v10407_v36  ;;  %v10503_v6 = vpack.i.bf16 %v5372_v40, %v5371_v54 }
 0x1ad   : > { %1643 = vst.msk [vmem:[#allocation2 + $0x6c] sm:$0xff] %vm460_vm1, %v1640_v60  ;;  %v9468_v62 = vpop.f32.mrb[21].mxu0  ;;  %v9497_v58 = vadd.f32 %v9496_v53, %v9495_v14  ;;  %9880 = vmatpush3.bf16.msra.mxu1 %v11357_v3  ;;  %v9498_v10 = vpop.f32.mrb[22].mxu1  ;;  %v5374_v7 = vld [vmem:[#allocation2 + $0x4f] ss:$2 sm:$0x1]  ;;  %v4516_v3 = vsel %vm263_vm0, %v9086_v11, %v10402_v51  ;;  %v4758_v2 = vpack.c.bf16 %v4752_v13, %v4752_v13 }
 0x1ae   : > { %1407 = vst.msk [vmem:[#allocation2 + $0x58] sm:$0xff] %vm460_vm1, %v1404_v48  ;;  %v9469_v15 = vadd.f32 %v9468_v62, %v9467_v50  ;;  %9852 = vmatpush3.bf16.msra.mxu0 %v11356_v28  ;;  %10484 = vrot.lane.b32.xlu1 %v10483_v37, %s11514_s9  ;;  %v9470_v63 = vpop.f32.mrb[22].mxu0  ;;  %v9499_v47 = vpop.f32.mrb[23].mxu1  ;;  %v10508_v24 = vpack.i.bf16 %v5374_v7, %v5373_v18  ;;  %v11377_v52 = vld [vmem:[%s14526_s3 + $0x8] sm:$0xff]   ;;  %v11378_v28 = vld [vmem:[%s14526_s3 + $0x50] sm:$0xff]   ;;  %v11364_v38 = vld [vmem:[%s14526_s3 + $0x58] sm:$0xff]  }
 0x1af   : > { %v1634_v55 = vadd.f32 %v9497_v58, %v13104_v33  ;;  %10489 = vrot.lane.b32.xlu0 %v10488_v9, %s11516_s24  ;;  %v9471_v12 = vpop.f32.mrb[23].mxu0  ;;  %9893 = vmatprep.subr.bf16.mxu0 %v11358_v23  ;;  %v4522_v27 = vpack.c.bf16 %v4516_v3, %v4516_v3  ;;  %v11379_v41 = vld [vmem:[%s14526_s3 + $0x10] sm:$0xff]   ;;  %v11380_v39 = vld [vmem:[%s14526_s3 + $0x58] sm:$0xff]   ;;  %v11366_v23 = vld [vmem:[%s14526_s3 + $0x60] sm:$0xff]  }
 0x1b0   : > { %v1398_v31 = vadd.f32 %v11502_v42, %v9469_v15  ;;  %4928 = vmatmul.mubr.bf16.vlgmr.msra.gmra.mrb[72].mxu1 %v4756_v34  ;;  %9915 = vmatprep.subr.bf16.mxu1 %v11374_v5  ;;  %v11365_v42 = vld [vmem:[%s14526_s3 + $0x18] sm:$0xff]   ;;  %v11382_v48 = vld [vmem:[%s14526_s3 + $0x60] sm:$0xff]   ;;  %v11368_v53 = vld [vmem:[%s14526_s3 + $0x68] sm:$0xff]  }
 0x1b1   : > { %v1641_v45 = vmax.f32 %v1634_v55, 0.0  ;;  %4692 = vmatmul.mubr.bf16.vlgmr.msra.gmra.mrb[72].mxu0 %v4520_v46  ;;  %4935 = vmatprep.mubr.bf16.mxu1 %v4759_v8  ;;  %v11381_v44 = vld [vmem:[%s14526_s3 + $0x18] sm:$0xff]   ;;  %v11367_v34 = vld [vmem:[%s14526_s3 + $0x20] sm:$0xff]   ;;  %v11384_v9 = vld [vmem:[%s14526_s3 + $0x68] sm:$0xff]  }
 0x1b2   : > { %v1405_v20 = vmax.f32 %v1398_v31, 0.0  ;;  %10494 = vrot.lane.b32.xlu1 %v10493_v17, %s11513_s11  ;;  %4699 = vmatprep.mubr.bf16.mxu0 %v4523_v59  ;;  %v11383_v5 = vld [vmem:[%s14526_s3 + $0x20] sm:$0xff]   ;;  %v11369_v32 = vld [vmem:[%s14526_s3 + $0x28] sm:$0xff]   ;;  %v11370_v8 = vld [vmem:[%s14526_s3 + $0x70] sm:$0xff]  }
 0x1b3   : > { %1644 = vst.msk [vmem:[#allocation2 + $0x74] sm:$0xf] %vm463_vm2, %v1641_v45  ;;  %10499 = vrot.lane.b32.xlu0 %v10498_v21, %s11518_s7  ;;  %9894 = vmatpush3.bf16.msra.mxu0 %v11359_v4  ;;  %v11371_v54 = vld [vmem:[%s14526_s3 + $0x30] sm:$0xff]   ;;  %v11385_v40 = vld [vmem:[%s14526_s3 + $0x28] sm:$0xff]   ;;  %v11372_v7 = vld [vmem:[%s14526_s3 + $0x78] sm:$0xff]  }
 0x1b4   : > { %1408 = vst.msk [vmem:[#allocation2 + $0x60] sm:$0xf] %vm463_vm2, %v1405_v20  ;;  %9895 = vmatprep.subr.bf16.mxu0 %v11360_v16  ;;  %9916 = vmatpush3.bf16.msra.mxu1 %v11375_v19  ;;  %v5392_v49 = vld [vmem:[#allocation2 + $0x64] ss:$2 sm:$0xff]  ;;  %v5396_v61 = vld [vmem:[#allocation2 + $0x65] ss:$2 sm:$0xff] }
 0x1b5   : > { %9917 = vmatprep.subr.bf16.mxu1 %v11376_v56  ;;  %v5380_v29 = vld [vmem:[#allocation2 + $0x51] ss:$2 sm:$0xff] }
 0x1b6   : > { %10504 = vrot.lane.b32.xlu1 %v10503_v6, %s11517_s6  ;;  %v5758_v31 = vld [vmem:[#allocation2 + $0x51] ss:$2 sm:$0xff] }
 0x1b7   : > { %10509 = vrot.lane.b32.xlu0 %v10508_v24, %s11519_s25  ;;  %9896 = vmatpush3.bf16.msra.mxu0 %v11361_v1  ;;  %v11386_v19 = vld [vmem:[%s14526_s3 + $0x70] sm:$0xff]  }
 0x1b8   : > { %4936 = vmatmul.mubr.bf16.gmra.mrb[76].mxu1 %v4758_v2  ;;  %9897 = vmatprep.subr.bf16.mxu0 %v11362_v22  ;;  %v11387_v56 = vld [vmem:[%s14526_s3 + $0x30] sm:$0xff]  }
 0x1b9   : > { %4700 = vmatmul.mubr.bf16.gmra.mrb[76].mxu0 %v4522_v27  ;;  %9918 = vmatpush3.bf16.msra.mxu1 %v11377_v52  ;;  %v11373_v52 = vld [vmem:[%s14526_s3 + $0x38] sm:$0xff]  }
 0x1ba   : > { %9919 = vmatprep.subr.bf16.mxu1 %v11378_v28  ;;  %v5394_v46 = vld [vmem:[#allocation2 + $0x74] ss:$2 sm:$0x1]  ;;  %v5398_v0 = vld [vmem:[#allocation2 + $0x75] ss:$2 sm:$0x1] }
 0x1bb   : > { %v5382_v30 = vld [vmem:[#allocation2 + $0x61] ss:$2 sm:$0x1]  ;;  %v5384_v26 = vld [vmem:[#allocation2 + $0x52] ss:$2 sm:$0xff]  ;;  %9898 = vmatpush3.bf16.msra.mxu0 %v11363_v35  ;;  %v10528_v37 = vpack.i.bf16 %v5394_v46, %v5392_v49  ;;  %v10533_v10 = vpack.i.bf16 %v5398_v0, %v5396_v61 }
 0x1bc   : > { %v10513_v57 = vpack.i.bf16 %v5382_v30, %v5380_v29  ;;  %v5386_v25 = vld [vmem:[#allocation2 + $0x62] ss:$2 sm:$0x1]  ;;  %9899 = vmatprep.subr.bf16.mxu0 %v11364_v38  ;;  %v5388_v14 = vld [vmem:[#allocation2 + $0x53] ss:$2 sm:$0xff] }
 0x1bd   : > { %v10518_v60 = vpack.i.bf16 %v5386_v25, %v5384_v26  ;;  %v5390_v43 = vld [vmem:[#allocation2 + $0x63] ss:$2 sm:$0x1]  ;;  %9920 = vmatpush3.bf16.msra.mxu1 %v11379_v41  ;;  %v5400_v62 = vld [vmem:[#allocation2 + $0x66] ss:$2 sm:$0xff]  ;;  %v11388_v38 = vld [vmem:[%s14526_s3 + $0x78] sm:$0xff]  }
 0x1be   : > { %10514 = vrot.lane.b32.xlu1 %v10513_v57, %s11515_s13  ;;  %9921 = vmatprep.subr.bf16.mxu1 %v11380_v39  ;;  %v10523_v50 = vpack.i.bf16 %v5390_v43, %v5388_v14  ;;  %v5402_v58 = vld [vmem:[#allocation2 + $0x76] ss:$2 sm:$0x1]  ;;  %v5404_v15 = vld [vmem:[#allocation2 + $0x67] ss:$2 sm:$0xff] }
 0x1bf   : > { %10519 = vrot.lane.b32.xlu0 %v10518_v60, %s11514_s9  ;;  %9900 = vmatpush3.bf16.msra.mxu0 %v11365_v42  ;;  %v10538_v59 = vpack.i.bf16 %v5402_v58, %v5400_v62  ;;  %v5406_v55 = vld [vmem:[#allocation2 + $0x77] ss:$2 sm:$0x1]  ;;  %v5759_v17 = vld [vmem:[#allocation2 + $0x61] ss:$2 sm:$0x1] }
 0x1c0   : > { %9901 = vmatprep.subr.bf16.mxu0 %v11366_v23  ;;  %v10543_v1 = vpack.i.bf16 %v5406_v55, %v5404_v15  ;;  %v5762_v6 = vld [vmem:[#allocation2 + $0x53] ss:$2 sm:$0xff]  ;;  %v10548_v22 = vpack.i.bf16 %v5759_v17, %v5758_v31  ;;  %v5763_v27 = vld [vmem:[#allocation2 + $0x63] ss:$2 sm:$0x1] }
 0x1c1   : > { %9922 = vmatpush3.bf16.msra.mxu1 %v11381_v44  ;;  %v5764_v39 = vld [vmem:[#allocation2 + $0x64] ss:$2 sm:$0xff]  ;;  %v5765_v30 = vld [vmem:[#allocation2 + $0x74] ss:$2 sm:$0x1]  ;;  %v10553_v25 = vpack.i.bf16 %v5763_v27, %v5762_v6  ;;  %v11389_v23 = vld [vmem:[%s14526_s3 + $0x38] sm:$0xff]  }
 0x1c2   : > { %10524 = vrot.lane.b32.xlu1 %v10523_v50, %s11516_s24  ;;  %9923 = vmatprep.subr.bf16.mxu1 %v11382_v48  ;;  %v11390_v48 = vld [vmem:[%s14526_s3 + $0x40] sm:$0xff]   ;;  %v10558_v0 = vpack.i.bf16 %v5765_v30, %v5764_v39 }
 0x1c3   : > { %10529 = vrot.lane.b32.xlu0 %v10528_v37, %s11513_s11  ;;  %v9545_v36 = vpop.f32.mrb[24].mxu1  ;;  %9902 = vmatpush3.bf16.msra.mxu0 %v11367_v34  ;;  %v5766_v50 = vld [vmem:[#allocation2 + $0x65] ss:$2 sm:$0xff]  ;;  %v5760_v55 = vld [vmem:[#allocation2 + $0x52] ss:$2 sm:$0xff] }
 0x1c4   : > { %v9517_v11 = vpop.f32.mrb[24].mxu0  ;;  %v9546_v4 = vpop.f32.mrb[25].mxu1  ;;  %9903 = vmatprep.subr.bf16.mxu0 %v11368_v53  ;;  %v5767_v53 = vld [vmem:[#allocation2 + $0x75] ss:$2 sm:$0x1] }
 0x1c5   : > { %v9518_v51 = vpop.f32.mrb[25].mxu0  ;;  %v9547_v63 = vadd.f32 %v9546_v4, %v9545_v36  ;;  %v9548_v47 = vpop.f32.mrb[26].mxu1  ;;  %9924 = vmatpush3.bf16.msra.mxu1 %v11383_v5  ;;  %v10563_v58 = vpack.i.bf16 %v5767_v53, %v5766_v50  ;;  %v5769_v36 = vld [vmem:[#allocation2 + $0x76] ss:$2 sm:$0x1] }
 0x1c6   : > { %v9519_v12 = vadd.f32 %v9518_v51, %v9517_v11  ;;  %v9520_v16 = vpop.f32.mrb[26].mxu0  ;;  %10534 = vrot.lane.b32.xlu1 %v10533_v10, %s11518_s7  ;;  %v9549_v18 = vpop.f32.mrb[27].mxu1  ;;  %9925 = vmatprep.subr.bf16.mxu1 %v11384_v9  ;;  %v5768_v9 = vld [vmem:[#allocation2 + $0x66] ss:$2 sm:$0xff] }
 0x1c7   : > { %10539 = vrot.lane.b32.xlu0 %v10538_v59, %s11517_s6  ;;  %v9521_v45 = vpop.f32.mrb[27].mxu0  ;;  %v2098_v21 = vadd.f32 %v9547_v63, %v13104_v33  ;;  %v9550_v13 = vadd.f32 %v9549_v18, %v9548_v47  ;;  %9904 = vmatpush3.bf16.msra.mxu0 %v11369_v32  ;;  %v5770_v32 = vld [vmem:[#allocation2 + $0x67] ss:$2 sm:$0xff]  ;;  %v5771_v11 = vld [vmem:[#allocation2 + $0x77] ss:$2 sm:$0x1] }
 0x1c8   : > { %v1862_v20 = vadd.f32 %v9519_v12, %v13104_v33  ;;  %v9522_v3 = vadd.f32 %v9521_v45, %v9520_v16  ;;  %9905 = vmatprep.subr.bf16.mxu0 %v11370_v8  ;;  %v10568_v8 = vpack.i.bf16 %v5769_v36, %v5768_v9  ;;  %v10573_v15 = vpack.i.bf16 %v5771_v11, %v5770_v32  ;;  %v5761_v17 = vld [vmem:[#allocation2 + $0x62] ss:$2 sm:$0x1] }
 0x1c9   : > { %v2111_v2 = vmax.f32 %v2098_v21, 0.0  ;;  %v2101_v24 = vadd.f32 %v9550_v13, %v13104_v33  ;;  %9926 = vmatpush3.bf16.msra.mxu1 %v11385_v40 }
 0x1ca   : > { %v1875_v28 = vmax.f32 %v1862_v20, 0.0  ;;  %v1865_v35 = vadd.f32 %v9522_v3, %v13104_v33  ;;  %10544 = vrot.lane.b32.xlu1 %v10543_v1, %s11519_s25  ;;  %9927 = vmatprep.subr.bf16.mxu1 %v11386_v19 }
 0x1cb   : > { %2114 = vst.msk [vmem:[#allocation2 + $0x8c] sm:$0xff] %vm460_vm1, %v2111_v2  ;;  %10549 = vrot.lane.b32.xlu0 %v10548_v22, %s11515_s13  ;;  %v2112_v41 = vmax.f32 %v2101_v24, 0.0  ;;  %v9551_v29 = vpop.f32.mrb[28].mxu1  ;;  %9906 = vmatpush3.bf16.msra.mxu0 %v11371_v54 }
 0x1cc   : > { %1878 = vst.msk [vmem:[#allocation2 + $0x78] sm:$0xff] %vm460_vm1, %v1875_v28  ;;  %v1876_v26 = vmax.f32 %v1865_v35, 0.0  ;;  %v9523_v42 = vpop.f32.mrb[28].mxu0  ;;  %v9552_v57 = vpop.f32.mrb[29].mxu1  ;;  %9907 = vmatprep.subr.bf16.mxu0 %v11372_v7 }
 0x1cd   : > { %2115 = vst.msk [vmem:[#allocation2 + $0x94] sm:$0xff] %vm460_vm1, %v2112_v41  ;;  %v9524_v60 = vpop.f32.mrb[29].mxu0  ;;  %v9553_v14 = vadd.f32 %v9552_v57, %v9551_v29  ;;  %v9554_v43 = vpop.f32.mrb[30].mxu1  ;;  %9928 = vmatpush3.bf16.msra.mxu1 %v11387_v56 }
 0x1ce   : > { %1879 = vst.msk [vmem:[#allocation2 + $0x80] sm:$0xff] %vm460_vm1, %v1876_v26  ;;  %v9525_v44 = vadd.f32 %v9524_v60, %v9523_v42  ;;  %10554 = vrot.lane.b32.xlu1 %v10553_v25, %s11516_s24  ;;  %v9526_v49 = vpop.f32.mrb[30].mxu0  ;;  %v9555_v46 = vpop.f32.mrb[31].mxu1  ;;  %9929 = vmatprep.subr.bf16.mxu1 %v11388_v38 }
 0x1cf   : > { %v2106_v34 = vadd.f32 %v9553_v14, %v13104_v33  ;;  %v9527_v37 = vpop.f32.mrb[31].mxu0  ;;  %9908 = vmatpush3.bf16.msra.mxu0 %v11373_v52 }
 0x1d0   : > { %v1870_v61 = vadd.f32 %v9525_v44, %v13104_v33  ;;  %9937 = vmatprep.subr.bf16.mxu0 %v11390_v48 }
 0x1d1   : > { %v2113_v5 = vmax.f32 %v2106_v34, 0.0  ;;  %9930 = vmatpush3.bf16.msra.mxu1 %v11389_v23 }
 0x1d2   : > { %v1877_v62 = vmax.f32 %v1870_v61, 0.0  ;;  %10559 = vrot.lane.b32.xlu1 %v10558_v0, %s11513_s11 }
 0x1d3   : > { %2116 = vst.msk [vmem:[#allocation2 + $0x9c] sm:$0xf] %vm463_vm2, %v2113_v5 }
 0x1d4   : > { %1880 = vst.msk [vmem:[#allocation2 + $0x88] sm:$0xf] %vm463_vm2, %v1877_v62  ;;  %v5789_v12 = vld [vmem:[#allocation2 + $0x8c] ss:$2 sm:$0xff]  ;;  %v5793_v7 = vld [vmem:[#allocation2 + $0x8d] ss:$2 sm:$0xff] }
 0x1d5   : > { %v5777_v10 = vld [vmem:[#allocation2 + $0x79] ss:$2 sm:$0xff]  ;;  %v6154_v11 = vld [vmem:[#allocation2 + $0x8c] ss:$2 sm:$0xff] }
 0x1d6   : > { %10564 = vrot.lane.b32.xlu1 %v10563_v58, %s11518_s7  ;;  %v6148_v24 = vld [vmem:[#allocation2 + $0x79] ss:$2 sm:$0xff] }
 0x1da   : > { %10569 = vrot.lane.b32.xlu1 %v10568_v8, %s11517_s6  ;;  %v5791_v31 = vld [vmem:[#allocation2 + $0x9c] ss:$2 sm:$0x1]  ;;  %v5795_v56 = vld [vmem:[#allocation2 + $0x9d] ss:$2 sm:$0x1] }
 0x1db   : > { %v5779_v4 = vld [vmem:[#allocation2 + $0x89] ss:$2 sm:$0x1]  ;;  %v5781_v59 = vld [vmem:[#allocation2 + $0x7a] ss:$2 sm:$0xff]  ;;  %v10598_v21 = vpack.i.bf16 %v5791_v31, %v5789_v12  ;;  %v10603_v57 = vpack.i.bf16 %v5795_v56, %v5793_v7 }
 0x1dc   : > { %v10583_v51 = vpack.i.bf16 %v5779_v4, %v5777_v10  ;;  %v5785_v63 = vld [vmem:[#allocation2 + $0x7b] ss:$2 sm:$0xff]  ;;  %v5787_v47 = vld [vmem:[#allocation2 + $0x8b] ss:$2 sm:$0x1]  ;;  %v10578_v54 = vpack.i.bf16 %v5781_v59, %v5760_v55 }
 0x1dd   : > { %v10593_v40 = vpack.i.bf16 %v5787_v47, %v5785_v63  ;;  %v5783_v16 = vld [vmem:[#allocation2 + $0x8a] ss:$2 sm:$0x1]  ;;  %v6149_v6 = vld [vmem:[#allocation2 + $0x89] ss:$2 sm:$0x1] }
 0x1de   : > { %10574 = vrot.lane.b32.xlu1 %v10573_v15, %s11519_s25  ;;  %10584 = vrot.lane.b32.xlu0 %v10583_v51, %s11515_s13  ;;  %v10588_v45 = vpack.i.bf16 %v5761_v17, %v5783_v16  ;;  %v6150_v38 = vld [vmem:[#allocation2 + $0x7a] ss:$2 sm:$0xff]  ;;  %v6151_v41 = vld [vmem:[#allocation2 + $0x8a] ss:$2 sm:$0x1]  ;;  %v10618_v42 = vpack.i.bf16 %v6149_v6, %v6148_v24 }
 0x1df   : > { %v5797_v29 = vld [vmem:[#allocation2 + $0x8e] ss:$2 sm:$0xff]  ;;  %v5799_v39 = vld [vmem:[#allocation2 + $0x9e] ss:$2 sm:$0x1]  ;;  %v10623_v61 = vpack.i.bf16 %v6151_v41, %v6150_v38 }
 0x1e0   : > { %v6152_v49 = vld [vmem:[#allocation2 + $0x7b] ss:$2 sm:$0xff]  ;;  %v6153_v46 = vld [vmem:[#allocation2 + $0x8b] ss:$2 sm:$0x1]  ;;  %v10608_v0 = vpack.i.bf16 %v5799_v39, %v5797_v29 }
 0x1e1   : > { %v5801_v48 = vld [vmem:[#allocation2 + $0x8f] ss:$2 sm:$0xff]  ;;  %v5803_v34 = vld [vmem:[#allocation2 + $0x9f] ss:$2 sm:$0x1]  ;;  %v10628_v63 = vpack.i.bf16 %v6153_v46, %v6152_v49 }
 0x1e2   : > { %10579 = vrot.lane.b32.xlu1 %v10578_v54, %s11514_s9  ;;  %10594 = vrot.lane.b32.xlu0 %v10593_v40, %s11516_s24  ;;  %v6155_v10 = vld [vmem:[#allocation2 + $0x9c] ss:$2 sm:$0x1]  ;;  %v6160_v4 = vld [vmem:[#allocation2 + $0x8f] ss:$2 sm:$0xff]  ;;  %v10613_v47 = vpack.i.bf16 %v5803_v34, %v5801_v48 }
 0x1e3   : > { %v9601_v18 = vpop.f32.mrb[32].mxu1  ;;  %v6161_v15 = vld [vmem:[#allocation2 + $0x9f] ss:$2 sm:$0x1]  ;;  %v10633_v40 = vpack.i.bf16 %v6155_v10, %v6154_v11  ;;  %v6156_v16 = vld [vmem:[#allocation2 + $0x8d] ss:$2 sm:$0xff] }
 0x1e4   : > { %v9573_v19 = vpop.f32.mrb[32].mxu0  ;;  %v9602_v13 = vpop.f32.mrb[33].mxu1  ;;  %v10648_v12 = vpack.i.bf16 %v6161_v15, %v6160_v4  ;;  %v6157_v31 = vld [vmem:[#allocation2 + $0x9d] ss:$2 sm:$0x1] }
 0x1e5   : > { %v9574_v20 = vpop.f32.mrb[33].mxu0  ;;  %v9603_v3 = vadd.f32 %v9602_v13, %v9601_v18  ;;  %v9604_v1 = vpop.f32.mrb[34].mxu1  ;;  %v6159_v18 = vld [vmem:[#allocation2 + $0x9e] ss:$2 sm:$0x1]  ;;  %v10638_v7 = vpack.i.bf16 %v6157_v31, %v6156_v16 }
 0x1e6   : > { %v9575_v2 = vadd.f32 %v9574_v20, %v9573_v19  ;;  %v9576_v22 = vpop.f32.mrb[34].mxu0  ;;  %10589 = vrot.lane.b32.xlu1 %v10588_v45, %s11514_s9  ;;  %10599 = vrot.lane.b32.xlu0 %v10598_v21, %s11513_s11  ;;  %v9605_v27 = vpop.f32.mrb[35].mxu1  ;;  %v6158_v19 = vld [vmem:[#allocation2 + $0x8e] ss:$2 sm:$0xff] }
 0x1e7   : > { %v9577_v52 = vpop.f32.mrb[35].mxu0  ;;  %v2570_v28 = vadd.f32 %v9603_v3, %v13104_v33  ;;  %v9606_v35 = vadd.f32 %v9605_v27, %v9604_v1  ;;  %v10643_v56 = vpack.i.bf16 %v6159_v18, %v6158_v19 }
 0x1e8   : > { %v2334_v30 = vadd.f32 %v9575_v2, %v13104_v33  ;;  %v9578_v26 = vadd.f32 %v9577_v52, %v9576_v22 }
 0x1e9   : > { %v2583_v25 = vmax.f32 %v2570_v28, 0.0  ;;  %v2573_v23 = vadd.f32 %v9606_v35, %v13104_v33 }
 0x1ea   : > { %v2347_v60 = vmax.f32 %v2334_v30, 0.0  ;;  %v2337_v14 = vadd.f32 %v9578_v26, %v13104_v33  ;;  %10619 = vrot.lane.b32.xlu1 %v10618_v42, %s11515_s13  ;;  %10604 = vrot.lane.b32.xlu0 %v10603_v57, %s11518_s7 }
 0x1eb   : > { %2586 = vst.msk [vmem:[#allocation2 + $0xb4] sm:$0xff] %vm460_vm1, %v2583_v25  ;;  %v2584_v43 = vmax.f32 %v2573_v23, 0.0  ;;  %v9607_v44 = vpop.f32.mrb[36].mxu1 }
 0x1ec   : > { %2350 = vst.msk [vmem:[#allocation2 + $0xa0] sm:$0xff] %vm460_vm1, %v2347_v60  ;;  %v2348_v50 = vmax.f32 %v2337_v14, 0.0  ;;  %v9579_v53 = vpop.f32.mrb[36].mxu0  ;;  %v9608_v37 = vpop.f32.mrb[37].mxu1 }
 0x1ed   : > { %2587 = vst.msk [vmem:[#allocation2 + $0xbc] sm:$0xff] %vm460_vm1, %v2584_v43  ;;  %v9580_v5 = vpop.f32.mrb[37].mxu0  ;;  %v9609_v62 = vadd.f32 %v9608_v37, %v9607_v44  ;;  %v9610_v58 = vpop.f32.mrb[38].mxu1 }
 0x1ee   : > { %2351 = vst.msk [vmem:[#allocation2 + $0xa8] sm:$0xff] %vm460_vm1, %v2348_v50  ;;  %v9581_v9 = vadd.f32 %v9580_v5, %v9579_v53  ;;  %10624 = vrot.lane.b32.xlu1 %v10623_v61, %s11514_s9  ;;  %10609 = vrot.lane.b32.xlu0 %v10608_v0, %s11517_s6  ;;  %v9582_v36 = vpop.f32.mrb[38].mxu0  ;;  %v9611_v32 = vpop.f32.mrb[39].mxu1  ;;  %v11503_v53 = vld [vmem:[%s14525_s2] ss:$0 sm:$0xff] }
 0x1ef   : > { %v2578_v8 = vadd.f32 %v9609_v62, %v13104_v33  ;;  %v9583_v51 = vpop.f32.mrb[39].mxu0 }
 0x1f0   : > { %v2342_v59 = vadd.f32 %v9581_v9, %v13104_v33  ;;  %v11406_v33 = vld [vmem:[%s14526_s3 + $0x40] sm:$0xff]   ;;  %v13335_v13 = vpop.permute.xlu1 %10414 }
 0x1f1   : > { %v2585_v55 = vmax.f32 %v2578_v8, 0.0  ;;  %v13332_v17 = vpop.permute.xlu0 %10409  ;;  %9959 = vmatprep.subr.bf16.mxu1 %v11406_v33 }
 0x1f2   : > { %v2349_v54 = vmax.f32 %v2342_v59, 0.0  ;;  %10629 = vrot.lane.b32.xlu1 %v10628_v63, %s11516_s24  ;;  %10614 = vrot.lane.b32.xlu0 %v10613_v47, %s11519_s25  ;;  %v10412_v4 = vunpack.i.h.bf16 %v13332_v17  ;;  %v10411_v15 = vunpack.i.l.bf16 %v13332_v17  ;;  %v4957_v47 = vld [vmem:[#allocation2 + $0x10] ss:$2 sm:$0x1] }
 0x1f3   : > { %2588 = vst.msk [vmem:[#allocation2 + $0xc4] sm:$0xf] %vm463_vm2, %v2585_v55  ;;  %v4955_v55 = vld [vmem:[#allocation2] ss:$2 sm:$0xff] }
 0x1f4   : > { %2352 = vst.msk [vmem:[#allocation2 + $0xb0] sm:$0xf] %vm463_vm2, %v2349_v54  ;;  %v13341_v41 = vpop.permute.xlu1 %10424  ;;  %v6179_v60 = vld [vmem:[#allocation2 + $0xb4] ss:$2 sm:$0xff]  ;;  %v6183_v62 = vld [vmem:[#allocation2 + $0xb5] ss:$2 sm:$0xff] }
 0x1f5   : > { %v6167_v45 = vld [vmem:[#allocation2 + $0xa1] ss:$2 sm:$0xff]  ;;  %v13337_v1 = vpop.permute.xlu0 %10419  ;;  %v6554_v0 = vld [vmem:[#allocation2 + $0xb4] ss:$2 sm:$0xff] }
 0x1f6   : > { %10634 = vrot.lane.b32.xlu1 %v10633_v40, %s11513_s11  ;;  %10649 = vrot.lane.b32.xlu0 %v10648_v12, %s11519_s25  ;;  %v6548_v22 = vld [vmem:[#allocation2 + $0xa1] ss:$2 sm:$0xff] }
 0x1f7   : > { %v6556_v16 = vld [vmem:[#allocation2 + $0xb5] ss:$2 sm:$0xff] }
 0x1f8   : > { %v13354_v51 = vpop.permute.xlu1 %10434 }
 0x1f9   : > { %v13345_v29 = vpop.permute.xlu0 %10429 }
 0x1fa   : > { %10639 = vrot.lane.b32.xlu1 %v10638_v7, %s11518_s7  ;;  %v6181_v30 = vld [vmem:[#allocation2 + $0xc4] ss:$2 sm:$0x1]  ;;  %v6185_v10 = vld [vmem:[#allocation2 + $0xc5] ss:$2 sm:$0x1] }
 0x1fb   : > { %v6169_v21 = vld [vmem:[#allocation2 + $0xb1] ss:$2 sm:$0x1]  ;;  %v6171_v6 = vld [vmem:[#allocation2 + $0xa2] ss:$2 sm:$0xff]  ;;  %v10668_v32 = vpack.i.bf16 %v6181_v30, %v6179_v60 }
 0x1fc   : > { %v10653_v20 = vpack.i.bf16 %v6169_v21, %v6167_v45  ;;  %v6549_v3 = vld [vmem:[#allocation2 + $0xb1] ss:$2 sm:$0x1]  ;;  %v6173_v2 = vld [vmem:[#allocation2 + $0xb2] ss:$2 sm:$0x1]  ;;  %v10673_v21 = vpack.i.bf16 %v6185_v10, %v6183_v62 }
 0x1fd   : > { %v10688_v24 = vpack.i.bf16 %v6549_v3, %v6548_v22  ;;  %v10658_v27 = vpack.i.bf16 %v6173_v2, %v6171_v6  ;;  %v6550_v52 = vld [vmem:[#allocation2 + $0xa2] ss:$2 sm:$0xff]  ;;  %v6551_v28 = vld [vmem:[#allocation2 + $0xb2] ss:$2 sm:$0x1]  ;;  %v13358_v54 = vpop.permute.xlu0 %10439  ;;  %v10417_v2 = vunpack.i.h.bf16 %v13335_v13  ;;  %v5131_v22 = vsel %vm460_vm1, %v4957_v47, %v10412_v4 }
 0x1fe   : > { %10644 = vrot.lane.b32.xlu1 %v10643_v56, %s11517_s6  ;;  %10654 = vrot.lane.b32.xlu0 %v10653_v20, %s11515_s13  ;;  %v6175_v35 = vld [vmem:[#allocation2 + $0xa3] ss:$2 sm:$0xff]  ;;  %v6177_v38 = vld [vmem:[#allocation2 + $0xb3] ss:$2 sm:$0x1]  ;;  %v10693_v42 = vpack.i.bf16 %v6551_v28, %v6550_v52  ;;  %v10416_v56 = vunpack.i.l.bf16 %v13335_v13  ;;  %v10437_v4 = vunpack.i.h.bf16 %v13354_v51 }
 0x1ff   : > { %v10663_v57 = vpack.i.bf16 %v6177_v38, %v6175_v35  ;;  %v6552_v23 = vld [vmem:[#allocation2 + $0xa3] ss:$2 sm:$0xff]  ;;  %v6553_v49 = vld [vmem:[#allocation2 + $0xb3] ss:$2 sm:$0x1]  ;;  %v10427_v35 = vunpack.i.h.bf16 %v13341_v41  ;;  %v10422_v38 = vunpack.i.h.bf16 %v13337_v1 }
 0x200   : > { %v6555_v5 = vld [vmem:[#allocation2 + $0xc4] ss:$2 sm:$0x1]  ;;  %v10698_v36 = vpack.i.bf16 %v6553_v49, %v6552_v23  ;;  %v6557_v31 = vld [vmem:[#allocation2 + $0xc5] ss:$2 sm:$0x1] }
 0x201   : > { %v6187_v33 = vld [vmem:[#allocation2 + $0xb6] ss:$2 sm:$0xff]  ;;  %v6189_v17 = vld [vmem:[#allocation2 + $0xc6] ss:$2 sm:$0x1]  ;;  %v10703_v45 = vpack.i.bf16 %v6555_v5, %v6554_v0 }
 0x202   : > { %10689 = vrot.lane.b32.xlu1 %v10688_v24, %s11515_s13  ;;  %10659 = vrot.lane.b32.xlu0 %v10658_v27, %s11514_s9  ;;  %v5130_v24 = vsel %vm460_vm1, %v4955_v55, %v10411_v15  ;;  %v6558_v30 = vld [vmem:[#allocation2 + $0xb6] ss:$2 sm:$0xff]  ;;  %v10678_v49 = vpack.i.bf16 %v6189_v17, %v6187_v33  ;;  %v6560_v47 = vld [vmem:[#allocation2 + $0xb7] ss:$2 sm:$0xff] }
 0x203   : > { %v9657_v39 = vpop.f32.mrb[40].mxu1  ;;  %v4987_v60 = vld [vmem:[#allocation2 + $0x28] ss:$2 sm:$0xff]  ;;  %v6561_v55 = vld [vmem:[#allocation2 + $0xc7] ss:$2 sm:$0x1] }
 0x204   : > { %v9629_v26 = vpop.f32.mrb[40].mxu0  ;;  %v9658_v25 = vpop.f32.mrb[41].mxu1 }
 0x205   : > { %v9630_v14 = vpop.f32.mrb[41].mxu0  ;;  %v9659_v43 = vadd.f32 %v9658_v25, %v9657_v39  ;;  %v9660_v44 = vpop.f32.mrb[42].mxu1  ;;  %v10421_v39 = vunpack.i.l.bf16 %v13337_v1  ;;  %v10426_v25 = vunpack.i.l.bf16 %v13341_v41 }
 0x206   : > { %v9631_v46 = vadd.f32 %v9630_v14, %v9629_v26  ;;  %v9632_v48 = vpop.f32.mrb[42].mxu0  ;;  %10694 = vrot.lane.b32.xlu1 %v10693_v42, %s11514_s9  ;;  %10664 = vrot.lane.b32.xlu0 %v10663_v57, %s11516_s24  ;;  %v9661_v34 = vpop.f32.mrb[43].mxu1  ;;  %v6559_v26 = vld [vmem:[#allocation2 + $0xc6] ss:$2 sm:$0x1] }
 0x207   : > { %v9633_v50 = vpop.f32.mrb[43].mxu0  ;;  %v3042_v37 = vadd.f32 %v11503_v53, %v9659_v43  ;;  %v9662_v61 = vadd.f32 %v9661_v34, %v9660_v44  ;;  %v6193_v42 = vld [vmem:[#allocation2 + $0xc7] ss:$2 sm:$0x1]  ;;  %v10708_v44 = vpack.i.bf16 %v6557_v31, %v6556_v16 }
 0x208   : > { %v2806_v58 = vadd.f32 %v11503_v53, %v9631_v46  ;;  %v9634_v9 = vadd.f32 %v9633_v50, %v9632_v48  ;;  %v4989_v14 = vld [vmem:[#allocation2 + $0x38] ss:$2 sm:$0x1]  ;;  %v6191_v46 = vld [vmem:[#allocation2 + $0xb7] ss:$2 sm:$0xff]  ;;  %v5133_v48 = vsel %vm5132_vm3, %v5130_v24, %v10416_v56  ;;  %v10718_v56 = vpack.i.bf16 %v6561_v55, %v6560_v47 }
 0x209   : > { %v3055_v8 = vmax.f32 %v3042_v37, 0.0  ;;  %v3045_v11 = vadd.f32 %v11503_v53, %v9662_v61  ;;  %v5134_v61 = vsel %vm5132_vm3, %v5131_v22, %v10417_v2  ;;  %v5136_v41 = vsel %vm5135_vm4, %v5133_v48, %v10421_v39 }
 0x20a   : > { %v2819_v59 = vmax.f32 %v2806_v58, 0.0  ;;  %v2809_v63 = vadd.f32 %v11503_v53, %v9634_v9  ;;  %10699 = vrot.lane.b32.xlu1 %v10698_v36, %s11516_s24  ;;  %10669 = vrot.lane.b32.xlu0 %v10668_v32, %s11513_s11  ;;  %v10432_v36 = vunpack.i.h.bf16 %v13345_v29  ;;  %v10431_v32 = vunpack.i.l.bf16 %v13345_v29 }
 0x20b   : > { %3058 = vst.msk [vmem:[#allocation2 + $0xdc] sm:$0xff] %vm460_vm1, %v3055_v8  ;;  %v3056_v40 = vmax.f32 %v3045_v11, 0.0  ;;  %v9663_v12 = vpop.f32.mrb[44].mxu1  ;;  %v10713_v11 = vpack.i.bf16 %v6559_v26, %v6558_v30  ;;  %v10683_v10 = vpack.i.bf16 %v6193_v42, %v6191_v46  ;;  %v5138_v29 = vsel %vm263_vm0, %v5136_v41, %v10426_v25  ;;  %v11391_v41 = vld [vmem:[%s14526_s3] sm:$0xff]  }
 0x20c   : > { %2822 = vst.msk [vmem:[#allocation2 + $0xc8] sm:$0xff] %vm460_vm1, %v2819_v59  ;;  %v2820_v18 = vmax.f32 %v2809_v63, 0.0  ;;  %v9635_v7 = vpop.f32.mrb[44].mxu0  ;;  %v9664_v19 = vpop.f32.mrb[45].mxu1 }
 0x20d   : > { %3059 = vst.msk [vmem:[#allocation2 + $0xe4] sm:$0xff] %vm460_vm1, %v3056_v40  ;;  %v9636_v20 = vpop.f32.mrb[45].mxu0  ;;  %v9665_v3 = vadd.f32 %v9664_v19, %v9663_v12  ;;  %v9666_v6 = vpop.f32.mrb[46].mxu1  ;;  %v5141_v19 = vsel %vm5140_vm5, %v5138_v29, %v10431_v32 }
 0x20e   : > { %2823 = vst.msk [vmem:[#allocation2 + $0xd0] sm:$0xff] %vm460_vm1, %v2820_v18  ;;  %v9637_v27 = vadd.f32 %v9636_v20, %v9635_v7  ;;  %10704 = vrot.lane.b32.xlu1 %v10703_v45, %s11513_s11  ;;  %10674 = vrot.lane.b32.xlu0 %v10673_v21, %s11518_s7  ;;  %v9638_v52 = vpop.f32.mrb[46].mxu0  ;;  %v9667_v28 = vpop.f32.mrb[47].mxu1  ;;  %v10436_v7 = vunpack.i.l.bf16 %v13354_v51  ;;  %v10442_v20 = vunpack.i.h.bf16 %v13358_v54 }
 0x20f   : > { %v3050_v13 = vadd.f32 %v11503_v53, %v9665_v3  ;;  %v9639_v57 = vpop.f32.mrb[47].mxu0  ;;  %v10441_v3 = vunpack.i.l.bf16 %v13358_v54 }
 0x210   : > { %v2814_v23 = vadd.f32 %v11503_v53, %v9637_v27  ;;  %v10445_v43 = vpop.permute.xlu1 %10444  ;;  %v5137_v53 = vsel %vm5135_vm4, %v5134_v61, %v10422_v38  ;;  %v5144_v54 = vsel %vm5143_vm6, %v5141_v19, %v10436_v7 }
 0x211   : > { %v3057_v34 = vmax.f32 %v3050_v13, 0.0  ;;  %v10447_v50 = vunpack.i.h.bf16 %v10445_v43  ;;  %v10446_v37 = vunpack.i.l.bf16 %v10445_v43  ;;  %v10450_v1 = vpop.permute.xlu0 %10449  ;;  %v5139_v33 = vsel %vm263_vm0, %v5137_v53, %v10427_v35 }
 0x212   : > { %v2821_v0 = vmax.f32 %v2814_v23, 0.0  ;;  %v10452_v5 = vunpack.i.h.bf16 %v10450_v1  ;;  %v10451_v62 = vunpack.i.l.bf16 %v10450_v1  ;;  %10709 = vrot.lane.b32.xlu1 %v10708_v44, %s11518_s7  ;;  %10679 = vrot.lane.b32.xlu0 %v10678_v49, %s11517_s6  ;;  %v5142_v45 = vsel %vm5140_vm5, %v5139_v33, %v10432_v36 }
 0x213   : > { %3060 = vst.msk [vmem:[#allocation2 + $0xec] sm:$0xf] %vm463_vm2, %v3057_v34  ;;  %v5150_v58 = vsel %vm460_vm1, %v4989_v14, %v10447_v50  ;;  %v5149_v9 = vsel %vm460_vm1, %v4987_v60, %v10446_v37  ;;  %v5145_v57 = vsel %vm5143_vm6, %v5142_v45, %v10437_v4  ;;  %v5147_v44 = vsel %vm5146_vm7, %v5144_v54, %v10441_v3  ;;  %v13432_v4 = vld [vmem:[%s14525_s2] ss:$0 sm:$0xff] }
 0x214   : > { %2824 = vst.msk [vmem:[#allocation2 + $0xd8] sm:$0xf] %vm463_vm2, %v2821_v0  ;;  %v10455_v8 = vpop.permute.xlu1 %10454  ;;  %v5152_v40 = vsel %vm5132_vm3, %v5150_v58, %v10452_v5  ;;  %v5151_v12 = vsel %vm5132_vm3, %v5149_v9, %v10451_v62  ;;  %v5148_v49 = vsel %vm5146_vm7, %v5145_v57, %v10442_v20 }
 0x215   : > { %v10457_v15 = vunpack.i.h.bf16 %v10455_v8  ;;  %v10456_v59 = vunpack.i.l.bf16 %v10455_v8  ;;  %v10460_v63 = vpop.permute.xlu0 %10459  ;;  %v6567_v51 = vld [vmem:[#allocation2 + $0xc9] ss:$2 sm:$0xff]  ;;  %v5163_v53 = vpack.c.bf16 %v5148_v49, %v5147_v44 }
 0x216   : > { %v10462_v16 = vunpack.i.h.bf16 %v10460_v63  ;;  %v10461_v31 = vunpack.i.l.bf16 %v10460_v63  ;;  %10714 = vrot.lane.b32.xlu1 %v10713_v11, %s11517_s6  ;;  %10684 = vrot.lane.b32.xlu0 %v10683_v10, %s11519_s25  ;;  %v6939_v37 = vld [vmem:[#allocation2 + $0xc9] ss:$2 sm:$0xff]  ;;  %v6579_v11 = vld [vmem:[#allocation2 + $0xdc] ss:$2 sm:$0xff] }
 0x217   : > { %v5153_v17 = vsel %vm5135_vm4, %v5151_v12, %v10456_v59  ;;  %v5154_v18 = vsel %vm5135_vm4, %v5152_v40, %v10457_v15  ;;  %v11392_v8 = vld [vmem:[%s14526_s3 + $0x48] sm:$0xff]  }
 0x218   : > { %v10465_v21 = vpop.permute.xlu1 %10464  ;;  %v5155_v24 = vsel %vm263_vm0, %v5153_v17, %v10461_v31  ;;  %v5156_v27 = vsel %vm263_vm0, %v5154_v18, %v10462_v16  ;;  %v11393_v59 = vld [vmem:[%s14526_s3 + $0x8] sm:$0xff]   ;;  %v11394_v16 = vld [vmem:[%s14526_s3 + $0x50] sm:$0xff]  }
 0x219   : > { %v10467_v6 = vunpack.i.h.bf16 %v10465_v21  ;;  %v10466_v2 = vunpack.i.l.bf16 %v10465_v21  ;;  %v10470_v22 = vpop.permute.xlu0 %10469  ;;  %v6583_v12 = vld [vmem:[#allocation2 + $0xdd] ss:$2 sm:$0xff]  ;;  %v11395_v21 = vld [vmem:[%s14526_s3 + $0x10] sm:$0xff]  }
 0x21a   : > { %v10472_v52 = vunpack.i.h.bf16 %v10470_v22  ;;  %v10471_v28 = vunpack.i.l.bf16 %v10470_v22  ;;  %10719 = vrot.lane.b32.xlu1 %v10718_v56, %s11519_s25  ;;  %v6581_v10 = vld [vmem:[#allocation2 + $0xec] ss:$2 sm:$0x1]  ;;  %v6585_v45 = vld [vmem:[#allocation2 + $0xed] ss:$2 sm:$0x1] }
 0x21b   : > { %v5157_v35 = vsel %vm5140_vm5, %v5155_v24, %v10466_v2  ;;  %v5158_v38 = vsel %vm5140_vm5, %v5156_v27, %v10467_v6  ;;  %v6569_v39 = vld [vmem:[#allocation2 + $0xd9] ss:$2 sm:$0x1]  ;;  %v6571_v13 = vld [vmem:[#allocation2 + $0xca] ss:$2 sm:$0xff]  ;;  %v10738_v33 = vpack.i.bf16 %v6581_v10, %v6579_v11 }
 0x21c   : > { %v10475_v30 = vpop.permute.xlu1 %10474  ;;  %v10723_v26 = vpack.i.bf16 %v6569_v39, %v6567_v51  ;;  %v6573_v42 = vld [vmem:[#allocation2 + $0xda] ss:$2 sm:$0x1]  ;;  %v6940_v43 = vld [vmem:[#allocation2 + $0xd9] ss:$2 sm:$0x1]  ;;  %v5159_v34 = vsel %vm5143_vm6, %v5157_v35, %v10471_v28  ;;  %v5160_v50 = vsel %vm5143_vm6, %v5158_v38, %v10472_v52  ;;  %v10743_v39 = vpack.i.bf16 %v6585_v45, %v6583_v12 }
 0x21d   : > { %v10477_v25 = vunpack.i.h.bf16 %v10475_v30  ;;  %v10476_v23 = vunpack.i.l.bf16 %v10475_v30  ;;  %v13407_v60 = vpop.permute.xlu0 %10479  ;;  %v10728_v14 = vpack.i.bf16 %v6573_v42, %v6571_v13  ;;  %v6575_v46 = vld [vmem:[#allocation2 + $0xcb] ss:$2 sm:$0xff]  ;;  %v6577_v48 = vld [vmem:[#allocation2 + $0xdb] ss:$2 sm:$0x1]  ;;  %v10758_v5 = vpack.i.bf16 %v6940_v43, %v6939_v37  ;;  %v11399_v45 = vld [vmem:[%s14526_s3 + $0x20] sm:$0xff]  }
 0x21e   : > { %10724 = vrot.lane.b32.xlu1 %v10723_v26, %s11515_s13  ;;  %v10733_v9 = vpack.i.bf16 %v6577_v48, %v6575_v46  ;;  %v6941_v36 = vld [vmem:[#allocation2 + $0xca] ss:$2 sm:$0xff]  ;;  %v6942_v32 = vld [vmem:[#allocation2 + $0xda] ss:$2 sm:$0x1]  ;;  %v10482_v54 = vunpack.i.h.bf16 %v13407_v60  ;;  %v10481_v30 = vunpack.i.l.bf16 %v13407_v60 }
 0x21f   : > { %10729 = vrot.lane.b32.xlu0 %v10728_v14, %s11514_s9  ;;  %v5161_v1 = vsel %vm5146_vm7, %v5159_v34, %v10476_v23  ;;  %v5162_v61 = vsel %vm5146_vm7, %v5160_v50, %v10477_v25  ;;  %v10763_v55 = vpack.i.bf16 %v6942_v32, %v6941_v36  ;;  %v6943_v40 = vld [vmem:[#allocation2 + $0xcb] ss:$2 sm:$0xff]  ;;  %v6944_v17 = vld [vmem:[#allocation2 + $0xdb] ss:$2 sm:$0x1] }
 0x220   : > { %v13417_v0 = vpop.permute.xlu1 %10484  ;;  %v5164_v62 = vpack.c.bf16 %v5162_v61, %v5161_v1  ;;  %v6945_v6 = vld [vmem:[#allocation2 + $0xdc] ss:$2 sm:$0xff]  ;;  %v6946_v2 = vld [vmem:[#allocation2 + $0xec] ss:$2 sm:$0x1]  ;;  %v10768_v27 = vpack.i.bf16 %v6944_v17, %v6943_v40 }
 0x221   : > { %v13422_v58 = vpop.permute.xlu0 %10489  ;;  %v6587_v28 = vld [vmem:[#allocation2 + $0xde] ss:$2 sm:$0xff]  ;;  %v6589_v51 = vld [vmem:[#allocation2 + $0xee] ss:$2 sm:$0x1]  ;;  %v10486_v44 = vunpack.i.l.bf16 %v13417_v0  ;;  %v10487_v37 = vunpack.i.h.bf16 %v13417_v0 }
 0x222   : > { %10759 = vrot.lane.b32.xlu1 %v10758_v5, %s11515_s13  ;;  %5332 = vmatprep.mubr.bf16.mxu0 %v5164_v62  ;;  %v11396_v35 = vld [vmem:[%s14526_s3 + $0x58] sm:$0xff]   ;;  %v13462_v23 = vld [vmem:[#allocation2 + $0xed] ss:$2 sm:$0x1]  ;;  %v5359_v14 = vld [vmem:[#allocation2 + $0x28] ss:$2 sm:$0xff]  ;;  %v10773_v62 = vpack.i.bf16 %v6946_v2, %v6945_v6  ;;  %v10748_v32 = vpack.i.bf16 %v6589_v51, %v6587_v28  ;;  %v10491_v12 = vunpack.i.l.bf16 %v13422_v58 }
 0x223   : > { %10734 = vrot.lane.b32.xlu0 %v10733_v9, %s11516_s24  ;;  %5333 = vmatmul.mubr.bf16.vlgmr.msra.gmra.mrb[80].mxu0 %v5163_v53  ;;  %v9713_v15 = vpop.f32.mrb[48].mxu1  ;;  %v13460_v25 = vld [vmem:[#allocation2 + $0xdd] ss:$2 sm:$0xff]  ;;  %v5360_v43 = vld [vmem:[#allocation2 + $0x38] ss:$2 sm:$0x1]  ;;  %v5519_v10 = vsel %vm460_vm1, %v5359_v14, %v10481_v30 }
 0x224   : > { %v9685_v63 = vpop.f32.mrb[48].mxu0  ;;  %v13437_v47 = vpop.permute.xlu1 %10494  ;;  %9938 = vmatpush3.bf16.msra.mxu0 %v11391_v41  ;;  %v13469_v34 = vld [vmem:[#allocation2 + $0xdf] ss:$2 sm:$0xff]  ;;  %v6593_v50 = vld [vmem:[#allocation2 + $0xef] ss:$2 sm:$0x1]  ;;  %v5520_v11 = vsel %vm460_vm1, %v5360_v43, %v10482_v54  ;;  %v5521_v40 = vsel %vm5132_vm3, %v5519_v10, %v10486_v44 }
 0x225   : > { %v13442_v31 = vpop.permute.xlu0 %10499  ;;  %v9686_v29 = vpop.f32.mrb[49].mxu0  ;;  %9939 = vmatprep.subr.bf16.mxu0 %v11392_v8  ;;  %v11397_v41 = vld [vmem:[%s14526_s3 + $0x18] sm:$0xff]   ;;  %v11398_v0 = vld [vmem:[%s14526_s3 + $0x60] sm:$0xff]   ;;  %v6950_v17 = vld [vmem:[#allocation2 + $0xee] ss:$2 sm:$0x1]  ;;  %v10753_v2 = vpack.i.bf16 %v6593_v50, %v13469_v34 }
 0x226   : > { %v9687_v18 = vadd.f32 %v9686_v29, %v9685_v63  ;;  %v9688_v7 = vpop.f32.mrb[50].mxu0  ;;  %10764 = vrot.lane.b32.xlu1 %v10763_v55, %s11514_s9  ;;  %v9714_v19 = vpop.f32.mrb[49].mxu1  ;;  %v10778_v29 = vpack.i.bf16 %v13462_v23, %v13460_v25  ;;  %v11400_v51 = vld [vmem:[%s14526_s3 + $0x68] sm:$0xff]   ;;  %v10501_v25 = vunpack.i.l.bf16 %v13442_v31  ;;  %v11402_v50 = vld [vmem:[%s14526_s3 + $0x70] sm:$0xff]  }
 0x227   : > { %10739 = vrot.lane.b32.xlu0 %v10738_v33, %s11513_s11  ;;  %v9689_v56 = vpop.f32.mrb[51].mxu0  ;;  %v9715_v20 = vadd.f32 %v9714_v19, %v9713_v15  ;;  %v9716_v3 = vpop.f32.mrb[50].mxu1  ;;  %v10492_v15 = vunpack.i.h.bf16 %v13422_v58  ;;  %v6949_v33 = vld [vmem:[#allocation2 + $0xde] ss:$2 sm:$0xff]  ;;  %v5522_v58 = vsel %vm5132_vm3, %v5520_v11, %v10487_v37 }
 0x228   : > { %v3278_v22 = vadd.f32 %v9687_v18, %v13432_v4  ;;  %v9690_v24 = vadd.f32 %v9689_v56, %v9688_v7  ;;  %v9717_v52 = vpop.f32.mrb[51].mxu1  ;;  %9940 = vmatpush3.bf16.msra.mxu0 %v11393_v59  ;;  %v13457_v57 = vpop.permute.xlu1 %10504  ;;  %v6951_v18 = vld [vmem:[#allocation2 + $0xdf] ss:$2 sm:$0xff]  ;;  %v6952_v7 = vld [vmem:[#allocation2 + $0xef] ss:$2 sm:$0x1]  ;;  %v10783_v14 = vpack.i.bf16 %v6950_v17, %v6949_v33 }
 0x229   : > { %v3514_v38 = vadd.f32 %v9715_v20, %v13432_v4  ;;  %v9718_v13 = vadd.f32 %v9717_v52, %v9716_v3  ;;  %9941 = vmatprep.subr.bf16.mxu0 %v11394_v16  ;;  %v13465_v49 = vpop.permute.xlu0 %10509  ;;  %v5376_v20 = vld [vmem:[#allocation2 + $0x50] ss:$2 sm:$0xff]  ;;  %v5378_v3 = vld [vmem:[#allocation2 + $0x60] ss:$2 sm:$0x1]  ;;  %v5524_v54 = vsel %vm5135_vm4, %v5522_v58, %v10492_v15  ;;  %v10788_v43 = vpack.i.bf16 %v6952_v7, %v6951_v18 }
 0x22a   : > { %v3291_v26 = vmax.f32 %v3278_v22, 0.0  ;;  %v3281_v42 = vadd.f32 %v9690_v24, %v13432_v4  ;;  %10769 = vrot.lane.b32.xlu1 %v10768_v27, %s11516_s24  ;;  %v10496_v22 = vunpack.i.l.bf16 %v13437_v47 }
 0x22b   : > { %v3527_v46 = vmax.f32 %v3514_v38, 0.0  ;;  %10744 = vrot.lane.b32.xlu0 %v10743_v39, %s11518_s7  ;;  %v3517_v60 = vadd.f32 %v9718_v13, %v13432_v4  ;;  %v9719_v48 = vpop.f32.mrb[52].mxu1  ;;  %v5523_v13 = vsel %vm5135_vm4, %v5521_v40, %v10491_v12 }
 0x22c   : > { %3294 = vst.msk [vmem:[#allocation2 + $0xf0] sm:$0xff] %vm460_vm1, %v3291_v26  ;;  %v3292_v1 = vmax.f32 %v3281_v42, 0.0  ;;  %v9691_v61 = vpop.f32.mrb[52].mxu0  ;;  %v9720_v5 = vpop.f32.mrb[53].mxu1  ;;  %9942 = vmatpush3.bf16.msra.mxu0 %v11395_v21  ;;  %v10497_v21 = vunpack.i.h.bf16 %v13437_v47  ;;  %v11401_v26 = vld [vmem:[%s14526_s3 + $0x28] sm:$0xff]   ;;  %v10502_v42 = vunpack.i.h.bf16 %v13442_v31  ;;  %v5525_v44 = vsel %vm263_vm0, %v5523_v13, %v10496_v22 }
 0x22d   : > { %3530 = vst.msk [vmem:[#allocation2 + $0x104] sm:$0xff] %vm460_vm1, %v3527_v46  ;;  %v3528_v53 = vmax.f32 %v3517_v60, 0.0  ;;  %v9692_v9 = vpop.f32.mrb[53].mxu0  ;;  %v9721_v36 = vadd.f32 %v9720_v5, %v9719_v48  ;;  %v9722_v8 = vpop.f32.mrb[54].mxu1  ;;  %9943 = vmatprep.subr.bf16.mxu0 %v11396_v35 }
 0x22e   : > { %3295 = vst.msk [vmem:[#allocation2 + $0xf8] sm:$0xff] %vm460_vm1, %v3292_v1  ;;  %v9693_v59 = vadd.f32 %v9692_v9, %v9691_v61  ;;  %10774 = vrot.lane.b32.xlu1 %v10773_v62, %s11513_s11  ;;  %v9694_v63 = vpop.f32.mrb[54].mxu0  ;;  %v9723_v55 = vpop.f32.mrb[55].mxu1  ;;  %v5526_v46 = vsel %vm263_vm0, %v5524_v54, %v10497_v21  ;;  %v10506_v9 = vunpack.i.l.bf16 %v13457_v57  ;;  %v5527_v8 = vsel %vm5140_vm5, %v5525_v44, %v10501_v25  ;;  %v11408_v44 = vld [vmem:[%s14526_s3 + $0x48] sm:$0xff]  }
 0x22f   : > { %3531 = vst.msk [vmem:[#allocation2 + $0x10c] sm:$0xff] %vm460_vm1, %v3528_v53  ;;  %v3522_v16 = vadd.f32 %v9721_v36, %v13432_v4  ;;  %10749 = vrot.lane.b32.xlu0 %v10748_v32, %s11517_s6  ;;  %v9695_v19 = vpop.f32.mrb[55].mxu0  ;;  %v10507_v53 = vunpack.i.h.bf16 %v13457_v57  ;;  %v11404_v32 = vld [vmem:[%s14526_s3 + $0x78] sm:$0xff]  }
 0x230   : > { %v3286_v56 = vadd.f32 %v9693_v59, %v13432_v4  ;;  %v10515_v6 = vpop.permute.xlu1 %10514  ;;  %9944 = vmatpush3.bf16.msra.mxu0 %v11397_v41  ;;  %v11403_v41 = vld [vmem:[%s14526_s3 + $0x30] sm:$0xff]   ;;  %v5529_v19 = vsel %vm5143_vm6, %v5527_v8, %v10506_v9 }
 0x231   : > { %v3529_v24 = vmax.f32 %v3522_v16, 0.0  ;;  %v10517_v27 = vunpack.i.h.bf16 %v10515_v6  ;;  %v10516_v52 = vunpack.i.l.bf16 %v10515_v6  ;;  %v10520_v28 = vpop.permute.xlu0 %10519  ;;  %9945 = vmatprep.subr.bf16.mxu0 %v11398_v0  ;;  %v5528_v0 = vsel %vm5140_vm5, %v5526_v46, %v10502_v42  ;;  %v11410_v8 = vld [vmem:[%s14526_s3 + $0x50] sm:$0xff]  }
 0x232   : > { %v3293_v35 = vmax.f32 %v3286_v56, 0.0  ;;  %v10522_v38 = vunpack.i.h.bf16 %v10520_v28  ;;  %v10521_v39 = vunpack.i.l.bf16 %v10520_v28  ;;  %10779 = vrot.lane.b32.xlu1 %v10778_v29, %s11518_s7  ;;  %v10512_v16 = vunpack.i.h.bf16 %v13465_v49 }
 0x233   : > { %3532 = vst.msk [vmem:[#allocation2 + $0x114] sm:$0xf] %vm463_vm2, %v3529_v24  ;;  %v5534_v47 = vsel %vm460_vm1, %v5378_v3, %v10517_v27  ;;  %v5533_v30 = vsel %vm460_vm1, %v5376_v20, %v10516_v52  ;;  %10754 = vrot.lane.b32.xlu0 %v10753_v2, %s11519_s25  ;;  %v10511_v29 = vunpack.i.l.bf16 %v13465_v49  ;;  %v11405_v49 = vld [vmem:[%s14526_s3 + $0x38] sm:$0xff]   ;;  %v11421_v27 = vld [vmem:[%s14526_s3 + $0x40] sm:$0xff]  }
 0x234   : > { %3296 = vst.msk [vmem:[#allocation2 + $0x100] sm:$0xf] %vm463_vm2, %v3293_v35  ;;  %v10525_v23 = vpop.permute.xlu1 %10524  ;;  %9946 = vmatpush3.bf16.msra.mxu0 %v11399_v45  ;;  %v5536_v31 = vsel %vm5132_vm3, %v5534_v47, %v10522_v38  ;;  %v5535_v37 = vsel %vm5132_vm3, %v5533_v30, %v10521_v39  ;;  %v5530_v45 = vsel %vm5143_vm6, %v5528_v0, %v10507_v53 }
 0x235   : > { %v10527_v60 = vunpack.i.h.bf16 %v10525_v23  ;;  %v10526_v48 = vunpack.i.l.bf16 %v10525_v23  ;;  %v10530_v34 = vpop.permute.xlu0 %10529  ;;  %9947 = vmatprep.subr.bf16.mxu0 %v11400_v51  ;;  %v7339_v40 = vld [vmem:[#allocation2 + $0xf1] ss:$2 sm:$0xff]  ;;  %v5531_v51 = vsel %vm5146_vm7, %v5529_v19, %v10511_v29  ;;  %v5532_v35 = vsel %vm5146_vm7, %v5530_v45, %v10512_v16 }
 0x236   : > { %v10532_v1 = vunpack.i.h.bf16 %v10530_v34  ;;  %v10531_v61 = vunpack.i.l.bf16 %v10530_v34  ;;  %10784 = vrot.lane.b32.xlu1 %v10783_v14, %s11517_s6  ;;  %v6958_v12 = vld [vmem:[#allocation2 + $0xf1] ss:$2 sm:$0xff]  ;;  %v11407_v14 = vld [vmem:[%s14526_s3] sm:$0xff]  }
 0x237   : > { %v5537_v5 = vsel %vm5135_vm4, %v5535_v37, %v10526_v48  ;;  %v5538_v62 = vsel %vm5135_vm4, %v5536_v31, %v10527_v60  ;;  %10789 = vrot.lane.b32.xlu0 %v10788_v43, %s11519_s25  ;;  %v5547_v43 = vpack.c.bf16 %v5532_v35, %v5531_v51  ;;  %v7345_v60 = vld [vmem:[#allocation2 + $0x104] ss:$2 sm:$0xff] }
 0x238   : > { %v10535_v36 = vpop.permute.xlu1 %10534  ;;  %9948 = vmatpush3.bf16.msra.mxu0 %v11401_v26  ;;  %v5539_v59 = vsel %vm263_vm0, %v5537_v5, %v10531_v61  ;;  %v5540_v63 = vsel %vm263_vm0, %v5538_v62, %v10532_v1  ;;  %v6970_v1 = vld [vmem:[#allocation2 + $0x104] ss:$2 sm:$0xff] }
 0x239   : > { %v10537_v11 = vunpack.i.h.bf16 %v10535_v36  ;;  %v10536_v10 = vunpack.i.l.bf16 %v10535_v36  ;;  %v10540_v15 = vpop.permute.xlu0 %10539  ;;  %9949 = vmatprep.subr.bf16.mxu0 %v11402_v50 }
 0x23a   : > { %v10542_v55 = vunpack.i.h.bf16 %v10540_v15  ;;  %v10541_v57 = vunpack.i.l.bf16 %v10540_v15  ;;  %v7346_v48 = vld [vmem:[#allocation2 + $0x114] ss:$2 sm:$0x1] }
 0x23b   : > { %v5541_v33 = vsel %vm5140_vm5, %v5539_v59, %v10536_v10  ;;  %v5542_v17 = vsel %vm5140_vm5, %v5540_v63, %v10537_v11  ;;  %v7340_v18 = vld [vmem:[#allocation2 + $0x101] ss:$2 sm:$0x1]  ;;  %v7341_v20 = vld [vmem:[#allocation2 + $0xf2] ss:$2 sm:$0xff]  ;;  %v10843_v11 = vpack.i.bf16 %v7346_v48, %v7345_v60 }
 0x23c   : > { %v6960_v7 = vld [vmem:[#allocation2 + $0x101] ss:$2 sm:$0x1]  ;;  %v10545_v58 = vpop.permute.xlu1 %10544  ;;  %v10828_v21 = vpack.i.bf16 %v7340_v18, %v7339_v40  ;;  %v7342_v3 = vld [vmem:[#allocation2 + $0x102] ss:$2 sm:$0x1]  ;;  %9950 = vmatpush3.bf16.msra.mxu0 %v11403_v41  ;;  %v5543_v52 = vsel %vm5143_vm6, %v5541_v33, %v10541_v57  ;;  %v5544_v28 = vsel %vm5143_vm6, %v5542_v17, %v10542_v55 }
 0x23d   : > { %v10793_v56 = vpack.i.bf16 %v6960_v7, %v6958_v12  ;;  %v10547_v6 = vunpack.i.h.bf16 %v10545_v58  ;;  %v10546_v2 = vunpack.i.l.bf16 %v10545_v58  ;;  %v6962_v22 = vld [vmem:[#allocation2 + $0xf2] ss:$2 sm:$0xff]  ;;  %v6964_v24 = vld [vmem:[#allocation2 + $0x102] ss:$2 sm:$0x1]  ;;  %9951 = vmatprep.subr.bf16.mxu0 %v11404_v32  ;;  %v10833_v54 = vpack.i.bf16 %v7342_v3, %v7341_v20  ;;  %v11409_v41 = vld [vmem:[%s14526_s3 + $0x8] sm:$0xff]   ;;  %v13590_v58 = vpop.permute.xlu0 %10549 }
 0x23e   : > { %10829 = vrot.lane.b32.xlu1 %v10828_v21, %s11515_s13  ;;  %v10798_v47 = vpack.i.bf16 %v6964_v24, %v6962_v22  ;;  %v7343_v26 = vld [vmem:[#allocation2 + $0xf3] ss:$2 sm:$0xff]  ;;  %v7344_v42 = vld [vmem:[#allocation2 + $0x103] ss:$2 sm:$0x1] }
 0x23f   : > { %10794 = vrot.lane.b32.xlu0 %v10793_v56, %s11515_s13  ;;  %v5545_v38 = vsel %vm5146_vm7, %v5543_v52, %v10546_v2  ;;  %v5546_v39 = vsel %vm5146_vm7, %v5544_v28, %v10547_v6  ;;  %v6966_v25 = vld [vmem:[#allocation2 + $0xf3] ss:$2 sm:$0xff]  ;;  %v6968_v23 = vld [vmem:[#allocation2 + $0x103] ss:$2 sm:$0x1]  ;;  %v10838_v31 = vpack.i.bf16 %v7344_v42, %v7343_v26 }
 0x240   : > { %v13559_v13 = vpop.permute.xlu1 %10554  ;;  %v5548_v30 = vpack.c.bf16 %v5546_v39, %v5545_v38  ;;  %9952 = vmatpush3.bf16.msra.mxu0 %v11405_v49  ;;  %v10803_v37 = vpack.i.bf16 %v6968_v23, %v6966_v25  ;;  %v6972_v61 = vld [vmem:[#allocation2 + $0x114] ss:$2 sm:$0x1]  ;;  %v7347_v59 = vld [vmem:[#allocation2 + $0x105] ss:$2 sm:$0xff]  ;;  %v11412_v49 = vld [vmem:[%s14526_s3 + $0x58] sm:$0xff]  }
 0x241   : > { %9981 = vmatprep.subr.bf16.mxu0 %v11421_v27  ;;  %v10808_v10 = vpack.i.bf16 %v6972_v61, %v6970_v1  ;;  %v7348_v63 = vld [vmem:[#allocation2 + $0x115] ss:$2 sm:$0x1]  ;;  %v6974_v17 = vld [vmem:[#allocation2 + $0x105] ss:$2 sm:$0xff]  ;;  %v11413_v28 = vld [vmem:[%s14526_s3 + $0x18] sm:$0xff]  }
 0x242   : > { %10834 = vrot.lane.b32.xlu1 %v10833_v54, %s11514_s9  ;;  %5716 = vmatprep.mubr.bf16.mxu1 %v5548_v30  ;;  %v6976_v55 = vld [vmem:[#allocation2 + $0x115] ss:$2 sm:$0x1]  ;;  %v7349_v56 = vld [vmem:[#allocation2 + $0x106] ss:$2 sm:$0xff]  ;;  %v10848_v27 = vpack.i.bf16 %v7348_v63, %v7347_v59 }
 0x243   : > { %10799 = vrot.lane.b32.xlu0 %v10798_v47, %s11514_s9  ;;  %v9769_v46 = vpop.f32.mrb[56].mxu1  ;;  %5717 = vmatmul.mubr.bf16.vlgmr.msra.gmra.mrb[80].mxu1 %v5547_v43  ;;  %v11411_v57 = vld [vmem:[%s14526_s3 + $0x10] sm:$0xff]   ;;  %v10813_v52 = vpack.i.bf16 %v6976_v55, %v6974_v17  ;;  %v11414_v39 = vld [vmem:[%s14526_s3 + $0x60] sm:$0xff]  }
 0x244   : > { %v9741_v34 = vpop.f32.mrb[56].mxu0  ;;  %v13569_v50 = vpop.permute.xlu1 %10559  ;;  %9960 = vmatpush3.bf16.msra.mxu1 %v11407_v14  ;;  %v7350_v20 = vld [vmem:[#allocation2 + $0x116] ss:$2 sm:$0x1]  ;;  %v6978_v38 = vld [vmem:[#allocation2 + $0x106] ss:$2 sm:$0xff] }
 0x245   : > { %v9742_v5 = vpop.f32.mrb[57].mxu0  ;;  %v9770_v62 = vpop.f32.mrb[57].mxu1  ;;  %9961 = vmatprep.subr.bf16.mxu1 %v11408_v44  ;;  %v6980_v3 = vld [vmem:[#allocation2 + $0x116] ss:$2 sm:$0x1]  ;;  %v11415_v43 = vld [vmem:[%s14526_s3 + $0x20] sm:$0xff]  }
 0x246   : > { %v9743_v53 = vadd.f32 %v9742_v5, %v9741_v34  ;;  %v9744_v9 = vpop.f32.mrb[58].mxu0  ;;  %10839 = vrot.lane.b32.xlu1 %v10838_v31, %s11516_s24  ;;  %v9771_v36 = vadd.f32 %v9770_v62, %v9769_v46  ;;  %v9772_v32 = vpop.f32.mrb[58].mxu1  ;;  %v7352_v25 = vld [vmem:[#allocation2 + $0x117] ss:$2 sm:$0x1]  ;;  %v10853_v34 = vpack.i.bf16 %v7350_v20, %v7349_v56  ;;  %v10818_v31 = vpack.i.bf16 %v6980_v3, %v6978_v38  ;;  %v11416_v62 = vld [vmem:[%s14526_s3 + $0x68] sm:$0xff]  }
 0x247   : > { %10804 = vrot.lane.b32.xlu0 %v10803_v37, %s11516_s24  ;;  %v9745_v0 = vpop.f32.mrb[59].mxu0  ;;  %v9773_v15 = vpop.f32.mrb[59].mxu1  ;;  %v6984_v23 = vld [vmem:[#allocation2 + $0x117] ss:$2 sm:$0x1]  ;;  %v10562_v56 = vunpack.i.h.bf16 %v13569_v50 }
 0x248   : > { %v3750_v40 = vadd.f32 %v9743_v53, %v13432_v4  ;;  %v9746_v12 = vadd.f32 %v9745_v0, %v9744_v9  ;;  %v13583_v16 = vpop.permute.xlu1 %10564  ;;  %v3986_v29 = vadd.f32 %v9771_v36, %v13432_v4  ;;  %v9774_v33 = vadd.f32 %v9773_v15, %v9772_v32  ;;  %9962 = vmatpush3.bf16.msra.mxu1 %v11409_v41  ;;  %v7351_v37 = vld [vmem:[#allocation2 + $0x107] ss:$2 sm:$0xff]  ;;  %v5756_v15 = vld [vmem:[#allocation2 + $0x50] ss:$2 sm:$0xff] }
 0x249   : > { %9963 = vmatprep.subr.bf16.mxu1 %v11410_v8  ;;  %v6982_v1 = vld [vmem:[#allocation2 + $0x107] ss:$2 sm:$0xff]  ;;  %v10551_v41 = vunpack.i.l.bf16 %v13590_v58  ;;  %v10858_v36 = vpack.i.bf16 %v7352_v25, %v7351_v37  ;;  %v5757_v59 = vld [vmem:[#allocation2 + $0x60] ss:$2 sm:$0x1] }
 0x24a   : > { %v3763_v18 = vmax.f32 %v3750_v40, 0.0  ;;  %v3753_v7 = vadd.f32 %v9746_v12, %v13432_v4  ;;  %v3999_v19 = vmax.f32 %v3986_v29, 0.0  ;;  %10844 = vrot.lane.b32.xlu1 %v10843_v11, %s11513_s11  ;;  %v3989_v45 = vadd.f32 %v9774_v33, %v13432_v4  ;;  %v11417_v0 = vld [vmem:[%s14526_s3 + $0x28] sm:$0xff]   ;;  %v11419_v29 = vld [vmem:[%s14526_s3 + $0x30] sm:$0xff]   ;;  %v5773_v25 = vld [vmem:[#allocation2 + $0x78] ss:$2 sm:$0xff] }
 0x24b   : > { %10809 = vrot.lane.b32.xlu0 %v10808_v10, %s11513_s11  ;;  %v9775_v21 = vpop.f32.mrb[60].mxu1  ;;  %v10823_v32 = vpack.i.bf16 %v6984_v23, %v6982_v1  ;;  %v10552_v11 = vunpack.i.h.bf16 %v13590_v58  ;;  %v11418_v10 = vld [vmem:[%s14526_s3 + $0x70] sm:$0xff]   ;;  %v5916_v55 = vsel %vm460_vm1, %v5756_v15, %v10551_v41  ;;  %v10557_v58 = vunpack.i.h.bf16 %v13559_v13 }
 0x24c   : > { %3766 = vst.msk [vmem:[#allocation2 + $0x118] sm:$0xff] %vm460_vm1, %v3763_v18  ;;  %v3764_v6 = vmax.f32 %v3753_v7, 0.0  ;;  %4002 = vst.msk [vmem:[#allocation2 + $0x12c] sm:$0xff] %vm460_vm1, %v3999_v19  ;;  %v4000_v2 = vmax.f32 %v3989_v45, 0.0  ;;  %v9747_v22 = vpop.f32.mrb[60].mxu0  ;;  %v13597_v24 = vpop.permute.xlu1 %10569  ;;  %9964 = vmatpush3.bf16.msra.mxu1 %v11411_v57  ;;  %v11420_v19 = vld [vmem:[%s14526_s3 + $0x78] sm:$0xff]  }
 0x24d   : > { %v9748_v51 = vpop.f32.mrb[61].mxu0  ;;  %v9776_v35 = vpop.f32.mrb[61].mxu1  ;;  %9965 = vmatprep.subr.bf16.mxu1 %v11412_v49  ;;  %v5775_v57 = vld [vmem:[#allocation2 + $0x88] ss:$2 sm:$0x1]  ;;  %v5917_v45 = vsel %vm460_vm1, %v5757_v59, %v10552_v11  ;;  %v10571_v11 = vunpack.i.l.bf16 %v13597_v24 }
 0x24e   : > { %3767 = vst.msk [vmem:[#allocation2 + $0x120] sm:$0xff] %vm460_vm1, %v3764_v6  ;;  %4003 = vst.msk [vmem:[#allocation2 + $0x134] sm:$0xff] %vm460_vm1, %v4000_v2  ;;  %v9749_v54 = vadd.f32 %v9748_v51, %v9747_v22  ;;  %v9777_v47 = vadd.f32 %v9776_v35, %v9775_v21  ;;  %10849 = vrot.lane.b32.xlu1 %v10848_v27, %s11518_s7  ;;  %v9750_v30 = vpop.f32.mrb[62].mxu0  ;;  %v9778_v26 = vpop.f32.mrb[62].mxu1  ;;  %v10556_v21 = vunpack.i.l.bf16 %v13559_v13 }
 0x24f   : > { %10814 = vrot.lane.b32.xlu0 %v10813_v52, %s11518_s7  ;;  %v9751_v42 = vpop.f32.mrb[63].mxu0  ;;  %v9779_v14 = vpop.f32.mrb[63].mxu1  ;;  %v11422_v30 = vld [vmem:[%s14526_s3 + $0x38] sm:$0xff]   ;;  %v10567_v26 = vunpack.i.h.bf16 %v13583_v16 }
 0x250   : > { %v3758_v44 = vadd.f32 %v9749_v54, %v13432_v4  ;;  %v3994_v46 = vadd.f32 %v9777_v47, %v13432_v4  ;;  %v13614_v60 = vpop.permute.xlu1 %10574  ;;  %v13616_v48 = vpop.permute.xlu0 %10584  ;;  %9966 = vmatpush3.bf16.msra.mxu1 %v11413_v28  ;;  %v10566_v42 = vunpack.i.l.bf16 %v13583_v16  ;;  %v11438_v16 = vld [vmem:[%s14526_s3 + $0x40] sm:$0xff]  }
 0x251   : > { %9967 = vmatprep.subr.bf16.mxu1 %v11414_v39  ;;  %v10587_v63 = vunpack.i.h.bf16 %v13616_v48  ;;  %v10586_v3 = vunpack.i.l.bf16 %v13616_v48  ;;  %v10561_v39 = vunpack.i.l.bf16 %v13569_v50 }
 0x252   : > { %v3765_v61 = vmax.f32 %v3758_v44, 0.0  ;;  %v4001_v5 = vmax.f32 %v3994_v46, 0.0  ;;  %10854 = vrot.lane.b32.xlu1 %v10853_v34, %s11517_s6 }
 0x253   : > { %10819 = vrot.lane.b32.xlu0 %v10818_v31, %s11517_s6  ;;  %v5931_v20 = vsel %vm460_vm1, %v5775_v57, %v10587_v63  ;;  %v5930_v50 = vsel %vm460_vm1, %v5773_v25, %v10586_v3  ;;  %v10577_v57 = vunpack.i.h.bf16 %v13614_v60 }
 0x254   : > { %3768 = vst.msk [vmem:[#allocation2 + $0x128] sm:$0xf] %vm463_vm2, %v3765_v61  ;;  %4004 = vst.msk [vmem:[#allocation2 + $0x13c] sm:$0xf] %vm463_vm2, %v4001_v5  ;;  %v13626_v53 = vpop.permute.xlu1 %10579  ;;  %v13628_v9 = vpop.permute.xlu0 %10594  ;;  %9968 = vmatpush3.bf16.msra.mxu1 %v11415_v43 }
 0x255   : > { %v10581_v8 = vunpack.i.l.bf16 %v13626_v53  ;;  %9969 = vmatprep.subr.bf16.mxu1 %v11416_v62  ;;  %v7358_v7 = vld [vmem:[#allocation2 + $0x119] ss:$2 sm:$0xff]  ;;  %v10582_v49 = vunpack.i.h.bf16 %v13626_v53  ;;  %v10597_v54 = vunpack.i.h.bf16 %v13628_v9  ;;  %v10596_v46 = vunpack.i.l.bf16 %v13628_v9  ;;  %v7370_v59 = vld [vmem:[#allocation2 + $0x12c] ss:$2 sm:$0xff] }
 0x256   : > { %10859 = vrot.lane.b32.xlu1 %v10858_v36, %s11519_s25  ;;  %v7729_v43 = vld [vmem:[#allocation2 + $0x119] ss:$2 sm:$0xff]  ;;  %v10572_v53 = vunpack.i.h.bf16 %v13597_v24  ;;  %v10576_v24 = vunpack.i.l.bf16 %v13614_v60  ;;  %v7735_v25 = vld [vmem:[#allocation2 + $0x12c] ss:$2 sm:$0xff] }
 0x257   : > { %10824 = vrot.lane.b32.xlu0 %v10823_v32, %s11519_s25  ;;  %v5918_v33 = vsel %vm5132_vm3, %v5916_v55, %v10581_v8  ;;  %v5932_v37 = vsel %vm5132_vm3, %v5930_v50, %v10582_v49 }
 0x258   : > { %v10590_v40 = vpop.permute.xlu1 %10589  ;;  %v13642_v12 = vpop.permute.xlu0 %10599  ;;  %9970 = vmatpush3.bf16.msra.mxu1 %v11417_v0  ;;  %v5920_v27 = vsel %vm5135_vm4, %v5918_v33, %v10556_v21 }
 0x259   : > { %v10592_v17 = vunpack.i.h.bf16 %v10590_v40  ;;  %v10591_v18 = vunpack.i.l.bf16 %v10590_v40  ;;  %9971 = vmatprep.subr.bf16.mxu1 %v11418_v10  ;;  %v5922_v44 = vsel %vm263_vm0, %v5920_v27, %v10561_v39  ;;  %v10602_v1 = vunpack.i.h.bf16 %v13642_v12 }
 0x25a   : > { %v10601_v61 = vunpack.i.l.bf16 %v13642_v12  ;;  %v5924_v55 = vsel %vm5140_vm5, %v5922_v44, %v10566_v42  ;;  %v5934_v40 = vsel %vm5135_vm4, %v5932_v37, %v10596_v46 }
 0x25b   : > { %v5919_v6 = vsel %vm5132_vm3, %v5917_v45, %v10592_v17  ;;  %v7360_v2 = vld [vmem:[#allocation2 + $0x129] ss:$2 sm:$0x1]  ;;  %v7362_v22 = vld [vmem:[#allocation2 + $0x11a] ss:$2 sm:$0xff]  ;;  %v5933_v28 = vsel %vm5132_vm3, %v5931_v20, %v10591_v18  ;;  %v5926_v60 = vsel %vm5143_vm6, %v5924_v55, %v10571_v11 }
 0x25c   : > { %v5921_v52 = vsel %vm5135_vm4, %v5919_v6, %v10557_v58  ;;  %v13662_v13 = vpop.permute.xlu1 %10619  ;;  %v10605_v51 = vpop.permute.xlu0 %10604  ;;  %v10863_v35 = vpack.i.bf16 %v7360_v2, %v7358_v7  ;;  %v7364_v38 = vld [vmem:[#allocation2 + $0x12a] ss:$2 sm:$0x1]  ;;  %v7730_v47 = vld [vmem:[#allocation2 + $0x129] ss:$2 sm:$0x1]  ;;  %9972 = vmatpush3.bf16.msra.mxu1 %v11419_v29  ;;  %v5935_v48 = vsel %vm5135_vm4, %v5933_v28, %v10597_v54  ;;  %v5936_v7 = vsel %vm263_vm0, %v5934_v40, %v10601_v61 }
 0x25d   : > { %v5923_v23 = vsel %vm263_vm0, %v5921_v52, %v10562_v56  ;;  %v10868_v14 = vpack.i.bf16 %v7364_v38, %v7362_v22  ;;  %9973 = vmatprep.subr.bf16.mxu1 %v11420_v19  ;;  %v7366_v34 = vld [vmem:[#allocation2 + $0x11b] ss:$2 sm:$0xff]  ;;  %v7368_v31 = vld [vmem:[#allocation2 + $0x12b] ss:$2 sm:$0x1]  ;;  %v10898_v41 = vpack.i.bf16 %v7730_v47, %v7729_v43  ;;  %v10607_v9 = vunpack.i.h.bf16 %v10605_v51 }
 0x25e   : > { %10864 = vrot.lane.b32.xlu1 %v10863_v35, %s11515_s13  ;;  %v10606_v36 = vunpack.i.l.bf16 %v10605_v51  ;;  %v7731_v32 = vld [vmem:[#allocation2 + $0x11a] ss:$2 sm:$0xff]  ;;  %v7732_v8 = vld [vmem:[#allocation2 + $0x12a] ss:$2 sm:$0x1]  ;;  %v5925_v0 = vsel %vm5140_vm5, %v5923_v23, %v10567_v26  ;;  %v5937_v10 = vsel %vm263_vm0, %v5935_v48, %v10602_v1  ;;  %v10873_v15 = vpack.i.bf16 %v7368_v31, %v7366_v34 }
 0x25f   : > { %10869 = vrot.lane.b32.xlu0 %v10868_v14, %s11514_s9  ;;  %v7372_v63 = vld [vmem:[#allocation2 + $0x13c] ss:$2 sm:$0x1]  ;;  %v7733_v17 = vld [vmem:[#allocation2 + $0x11b] ss:$2 sm:$0xff]  ;;  %v10903_v58 = vpack.i.bf16 %v7732_v8, %v7731_v32  ;;  %v5927_v21 = vsel %vm5143_vm6, %v5925_v0, %v10572_v53  ;;  %v5939_v20 = vsel %vm5140_vm5, %v5937_v10, %v10607_v9  ;;  %v5928_v37 = vsel %vm5146_vm7, %v5926_v60, %v10576_v24  ;;  %v11427_v60 = vld [vmem:[%s14526_s3 + $0x10] sm:$0xff]  }
 0x260   : > { %v13684_v5 = vpop.permute.xlu1 %10624  ;;  %v10610_v62 = vpop.permute.xlu0 %10609  ;;  %9974 = vmatpush3.bf16.msra.mxu1 %v11422_v30  ;;  %v7734_v18 = vld [vmem:[#allocation2 + $0x12b] ss:$2 sm:$0x1]  ;;  %v5938_v56 = vsel %vm5140_vm5, %v5936_v7, %v10606_v36  ;;  %v10878_v6 = vpack.i.bf16 %v7372_v63, %v7370_v59  ;;  %v7374_v2 = vld [vmem:[#allocation2 + $0x12d] ss:$2 sm:$0xff]  ;;  %v5929_v42 = vsel %vm5146_vm7, %v5927_v21, %v10577_v57  ;;  %v11423_v34 = vld [vmem:[%s14526_s3] sm:$0xff]  }
 0x261   : > { %v10612_v12 = vunpack.i.h.bf16 %v10610_v62  ;;  %v10611_v29 = vunpack.i.l.bf16 %v10610_v62  ;;  %10003 = vmatprep.subr.bf16.mxu1 %v11438_v16  ;;  %v10908_v35 = vpack.i.bf16 %v7734_v18, %v7733_v17  ;;  %v7376_v38 = vld [vmem:[#allocation2 + $0x13d] ss:$2 sm:$0x1]  ;;  %v7736_v23 = vld [vmem:[#allocation2 + $0x13c] ss:$2 sm:$0x1]  ;;  %v5944_v9 = vpack.c.bf16 %v5929_v42, %v5928_v37 }
 0x262   : > { %10899 = vrot.lane.b32.xlu1 %v10898_v41, %s11515_s13  ;;  %v7378_v1 = vld [vmem:[#allocation2 + $0x12e] ss:$2 sm:$0xff]  ;;  %v7380_v61 = vld [vmem:[#allocation2 + $0x13e] ss:$2 sm:$0x1]  ;;  %v10883_v53 = vpack.i.bf16 %v7376_v38, %v7374_v2  ;;  %v10913_v55 = vpack.i.bf16 %v7736_v23, %v7735_v25 }
 0x263   : > { %v9825_v33 = vpop.f32.mrb[64].mxu1  ;;  %10874 = vrot.lane.b32.xlu0 %v10873_v15, %s11516_s24  ;;  %v5940_v39 = vsel %vm5143_vm6, %v5938_v56, %v10611_v29  ;;  %v5941_v54 = vsel %vm5143_vm6, %v5939_v20, %v10612_v12  ;;  %v11424_v36 = vld [vmem:[%s14526_s3 + $0x48] sm:$0xff]   ;;  %v7738_v10 = vld [vmem:[#allocation2 + $0x13d] ss:$2 sm:$0x1]  ;;  %v11426_v57 = vld [vmem:[%s14526_s3 + $0x50] sm:$0xff]  }
 0x264   : > { %v9797_v19 = vpop.f32.mrb[64].mxu0  ;;  %v13697_v45 = vpop.permute.xlu1 %10629  ;;  %v11425_v15 = vld [vmem:[%s14526_s3 + $0x8] sm:$0xff]   ;;  %v11504_v40 = vld [vmem:[%s14525_s2] ss:$0 sm:$0xff]  ;;  %v11429_v23 = vld [vmem:[%s14526_s3 + $0x18] sm:$0xff]  }
 0x265   : > { %v10615_v3 = vpop.permute.xlu0 %10614  ;;  %v9798_v49 = vpop.f32.mrb[65].mxu0  ;;  %v7737_v17 = vld [vmem:[#allocation2 + $0x12d] ss:$2 sm:$0xff]  ;;  %v7384_v18 = vld [vmem:[#allocation2 + $0x13f] ss:$2 sm:$0x1]  ;;  %v10632_v37 = vunpack.i.h.bf16 %v13697_v45 }
 0x266   : > { %v10617_v22 = vunpack.i.h.bf16 %v10615_v3  ;;  %v10616_v27 = vunpack.i.l.bf16 %v10615_v3  ;;  %v9799_v52 = vadd.f32 %v9798_v49, %v9797_v19  ;;  %v9800_v28 = vpop.f32.mrb[66].mxu0  ;;  %10904 = vrot.lane.b32.xlu1 %v10903_v58, %s11514_s9  ;;  %v9826_v51 = vpop.f32.mrb[65].mxu1  ;;  %v10888_v58 = vpack.i.bf16 %v7380_v61, %v7378_v1  ;;  %v7382_v21 = vld [vmem:[#allocation2 + $0x12f] ss:$2 sm:$0xff]  ;;  %v7739_v49 = vld [vmem:[#allocation2 + $0x12e] ss:$2 sm:$0xff] }
 0x267   : > { %v9801_v47 = vpop.f32.mrb[67].mxu0  ;;  %v9827_v30 = vadd.f32 %v9826_v51, %v9825_v33  ;;  %v9828_v26 = vpop.f32.mrb[66].mxu1  ;;  %10879 = vrot.lane.b32.xlu0 %v10878_v6, %s11513_s11  ;;  %v7740_v6 = vld [vmem:[#allocation2 + $0x13e] ss:$2 sm:$0x1]  ;;  %v10918_v51 = vpack.i.bf16 %v7738_v10, %v7737_v17  ;;  %v10631_v1 = vunpack.i.l.bf16 %v13697_v45  ;;  %v11432_v45 = vld [vmem:[%s14526_s3 + $0x68] sm:$0xff]  }
 0x268   : > { %v4222_v14 = vadd.f32 %v9799_v52, %v13432_v4  ;;  %v9802_v43 = vadd.f32 %v9801_v47, %v9800_v28  ;;  %v13709_v50 = vpop.permute.xlu1 %10634  ;;  %v5942_v44 = vsel %vm5146_vm7, %v5940_v39, %v10616_v27  ;;  %v5943_v46 = vsel %vm5146_vm7, %v5941_v54, %v10617_v22  ;;  %v9829_v48 = vpop.f32.mrb[67].mxu1  ;;  %v7741_v38 = vld [vmem:[#allocation2 + $0x12f] ss:$2 sm:$0xff] }
 0x269   : > { %v4458_v31 = vadd.f32 %v9827_v30, %v13432_v4  ;;  %v5945_v16 = vpack.c.bf16 %v5943_v46, %v5942_v44  ;;  %v13723_v32 = vpop.permute.xlu0 %10649  ;;  %v9830_v0 = vadd.f32 %v9829_v48, %v9828_v26  ;;  %v10893_v47 = vpack.i.bf16 %v7384_v18, %v7382_v21  ;;  %v7742_v30 = vld [vmem:[#allocation2 + $0x13f] ss:$2 sm:$0x1]  ;;  %v11430_v46 = vld [vmem:[%s14526_s3 + $0x60] sm:$0xff]   ;;  %v11433_v21 = vld [vmem:[%s14526_s3 + $0x28] sm:$0xff]  }
 0x26a   : > { %v4235_v62 = vmax.f32 %v4222_v14, 0.0  ;;  %v4225_v41 = vadd.f32 %v9802_v43, %v13432_v4  ;;  %10909 = vrot.lane.b32.xlu1 %v10908_v35, %s11516_s24  ;;  %v11428_v35 = vld [vmem:[%s14526_s3 + $0x58] sm:$0xff]   ;;  %v10923_v25 = vpack.i.bf16 %v7740_v6, %v7739_v49  ;;  %v10622_v14 = vunpack.i.h.bf16 %v13662_v13 }
 0x26b   : > { %v4471_v8 = vmax.f32 %v4458_v31, 0.0  ;;  %6113 = vmatprep.mubr.bf16.mxu0 %v5945_v16  ;;  %v9831_v11 = vpop.f32.mrb[68].mxu1  ;;  %10884 = vrot.lane.b32.xlu0 %v10883_v53, %s11518_s7  ;;  %v4461_v12 = vadd.f32 %v11504_v40, %v9830_v0  ;;  %v10621_v43 = vunpack.i.l.bf16 %v13662_v13  ;;  %v10928_v44 = vpack.i.bf16 %v7742_v30, %v7741_v38  ;;  %v6146_v31 = vld [vmem:[#allocation2 + $0x78] ss:$2 sm:$0xff] }
 0x26c   : > { %4238 = vst.msk [vmem:[#allocation2 + $0x140] sm:$0xff] %vm460_vm1, %v4235_v62  ;;  %v4236_v4 = vmax.f32 %v4225_v41, 0.0  ;;  %6114 = vmatmul.mubr.bf16.vlgmr.msra.gmra.mrb[84].mxu0 %v5944_v9  ;;  %v9803_v59 = vpop.f32.mrb[68].mxu0  ;;  %v13730_v63 = vpop.permute.xlu1 %10639  ;;  %v10627_v48 = vunpack.i.h.bf16 %v13684_v5  ;;  %v6147_v16 = vld [vmem:[#allocation2 + $0x88] ss:$2 sm:$0x1]  ;;  %v10637_v41 = vunpack.i.h.bf16 %v13709_v50 }
 0x26d   : > { %4474 = vst.msk [vmem:[#allocation2 + $0x154] sm:$0xff] %vm460_vm1, %v4471_v8  ;;  %v9804_v29 = vpop.f32.mrb[69].mxu0  ;;  %v9832_v33 = vpop.f32.mrb[69].mxu1  ;;  %9982 = vmatpush3.bf16.msra.mxu0 %v11423_v34  ;;  %v4472_v20 = vmax.f32 %v4461_v12, 0.0  ;;  %v10626_v34 = vunpack.i.l.bf16 %v13684_v5  ;;  %v11431_v62 = vld [vmem:[%s14526_s3 + $0x20] sm:$0xff]   ;;  %v10636_v5 = vunpack.i.l.bf16 %v13709_v50  ;;  %v6306_v8 = vsel %vm460_vm1, %v6146_v31, %v10621_v43 }
 0x26e   : > { %4239 = vst.msk [vmem:[#allocation2 + $0x148] sm:$0xff] %vm460_vm1, %v4236_v4  ;;  %v9805_v24 = vadd.f32 %v9804_v29, %v9803_v59  ;;  %v9833_v7 = vadd.f32 %v9832_v33, %v9831_v11  ;;  %v9806_v19 = vpop.f32.mrb[70].mxu0  ;;  %10914 = vrot.lane.b32.xlu1 %v10913_v55, %s11513_s11  ;;  %v9834_v56 = vpop.f32.mrb[70].mxu1  ;;  %9983 = vmatprep.subr.bf16.mxu0 %v11424_v36  ;;  %v10642_v0 = vunpack.i.h.bf16 %v13730_v63  ;;  %v10641_v11 = vunpack.i.l.bf16 %v13730_v63  ;;  %v6163_v43 = vld [vmem:[#allocation2 + $0xa0] ss:$2 sm:$0xff] }
 0x26f   : > { %v9807_v3 = vpop.f32.mrb[71].mxu0  ;;  %v9835_v2 = vpop.f32.mrb[71].mxu1  ;;  %10889 = vrot.lane.b32.xlu0 %v10888_v58, %s11517_s6  ;;  %4475 = vst.msk [vmem:[#allocation2 + $0x15c] sm:$0xff] %vm460_vm1, %v4472_v20  ;;  %v6307_v36 = vsel %vm460_vm1, %v6147_v16, %v10622_v14  ;;  %v6308_v10 = vsel %vm5132_vm3, %v6306_v8, %v10626_v34  ;;  %v13842_v16 = vld [vmem:[%s14525_s2] ss:$0 sm:$0xff] }
 0x270   : > { %v4230_v22 = vadd.f32 %v11504_v40, %v9805_v24  ;;  %v4466_v27 = vadd.f32 %v11504_v40, %v9833_v7  ;;  %v13745_v52 = vpop.permute.xlu1 %10644  ;;  %v13747_v28 = vpop.permute.xlu0 %10654  ;;  %v6309_v50 = vsel %vm5132_vm3, %v6307_v36, %v10627_v48 }
 0x271   : > { %9984 = vmatpush3.bf16.msra.mxu0 %v11425_v15  ;;  %v10647_v15 = vunpack.i.h.bf16 %v13745_v52  ;;  %v10646_v4 = vunpack.i.l.bf16 %v13745_v52  ;;  %v6311_v40 = vsel %vm5135_vm4, %v6309_v50, %v10632_v37  ;;  %v10657_v6 = vunpack.i.h.bf16 %v13747_v28 }
 0x272   : > { %v4237_v39 = vmax.f32 %v4230_v22, 0.0  ;;  %v4473_v54 = vmax.f32 %v4466_v27, 0.0  ;;  %10919 = vrot.lane.b32.xlu1 %v10918_v51, %s11518_s7  ;;  %9985 = vmatprep.subr.bf16.mxu0 %v11426_v57  ;;  %v6310_v57 = vsel %vm5135_vm4, %v6308_v10, %v10631_v1  ;;  %v6313_v7 = vsel %vm263_vm0, %v6311_v40, %v10637_v41 }
 0x273   : > { %10894 = vrot.lane.b32.xlu0 %v10893_v47, %s11519_s25  ;;  %v6312_v24 = vsel %vm263_vm0, %v6310_v57, %v10636_v5  ;;  %v6315_v20 = vsel %vm5140_vm5, %v6313_v7, %v10642_v0  ;;  %v10656_v2 = vunpack.i.l.bf16 %v13747_v28  ;;  %v10652_v47 = vunpack.i.h.bf16 %v13723_v32  ;;  %v11437_v5 = vld [vmem:[%s14526_s3 + $0x38] sm:$0xff]  }
 0x274   : > { %4240 = vst.msk [vmem:[#allocation2 + $0x150] sm:$0xf] %vm463_vm2, %v4237_v39  ;;  %4476 = vst.msk [vmem:[#allocation2 + $0x164] sm:$0xf] %vm463_vm2, %v4473_v54  ;;  %v13757_v26 = vpop.permute.xlu1 %10689  ;;  %v13759_v42 = vpop.permute.xlu0 %10659  ;;  %v6314_v56 = vsel %vm5140_vm5, %v6312_v24, %v10641_v11  ;;  %v6317_v49 = vsel %vm5143_vm6, %v6315_v20, %v10647_v15  ;;  %v10651_v28 = vunpack.i.l.bf16 %v13723_v32  ;;  %v11436_v32 = vld [vmem:[%s14526_s3 + $0x78] sm:$0xff]  }
 0x275   : > { %9986 = vmatpush3.bf16.msra.mxu0 %v11427_v60  ;;  %v8128_v53 = vld [vmem:[#allocation2 + $0x141] ss:$2 sm:$0xff]  ;;  %v6316_v3 = vsel %vm5143_vm6, %v6314_v56, %v10646_v4  ;;  %v11434_v60 = vld [vmem:[%s14526_s3 + $0x70] sm:$0xff]   ;;  %v10662_v22 = vunpack.i.h.bf16 %v13759_v42  ;;  %v10661_v27 = vunpack.i.l.bf16 %v13759_v42  ;;  %v6320_v31 = vsel %vm460_vm1, %v6163_v43, %v10656_v2 }
 0x276   : > { %10924 = vrot.lane.b32.xlu1 %v10923_v25, %s11517_s6  ;;  %9987 = vmatprep.subr.bf16.mxu0 %v11428_v35  ;;  %v7748_v9 = vld [vmem:[#allocation2 + $0x141] ss:$2 sm:$0xff]  ;;  %v11435_v42 = vld [vmem:[%s14526_s3 + $0x30] sm:$0xff]   ;;  %v13848_v41 = vsel %vm5146_vm7, %v6317_v49, %v10652_v47 }
 0x277   : > { %10929 = vrot.lane.b32.xlu0 %v10928_v44, %s11519_s25  ;;  %v6165_v44 = vld [vmem:[#allocation2 + $0xb0] ss:$2 sm:$0x1]  ;;  %v8134_v1 = vld [vmem:[#allocation2 + $0x154] ss:$2 sm:$0xff] }
 0x278   : > { %v13775_v13 = vpop.permute.xlu1 %10694  ;;  %v13777_v61 = vpop.permute.xlu0 %10664  ;;  %v6321_v34 = vsel %vm460_vm1, %v6165_v44, %v10657_v6  ;;  %v7760_v11 = vld [vmem:[#allocation2 + $0x154] ss:$2 sm:$0xff]  ;;  %v13861_v40 = vld [vmem:[#allocation2 + $0x155] ss:$2 sm:$0xff] }
 0x279   : > { %9988 = vmatpush3.bf16.msra.mxu0 %v11429_v23  ;;  %v10667_v30 = vunpack.i.h.bf16 %v13777_v61  ;;  %v10666_v25 = vunpack.i.l.bf16 %v13777_v61 }
 0x27a   : > { %9989 = vmatprep.subr.bf16.mxu0 %v11430_v46 }
 0x27b   : > { %v8129_v59 = vld [vmem:[#allocation2 + $0x151] ss:$2 sm:$0x1]  ;;  %v8130_v17 = vld [vmem:[#allocation2 + $0x142] ss:$2 sm:$0xff] }
 0x27c   : > { %v7750_v55 = vld [vmem:[#allocation2 + $0x151] ss:$2 sm:$0x1]  ;;  %v13797_v12 = vpop.permute.xlu1 %10699  ;;  %v13799_v29 = vpop.permute.xlu0 %10669  ;;  %v10968_v63 = vpack.i.bf16 %v8129_v59, %v8128_v53  ;;  %v8131_v18 = vld [vmem:[#allocation2 + $0x152] ss:$2 sm:$0x1]  ;;  %v6322_v53 = vsel %vm5132_vm3, %v6320_v31, %v10661_v27 }
 0x27d   : > { %v10933_v33 = vpack.i.bf16 %v7750_v55, %v7748_v9  ;;  %v7752_v19 = vld [vmem:[#allocation2 + $0x142] ss:$2 sm:$0xff]  ;;  %v7754_v58 = vld [vmem:[#allocation2 + $0x152] ss:$2 sm:$0x1]  ;;  %9990 = vmatpush3.bf16.msra.mxu0 %v11431_v62  ;;  %v10973_v35 = vpack.i.bf16 %v8131_v18, %v8130_v17  ;;  %v10672_v46 = vunpack.i.h.bf16 %v13799_v29  ;;  %v10671_v48 = vunpack.i.l.bf16 %v13799_v29 }
 0x27e   : > { %10969 = vrot.lane.b32.xlu1 %v10968_v63, %s11515_s13  ;;  %9991 = vmatprep.subr.bf16.mxu0 %v11432_v45  ;;  %v10938_v38 = vpack.i.bf16 %v7754_v58, %v7752_v19  ;;  %v8132_v39 = vld [vmem:[#allocation2 + $0x143] ss:$2 sm:$0xff]  ;;  %v8133_v54 = vld [vmem:[#allocation2 + $0x153] ss:$2 sm:$0x1]  ;;  %v13845_v62 = vsel %vm5146_vm7, %v6316_v3, %v10651_v28  ;;  %v6323_v9 = vsel %vm5132_vm3, %v6321_v34, %v10662_v22 }
 0x27f   : > { %10934 = vrot.lane.b32.xlu0 %v10933_v33, %s11515_s13  ;;  %v7756_v23 = vld [vmem:[#allocation2 + $0x143] ss:$2 sm:$0xff]  ;;  %v7758_v14 = vld [vmem:[#allocation2 + $0x153] ss:$2 sm:$0x1]  ;;  %v10978_v8 = vpack.i.bf16 %v8133_v54, %v8132_v39  ;;  %v6324_v50 = vsel %vm5135_vm4, %v6322_v53, %v10666_v25  ;;  %v6325_v15 = vsel %vm5135_vm4, %v6323_v9, %v10667_v30 }
 0x280   : > { %v13819_v52 = vpop.permute.xlu1 %10704  ;;  %v13821_v51 = vpop.permute.xlu0 %10674  ;;  %v8135_v61 = vld [vmem:[#allocation2 + $0x164] ss:$2 sm:$0x1]  ;;  %v10943_v0 = vpack.i.bf16 %v7758_v14, %v7756_v23  ;;  %v13863_v29 = vld [vmem:[#allocation2 + $0x165] ss:$2 sm:$0x1]  ;;  %v6326_v63 = vsel %vm263_vm0, %v6324_v50, %v10671_v48  ;;  %v6327_v33 = vsel %vm263_vm0, %v6325_v15, %v10672_v46 }
 0x281   : > { %9992 = vmatpush3.bf16.msra.mxu0 %v11433_v21  ;;  %v7762_v10 = vld [vmem:[#allocation2 + $0x164] ss:$2 sm:$0x1]  ;;  %v10677_v4 = vunpack.i.h.bf16 %v13821_v51  ;;  %v10676_v59 = vunpack.i.l.bf16 %v13821_v51  ;;  %v10983_v20 = vpack.i.bf16 %v8135_v61, %v8134_v1  ;;  %v10988_v27 = vpack.i.bf16 %v13863_v29, %v13861_v40  ;;  %v7764_v51 = vld [vmem:[#allocation2 + $0x155] ss:$2 sm:$0xff] }
 0x282   : > { %10974 = vrot.lane.b32.xlu1 %v10973_v35, %s11514_s9  ;;  %9993 = vmatprep.subr.bf16.mxu0 %v11434_v60  ;;  %v11453_v3 = vld [vmem:[%s14526_s3 + $0x40] sm:$0xff]   ;;  %v10948_v60 = vpack.i.bf16 %v7762_v10, %v7760_v11  ;;  %v11440_v10 = vld [vmem:[%s14526_s3 + $0x48] sm:$0xff]  }
 0x283   : > { %10939 = vrot.lane.b32.xlu0 %v10938_v38, %s11514_s9  ;;  %v9881_v37 = vpop.f32.mrb[72].mxu1  ;;  %v6328_v35 = vsel %vm5140_vm5, %v6326_v63, %v10676_v59  ;;  %v6329_v38 = vsel %vm5140_vm5, %v6327_v33, %v10677_v4  ;;  %v7766_v28 = vld [vmem:[#allocation2 + $0x165] ss:$2 sm:$0x1]  ;;  %v7768_v9 = vld [vmem:[#allocation2 + $0x156] ss:$2 sm:$0xff]  ;;  %v6334_v59 = vpack.c.bf16 %v13848_v41, %v13845_v62 }
 0x284   : > { %v9853_v45 = vpop.f32.mrb[72].mxu0  ;;  %v13855_v36 = vpop.permute.xlu1 %10709  ;;  %v11439_v34 = vld [vmem:[%s14526_s3] sm:$0xff]   ;;  %v10953_v61 = vpack.i.bf16 %v7766_v28, %v7764_v51  ;;  %v10696_v51 = vunpack.i.l.bf16 %v13775_v13 }
 0x285   : > { %v10680_v55 = vpop.permute.xlu0 %10679  ;;  %v9854_v57 = vpop.f32.mrb[73].mxu0  ;;  %9994 = vmatpush3.bf16.msra.mxu0 %v11435_v42  ;;  %v7774_v29 = vld [vmem:[#allocation2 + $0x167] ss:$2 sm:$0x1]  ;;  %v7772_v41 = vld [vmem:[#allocation2 + $0x157] ss:$2 sm:$0xff] }
 0x286   : > { %v9855_v17 = vadd.f32 %v9854_v57, %v9853_v45  ;;  %v9856_v18 = vpop.f32.mrb[74].mxu0  ;;  %10979 = vrot.lane.b32.xlu1 %v10978_v8, %s11516_s24  ;;  %v9882_v24 = vpop.f32.mrb[73].mxu1  ;;  %v10682_v7 = vunpack.i.h.bf16 %v10680_v55  ;;  %v10681_v19 = vunpack.i.l.bf16 %v10680_v55  ;;  %9995 = vmatprep.subr.bf16.mxu0 %v11436_v32  ;;  %v7770_v32 = vld [vmem:[#allocation2 + $0x166] ss:$2 sm:$0x1] }
 0x287   : > { %10944 = vrot.lane.b32.xlu0 %v10943_v0, %s11516_s24  ;;  %v9857_v58 = vpop.f32.mrb[75].mxu0  ;;  %v9883_v21 = vadd.f32 %v9882_v24, %v9881_v37  ;;  %v9884_v56 = vpop.f32.mrb[74].mxu1  ;;  %v11441_v24 = vld [vmem:[%s14526_s3 + $0x8] sm:$0xff]  }
 0x288   : > { %v4694_v49 = vadd.f32 %v9855_v17, %v13842_v16  ;;  %v9858_v6 = vadd.f32 %v9857_v58, %v9856_v18  ;;  %v13873_v2 = vpop.permute.xlu1 %10714  ;;  %v9885_v22 = vpop.f32.mrb[75].mxu1  ;;  %v6330_v42 = vsel %vm5143_vm6, %v6328_v35, %v10681_v19  ;;  %v6331_v43 = vsel %vm5143_vm6, %v6329_v38, %v10682_v7 }
 0x289   : > { %v10685_v39 = vpop.permute.xlu0 %10684  ;;  %v4930_v54 = vadd.f32 %v9883_v21, %v13842_v16  ;;  %v9886_v47 = vadd.f32 %v9885_v22, %v9884_v56  ;;  %9996 = vmatpush3.bf16.msra.mxu0 %v11437_v5  ;;  %v10958_v18 = vpack.i.bf16 %v7770_v32, %v7768_v9  ;;  %v10963_v21 = vpack.i.bf16 %v7774_v29, %v7772_v41  ;;  %v6547_v22 = vld [vmem:[#allocation2 + $0xb0] ss:$2 sm:$0x1] }
 0x28a   : > { %v4707_v30 = vmax.f32 %v4694_v49, 0.0  ;;  %v4697_v25 = vadd.f32 %v9858_v6, %v13842_v16  ;;  %v10687_v23 = vunpack.i.h.bf16 %v10685_v39  ;;  %v10686_v14 = vunpack.i.l.bf16 %v10685_v39  ;;  %10984 = vrot.lane.b32.xlu1 %v10983_v20, %s11513_s11  ;;  %10025 = vmatprep.subr.bf16.mxu0 %v11453_v3  ;;  %v11443_v20 = vld [vmem:[%s14526_s3 + $0x10] sm:$0xff]   ;;  %v11444_v6 = vld [vmem:[%s14526_s3 + $0x58] sm:$0xff]   ;;  %v11446_v39 = vld [vmem:[%s14526_s3 + $0x60] sm:$0xff]  }
 0x28b   : > { %10949 = vrot.lane.b32.xlu0 %v10948_v60, %s11513_s11  ;;  %v4943_v44 = vmax.f32 %v4930_v54, 0.0  ;;  %v4933_v46 = vadd.f32 %v9886_v47, %v13842_v16  ;;  %v9887_v48 = vpop.f32.mrb[76].mxu1  ;;  %v10692_v3 = vunpack.i.h.bf16 %v13757_v26  ;;  %v10691_v49 = vunpack.i.l.bf16 %v13757_v26  ;;  %v6546_v60 = vld [vmem:[#allocation2 + $0xa0] ss:$2 sm:$0xff]  ;;  %v11445_v26 = vld [vmem:[%s14526_s3 + $0x18] sm:$0xff]  }
 0x28c   : > { %4710 = vst.msk [vmem:[#allocation2 + $0x168] sm:$0xff] %vm460_vm1, %v4707_v30  ;;  %v4708_v31 = vmax.f32 %v4697_v25, 0.0  ;;  %v9859_v37 = vpop.f32.mrb[76].mxu0  ;;  %v13890_v1 = vpop.permute.xlu1 %10719  ;;  %v6332_v5 = vsel %vm5146_vm7, %v6330_v42, %v10686_v14  ;;  %v6333_v53 = vsel %vm5146_vm7, %v6331_v43, %v10687_v23  ;;  %v10701_v35 = vunpack.i.l.bf16 %v13797_v12  ;;  %v8139_v25 = vld [vmem:[#allocation2 + $0x166] ss:$2 sm:$0x1] }
 0x28d   : > { %4946 = vst.msk [vmem:[#allocation2 + $0x17c] sm:$0xff] %vm460_vm1, %v4943_v44  ;;  %v4944_v45 = vmax.f32 %v4933_v46, 0.0  ;;  %v9860_v8 = vpop.f32.mrb[77].mxu0  ;;  %v9888_v0 = vpop.f32.mrb[77].mxu1  ;;  %v6335_v11 = vpack.c.bf16 %v6333_v53, %v6332_v5  ;;  %v10702_v54 = vunpack.i.h.bf16 %v13797_v12  ;;  %v10706_v47 = vunpack.i.l.bf16 %v13819_v52  ;;  %v13947_v23 = vld [vmem:[#allocation2 + $0x157] ss:$2 sm:$0xff] }
 0x28e   : > { %4711 = vst.msk [vmem:[#allocation2 + $0x170] sm:$0xff] %vm460_vm1, %v4708_v31  ;;  %v9861_v50 = vadd.f32 %v9860_v8, %v9859_v37  ;;  %v9889_v15 = vadd.f32 %v9888_v0, %v9887_v48  ;;  %v9862_v4 = vpop.f32.mrb[78].mxu0  ;;  %10989 = vrot.lane.b32.xlu1 %v10988_v27, %s11518_s7  ;;  %v9890_v55 = vpop.f32.mrb[78].mxu1  ;;  %v10697_v27 = vunpack.i.h.bf16 %v13775_v13  ;;  %v8138_v13 = vld [vmem:[#allocation2 + $0x156] ss:$2 sm:$0xff]  ;;  %v6707_v42 = vsel %vm460_vm1, %v6547_v22, %v10692_v3 }
 0x28f   : > { %10954 = vrot.lane.b32.xlu0 %v10953_v61, %s11518_s7  ;;  %4947 = vst.msk [vmem:[#allocation2 + $0x184] sm:$0xff] %vm460_vm1, %v4944_v45  ;;  %6503 = vmatprep.mubr.bf16.mxu1 %v6335_v11  ;;  %v9863_v57 = vpop.f32.mrb[79].mxu0  ;;  %v9891_v40 = vpop.f32.mrb[79].mxu1  ;;  %v13949_v14 = vld [vmem:[#allocation2 + $0x167] ss:$2 sm:$0x1]  ;;  %v6706_v43 = vsel %vm460_vm1, %v6546_v60, %v10691_v49  ;;  %v10707_v44 = vunpack.i.h.bf16 %v13819_v52  ;;  %v10711_v48 = vunpack.i.l.bf16 %v13855_v36  ;;  %v10716_v29 = vunpack.i.l.bf16 %v13873_v2 }
 0x290   : > { %v4702_v63 = vadd.f32 %v9861_v50, %v13842_v16  ;;  %v4938_v33 = vadd.f32 %v9889_v15, %v13842_v16  ;;  %6504 = vmatmul.mubr.bf16.vlgmr.msra.gmra.mrb[84].mxu1 %v6334_v59  ;;  %v13906_v17 = vpop.permute.xlu1 %10724  ;;  %v11442_v16 = vld [vmem:[%s14526_s3 + $0x50] sm:$0xff]   ;;  %v6708_v12 = vsel %vm5132_vm3, %v6706_v43, %v10696_v51  ;;  %v6709_v46 = vsel %vm5132_vm3, %v6707_v42, %v10697_v27  ;;  %v11447_v11 = vld [vmem:[%s14526_s3 + $0x20] sm:$0xff]   ;;  %v11448_v57 = vld [vmem:[%s14526_s3 + $0x68] sm:$0xff]  }
 0x291   : > { %v13911_v62 = vpop.permute.xlu0 %10729  ;;  %10004 = vmatpush3.bf16.msra.mxu1 %v11439_v34  ;;  %v6710_v31 = vsel %vm5135_vm4, %v6708_v12, %v10701_v35  ;;  %v10727_v37 = vunpack.i.h.bf16 %v13906_v17  ;;  %v10726_v61 = vunpack.i.l.bf16 %v13906_v17  ;;  %v6711_v52 = vsel %vm5135_vm4, %v6709_v46, %v10702_v54  ;;  %v11451_v43 = vld [vmem:[%s14526_s3 + $0x30] sm:$0xff]  }
 0x292   : > { %v4709_v7 = vmax.f32 %v4702_v63, 0.0  ;;  %v4945_v19 = vmax.f32 %v4938_v33, 0.0  ;;  %10005 = vmatprep.subr.bf16.mxu1 %v11440_v10  ;;  %v6712_v45 = vsel %vm263_vm0, %v6710_v31, %v10706_v47  ;;  %v6713_v10 = vsel %vm263_vm0, %v6711_v52, %v10707_v44  ;;  %v6563_v63 = vld [vmem:[#allocation2 + $0xc8] ss:$2 sm:$0xff] }
 0x293   : > { %10959 = vrot.lane.b32.xlu0 %v10958_v18, %s11517_s6  ;;  %v10712_v50 = vunpack.i.h.bf16 %v13855_v36  ;;  %v10998_v15 = vpack.i.bf16 %v8139_v25, %v8138_v13  ;;  %v11033_v55 = vpack.i.bf16 %v13949_v14, %v13947_v23  ;;  %v6714_v40 = vsel %vm5140_vm5, %v6712_v45, %v10711_v48  ;;  %v6565_v33 = vld [vmem:[#allocation2 + $0xd8] ss:$2 sm:$0x1]  ;;  %v11449_v18 = vld [vmem:[%s14526_s3 + $0x28] sm:$0xff]  }
 0x294   : > { %4712 = vst.msk [vmem:[#allocation2 + $0x178] sm:$0xf] %vm463_vm2, %v4709_v7  ;;  %4948 = vst.msk [vmem:[#allocation2 + $0x18c] sm:$0xf] %vm463_vm2, %v4945_v19  ;;  %v13919_v58 = vpop.permute.xlu1 %10759  ;;  %v10732_v36 = vunpack.i.h.bf16 %v13911_v62  ;;  %v10731_v17 = vunpack.i.l.bf16 %v13911_v62  ;;  %v6720_v41 = vsel %vm460_vm1, %v6563_v63, %v10726_v61  ;;  %v11450_v62 = vld [vmem:[%s14526_s3 + $0x70] sm:$0xff]   ;;  %v10717_v3 = vunpack.i.h.bf16 %v13873_v2 }
 0x295   : > { %v13921_v56 = vpop.permute.xlu0 %10734  ;;  %10006 = vmatpush3.bf16.msra.mxu1 %v11441_v24  ;;  %v8147_v30 = vld [vmem:[#allocation2 + $0x169] ss:$2 sm:$0xff]  ;;  %v6721_v24 = vsel %vm460_vm1, %v6565_v33, %v10727_v37  ;;  %v10722_v27 = vunpack.i.h.bf16 %v13890_v1  ;;  %v6715_v47 = vsel %vm5140_vm5, %v6713_v10, %v10712_v50  ;;  %v11452_v37 = vld [vmem:[%s14526_s3 + $0x78] sm:$0xff]   ;;  %v11455_v50 = vld [vmem:[%s14526_s3] sm:$0xff]  }
 0x296   : > { %10007 = vmatprep.subr.bf16.mxu1 %v11442_v16  ;;  %v10737_v7 = vunpack.i.h.bf16 %v13921_v56  ;;  %v10736_v19 = vunpack.i.l.bf16 %v13921_v56  ;;  %v10721_v56 = vunpack.i.l.bf16 %v13890_v1  ;;  %v6722_v2 = vsel %vm5132_vm3, %v6720_v41, %v10731_v17  ;;  %v11454_v10 = vld [vmem:[%s14526_s3 + $0x38] sm:$0xff]   ;;  %v11457_v33 = vld [vmem:[%s14526_s3 + $0x8] sm:$0xff]   ;;  %vm5734_vm2 = vmor %vm5354_vm13, %vm5733_vm15 }
 0x297   : > { %10964 = vrot.lane.b32.xlu0 %v10963_v21, %s11519_s25  ;;  %v8159_v21 = vld [vmem:[#allocation2 + $0x17c] ss:$2 sm:$0xff]  ;;  %v6717_v13 = vsel %vm5143_vm6, %v6715_v47, %v10717_v3  ;;  %vm6920_vm15 = vcmask 1041408  }
 0x298   : > { %v13935_v38 = vpop.permute.xlu1 %10764  ;;  %v11461_v3 = vld [vmem:[%s14526_s3 + $0x18] sm:$0xff]  }
 0x299   : > { %v13945_v28 = vpop.permute.xlu0 %10739  ;;  %10008 = vmatpush3.bf16.msra.mxu1 %v11443_v20 }
 0x29a   : > { %10009 = vmatprep.subr.bf16.mxu1 %v11444_v6  ;;  %v10742_v49 = vunpack.i.h.bf16 %v13945_v28  ;;  %v10741_v6 = vunpack.i.l.bf16 %v13945_v28  ;;  %v6716_v28 = vsel %vm5143_vm6, %v6714_v40, %v10716_v29 }
 0x29b   : > { %v8149_v32 = vld [vmem:[#allocation2 + $0x179] ss:$2 sm:$0x1]  ;;  %v8151_v34 = vld [vmem:[#allocation2 + $0x16a] ss:$2 sm:$0xff]  ;;  %v6718_v61 = vsel %vm5146_vm7, %v6716_v28, %v10721_v56  ;;  %v10761_v56 = vunpack.i.l.bf16 %v13919_v58 }
 0x29c   : > { %v13960_v5 = vpop.permute.xlu1 %10769  ;;  %v10993_v53 = vpack.i.bf16 %v8149_v32, %v8147_v30  ;;  %v8153_v9 = vld [vmem:[#allocation2 + $0x17a] ss:$2 sm:$0x1]  ;;  %v8155_v4 = vld [vmem:[#allocation2 + $0x16b] ss:$2 sm:$0xff]  ;;  %v6724_v30 = vsel %vm5135_vm4, %v6722_v2, %v10736_v19 }
 0x29d   : > { %v10745_v8 = vpop.permute.xlu0 %10744  ;;  %v11003_v0 = vpack.i.bf16 %v8153_v9, %v8151_v34  ;;  %10010 = vmatpush3.bf16.msra.mxu1 %v11445_v26  ;;  %v8157_v59 = vld [vmem:[#allocation2 + $0x17b] ss:$2 sm:$0x1]  ;;  %v8161_v20 = vld [vmem:[#allocation2 + $0x18c] ss:$2 sm:$0x1]  ;;  %v6723_v26 = vsel %vm5132_vm3, %v6721_v24, %v10732_v36  ;;  %v6726_v25 = vsel %vm263_vm0, %v6724_v30, %v10741_v6  ;;  %v10772_v2 = vunpack.i.h.bf16 %v13960_v5 }
 0x29e   : > { %10994 = vrot.lane.b32.xlu1 %v10993_v53, %s11515_s13  ;;  %10011 = vmatprep.subr.bf16.mxu1 %v11446_v39  ;;  %v11008_v22 = vpack.i.bf16 %v8157_v59, %v8155_v4  ;;  %v10747_v51 = vunpack.i.h.bf16 %v10745_v8  ;;  %v10746_v35 = vunpack.i.l.bf16 %v10745_v8  ;;  %v6725_v1 = vsel %vm5135_vm4, %v6723_v26, %v10737_v7  ;;  %v8163_v34 = vld [vmem:[#allocation2 + $0x17d] ss:$2 sm:$0xff]  ;;  %v8165_v31 = vld [vmem:[#allocation2 + $0x18d] ss:$2 sm:$0x1]  ;;  %v11459_v19 = vld [vmem:[%s14526_s3 + $0x10] sm:$0xff]  }
 0x29f   : > { %11004 = vrot.lane.b32.xlu0 %v11003_v0, %s11514_s9  ;;  %v6727_v23 = vsel %vm263_vm0, %v6725_v1, %v10742_v49  ;;  %v11013_v42 = vpack.i.bf16 %v8161_v20, %v8159_v21  ;;  %v6719_v53 = vsel %vm5146_vm7, %v6717_v13, %v10722_v27  ;;  %v11018_v0 = vpack.i.bf16 %v8165_v31, %v8163_v34  ;;  %v8167_v59 = vld [vmem:[#allocation2 + $0x17e] ss:$2 sm:$0xff]  ;;  %v8171_v36 = vld [vmem:[#allocation2 + $0x17f] ss:$2 sm:$0xff]  ;;  %s10092_s13 = smul.u32 44, %s14534_s19 }
 0x2a0   : > { %v13987_v16 = vpop.permute.xlu1 %10774  ;;  %v6728_v44 = vsel %vm5140_vm5, %v6726_v25, %v10746_v35  ;;  %v6729_v12 = vsel %vm5140_vm5, %v6727_v23, %v10747_v51  ;;  %v6734_v4 = vpack.c.bf16 %v6719_v53, %v6718_v61  ;;  %v8173_v17 = vld [vmem:[#allocation2 + $0x18f] ss:$2 sm:$0x1]  ;;  %v11460_v21 = vld [vmem:[%s14526_s3 + $0x58] sm:$0xff]   ;;  %v11462_v49 = vld [vmem:[%s14526_s3 + $0x60] sm:$0xff]   ;;  %v10762_v27 = vunpack.i.h.bf16 %v13919_v58 }
 0x2a1   : > { %v10750_v60 = vpop.permute.xlu0 %10749  ;;  %10012 = vmatpush3.bf16.msra.mxu1 %v11447_v11  ;;  %v11028_v7 = vpack.i.bf16 %v8173_v17, %v8171_v36  ;;  %v11464_v51 = vld [vmem:[%s14526_s3 + $0x68] sm:$0xff]   ;;  %v10767_v35 = vunpack.i.h.bf16 %v13935_v38  ;;  %v10766_v26 = vunpack.i.l.bf16 %v13935_v38  ;;  %v6938_v30 = vld [vmem:[#allocation2 + $0xd8] ss:$2 sm:$0x1]  ;;  %v10777_v58 = vunpack.i.h.bf16 %v13987_v16  ;;  %s14161_s10 = scalar_lea.vmem %s14528_s5, %s10092_s13 }
 0x2a2   : > { %10999 = vrot.lane.b32.xlu1 %v10998_v15, %s11517_s6  ;;  %10013 = vmatprep.subr.bf16.mxu1 %v11448_v57  ;;  %v10752_v39 = vunpack.i.h.bf16 %v10750_v60  ;;  %v10751_v54 = vunpack.i.l.bf16 %v10750_v60  ;;  %v11456_v15 = vld [vmem:[%s14526_s3 + $0x48] sm:$0xff]   ;;  %v11470_v57 = vld [vmem:[%s14526_s3 + $0x40] sm:$0xff]   ;;  %v10776_v1 = vunpack.i.l.bf16 %v13987_v16  ;;  %v7098_v38 = vsel %vm460_vm1, %v6938_v30, %v10762_v27 }
 0x2a3   : > { %11009 = vrot.lane.b32.xlu0 %v11008_v22, %s11516_s24  ;;  %v11463_v22 = vld [vmem:[%s14526_s3 + $0x20] sm:$0xff]   ;;  %v6937_v28 = vld [vmem:[#allocation2 + $0xc8] ss:$2 sm:$0xff] }
 0x2a4   : > { %v14013_v46 = vpop.permute.xlu1 %10779  ;;  %v6730_v9 = vsel %vm5143_vm6, %v6728_v44, %v10751_v54  ;;  %v6731_v52 = vsel %vm5143_vm6, %v6729_v12, %v10752_v39  ;;  %v10771_v39 = vunpack.i.l.bf16 %v13960_v5  ;;  %v11465_v13 = vld [vmem:[%s14526_s3 + $0x28] sm:$0xff]   ;;  %v7097_v25 = vsel %vm460_vm1, %v6937_v28, %v10761_v56 }
 0x2a5   : > { %v10755_v14 = vpop.permute.xlu0 %10754  ;;  %10014 = vmatpush3.bf16.msra.mxu1 %v11449_v18  ;;  %v11458_v18 = vld [vmem:[%s14526_s3 + $0x50] sm:$0xff]   ;;  %v10782_v5 = vunpack.i.h.bf16 %v14013_v46  ;;  %v10781_v23 = vunpack.i.l.bf16 %v14013_v46  ;;  %v7099_v16 = vsel %vm5132_vm3, %v7097_v25, %v10766_v26 }
 0x2a6   : > { %v10757_v48 = vunpack.i.h.bf16 %v10755_v14  ;;  %v10756_v32 = vunpack.i.l.bf16 %v10755_v14  ;;  %11034 = vrot.lane.b32.xlu1 %v11033_v55, %s11519_s25  ;;  %10015 = vmatprep.subr.bf16.mxu1 %v11450_v62  ;;  %v8169_v55 = vld [vmem:[#allocation2 + $0x18e] ss:$2 sm:$0x1]  ;;  %v11466_v14 = vld [vmem:[%s14526_s3 + $0x70] sm:$0xff]  }
 0x2a7   : > { %11014 = vrot.lane.b32.xlu0 %v11013_v42, %s11513_s11  ;;  %v11023_v63 = vpack.i.bf16 %v8169_v55, %v8167_v59  ;;  %v7100_v42 = vsel %vm5132_vm3, %v7098_v38, %v10767_v35  ;;  %v6956_v59 = vld [vmem:[#allocation2 + $0x100] ss:$2 sm:$0x1] }
 0x2a8   : > { %v6732_v45 = vsel %vm5146_vm7, %v6730_v9, %v10756_v32  ;;  %v6733_v8 = vsel %vm5146_vm7, %v6731_v52, %v10757_v48  ;;  %v14039_v40 = vpop.permute.xlu1 %10784  ;;  %v7102_v44 = vsel %vm5135_vm4, %v7100_v42, %v10772_v2 }
 0x2a9   : > { %v6735_v11 = vpack.c.bf16 %v6733_v8, %v6732_v45  ;;  %10016 = vmatpush3.bf16.msra.mxu1 %v11451_v43  ;;  %v14041_v29 = vpop.permute.xlu0 %10789  ;;  %v7101_v43 = vsel %vm5135_vm4, %v7099_v16, %v10771_v39  ;;  %v7104_v46 = vsel %vm263_vm0, %v7102_v44, %v10777_v58  ;;  %v11468_v45 = vld [vmem:[%s14526_s3 + $0x78] sm:$0xff]   ;;  %v10787_v8 = vunpack.i.h.bf16 %v14039_v40  ;;  %v11472_v16 = vld [vmem:[%s14526_s3 + $0x48] sm:$0xff]  }
 0x2aa   : > { %10017 = vmatprep.subr.bf16.mxu1 %v11452_v37  ;;  %v7103_v32 = vsel %vm263_vm0, %v7101_v43, %v10776_v1  ;;  %v11467_v37 = vld [vmem:[%s14526_s3 + $0x30] sm:$0xff]   ;;  %v7106_v53 = vsel %vm5140_vm5, %v7104_v46, %v10782_v5  ;;  %v11471_v5 = vld [vmem:[%s14526_s3] sm:$0xff]   ;;  %v11473_v44 = vld [vmem:[%s14526_s3 + $0x8] sm:$0xff]  }
 0x2ab   : > { %11019 = vrot.lane.b32.xlu0 %v11018_v0, %s11518_s7  ;;  %6903 = vmatprep.mubr.bf16.mxu0 %v6735_v11  ;;  %v7105_v61 = vsel %vm5140_vm5, %v7103_v32, %v10781_v23  ;;  %v10786_v0 = vunpack.i.l.bf16 %v14039_v40  ;;  %v4952_v23 = vld [vmem:[%s14161_s10 + $0x28] sm:$0x3] }
 0x2ac   : > { %6904 = vmatmul.mubr.bf16.vlgmr.msra.gmra.mrb[88].mxu0 %v6734_v4  ;;  %v6954_v4 = vld [vmem:[#allocation2 + $0xf0] ss:$2 sm:$0xff]  ;;  %v4953_v42 = vsel %vm4951_vm10, 0, %v4952_v23  ;;  %vm6520_vm10 = vsmask.f32 5392 }
 0x2ad   : > { %10018 = vmatpush3.bf16.msra.mxu1 %v11454_v10  ;;  %10026 = vmatpush3.bf16.msra.mxu0 %v11455_v50  ;;  %v10792_v50 = vunpack.i.h.bf16 %v14041_v29  ;;  %4954 = vst [vmem:[%s14161_s10 + $0x28] sm:$0x3] %v4953_v42 }
 0x2ae   : > { %10027 = vmatprep.subr.bf16.mxu0 %v11456_v15  ;;  %10047 = vmatprep.subr.bf16.mxu1 %v11470_v57  ;;  %v10791_v15 = vunpack.i.l.bf16 %v14041_v29 }
 0x2af   : > { %11024 = vrot.lane.b32.xlu0 %v11023_v63, %s11517_s6 }
 0x2b0   : > { %v14050_v24 = vpop.permute.xlu1 %10829 }
 0x2b1   : > { %v14052_v41 = vpop.permute.xlu0 %10794  ;;  %10028 = vmatpush3.bf16.msra.mxu0 %v11457_v33 }
 0x2b2   : > { %10029 = vmatprep.subr.bf16.mxu0 %v11458_v18  ;;  %v10797_v34 = vunpack.i.h.bf16 %v14052_v41  ;;  %v10796_v31 = vunpack.i.l.bf16 %v14052_v41  ;;  %v11469_v18 = vld [vmem:[%s14526_s3 + $0x38] sm:$0xff]  }
 0x2b3   : > { %11029 = vrot.lane.b32.xlu0 %v11028_v7, %s11519_s25 }
 0x2b4   : > { %v14061_v20 = vpop.permute.xlu1 %10834  ;;  %v7112_v33 = vsel %vm460_vm1, %v6956_v59, %v10797_v34  ;;  %v7111_v36 = vsel %vm460_vm1, %v6954_v4, %v10796_v31  ;;  %v11475_v34 = vld [vmem:[%s14526_s3 + $0x10] sm:$0xff]   ;;  %v11476_v31 = vld [vmem:[%s14526_s3 + $0x58] sm:$0xff]  }
 0x2b5   : > { %v14063_v62 = vpop.permute.xlu0 %10799  ;;  %10030 = vmatpush3.bf16.msra.mxu0 %v11459_v19 }
 0x2b6   : > { %10031 = vmatprep.subr.bf16.mxu0 %v11460_v21  ;;  %v10802_v9 = vunpack.i.h.bf16 %v14063_v62  ;;  %v10801_v52 = vunpack.i.l.bf16 %v14063_v62  ;;  %v11485_v62 = vld [vmem:[%s14526_s3 + $0x40] sm:$0xff]  }
 0x2b8   : > { %v14071_v6 = vpop.permute.xlu1 %10839  ;;  %v7113_v29 = vsel %vm5132_vm3, %v7111_v36, %v10801_v52  ;;  %v7114_v41 = vsel %vm5132_vm3, %v7112_v33, %v10802_v9  ;;  %v11477_v9 = vld [vmem:[%s14526_s3 + $0x18] sm:$0xff]   ;;  %v10837_v52 = vunpack.i.h.bf16 %v14061_v20 }
 0x2b9   : > { %v14073_v60 = vpop.permute.xlu0 %10804  ;;  %10032 = vmatpush3.bf16.msra.mxu0 %v11461_v3  ;;  %v7107_v3 = vsel %vm5143_vm6, %v7105_v61, %v10786_v0  ;;  %v10832_v61 = vunpack.i.h.bf16 %v14050_v24  ;;  %v11478_v0 = vld [vmem:[%s14526_s3 + $0x60] sm:$0xff]  }
 0x2ba   : > { %10033 = vmatprep.subr.bf16.mxu0 %v11462_v49  ;;  %v10807_v11 = vunpack.i.h.bf16 %v14073_v60  ;;  %v10806_v10 = vunpack.i.l.bf16 %v14073_v60  ;;  %v7108_v49 = vsel %vm5143_vm6, %v7106_v53, %v10787_v8  ;;  %v7109_v28 = vsel %vm5146_vm7, %v7107_v3, %v10791_v15  ;;  %v7338_v15 = vld [vmem:[#allocation2 + $0x100] ss:$2 sm:$0x1] }
 0x2bb   : > { %v10831_v53 = vunpack.i.l.bf16 %v14050_v24  ;;  %v10841_v24 = vunpack.i.l.bf16 %v14071_v6  ;;  %v7354_v3 = vld [vmem:[#allocation2 + $0x118] ss:$2 sm:$0xff] }
 0x2bc   : > { %v14087_v54 = vpop.permute.xlu1 %10844  ;;  %v7115_v60 = vsel %vm5135_vm4, %v7113_v29, %v10806_v10 }
 0x2bd   : > { %v14089_v47 = vpop.permute.xlu0 %10809  ;;  %10034 = vmatpush3.bf16.msra.mxu0 %v11463_v22  ;;  %v7116_v22 = vsel %vm5135_vm4, %v7114_v41, %v10807_v11  ;;  %v10842_v11 = vunpack.i.h.bf16 %v14071_v6  ;;  %v10847_v4 = vunpack.i.h.bf16 %v14087_v54  ;;  %v10846_v59 = vunpack.i.l.bf16 %v14087_v54  ;;  %v11480_v54 = vld [vmem:[%s14526_s3 + $0x68] sm:$0xff]  }
 0x2be   : > { %10035 = vmatprep.subr.bf16.mxu0 %v11464_v51  ;;  %v10812_v55 = vunpack.i.h.bf16 %v14089_v47  ;;  %v10811_v57 = vunpack.i.l.bf16 %v14089_v47  ;;  %v7110_v47 = vsel %vm5146_vm7, %v7108_v49, %v10792_v50  ;;  %v7337_v50 = vld [vmem:[#allocation2 + $0xf0] ss:$2 sm:$0xff]  ;;  %v7356_v49 = vld [vmem:[#allocation2 + $0x128] ss:$2 sm:$0x1] }
 0x2c0   : > { %v14107_v12 = vpop.permute.xlu1 %10849  ;;  %v7117_v27 = vsel %vm263_vm0, %v7115_v60, %v10811_v57  ;;  %v7118_v56 = vsel %vm263_vm0, %v7116_v22, %v10812_v55  ;;  %v7497_v55 = vsel %vm460_vm1, %v7337_v50, %v10831_v53  ;;  %v11479_v57 = vld [vmem:[%s14526_s3 + $0x20] sm:$0xff]  }
 0x2c1   : > { %v10815_v48 = vpop.permute.xlu0 %10814  ;;  %10036 = vmatpush3.bf16.msra.mxu0 %v11465_v13 }
 0x2c2   : > { %10037 = vmatprep.subr.bf16.mxu0 %v11466_v14  ;;  %v10817_v40 = vunpack.i.h.bf16 %v10815_v48  ;;  %v10816_v17 = vunpack.i.l.bf16 %v10815_v48  ;;  %v7125_v14 = vpack.c.bf16 %v7110_v47, %v7109_v28  ;;  %v11474_v48 = vld [vmem:[%s14526_s3 + $0x50] sm:$0xff]  }
 0x2c4   : > { %v14138_v7 = vpop.permute.xlu1 %10854  ;;  %v7119_v35 = vsel %vm5140_vm5, %v7117_v27, %v10816_v17  ;;  %v7120_v26 = vsel %vm5140_vm5, %v7118_v56, %v10817_v40  ;;  %v11481_v27 = vld [vmem:[%s14526_s3 + $0x28] sm:$0xff]  }
 0x2c5   : > { %v10820_v63 = vpop.permute.xlu0 %10819  ;;  %10038 = vmatpush3.bf16.msra.mxu0 %v11467_v37 }
 0x2c6   : > { %v10822_v19 = vunpack.i.h.bf16 %v10820_v63  ;;  %v10821_v21 = vunpack.i.l.bf16 %v10820_v63  ;;  %10039 = vmatprep.subr.bf16.mxu0 %v11468_v45  ;;  %v10836_v45 = vunpack.i.l.bf16 %v14061_v20  ;;  %v7498_v20 = vsel %vm460_vm1, %v7338_v15, %v10832_v61  ;;  %v11486_v15 = vld [vmem:[%s14526_s3 + $0x38] sm:$0xff]  }
 0x2c7   : > { %v7500_v6 = vsel %vm5132_vm3, %v7498_v20, %v10837_v52 }
 0x2c8   : > { %v7121_v30 = vsel %vm5143_vm6, %v7119_v35, %v10821_v21  ;;  %v7122_v58 = vsel %vm5143_vm6, %v7120_v26, %v10822_v19  ;;  %v14163_v38 = vpop.permute.xlu1 %10859  ;;  %v7499_v63 = vsel %vm5132_vm3, %v7497_v55, %v10836_v45  ;;  %v7502_v17 = vsel %vm5135_vm4, %v7500_v6, %v10842_v11  ;;  %v11487_v55 = vld [vmem:[%s14526_s3] sm:$0xff]   ;;  %v11488_v6 = vld [vmem:[%s14526_s3 + $0x48] sm:$0xff]  }
 0x2c9   : > { %v10825_v51 = vpop.permute.xlu0 %10824  ;;  %10040 = vmatpush3.bf16.msra.mxu0 %v11469_v18  ;;  %v7501_v40 = vsel %vm5135_vm4, %v7499_v63, %v10841_v24  ;;  %v7504_v41 = vsel %vm263_vm0, %v7502_v17, %v10847_v4  ;;  %v10852_v21 = vunpack.i.h.bf16 %v14107_v12 }
 0x2ca   : > { %v10827_v2 = vunpack.i.h.bf16 %v10825_v51  ;;  %v10826_v39 = vunpack.i.l.bf16 %v10825_v51  ;;  %10069 = vmatprep.subr.bf16.mxu0 %v11485_v62  ;;  %v7503_v29 = vsel %vm263_vm0, %v7501_v40, %v10846_v59  ;;  %v10851_v62 = vunpack.i.l.bf16 %v14107_v12  ;;  %v11482_v12 = vld [vmem:[%s14526_s3 + $0x70] sm:$0xff]  }
 0x2cc   : > { %v7123_v1 = vsel %vm5146_vm7, %v7121_v30, %v10826_v39  ;;  %v7124_v13 = vsel %vm5146_vm7, %v7122_v58, %v10827_v2  ;;  %v10857_v2 = vunpack.i.h.bf16 %v14138_v7  ;;  %v10856_v39 = vunpack.i.l.bf16 %v14138_v7  ;;  %v11483_v7 = vld [vmem:[%s14526_s3 + $0x30] sm:$0xff]  }
 0x2cd   : > { %v7126_v25 = vpack.c.bf16 %v7124_v13, %v7123_v1  ;;  %v10862_v58 = vunpack.i.h.bf16 %v14163_v38  ;;  %v10861_v1 = vunpack.i.l.bf16 %v14163_v38  ;;  %v7505_v42 = vsel %vm5140_vm5, %v7503_v29, %v10851_v62  ;;  %v11492_v29 = vld [vmem:[%s14526_s3 + $0x58] sm:$0xff]  }
 0x2cf   : > { %7294 = vmatprep.mubr.bf16.mxu1 %v7126_v25 }
 0x2d0   : > { %7295 = vmatmul.mubr.bf16.vlgmr.msra.gmra.mrb[88].mxu1 %v7125_v14  ;;  %v10865_v43 = vpop.permute.xlu1 %10864 }
 0x2d1   : > { %10048 = vmatpush3.bf16.msra.mxu1 %v11471_v5  ;;  %v14181_v32 = vpop.permute.xlu0 %10869  ;;  %v10867_v33 = vunpack.i.h.bf16 %v10865_v43  ;;  %v10866_v36 = vunpack.i.l.bf16 %v10865_v43  ;;  %v7506_v43 = vsel %vm5140_vm5, %v7504_v41, %v10852_v21 }
 0x2d2   : > { %10049 = vmatprep.subr.bf16.mxu1 %v11472_v16  ;;  %v10872_v60 = vunpack.i.h.bf16 %v14181_v32  ;;  %v10871_v22 = vunpack.i.l.bf16 %v14181_v32  ;;  %v11484_v32 = vld [vmem:[%s14526_s3 + $0x78] sm:$0xff]  }
 0x2d3   : > { %v7512_v56 = vsel %vm460_vm1, %v7356_v49, %v10867_v33  ;;  %v7511_v51 = vsel %vm460_vm1, %v7354_v3, %v10866_v36  ;;  %v11489_v36 = vld [vmem:[%s14526_s3 + $0x8] sm:$0xff]   ;;  %v11493_v3 = vld [vmem:[%s14526_s3 + $0x18] sm:$0xff]   ;;  %v14308_v49 = vld [vmem:[%s14527_s4] ss:$0 sm:$0xff] }
 0x2d4   : > { %v14183_v46 = vpop.permute.xlu1 %10899  ;;  %v7514_v5 = vsel %vm5132_vm3, %v7512_v56, %v10872_v60  ;;  %v7513_v23 = vsel %vm5132_vm3, %v7511_v51, %v10871_v22  ;;  %v11494_v22 = vld [vmem:[%s14526_s3 + $0x60] sm:$0xff]  }
 0x2d5   : > { %10050 = vmatpush3.bf16.msra.mxu1 %v11473_v44  ;;  %v14191_v37 = vpop.permute.xlu0 %10874  ;;  %v10902_v51 = vunpack.i.h.bf16 %v14183_v46 }
 0x2d6   : > { %10051 = vmatprep.subr.bf16.mxu1 %v11474_v48  ;;  %v10877_v35 = vunpack.i.h.bf16 %v14191_v37  ;;  %v10876_v26 = vunpack.i.l.bf16 %v14191_v37 }
 0x2d8   : > { %v14200_v8 = vpop.permute.xlu1 %10904  ;;  %v7515_v44 = vsel %vm5135_vm4, %v7513_v23, %v10876_v26  ;;  %v7516_v38 = vsel %vm5135_vm4, %v7514_v5, %v10877_v35  ;;  %v10901_v35 = vunpack.i.l.bf16 %v14183_v46  ;;  %v11496_v46 = vld [vmem:[%s14526_s3 + $0x68] sm:$0xff]  }
 0x2d9   : > { %10052 = vmatpush3.bf16.msra.mxu1 %v11475_v34  ;;  %v10880_v10 = vpop.permute.xlu0 %10879  ;;  %v7507_v34 = vsel %vm5143_vm6, %v7505_v42, %v10856_v39 }
 0x2da   : > { %10053 = vmatprep.subr.bf16.mxu1 %v11476_v31  ;;  %v10882_v47 = vunpack.i.h.bf16 %v10880_v10  ;;  %v10881_v28 = vunpack.i.l.bf16 %v10880_v10  ;;  %v7508_v31 = vsel %vm5143_vm6, %v7506_v43, %v10857_v2  ;;  %v7509_v11 = vsel %vm5146_vm7, %v7507_v34, %v10861_v1  ;;  %v11497_v34 = vld [vmem:[%s14526_s3 + $0x28] sm:$0xff]  }
 0x2db   : > { %v7510_v24 = vsel %vm5146_vm7, %v7508_v31, %v10862_v58  ;;  %v10906_v2 = vunpack.i.l.bf16 %v14200_v8 }
 0x2dc   : > { %v14223_v19 = vpop.permute.xlu1 %10909  ;;  %v7517_v37 = vsel %vm263_vm0, %v7515_v44, %v10881_v28  ;;  %v7518_v61 = vsel %vm263_vm0, %v7516_v38, %v10882_v47  ;;  %v11495_v28 = vld [vmem:[%s14526_s3 + $0x20] sm:$0xff]  }
 0x2dd   : > { %10054 = vmatpush3.bf16.msra.mxu1 %v11477_v9  ;;  %v10885_v18 = vpop.permute.xlu0 %10884  ;;  %v10911_v58 = vunpack.i.l.bf16 %v14223_v19 }
 0x2de   : > { %10055 = vmatprep.subr.bf16.mxu1 %v11478_v0  ;;  %v10887_v13 = vunpack.i.h.bf16 %v10885_v18  ;;  %v10886_v25 = vunpack.i.l.bf16 %v10885_v18  ;;  %v11491_v18 = vld [vmem:[%s14526_s3 + $0x10] sm:$0xff]  }
 0x2e0   : > { %v14252_v48 = vpop.permute.xlu1 %10914  ;;  %v7519_v9 = vsel %vm5140_vm5, %v7517_v37, %v10886_v25  ;;  %v7520_v52 = vsel %vm5140_vm5, %v7518_v61, %v10887_v13  ;;  %v7728_v13 = vld [vmem:[#allocation2 + $0x128] ss:$2 sm:$0x1]  ;;  %v11498_v61 = vld [vmem:[%s14526_s3 + $0x70] sm:$0xff]  }
 0x2e1   : > { %10056 = vmatpush3.bf16.msra.mxu1 %v11479_v57  ;;  %v10890_v30 = vpop.permute.xlu0 %10889  ;;  %v7525_v57 = vpack.c.bf16 %v7510_v24, %v7509_v11  ;;  %v10917_v25 = vunpack.i.h.bf16 %v14252_v48  ;;  %v10916_v5 = vunpack.i.l.bf16 %v14252_v48 }
 0x2e2   : > { %10057 = vmatprep.subr.bf16.mxu1 %v11480_v54  ;;  %v10892_v14 = vunpack.i.h.bf16 %v10890_v30  ;;  %v10891_v16 = vunpack.i.l.bf16 %v10890_v30  ;;  %v11490_v54 = vld [vmem:[%s14526_s3 + $0x50] sm:$0xff]   ;;  %v10912_v30 = vunpack.i.h.bf16 %v14223_v19  ;;  %v7888_v19 = vsel %vm460_vm1, %v7728_v13, %v10902_v51 }
 0x2e4   : > { %v7521_v10 = vsel %vm5143_vm6, %v7519_v9, %v10891_v16  ;;  %v7522_v50 = vsel %vm5143_vm6, %v7520_v52, %v10892_v14  ;;  %v14275_v63 = vpop.permute.xlu1 %10919 }
 0x2e5   : > { %10058 = vmatpush3.bf16.msra.mxu1 %v11481_v27  ;;  %v10895_v53 = vpop.permute.xlu0 %10894  ;;  %v10922_v42 = vunpack.i.h.bf16 %v14275_v63  ;;  %v10921_v43 = vunpack.i.l.bf16 %v14275_v63  ;;  %v11499_v63 = vld [vmem:[%s14526_s3 + $0x30] sm:$0xff]  }
 0x2e6   : > { %10059 = vmatprep.subr.bf16.mxu1 %v11482_v12  ;;  %v10897_v45 = vunpack.i.h.bf16 %v10895_v53  ;;  %v10896_v0 = vunpack.i.l.bf16 %v10895_v53  ;;  %v10907_v12 = vunpack.i.h.bf16 %v14200_v8  ;;  %v7727_v8 = vld [vmem:[#allocation2 + $0x118] ss:$2 sm:$0xff] }
 0x2e8   : > { %v7523_v4 = vsel %vm5146_vm7, %v7521_v10, %v10896_v0  ;;  %v7524_v59 = vsel %vm5146_vm7, %v7522_v50, %v10897_v45  ;;  %v14290_v17 = vpop.permute.xlu1 %10924  ;;  %v7890_v38 = vsel %vm5132_vm3, %v7888_v19, %v10907_v12 }
 0x2e9   : > { %10060 = vmatpush3.bf16.msra.mxu1 %v11483_v7  ;;  %v7526_v20 = vpack.c.bf16 %v7524_v59, %v7523_v4  ;;  %v14280_v33 = vpop.permute.xlu0 %10929  ;;  %v7887_v7 = vsel %vm460_vm1, %v7727_v8, %v10901_v35  ;;  %v7892_v37 = vsel %vm5135_vm4, %v7890_v38, %v10912_v30  ;;  %v5356_v4 = vld [vmem:[%s14161_s10 + $0x4] sm:$0x1]  ;;  %v10927_v59 = vunpack.i.h.bf16 %v14290_v17 }
 0x2ea   : > { %10061 = vmatprep.subr.bf16.mxu1 %v11484_v32  ;;  %v7889_v44 = vsel %vm5132_vm3, %v7887_v7, %v10906_v2  ;;  %v7894_v9 = vsel %vm263_vm0, %v7892_v37, %v10917_v25 }
 0x2eb   : > { %7694 = vmatprep.mubr.bf16.mxu0 %v7526_v20  ;;  %v7891_v31 = vsel %vm5135_vm4, %v7889_v44, %v10911_v58  ;;  %v7896_v11 = vsel %vm5140_vm5, %v7894_v9, %v10922_v42 }
 0x2ec   : > { %7695 = vmatmul.mubr.bf16.vlgmr.msra.gmra.mrb[92].mxu0 %v7525_v57  ;;  %v7893_v53 = vsel %vm263_vm0, %v7891_v31, %v10916_v5 }
 0x2ed   : > { %10062 = vmatpush3.bf16.msra.mxu1 %v11486_v15  ;;  %10070 = vmatpush3.bf16.msra.mxu0 %v11487_v55  ;;  %v7895_v0 = vsel %vm5140_vm5, %v7893_v53, %v10921_v43 }
 0x2ee   : > { %10071 = vmatprep.subr.bf16.mxu0 %v11488_v6  ;;  %v10926_v6 = vunpack.i.l.bf16 %v14290_v17 }
 0x2f0   : > { %v14300_v21 = vpop.permute.xlu1 %10969 }
 0x2f1   : > { %v14288_v40 = vpop.permute.xlu0 %10934  ;;  %10072 = vmatpush3.bf16.msra.mxu0 %v11489_v36  ;;  %v10932_v36 = vunpack.i.h.bf16 %v14280_v33  ;;  %v10972_v53 = vunpack.i.h.bf16 %v14300_v21 }
 0x2f2   : > { %10073 = vmatprep.subr.bf16.mxu0 %v11490_v54  ;;  %v10937_v24 = vunpack.i.h.bf16 %v14288_v40  ;;  %v10936_v10 = vunpack.i.l.bf16 %v14288_v40 }
 0x2f4   : > { %v14325_v1 = vpop.permute.xlu1 %10974 }
 0x2f5   : > { %v14298_v41 = vpop.permute.xlu0 %10939  ;;  %10074 = vmatpush3.bf16.msra.mxu0 %v11491_v18  ;;  %v11500_v18 = vld [vmem:[%s14526_s3 + $0x78] sm:$0xff]   ;;  %v10976_v9 = vunpack.i.l.bf16 %v14325_v1 }
 0x2f6   : > { %v9909_v62 = vpop.f32.mrb[80].mxu0  ;;  %10075 = vmatprep.subr.bf16.mxu0 %v11492_v29  ;;  %v10942_v20 = vunpack.i.h.bf16 %v14298_v41  ;;  %v10941_v55 = vunpack.i.l.bf16 %v14298_v41  ;;  %v10931_v29 = vunpack.i.l.bf16 %v14280_v33  ;;  %v7744_v41 = vld [vmem:[#allocation2 + $0x140] ss:$2 sm:$0xff] }
 0x2f7   : > { %v9910_v60 = vpop.f32.mrb[81].mxu0 }
 0x2f8   : > { %v9911_v27 = vadd.f32 %v9910_v60, %v9909_v62  ;;  %v9912_v26 = vpop.f32.mrb[82].mxu0  ;;  %v14357_v50 = vpop.permute.xlu1 %10979  ;;  %v7746_v62 = vld [vmem:[#allocation2 + $0x150] ss:$2 sm:$0x1] }
 0x2f9   : > { %v14313_v56 = vpop.permute.xlu0 %10944  ;;  %v9913_v47 = vpop.f32.mrb[83].mxu0  ;;  %10076 = vmatpush3.bf16.msra.mxu0 %v11493_v3 }
 0x2fa   : > { %v5335_v39 = vadd.f32 %v9911_v27, %v14308_v49  ;;  %10077 = vmatprep.subr.bf16.mxu0 %v11494_v22  ;;  %v9914_v14 = vadd.f32 %v9913_v47, %v9912_v26  ;;  %v10947_v54 = vunpack.i.h.bf16 %v14313_v56  ;;  %v10946_v40 = vunpack.i.l.bf16 %v14313_v56 }
 0x2fb   : > { %v7902_v27 = vsel %vm460_vm1, %v7746_v62, %v10937_v24  ;;  %v7901_v56 = vsel %vm460_vm1, %v7744_v41, %v10936_v10  ;;  %v7897_v47 = vsel %vm5143_vm6, %v7895_v0, %v10926_v6  ;;  %v10977_v0 = vunpack.i.h.bf16 %v14325_v1 }
 0x2fc   : > { %v5341_v23 = vmax.f32 %v5335_v39, 0.0  ;;  %v5338_v48 = vadd.f32 %v9914_v14, %v14308_v49  ;;  %v7903_v26 = vsel %vm5132_vm3, %v7901_v56, %v10941_v55  ;;  %v7904_v33 = vsel %vm5132_vm3, %v7902_v27, %v10942_v20  ;;  %v11501_v39 = vld [vmem:[%s14526_s3 + $0x38] sm:$0xff]  }
 0x2fd   : > { %v14332_v16 = vpop.permute.xlu0 %10949  ;;  %10078 = vmatpush3.bf16.msra.mxu0 %v11495_v28  ;;  %v7898_v28 = vsel %vm5143_vm6, %v7896_v11, %v10927_v59  ;;  %v7905_v30 = vsel %vm5135_vm4, %v7903_v26, %v10946_v40  ;;  %v7906_v58 = vsel %vm5135_vm4, %v7904_v33, %v10947_v54  ;;  %v7899_v7 = vsel %vm5146_vm7, %v7897_v47, %v10931_v29  ;;  %v8127_v59 = vld [vmem:[#allocation2 + $0x150] ss:$2 sm:$0x1] }
 0x2fe   : > { %v9315_v32 = vpack.c.bf16 %v5341_v23, %v5341_v23  ;;  %10079 = vmatprep.subr.bf16.mxu0 %v11496_v46  ;;  %v5342_v52 = vmax.f32 %v5338_v48, 0.0  ;;  %v10952_v17 = vunpack.i.h.bf16 %v14332_v16  ;;  %v10951_v60 = vunpack.i.l.bf16 %v14332_v16  ;;  %v14396_v46 = vpop.permute.xlu1 %10984 }
 0x2ff   : > { %v7900_v19 = vsel %vm5146_vm7, %v7898_v28, %v10932_v36  ;;  %v10981_v11 = vunpack.i.l.bf16 %v14357_v50  ;;  %v10982_v20 = vunpack.i.h.bf16 %v14357_v50  ;;  %v10986_v55 = vunpack.i.l.bf16 %v14396_v46 }
 0x300   : > { %5352 = vst.msk [vmem:[%s14161_s10] sm:$0xf] %vm5351_vm11, %v9315_v32  ;;  %v9316_v57 = vpack.c.bf16 %v5342_v52, %v5342_v52  ;;  %v7907_v8 = vsel %vm263_vm0, %v7905_v30, %v10951_v60  ;;  %v7908_v13 = vsel %vm263_vm0, %v7906_v58, %v10952_v17  ;;  %v7915_v48 = vpack.c.bf16 %v7900_v19, %v7899_v7  ;;  %v8143_v17 = vld [vmem:[#allocation2 + $0x168] ss:$2 sm:$0xff] }
 0x301   : > { %v10955_v45 = vpop.permute.xlu0 %10954  ;;  %10080 = vmatpush3.bf16.msra.mxu0 %v11497_v34  ;;  %v8287_v6 = vsel %vm460_vm1, %v8127_v59, %v10972_v53  ;;  %v10987_v1 = vunpack.i.h.bf16 %v14396_v46  ;;  %v8145_v60 = vld [vmem:[#allocation2 + $0x178] ss:$2 sm:$0x1] }
 0x302   : > { %10081 = vmatprep.subr.bf16.mxu0 %v11498_v61  ;;  %v5357_v3 = vsel %vm14361_vm14, %v9316_v57, %v5356_v4  ;;  %v10957_v51 = vunpack.i.h.bf16 %v10955_v45  ;;  %v10956_v35 = vunpack.i.l.bf16 %v10955_v45  ;;  %v10990_v34 = vpop.permute.xlu1 %10989  ;;  %v10971_v61 = vunpack.i.l.bf16 %v14300_v21  ;;  %v8126_v45 = vld [vmem:[#allocation2 + $0x140] ss:$2 sm:$0xff] }
 0x303   : > { %5358 = vst [vmem:[%s14161_s10 + $0x4] sm:$0x1] %v5357_v3  ;;  %v8289_v29 = vsel %vm5132_vm3, %v8287_v6, %v10977_v0  ;;  %v10992_v50 = vunpack.i.h.bf16 %v10990_v34  ;;  %v10991_v62 = vunpack.i.l.bf16 %v10990_v34 }
 0x304   : > { %v7909_v5 = vsel %vm5140_vm5, %v7907_v8, %v10956_v35  ;;  %v7910_v23 = vsel %vm5140_vm5, %v7908_v13, %v10957_v51  ;;  %v8286_v24 = vsel %vm460_vm1, %v8126_v45, %v10971_v61  ;;  %v8291_v35 = vsel %vm5135_vm4, %v8289_v29, %v10982_v20 }
 0x305   : > { %v10960_v22 = vpop.permute.xlu0 %10959  ;;  %10082 = vmatpush3.bf16.msra.mxu0 %v11499_v63  ;;  %v8288_v36 = vsel %vm5132_vm3, %v8286_v24, %v10976_v9 }
 0x306   : > { %v10962_v12 = vunpack.i.h.bf16 %v10960_v22  ;;  %v10961_v2 = vunpack.i.l.bf16 %v10960_v22  ;;  %10083 = vmatprep.subr.bf16.mxu0 %v11500_v18  ;;  %v8290_v41 = vsel %vm5135_vm4, %v8288_v36, %v10981_v11 }
 0x307   : > { %v8292_v26 = vsel %vm263_vm0, %v8290_v41, %v10986_v55 }
 0x308   : > { %v7911_v42 = vsel %vm5143_vm6, %v7909_v5, %v10961_v2  ;;  %v7912_v43 = vsel %vm5143_vm6, %v7910_v23, %v10962_v12  ;;  %v8293_v2 = vsel %vm263_vm0, %v8291_v35, %v10987_v1  ;;  %v8294_v46 = vsel %vm5140_vm5, %v8292_v26, %v10991_v62 }
 0x309   : > { %v10965_v25 = vpop.permute.xlu0 %10964  ;;  %10084 = vmatpush3.bf16.msra.mxu0 %v11501_v39  ;;  %v8295_v8 = vsel %vm5140_vm5, %v8293_v2, %v10992_v50 }
 0x30a   : > { %v10967_v14 = vunpack.i.h.bf16 %v10965_v25  ;;  %v10966_v16 = vunpack.i.l.bf16 %v10965_v25  ;;  %v5751_v6 = vld [vmem:[%s14161_s10 + $0x4] sm:$0xf] }
 0x30c   : > { %v7913_v44 = vsel %vm5146_vm7, %v7911_v42, %v10966_v16  ;;  %v7914_v38 = vsel %vm5146_vm7, %v7912_v43, %v10967_v14 }
 0x30d   : > { %v7916_v32 = vpack.c.bf16 %v7914_v38, %v7913_v44 }
 0x30f   : > { %8084 = vmatprep.mubr.bf16.mxu1 %v7916_v32 }
 0x310   : > { %8085 = vmatmul.mubr.bf16.vlgmr.msra.gmra.mrb[92].mxu1 %v7915_v48  ;;  %v10995_v31 = vpop.permute.xlu1 %10994 }
 0x311   : > { %v11005_v37 = vpop.permute.xlu0 %11004  ;;  %v10997_v57 = vunpack.i.h.bf16 %v10995_v31  ;;  %v10996_v21 = vunpack.i.l.bf16 %v10995_v31 }
 0x312   : > { %v11007_v22 = vunpack.i.h.bf16 %v11005_v37  ;;  %v11006_v27 = vunpack.i.l.bf16 %v11005_v37 }
 0x313   : > { %v8301_v33 = vsel %vm460_vm1, %v8145_v60, %v10997_v57  ;;  %v8300_v12 = vsel %vm460_vm1, %v8143_v17, %v10996_v21  ;;  %vm14441_vm1 = vmand %vm5351_vm11, %vm4950_vm8  ;;  %vm6539_vm8 = vsmask.f32 7942 }
 0x314   : > { %v11000_v10 = vpop.permute.xlu1 %10999  ;;  %v8303_v5 = vsel %vm5132_vm3, %v8301_v33, %v11007_v22  ;;  %v8302_v23 = vsel %vm5132_vm3, %v8300_v12, %v11006_v27  ;;  %vm6131_vm3 = vcmask 1044484  }
 0x315   : > { %v14411_v52 = vpop.permute.xlu0 %11009  ;;  %v11001_v39 = vunpack.i.l.bf16 %v11000_v10  ;;  %v11002_v13 = vunpack.i.h.bf16 %v11000_v10 }
 0x316   : > { %v9931_v4 = vpop.f32.mrb[80].mxu1  ;;  %v11011_v25 = vunpack.i.l.bf16 %v14411_v52  ;;  %v11012_v19 = vunpack.i.h.bf16 %v14411_v52 }
 0x317   : > { %v9932_v63 = vpop.f32.mrb[81].mxu1  ;;  %v8296_v44 = vsel %vm5143_vm6, %v8294_v46, %v11001_v39  ;;  %v8297_v31 = vsel %vm5143_vm6, %v8295_v8, %v11002_v13  ;;  %v6143_v8 = vld [vmem:[%s14161_s10 + $0xc] sm:$0x3] }
 0x318   : > { %v9933_v54 = vadd.f32 %v9932_v63, %v9931_v4  ;;  %v9934_v18 = vpop.f32.mrb[82].mxu1  ;;  %v11035_v28 = vpop.permute.xlu1 %11034  ;;  %v8304_v37 = vsel %vm5135_vm4, %v8302_v23, %v11011_v25  ;;  %v8305_v24 = vsel %vm5135_vm4, %v8303_v5, %v11012_v19  ;;  %vm6139_vm4 = vcmask 257025  }
 0x319   : > { %v11015_v40 = vpop.permute.xlu0 %11014  ;;  %v9935_v3 = vpop.f32.mrb[83].mxu1  ;;  %v11037_v7 = vunpack.i.h.bf16 %v11035_v28  ;;  %v11036_v42 = vunpack.i.l.bf16 %v11035_v28 }
 0x31a   : > { %v5719_v56 = vadd.f32 %v9933_v54, %v14308_v49  ;;  %v9936_v51 = vadd.f32 %v9935_v3, %v9934_v18  ;;  %v11016_v43 = vunpack.i.l.bf16 %v11015_v40  ;;  %v11017_v32 = vunpack.i.h.bf16 %v11015_v40 }
 0x31b   : > { %v8298_v10 = vsel %vm5146_vm7, %v8296_v44, %v11036_v42  ;;  %v8299_v4 = vsel %vm5146_vm7, %v8297_v31, %v11037_v7 }
 0x31c   : > { %v5725_v47 = vmax.f32 %v5719_v56, 0.0  ;;  %v5722_v30 = vadd.f32 %v9936_v51, %v14308_v49  ;;  %v8306_v59 = vsel %vm263_vm0, %v8304_v37, %v11016_v43  ;;  %v8307_v57 = vsel %vm263_vm0, %v8305_v24, %v11017_v32 }
 0x31d   : > { %v11020_v58 = vpop.permute.xlu0 %11019  ;;  %v8314_v60 = vpack.c.bf16 %v8299_v4, %v8298_v10  ;;  %vm6130_vm0 = vcmask 1040384  }
 0x31e   : > { %v9317_v14 = vpack.c.bf16 %v5725_v47, %v5725_v47  ;;  %v5726_v16 = vmax.f32 %v5722_v30, 0.0  ;;  %v11022_v61 = vunpack.i.h.bf16 %v11020_v58  ;;  %v11021_v53 = vunpack.i.l.bf16 %v11020_v58 }
 0x320   : > { %v5736_v38 = vshrl.u32 %v9317_v14, 16  ;;  %v9318_v48 = vpack.c.bf16 %v5726_v16, %v5726_v16  ;;  %v5739_v45 = vshll.u32 %v9317_v14, 16  ;;  %v8308_v36 = vsel %vm5140_vm5, %v8306_v59, %v11021_v53 }
 0x321   : > { %v11025_v34 = vpop.permute.xlu0 %11024  ;;  %v8309_v1 = vsel %vm5140_vm5, %v8307_v57, %v11022_v61  ;;  %vm6141_vm5 = vsmask.f32 1280 }
 0x322   : > { %v5738_v9 = vrot.slane %v5736_v38, 7  ;;  %v11027_v0 = vunpack.i.h.bf16 %v11025_v34  ;;  %v11026_v11 = vunpack.i.l.bf16 %v11025_v34  ;;  %v5744_v21 = vshll.u32 %v9318_v48, 16  ;;  %vm6521_vm13 = vmor %vm6141_vm5, %vm6520_vm10 }
 0x323   : > { %vm7711_vm10 = vcmask 1042432  }
 0x324   : > { %v5741_v20 = vor.u32 %v5739_v45, %v5738_v9  ;;  %v5742_v55 = vrot.slane %v5738_v9, 4  ;;  %v8310_v41 = vsel %vm5143_vm6, %v8308_v36, %v11026_v11  ;;  %v8311_v50 = vsel %vm5143_vm6, %v8309_v1, %v11027_v0  ;;  %vm6132_vm6 = vmor %vm6130_vm0, %vm6131_vm3 }
 0x325   : > { %v11030_v63 = vpop.permute.xlu0 %11029  ;;  %vm6932_vm0 = vsmask.f32 2304 }
 0x326   : > { %v11032_v54 = vunpack.i.h.bf16 %v11030_v63  ;;  %v11031_v40 = vunpack.i.l.bf16 %v11030_v63  ;;  %v5752_v18 = vsel %vm14441_vm1, %v5741_v20, %v5751_v6  ;;  %v5746_v29 = vsel %vm5734_vm2, %v5742_v55, %v5744_v21 }
 0x327   : > { %5753 = vst [vmem:[%s14161_s10 + $0x4] sm:$0xf] %v5752_v18  ;;  %5755 = vst.msk [vmem:[%s14161_s10 + $0x8] sm:$0x1] %vm5353_vm12, %v5746_v29  ;;  %vm6921_vm1 = vcmask 1045508   ;;  %vm6929_vm2 = vcmask 257026  }
 0x328   : > { %v8312_v62 = vsel %vm5146_vm7, %v8310_v41, %v11031_v40  ;;  %v8313_v3 = vsel %vm5146_vm7, %v8311_v50, %v11032_v54  ;;  %vm6142_vm7 = vmand %vm4949_vm9, %vm6141_vm5  ;;  %v6934_v41 = vld [vmem:[%s14161_s10 + $0x14] sm:$0x7]  ;;  %vm7330_vm5 = vsmask.f32 7946 }
 0x329   : > { %v8315_v17 = vpack.c.bf16 %v8313_v3, %v8312_v62  ;;  %vm6540_vm12 = vmand %vm6139_vm4, %vm6539_vm8 }
 0x32a   : > { %vm6922_vm3 = vmor %vm6920_vm15, %vm6921_vm1  ;;  %vm7722_vm15 = vsmask.f32 3328 }
 0x32b   : > { %8483 = vmatprep.mubr.bf16.mxu0 %v8315_v17 }
 0x32c   : > { %8484 = vmatmul.mubr.bf16.vlgmr.msra.gmra.mrb[96].mxu0 %v8314_v60 }
 0x33f   : > { %v9953_v22 = vpop.f32.mrb[84].mxu0 }
 0x340   : > { %v9954_v27 = vpop.f32.mrb[85].mxu0 }
 0x341   : > { %v9955_v56 = vadd.f32 %v9954_v27, %v9953_v22  ;;  %v9956_v51 = vpop.f32.mrb[86].mxu0 }
 0x342   : > { %v9957_v35 = vpop.f32.mrb[87].mxu0 }
 0x343   : > { %v6116_v26 = vadd.f32 %v9955_v56, %v14308_v49  ;;  %v9958_v33 = vadd.f32 %v9957_v35, %v9956_v51 }
 0x345   : > { %v6122_v12 = vmax.f32 %v6116_v26, 0.0  ;;  %v6119_v2 = vadd.f32 %v9958_v33, %v14308_v49 }
 0x347   : > { %v9319_v39 = vpack.c.bf16 %v6122_v12, %v6122_v12  ;;  %v6123_v47 = vmax.f32 %v6119_v2, 0.0 }
 0x349   : > { %v6133_v28 = vrot.slane %v9319_v39, 7  ;;  %v9320_v30 = vpack.c.bf16 %v6123_v47, %v6123_v47 }
 0x34b   : > { %v6134_v58 = vrot.slane %v6133_v28, 4  ;;  %6140 = vst.msk [vmem:[%s14161_s10 + $0x8] sm:$0xe] %vm6139_vm4, %v6133_v28  ;;  %v6135_v46 = vrot.slane %v9320_v30, 7 }
 0x34d   : > { %v6136_v13 = vsel %vm6132_vm6, %v6134_v58, %v6135_v46  ;;  %vm7311_vm6 = vsmask.f32 6416 }
 0x34e   : > { %v6144_v25 = vsel %vm6142_vm7, %v6136_v13, %v6143_v8  ;;  %vm7331_vm7 = vmand %vm6929_vm2, %vm7330_vm5 }
 0x34f   : > { %6145 = vst [vmem:[%s14161_s10 + $0xc] sm:$0x3] %v6144_v25  ;;  %vm7312_vm8 = vmor %vm6932_vm0, %vm7311_vm6 }
 0x356   : > { %v6541_v45 = vld [vmem:[%s14161_s10 + $0xc] sm:$0xe] }
 0x363   : > { %v9975_v5 = vpop.f32.mrb[84].mxu1 }
 0x364   : > { %v9976_v23 = vpop.f32.mrb[85].mxu1 }
 0x365   : > { %v9977_v14 = vadd.f32 %v9976_v23, %v9975_v5  ;;  %v9978_v16 = vpop.f32.mrb[86].mxu1 }
 0x366   : > { %v9979_v19 = vpop.f32.mrb[87].mxu1 }
 0x367   : > { %v6506_v7 = vadd.f32 %v9977_v14, %v14308_v49  ;;  %v9980_v42 = vadd.f32 %v9979_v19, %v9978_v16 }
 0x369   : > { %v6512_v43 = vmax.f32 %v6506_v7, 0.0  ;;  %v6509_v44 = vadd.f32 %v9980_v42, %v14308_v49 }
 0x36b   : > { %v9321_v38 = vpack.c.bf16 %v6512_v43, %v6512_v43  ;;  %v6513_v32 = vmax.f32 %v6509_v44, 0.0 }
 0x36d   : > { %v6523_v48 = vshrl.u32 %v9321_v38, 16  ;;  %v6526_v34 = vshll.u32 %v9321_v38, 16  ;;  %v9322_v31 = vpack.c.bf16 %v6513_v32, %v6513_v32 }
 0x36f   : > { %v6525_v37 = vrot.slane %v6523_v48, 6  ;;  %v6528_v61 = vrot.slane %v6526_v34, 7  ;;  %v6532_v53 = vshll.u32 %v9322_v31, 16 }
 0x371   : > { %v6529_v9 = vor.u32 %v6528_v61, %v6525_v37  ;;  %v6534_v11 = vrot.slane %v6532_v53, 7 }
 0x373   : > { %v6530_v52 = vrot.slane %v6529_v9, 4  ;;  %v6542_v0 = vsel %vm6540_vm12, %v6529_v9, %v6541_v45  ;;  %vm7712_vm12 = vcmask 1046532   ;;  %v7724_v9 = vld [vmem:[%s14161_s10 + $0x1c] sm:$0xf] }
 0x374   : > { %6543 = vst [vmem:[%s14161_s10 + $0xc] sm:$0xe] %v6542_v0  ;;  %vm7713_vm1 = vmor %vm7711_vm10, %vm7712_vm12 }
 0x375   : > { %v6535_v24 = vsel %vm6521_vm13, %v6530_v52, %v6534_v11  ;;  %vm7720_vm13 = vcmask 257027  }
 0x376   : > { %6545 = vst.msk [vmem:[%s14161_s10 + $0x10] sm:$0x3] %vm4949_vm9, %v6535_v24  ;;  %vm6931_vm9 = vcmask 256000  }
 0x377   : > { %vm6933_vm4 = vmand %vm6931_vm9, %vm6932_vm0 }
 0x37f   : > { %v9997_v10 = vpop.f32.mrb[88].mxu0 }
 0x380   : > { %v9998_v4 = vpop.f32.mrb[89].mxu0 }
 0x381   : > { %v9999_v59 = vadd.f32 %v9998_v4, %v9997_v10  ;;  %v10000_v20 = vpop.f32.mrb[90].mxu0 }
 0x382   : > { %v10001_v55 = vpop.f32.mrb[91].mxu0 }
 0x383   : > { %v6906_v57 = vadd.f32 %v9999_v59, %v14308_v49  ;;  %v10002_v21 = vadd.f32 %v10001_v55, %v10000_v20 }
 0x385   : > { %v6912_v63 = vmax.f32 %v6906_v57, 0.0  ;;  %v6909_v6 = vadd.f32 %v10002_v21, %v14308_v49 }
 0x387   : > { %v9323_v36 = vpack.c.bf16 %v6912_v63, %v6912_v63  ;;  %v6913_v1 = vmax.f32 %v6909_v6, 0.0 }
 0x389   : > { %v6923_v54 = vrot.slane %v9323_v36, 6  ;;  %v9324_v40 = vpack.c.bf16 %v6913_v1, %v6913_v1 }
 0x38b   : > { %v6924_v18 = vrot.slane %v6923_v54, 4  ;;  %6930 = vst.msk [vmem:[%s14161_s10 + $0x10] sm:$0xc] %vm6929_vm2, %v6923_v54  ;;  %v6925_v29 = vrot.slane %v9324_v40, 6  ;;  %vm7723_vm2 = vmand %vm5351_vm11, %vm7722_vm15 }
 0x38d   : > { %v6926_v50 = vsel %vm6922_vm3, %v6924_v18, %v6925_v29  ;;  %vm8101_vm3 = vsmask.f32 7440 }
 0x38e   : > { %v6935_v62 = vsel %vm6933_vm4, %v6926_v50, %v6934_v41  ;;  %vm8102_vm4 = vmor %vm7722_vm15, %vm8101_vm3 }
 0x38f   : > { %6936 = vst [vmem:[%s14161_s10 + $0x14] sm:$0x7] %v6935_v62 }
 0x396   : > { %v7332_v8 = vld [vmem:[%s14161_s10 + $0x14] sm:$0xc] }
 0x3a3   : > { %v10019_v3 = vpop.f32.mrb[88].mxu1 }
 0x3a4   : > { %v10020_v17 = vpop.f32.mrb[89].mxu1 }
 0x3a5   : > { %v10021_v60 = vadd.f32 %v10020_v17, %v10019_v3  ;;  %v10022_v22 = vpop.f32.mrb[90].mxu1 }
 0x3a6   : > { %v10023_v27 = vpop.f32.mrb[91].mxu1 }
 0x3a7   : > { %v7297_v56 = vadd.f32 %v10021_v60, %v14308_v49  ;;  %v10024_v51 = vadd.f32 %v10023_v27, %v10022_v22 }
 0x3a9   : > { %v7303_v35 = vmax.f32 %v7297_v56, 0.0  ;;  %v7300_v26 = vadd.f32 %v10024_v51, %v14308_v49 }
 0x3ab   : > { %v9325_v33 = vpack.c.bf16 %v7303_v35, %v7303_v35  ;;  %v7304_v12 = vmax.f32 %v7300_v26, 0.0 }
 0x3ad   : > { %v7314_v2 = vshrl.u32 %v9325_v33, 16  ;;  %v7317_v39 = vshll.u32 %v9325_v33, 16  ;;  %v9326_v47 = vpack.c.bf16 %v7304_v12, %v7304_v12 }
 0x3af   : > { %v7316_v28 = vrot.slane %v7314_v2, 5  ;;  %v7319_v30 = vrot.slane %v7317_v39, 6  ;;  %v7323_v58 = vshll.u32 %v9326_v47, 16  ;;  %v8503_v47 = vld [vmem:[%s14161_s10 + $0x28] sm:$0x1] }
 0x3b1   : > { %v7320_v46 = vor.u32 %v7319_v30, %v7316_v28  ;;  %v7325_v5 = vrot.slane %v7323_v58, 6 }
 0x3b3   : > { %v7321_v13 = vrot.slane %v7320_v46, 4  ;;  %v7333_v25 = vsel %vm7331_vm7, %v7320_v46, %v7332_v8 }
 0x3b4   : > { %7334 = vst [vmem:[%s14161_s10 + $0x14] sm:$0xc] %v7333_v25 }
 0x3b5   : > { %v7326_v23 = vsel %vm7312_vm8, %v7321_v13, %v7325_v5 }
 0x3b6   : > { %7336 = vst.msk [vmem:[%s14161_s10 + $0x18] sm:$0x7] %vm6931_vm9, %v7326_v23  ;;  %vm8120_vm9 = vsmask.f32 7950 }
 0x3b7   : > { %vm8121_vm0 = vmand %vm7720_vm13, %vm8120_vm9 }
 0x3bf   : > { %v10041_v14 = vpop.f32.mrb[92].mxu0 }
 0x3c0   : > { %v10042_v16 = vpop.f32.mrb[93].mxu0 }
 0x3c1   : > { %v10043_v19 = vadd.f32 %v10042_v16, %v10041_v14  ;;  %v10044_v7 = vpop.f32.mrb[94].mxu0 }
 0x3c2   : > { %v10045_v42 = vpop.f32.mrb[95].mxu0 }
 0x3c3   : > { %v7697_v43 = vadd.f32 %v10043_v19, %v14308_v49  ;;  %v10046_v44 = vadd.f32 %v10045_v42, %v10044_v7 }
 0x3c5   : > { %v7703_v38 = vmax.f32 %v7697_v43, 0.0  ;;  %v7700_v32 = vadd.f32 %v10046_v44, %v14308_v49 }
 0x3c7   : > { %v9327_v48 = vpack.c.bf16 %v7703_v38, %v7703_v38  ;;  %v7704_v34 = vmax.f32 %v7700_v32, 0.0 }
 0x3c9   : > { %v7714_v31 = vrot.slane %v9327_v48, 5  ;;  %v9328_v37 = vpack.c.bf16 %v7704_v34, %v7704_v34 }
 0x3cb   : > { %v7715_v61 = vrot.slane %v7714_v31, 4  ;;  %7721 = vst.msk [vmem:[%s14161_s10 + $0x18] sm:$0x8] %vm7720_vm13, %v7714_v31  ;;  %v7716_v53 = vrot.slane %v9328_v37, 5 }
 0x3cd   : > { %v7717_v45 = vsel %vm7713_vm1, %v7715_v61, %v7716_v53 }
 0x3ce   : > { %v7725_v52 = vsel %vm7723_vm2, %v7717_v45, %v7724_v9 }
 0x3cf   : > { %7726 = vst [vmem:[%s14161_s10 + $0x1c] sm:$0xf] %v7725_v52 }
 0x3d6   : > { %v8122_v29 = vld [vmem:[%s14161_s10 + $0x1c] sm:$0x8] }
 0x3e3   : > { %v10063_v0 = vpop.f32.mrb[92].mxu1 }
 0x3e4   : > { %v10064_v11 = vpop.f32.mrb[93].mxu1 }
 0x3e5   : > { %v10065_v24 = vadd.f32 %v10064_v11, %v10063_v0  ;;  %v10066_v10 = vpop.f32.mrb[94].mxu1 }
 0x3e6   : > { %v10067_v4 = vpop.f32.mrb[95].mxu1 }
 0x3e7   : > { %v8087_v59 = vadd.f32 %v10065_v24, %v14308_v49  ;;  %v10068_v20 = vadd.f32 %v10067_v4, %v10066_v10 }
 0x3e9   : > { %v8093_v55 = vmax.f32 %v8087_v59, 0.0  ;;  %v8090_v57 = vadd.f32 %v10068_v20, %v14308_v49 }
 0x3eb   : > { %v9329_v21 = vpack.c.bf16 %v8093_v55, %v8093_v55  ;;  %v8094_v63 = vmax.f32 %v8090_v57, 0.0 }
 0x3ed   : > { %v8104_v6 = vshll.u32 %v9329_v21, 16  ;;  %v8107_v36 = vshrl.u32 %v9329_v21, 16  ;;  %v9330_v1 = vpack.c.bf16 %v8094_v63, %v8094_v63 }
 0x3ef   : > { %v8106_v54 = vrot.slane %v8104_v6, 5  ;;  %v8109_v40 = vrot.slane %v8107_v36, 4  ;;  %v8113_v18 = vshll.u32 %v9330_v1, 16 }
 0x3f1   : > { %v8110_v41 = vor.u32 %v8109_v40, %v8106_v54  ;;  %v8123_v50 = vsel %vm8121_vm0, %v8106_v54, %v8122_v29  ;;  %v8115_v3 = vrot.slane %v8113_v18, 5 }
 0x3f2   : > { %8124 = vst [vmem:[%s14161_s10 + $0x1c] sm:$0x8] %v8123_v50 }
 0x3f3   : > { %v8111_v62 = vrot.slane %v8110_v41, 4 }
 0x3f5   : > { %v8116_v17 = vsel %vm8102_vm4, %v8111_v62, %v8115_v3 }
 0x3f6   : > { %8125 = vst.msk [vmem:[%s14161_s10 + $0x20] sm:$0xf] %vm5351_vm11, %v8116_v17 }
 0x3ff   : > { %v10085_v60 = vpop.f32.mrb[96].mxu0 }
 0x400   : > { %v10086_v22 = vpop.f32.mrb[97].mxu0 }
 0x401   : > { %v10087_v27 = vadd.f32 %v10086_v22, %v10085_v60  ;;  %v10088_v56 = vpop.f32.mrb[98].mxu0 }
 0x402   : > { %v10089_v51 = vpop.f32.mrb[99].mxu0 }
 0x403   : > { %v8486_v35 = vadd.f32 %v10087_v27, %v14308_v49  ;;  %v10090_v26 = vadd.f32 %v10089_v51, %v10088_v56 }
 0x405   : > { %v8492_v33 = vmax.f32 %v8486_v35, 0.0  ;;  %v8489_v12 = vadd.f32 %v10090_v26, %v14308_v49 }
 0x407   : > { %v9331_v2 = vpack.c.bf16 %v8492_v33, %v8492_v33  ;;  %v8493_v39 = vmax.f32 %v8489_v12, 0.0 }
 0x409   : > { %8502 = vst.msk [vmem:[%s14161_s10 + $0x24] sm:$0xf] %vm5351_vm11, %v9331_v2  ;;  %v9332_v28 = vpack.c.bf16 %v8493_v39, %v8493_v39 }
 0x40b   : > { %v8504_v30 = vsel %vm14361_vm14, %v9332_v28, %v8503_v47 }
 0x40c   : > { %8505 = vst [vmem:[%s14161_s10 + $0x28] sm:$0x1] %v8504_v30 }
 0x40d PF: > { %s15_s18 = sadd.s32 1, %s11511_s18  }
 0x40e   : > { %p12_p4 = scmp.ge.s32.totalorder %s15_s18, 4  }
 0x410   :  { %14 = sbr.rel (!%p12_p4) target bundleno = 1 (0x1), region = 249 }

</bundles_post_ra>
